<compile_context>
chip_gen: v7x
topology: tpu7x:2x2x1
jax: 0.10.0
libtpu: 0.0.40
codegen_flags: <defaults>
</compile_context>

<pallas_src>
import functools

import jax
import jax.numpy as jnp
from jax import lax
from jax.experimental import pallas as pl
from jax.experimental.pallas import tpu as pltpu


# ----------------------------------------------------------------------------
# Fused kernel: conv1 + PS(2) + lrelu + conv2 + PS(2) + lrelu, one row tile.
# ----------------------------------------------------------------------------
def _upscale_fused_kernel(x_ref, w1_ref, w2q0_ref, w2q1_ref, o_ref,
                          col_ref, y1p_ref, *, TH, W, C, alpha):
    # x_ref  : (1, TH+4, W+2, C)  bf16  input rows [r*TH-2, r*TH+TH+2), zero-padded
    # w1_ref : (9C, 4C)           bf16  conv1, rows (dh, dw, ci), cols (i, j, c)
    # w2q*_ref:(9C, 4C)           bf16  conv2, rows reordered per q (see _pack_w2)
    # o_ref  : (1, 4, TH*W, 4C)   bf16  axis1 = p*2+q (conv2 output parity class)
    # col_ref: ((TH+2)*W, 9C)     bf16  shared im2col slab
    # y1p_ref: (32+(TH+2)*W, 4C)  bf16  conv1 activations (+16 guard rows each side)
    f32, bf16 = jnp.float32, jnp.bfloat16
    M1 = (TH + 2) * W          # conv1 rows this tile (1-row halo each side)
    M = TH * W                 # conv2 rows per parity class
    PAD = 16                   # sublane-aligned guard rows in y1p

    def lrelu(v):              # alpha < 1  =>  max(v, alpha*v) == LeakyReLU
        return jnp.maximum(v, alpha * v)

    # ---------- conv1: im2col (rows ordered (dh, dw, ci)) + one K=9C matmul --
    for dh in range(3):
        for dw in range(3):
            g = dh * 3 + dw
            col_ref[:, g * C:(g + 1) * C] = (
                x_ref[0, dh:dh + TH + 2, dw:dw + W, :].reshape(M1, C))
    y1 = lrelu(jnp.dot(col_ref[...], w1_ref[...],
                       preferred_element_type=f32)).astype(bf16)
    # y1[a1*W + b, (i*2+j)*C + c] = intermediate Z[2*(r*TH-1+a1)+i, 2b+j, c]
    y1p_ref[PAD:PAD + M1, :] = y1
    # guard rows touched by the +-1 column-shifted reads below (their values
    # are edge-masked anyway; zeroing keeps them deterministic)
    y1p_ref[PAD - 1:PAD, :] = jnp.zeros((1, 4 * C), bf16)
    y1p_ref[PAD + M1:PAD + M1 + 1, :] = jnp.zeros((1, 4 * C), bf16)

    r = pl.program_id(1)
    # conv2's zero padding at the image top/bottom: the phantom conv1 row
    # (block row 0 on the first tile / block row TH+1 on the last tile) feeds
    # intermediate rows -1 / 2H, which torch's conv2 padding sees as zeros.
    @pl.when(r == 0)
    def _():
        y1p_ref[PAD:PAD + W, 2 * C:4 * C] = jnp.zeros((W, 2 * C), bf16)

    @pl.when(r == pl.num_programs(1) - 1)
    def _():
        y1p_ref[PAD + (TH + 1) * W:PAD + M1, 0:2 * C] = (
            jnp.zeros((W, 2 * C), bf16))

    # column-edge masks for the +-1 column-shifted taps (conv2's left/right
    # zero padding on the 2W-wide intermediate)
    bpos = lax.broadcasted_iota(jnp.int32, (M, 1), 0) % W
    left_edge = bpos == 0              # b' == 0     (tap reads col -1)
    right_edge = bpos == W - 1         # b' == W-1   (tap reads col 2W)
    zero = jnp.zeros((), bf16)

    # ---------- conv2 (+ lrelu + PixelShuffle #2), one parity class (p,q) ----
    # Output pixel (4a+2p+i2, 4b+2q+j2).  Tap (dh, dw) reads the intermediate
    # at row 2(a+s)+ip (u=p+dh-1=2s+ip) and col 2(b+t)+jp (v=q+dw-1=2t+jp),
    # i.e. y1 row (a+1+s)*W + (b+t), plane column (ip*2+jp)*C.  For each dh the
    # two t==0 taps form one contiguous 128-lane block of y1 (shared by both q).
    for p in range(2):
        # shift-0 taps: three 128-lane contiguous copies, shared by q=0 and q=1
        for dh in range(3):
            u = p + dh - 1
            ip, s = u % 2, u // 2
            base = PAD + (1 + s) * W
            col_ref[0:M, dh * 2 * C:(dh + 1) * 2 * C] = (
                y1p_ref[base:base + M, ip * 2 * C:(ip + 1) * 2 * C])
        for q in range(2):
            w2_ref = w2q0_ref if q == 0 else w2q1_ref
            t = -1 if q == 0 else 1        # column shift of the remaining tap
            jp = 1 if q == 0 else 0
            edge = left_edge if q == 0 else right_edge
            for dh in range(3):
                u = p + dh - 1
                ip, s = u % 2, u // 2
                base = PAD + (1 + s) * W + t
                vals = y1p_ref[base:base + M,
                               (ip * 2 + jp) * C:(ip * 2 + jp + 1) * C]
                col_ref[0:M, 6 * C + dh * C:6 * C + (dh + 1) * C] = (
                    jnp.where(edge, zero, vals))
            acc = jnp.dot(col_ref[0:M, :], w2_ref[...],
                          preferred_element_type=f32)
            # columns of acc are (i2, j2, c): PixelShuffle #2 is this grouping
            o_ref[0, p * 2 + q, :, :] = lrelu(acc).astype(o_ref.dtype)


# ----------------------------------------------------------------------------
# One-time wrapper-side weight packing (PixelShuffle folded into the columns).
# PyTorch PixelShuffle(2) reads conv output channel o = c*4 + i*2 + j.
# ----------------------------------------------------------------------------
def _pack_w1(w_oihw, C):
    w = jnp.transpose(w_oihw, (2, 3, 1, 0))            # (kh, kw, ci, 4C)
    w = w.reshape(3, 3, C, C, 2, 2)                    # (dh, dw, ci, c, i, j)
    w = w.transpose(0, 1, 2, 4, 5, 3)                  # (dh, dw, ci, i, j, c)
    return w.reshape(9 * C, 4 * C).astype(jnp.bfloat16)


def _pack_w2(w_oihw, C, q):
    # Row order matches the kernel's per-class im2col layout:
    #   [0,6C): (dh, which, ci)  -- the two column-shift-0 taps per dh
    #   [6C,9C): (dh, ci)        -- the single +-1 column-shifted tap per dh
    w = jnp.transpose(w_oihw, (2, 3, 1, 0)).reshape(3, 3, C, C, 2, 2)
    w = w.transpose(0, 1, 2, 4, 5, 3).reshape(3, 3, C, 4 * C)  # (dh, dw, ci, col)
    pair_dws = (1 - q, 2 - q)              # taps with column shift t == 0
    shift_dw = 0 if q == 0 else 2          # the +-1 column-shifted tap
    pair = jnp.stack([w[:, pair_dws[0]], w[:, pair_dws[1]]], axis=1)
    pair = pair.reshape(6 * C, 4 * C)
    shift = w[:, shift_dw].reshape(3 * C, 4 * C)
    return jnp.concatenate([pair, shift], axis=0).astype(jnp.bfloat16)


def _pick_row_tile(H, W):
    # Largest divisor of H keeping M = TH*W modest (<= 2048) and, when
    # possible, a multiple of 256/128 for MXU row utilization (v5e/v6e).
    divs = [d for d in range(1, H + 1) if H % d == 0]
    ok = [d for d in divs if d == H or (d * W) % 8 == 0]
    fit = [d for d in ok if d * W <= 2048] or [min(ok)]
    for align in (256, 128):
        al = [d for d in fit if (d * W) % align == 0]
        if al:
            return max(al)
    return max(fit)


def _vmem_bytes_estimate(th, W, C):
    M, M1 = th * W, (th + 2) * W
    in_blk = (th + 4) * (W + 2) * C * 2
    w_blk = 3 * (9 * C) * (4 * C) * 2
    out_blk = 4 * M * (4 * C) * 2
    scratch = M1 * 9 * C * 2 + (M1 + 32) * 4 * C * 2
    temps = 8 * M * 4 * C                      # f32 accumulators / relayouts
    return 2 * (in_blk + w_blk + out_blk) + scratch + temps


# ----------------------------------------------------------------------------
# UpscaleNetwork forward (upscale_factor=4).  NCHW in / NCHW out.
# ----------------------------------------------------------------------------
def upscale_network_forward(x_nchw, w1_oihw, w2_oihw, *, alpha=0.2, th=None,
                            out_dtype=jnp.float32):
    N, C, H, W = x_nchw.shape
    th = _pick_row_tile(H, W) if th is None else th
    assert H % th == 0, (H, th)
    nt = H // th
    assert nt == 1 or (th * W) % 8 == 0, (th, W)

    w1 = _pack_w1(w1_oihw, C)
    w2q0 = _pack_w2(w2_oihw, C, 0)
    w2q1 = _pack_w2(w2_oihw, C, 1)

    # NHWC bf16; zero-pad 1 col (conv1 halo) and 2 rows (conv1+conv2 halo
    # across row tiles) each side, then bake the overlapping 2-row halo into
    # per-tile blocks (input is ~1/16 of the output traffic).
    x = jnp.transpose(x_nchw, (0, 2, 3, 1)).astype(jnp.bfloat16)
    xp = jnp.pad(x, ((0, 0), (2, 2), (1, 1), (0, 0)))
    rows = jnp.arange(nt)[:, None] * th + jnp.arange(th + 4)[None, :]
    x_tiles = xp[:, rows].reshape(N * nt, th + 4, W + 2, C)

    M, M1 = th * W, (th + 2) * W
    kernel = functools.partial(_upscale_fused_kernel,
                               TH=th, W=W, C=C, alpha=alpha)

    est = _vmem_bytes_estimate(th, W, C)
    vmem_limit = min(max(int(1.5 * est) + (8 << 20), 32 << 20), 64 << 20)
    flops = 2 * (9 * C) * (4 * C) * (M1 + 4 * M) * N * nt
    bytes_accessed = (x_tiles.size * 2 + 3 * (9 * C) * (4 * C) * 2
                      + N * 4 * H * W * 4 * C * 2)

    out = pl.pallas_call(
        kernel,
        out_shape=jax.ShapeDtypeStruct((N, 4, H * W, 4 * C), jnp.bfloat16),
        grid_spec=pltpu.PrefetchScalarGridSpec(
            num_scalar_prefetch=0,
            grid=(N, nt),
            in_specs=[
                pl.BlockSpec((1, th + 4, W + 2, C),
                             lambda n, r: (n * nt + r, 0, 0, 0)),
                pl.BlockSpec((9 * C, 4 * C), lambda n, r: (0, 0)),
                pl.BlockSpec((9 * C, 4 * C), lambda n, r: (0, 0)),
                pl.BlockSpec((9 * C, 4 * C), lambda n, r: (0, 0)),
            ],
            out_specs=pl.BlockSpec((1, 4, M, 4 * C), lambda n, r: (n, 0, r, 0)),
            scratch_shapes=[
                pltpu.VMEM((M1, 9 * C), jnp.bfloat16),       # shared im2col slab
                pltpu.VMEM((M1 + 32, 4 * C), jnp.bfloat16),  # conv1 activations
            ],
        ),
        compiler_params=pltpu.CompilerParams(
            dimension_semantics=("parallel", "parallel"),
            vmem_limit_bytes=vmem_limit),
        cost_estimate=pl.CostEstimate(flops=flops, transcendentals=0,
                                      bytes_accessed=bytes_accessed),
    )(x_tiles, w1, w2q0, w2q1)

    # (n, p*2+q, a*W+b, (i2,j2,c)) -> NCHW (n, c, 4a+2p+i2, 4b+2q+j2).
    # Runs on bf16 (half the old f32 traffic); the out_dtype cast fuses in.
    # TODO(synk): a consumer that accepts the kernel's native layout can skip
    # this transpose pass entirely.
    out = out.reshape(N, 2, 2, H, W, 2, 2, C)        # n p q a b i2 j2 c
    out = out.transpose(0, 7, 3, 1, 5, 4, 2, 6)      # n c a p i2 b q j2
    return out.reshape(N, C, 4 * H, 4 * W).astype(out_dtype)


# ----------------------------------------------------------------------------
# Pure-JAX references (exact torch op order: conv -> PixelShuffle -> LeakyReLU).
# ----------------------------------------------------------------------------
def _conv_nchw(x, w):
    return lax.conv_general_dilated(
        x, w, window_strides=(1, 1), padding=((1, 1), (1, 1)),
        dimension_numbers=("NCHW", "OIHW", "NCHW"))


def _pixel_shuffle_nchw(x, r):
    N, Crr, H, W = x.shape
    c = Crr // (r * r)
    x = x.reshape(N, c, r, r, H, W)
    x = x.transpose(0, 1, 4, 2, 5, 3)
    return x.reshape(N, c, H * r, W * r)


def _lrelu(x, alpha=0.2):
    return jnp.where(x >= 0, x, alpha * x)


def _ref_forward_f32(x, w1, w2):
    x = _lrelu(_pixel_shuffle_nchw(_conv_nchw(x, w1), 2))
    x = _lrelu(_pixel_shuffle_nchw(_conv_nchw(x, w2), 2))
    return x


def _ref_forward_bf16(x, w1, w2):
    """Same op order with the kernel's bf16 operand/activation rounding
    (f32 accumulate); only summation order differs from the Pallas kernel."""
    b = lambda a: a.astype(jnp.bfloat16).astype(jnp.float32)
    x = _lrelu(_pixel_shuffle_nchw(_conv_nchw(b(x), b(w1)), 2))
    x = _lrelu(_pixel_shuffle_nchw(_conv_nchw(b(x), b(w2)), 2))
    return b(x)


if __name__ == "__main__":
    C = 64                            # fixed by the module's Conv2d shapes
    key = jax.random.PRNGKey(0)
    configs = [
        # (N, H, W, row_tile)  -- second config exercises odd W and 3 row tiles
        (2, 16, 16, 8),
        (1, 12, 20, 4),
    ]
    for (N, H, W, th) in configs:
        kx, k1, k2, key = jax.random.split(key, 4)
        x = jax.random.normal(kx, (N, C, H, W), jnp.float32)
        w1 = 0.05 * jax.random.normal(k1, (4 * C, C, 3, 3), jnp.float32)
        w2 = 0.05 * jax.random.normal(k2, (4 * C, C, 3, 3), jnp.float32)

        fwd = jax.jit(functools.partial(upscale_network_forward, th=th))
        out = jax.block_until_ready(fwd(x, w1, w2))
        assert out.shape == (N, C, 4 * H, 4 * W), out.shape

        # bf16-matched reference: only accumulation order differs.
        ref_b = jax.block_until_ready(_ref_forward_bf16(x, w1, w2))
        max_err = float(jnp.max(jnp.abs(out - ref_b)))
        assert jnp.allclose(out, ref_b, atol=3e-2, rtol=3e-2), max_err

        # Full-f32 reference: loose check bounding the bf16 quantization error.
        ref_f = jax.block_until_ready(_ref_forward_f32(x, w1, w2))
        rel = float(jnp.linalg.norm((out - ref_f).ravel()) /
                    jnp.linalg.norm(ref_f.ravel()))
        assert rel < 5e-2, rel

    print("KERNEL_OK")
</pallas_src>

<mosaic_0001>
module attributes {stable_mosaic.version = 11 : i64} {
  func.func @_upscale_fused_kernel(%arg0: i32, %arg1: i32, %arg2: memref<1x12x18x64xbf16, #tpu.memory_space<vmem>>, %arg3: memref<576x256xbf16, #tpu.memory_space<vmem>>, %arg4: memref<576x256xbf16, #tpu.memory_space<vmem>>, %arg5: memref<576x256xbf16, #tpu.memory_space<vmem>>, %arg6: memref<1x4x128x256xbf16, #tpu.memory_space<vmem>>, %arg7: memref<160x576xbf16, #tpu.memory_space<vmem>>, %arg8: memref<192x256xbf16, #tpu.memory_space<vmem>>) attributes {dimension_semantics = [#tpu.dimension_semantics<parallel>, #tpu.dimension_semantics<parallel>], iteration_bounds = array<i64: 2, 2>, scalar_prefetch = 0 : i64, scratch_operands = 2 : i64, tpu.core_type = #tpu.core_type<tc>, window_params = [{transform_indices = @transform_0, window_bounds = array<i64: 1, 12, 18, 64>}, {pipeline_mode = #tpu.pipeline_mode<synchronous>, transform_indices = @transform_1, window_bounds = array<i64: 576, 256>}, {pipeline_mode = #tpu.pipeline_mode<synchronous>, transform_indices = @transform_2, window_bounds = array<i64: 576, 256>}, {pipeline_mode = #tpu.pipeline_mode<synchronous>, transform_indices = @transform_3, window_bounds = array<i64: 576, 256>}, {transform_indices = @transform_4, window_bounds = array<i64: 1, 4, 128, 256>}]} {
    %c0 = arith.constant 0 : index
    %c0_0 = arith.constant 0 : index
    %c0_1 = arith.constant 0 : index
    %c0_2 = arith.constant 0 : index
    %0 = vector.load %arg2[%c0, %c0_0, %c0_1, %c0_2] : memref<1x12x18x64xbf16, #tpu.memory_space<vmem>>, vector<1x10x16x64xbf16>
    %1 = vector.shape_cast %0 : vector<1x10x16x64xbf16> to vector<10x16x64xbf16>
    %2 = vector.shape_cast %1 : vector<10x16x64xbf16> to vector<160x64xbf16>
    %c0_3 = arith.constant 0 : index
    %c0_4 = arith.constant 0 : index
    %3 = vector.load %arg7[%c0_3, %c0_4] : memref<160x576xbf16, #tpu.memory_space<vmem>>, vector<160x64xbf16>
    tpu.vector_store %arg7[%c0_3, %c0_4], %2 {strides = array<i32>} : memref<160x576xbf16, #tpu.memory_space<vmem>>, vector<160x64xbf16>,
    %c0_5 = arith.constant 0 : index
    %c0_6 = arith.constant 0 : index
    %c1 = arith.constant 1 : index
    %c0_7 = arith.constant 0 : index
    %4 = vector.load %arg2[%c0_5, %c0_6, %c1, %c0_7] : memref<1x12x18x64xbf16, #tpu.memory_space<vmem>>, vector<1x10x16x64xbf16>
    %5 = vector.shape_cast %4 : vector<1x10x16x64xbf16> to vector<10x16x64xbf16>
    %6 = vector.shape_cast %5 : vector<10x16x64xbf16> to vector<160x64xbf16>
    %c0_8 = arith.constant 0 : index
    %c64 = arith.constant 64 : index
    %7 = vector.load %arg7[%c0_8, %c64] : memref<160x576xbf16, #tpu.memory_space<vmem>>, vector<160x64xbf16>
    tpu.vector_store %arg7[%c0_8, %c64], %6 {strides = array<i32>} : memref<160x576xbf16, #tpu.memory_space<vmem>>, vector<160x64xbf16>,
    %c0_9 = arith.constant 0 : index
    %c0_10 = arith.constant 0 : index
    %c2 = arith.constant 2 : index
    %c0_11 = arith.constant 0 : index
    %8 = vector.load %arg2[%c0_9, %c0_10, %c2, %c0_11] : memref<1x12x18x64xbf16, #tpu.memory_space<vmem>>, vector<1x10x16x64xbf16>
    %9 = vector.shape_cast %8 : vector<1x10x16x64xbf16> to vector<10x16x64xbf16>
    %10 = vector.shape_cast %9 : vector<10x16x64xbf16> to vector<160x64xbf16>
    %c0_12 = arith.constant 0 : index
    %c128 = arith.constant 128 : index
    %11 = vector.load %arg7[%c0_12, %c128] : memref<160x576xbf16, #tpu.memory_space<vmem>>, vector<160x64xbf16>
    tpu.vector_store %arg7[%c0_12, %c128], %10 {strides = array<i32>} : memref<160x576xbf16, #tpu.memory_space<vmem>>, vector<160x64xbf16>,
    %c0_13 = arith.constant 0 : index
    %c1_14 = arith.constant 1 : index
    %c0_15 = arith.constant 0 : index
    %c0_16 = arith.constant 0 : index
    %12 = vector.load %arg2[%c0_13, %c1_14, %c0_15, %c0_16] : memref<1x12x18x64xbf16, #tpu.memory_space<vmem>>, vector<1x10x16x64xbf16>
    %13 = vector.shape_cast %12 : vector<1x10x16x64xbf16> to vector<10x16x64xbf16>
    %14 = vector.shape_cast %13 : vector<10x16x64xbf16> to vector<160x64xbf16>
    %c0_17 = arith.constant 0 : index
    %c192 = arith.constant 192 : index
    %15 = vector.load %arg7[%c0_17, %c192] : memref<160x576xbf16, #tpu.memory_space<vmem>>, vector<160x64xbf16>
    tpu.vector_store %arg7[%c0_17, %c192], %14 {strides = array<i32>} : memref<160x576xbf16, #tpu.memory_space<vmem>>, vector<160x64xbf16>,
    %c0_18 = arith.constant 0 : index
    %c1_19 = arith.constant 1 : index
    %c1_20 = arith.constant 1 : index
    %c0_21 = arith.constant 0 : index
    %16 = vector.load %arg2[%c0_18, %c1_19, %c1_20, %c0_21] : memref<1x12x18x64xbf16, #tpu.memory_space<vmem>>, vector<1x10x16x64xbf16>
    %17 = vector.shape_cast %16 : vector<1x10x16x64xbf16> to vector<10x16x64xbf16>
    %18 = vector.shape_cast %17 : vector<10x16x64xbf16> to vector<160x64xbf16>
    %c0_22 = arith.constant 0 : index
    %c256 = arith.constant 256 : index
    %19 = vector.load %arg7[%c0_22, %c256] : memref<160x576xbf16, #tpu.memory_space<vmem>>, vector<160x64xbf16>
    tpu.vector_store %arg7[%c0_22, %c256], %18 {strides = array<i32>} : memref<160x576xbf16, #tpu.memory_space<vmem>>, vector<160x64xbf16>,
    %c0_23 = arith.constant 0 : index
    %c1_24 = arith.constant 1 : index
    %c2_25 = arith.constant 2 : index
    %c0_26 = arith.constant 0 : index
    %20 = vector.load %arg2[%c0_23, %c1_24, %c2_25, %c0_26] : memref<1x12x18x64xbf16, #tpu.memory_space<vmem>>, vector<1x10x16x64xbf16>
    %21 = vector.shape_cast %20 : vector<1x10x16x64xbf16> to vector<10x16x64xbf16>
    %22 = vector.shape_cast %21 : vector<10x16x64xbf16> to vector<160x64xbf16>
    %c0_27 = arith.constant 0 : index
    %c320 = arith.constant 320 : index
    %23 = vector.load %arg7[%c0_27, %c320] : memref<160x576xbf16, #tpu.memory_space<vmem>>, vector<160x64xbf16>
    tpu.vector_store %arg7[%c0_27, %c320], %22 {strides = array<i32>} : memref<160x576xbf16, #tpu.memory_space<vmem>>, vector<160x64xbf16>,
    %c0_28 = arith.constant 0 : index
    %c2_29 = arith.constant 2 : index
    %c0_30 = arith.constant 0 : index
    %c0_31 = arith.constant 0 : index
    %24 = vector.load %arg2[%c0_28, %c2_29, %c0_30, %c0_31] : memref<1x12x18x64xbf16, #tpu.memory_space<vmem>>, vector<1x10x16x64xbf16>
    %25 = vector.shape_cast %24 : vector<1x10x16x64xbf16> to vector<10x16x64xbf16>
    %26 = vector.shape_cast %25 : vector<10x16x64xbf16> to vector<160x64xbf16>
    %c0_32 = arith.constant 0 : index
    %c384 = arith.constant 384 : index
    %27 = vector.load %arg7[%c0_32, %c384] : memref<160x576xbf16, #tpu.memory_space<vmem>>, vector<160x64xbf16>
    tpu.vector_store %arg7[%c0_32, %c384], %26 {strides = array<i32>} : memref<160x576xbf16, #tpu.memory_space<vmem>>, vector<160x64xbf16>,
    %c0_33 = arith.constant 0 : index
    %c2_34 = arith.constant 2 : index
    %c1_35 = arith.constant 1 : index
    %c0_36 = arith.constant 0 : index
    %28 = vector.load %arg2[%c0_33, %c2_34, %c1_35, %c0_36] : memref<1x12x18x64xbf16, #tpu.memory_space<vmem>>, vector<1x10x16x64xbf16>
    %29 = vector.shape_cast %28 : vector<1x10x16x64xbf16> to vector<10x16x64xbf16>
    %30 = vector.shape_cast %29 : vector<10x16x64xbf16> to vector<160x64xbf16>
    %c0_37 = arith.constant 0 : index
    %c448 = arith.constant 448 : index
    %31 = vector.load %arg7[%c0_37, %c448] : memref<160x576xbf16, #tpu.memory_space<vmem>>, vector<160x64xbf16>
    tpu.vector_store %arg7[%c0_37, %c448], %30 {strides = array<i32>} : memref<160x576xbf16, #tpu.memory_space<vmem>>, vector<160x64xbf16>,
    %c0_38 = arith.constant 0 : index
    %c2_39 = arith.constant 2 : index
    %c2_40 = arith.constant 2 : index
    %c0_41 = arith.constant 0 : index
    %32 = vector.load %arg2[%c0_38, %c2_39, %c2_40, %c0_41] : memref<1x12x18x64xbf16, #tpu.memory_space<vmem>>, vector<1x10x16x64xbf16>
    %33 = vector.shape_cast %32 : vector<1x10x16x64xbf16> to vector<10x16x64xbf16>
    %34 = vector.shape_cast %33 : vector<10x16x64xbf16> to vector<160x64xbf16>
    %c0_42 = arith.constant 0 : index
    %c512 = arith.constant 512 : index
    %35 = vector.load %arg7[%c0_42, %c512] : memref<160x576xbf16, #tpu.memory_space<vmem>>, vector<160x64xbf16>
    tpu.vector_store %arg7[%c0_42, %c512], %34 {strides = array<i32>} : memref<160x576xbf16, #tpu.memory_space<vmem>>, vector<160x64xbf16>,
    %c0_43 = arith.constant 0 : index
    %c0_44 = arith.constant 0 : index
    %36 = vector.load %arg7[%c0_43, %c0_44] : memref<160x576xbf16, #tpu.memory_space<vmem>>, vector<160x576xbf16>
    %c0_45 = arith.constant 0 : index
    %c0_46 = arith.constant 0 : index
    %37 = vector.load %arg3[%c0_45, %c0_46] : memref<576x256xbf16, #tpu.memory_space<vmem>>, vector<576x256xbf16>
    %cst = arith.constant dense<0.000000e+00> : vector<160x256xf32>
    %38 = tpu.matmul %36, %37, %cst {dimension_numbers = #tpu.dot_dimension_numbers<[1], [0], [0], [1], [0, 0, 1, 1], [], []>} : vector<160x576xbf16>, vector<576x256xbf16>, vector<160x256xf32> -> vector<160x256xf32>
    %cst_47 = arith.constant 2.000000e-01 : f32
    %39 = vector.broadcast %cst_47 : f32 to vector<160x256xf32>
    %40 = arith.mulf %39, %38 : vector<160x256xf32>
    %41 = arith.maximumf %38, %40 : vector<160x256xf32>
    %42 = arith.truncf %41 : vector<160x256xf32> to vector<160x256xbf16>
    %c16 = arith.constant 16 : index
    %c0_48 = arith.constant 0 : index
    %43 = vector.load %arg8[%c16, %c0_48] : memref<192x256xbf16, #tpu.memory_space<vmem>>, vector<160x256xbf16>
    tpu.vector_store %arg8[%c16, %c0_48], %42 {strides = array<i32>} : memref<192x256xbf16, #tpu.memory_space<vmem>>, vector<160x256xbf16>,
    %cst_49 = arith.constant 0.000000e+00 : bf16
    %44 = vector.broadcast %cst_49 : bf16 to vector<1x256xbf16>
    %c15 = arith.constant 15 : index
    %c0_50 = arith.constant 0 : index
    %45 = vector.load %arg8[%c15, %c0_50] : memref<192x256xbf16, #tpu.memory_space<vmem>>, vector<1x256xbf16>
    tpu.vector_store %arg8[%c15, %c0_50], %44 {strides = array<i32>} : memref<192x256xbf16, #tpu.memory_space<vmem>>, vector<1x256xbf16>,
    %cst_51 = arith.constant 0.000000e+00 : bf16
    %46 = vector.broadcast %cst_51 : bf16 to vector<1x256xbf16>
    %c176 = arith.constant 176 : index
    %c0_52 = arith.constant 0 : index
    %47 = vector.load %arg8[%c176, %c0_52] : memref<192x256xbf16, #tpu.memory_space<vmem>>, vector<1x256xbf16>
    tpu.vector_store %arg8[%c176, %c0_52], %46 {strides = array<i32>} : memref<192x256xbf16, #tpu.memory_space<vmem>>, vector<1x256xbf16>,
    %c0_i32 = arith.constant 0 : i32
    %48 = arith.cmpi eq, %arg1, %c0_i32 : i32
    %49 = arith.extui %48 : i1 to i32
    %c0_i32_53 = arith.constant 0 : i32
    %50 = arith.cmpi ne, %49, %c0_i32_53 : i32
    scf.if %50 {
      %cst_177 = arith.constant 0.000000e+00 : bf16
      %199 = vector.broadcast %cst_177 : bf16 to vector<16x128xbf16>
      %c16_178 = arith.constant 16 : index
      %c128_179 = arith.constant 128 : index
      %200 = vector.load %arg8[%c16_178, %c128_179] : memref<192x256xbf16, #tpu.memory_space<vmem>>, vector<16x128xbf16>
      tpu.vector_store %arg8[%c16_178, %c128_179], %199 {strides = array<i32>} : memref<192x256xbf16, #tpu.memory_space<vmem>>, vector<16x128xbf16>,
    } else {
    }
    %c1_i32 = arith.constant 1 : i32
    %51 = arith.cmpi eq, %arg1, %c1_i32 : i32
    %52 = arith.extui %51 : i1 to i32
    %c0_i32_54 = arith.constant 0 : i32
    %53 = arith.cmpi ne, %52, %c0_i32_54 : i32
    scf.if %53 {
      %cst_177 = arith.constant 0.000000e+00 : bf16
      %199 = vector.broadcast %cst_177 : bf16 to vector<16x128xbf16>
      %c160 = arith.constant 160 : index
      %c0_178 = arith.constant 0 : index
      %200 = vector.load %arg8[%c160, %c0_178] : memref<192x256xbf16, #tpu.memory_space<vmem>>, vector<16x128xbf16>
      tpu.vector_store %arg8[%c160, %c0_178], %199 {strides = array<i32>} : memref<192x256xbf16, #tpu.memory_space<vmem>>, vector<16x128xbf16>,
    } else {
    }
    %54 = tpu.iota {dimensions = array<i32: 0>} : vector<128x1xi32>
    %c16_i32 = arith.constant 16 : i32
    %c0_i32_55 = arith.constant 0 : i32
    %55 = arith.cmpi eq, %c16_i32, %c0_i32_55 : i32
    %c1_i32_56 = arith.constant 1 : i32
    %56 = arith.select %55, %c1_i32_56, %c16_i32 : i32
    %57 = vector.broadcast %56 : i32 to vector<128x1xi32>
    %58 = arith.remsi %54, %57 : vector<128x1xi32>
    %c0_i32_57 = arith.constant 0 : i32
    %59 = vector.broadcast %c0_i32_57 : i32 to vector<128x1xi32>
    %60 = arith.cmpi ne, %58, %59 : vector<128x1xi32>
    %c0_i32_58 = arith.constant 0 : i32
    %61 = vector.broadcast %c0_i32_58 : i32 to vector<128x1xi32>
    %62 = arith.cmpi slt, %58, %61 : vector<128x1xi32>
    %c0_i32_59 = arith.constant 0 : i32
    %63 = arith.cmpi slt, %56, %c0_i32_59 : i32
    %64 = vector.broadcast %63 : i1 to vector<128x1xi1>
    %65 = vector.broadcast %64 : vector<128x1xi1> to vector<128x1xi1>
    %66 = arith.xori %62, %65 : vector<128x1xi1>
    %67 = arith.andi %66, %60 : vector<128x1xi1>
    %68 = vector.broadcast %56 : i32 to vector<128x1xi32>
    %69 = arith.addi %58, %68 : vector<128x1xi32>
    %70 = arith.select %67, %69, %58 : vector<128x1xi1>, vector<128x1xi32>
    %c0_i32_60 = arith.constant 0 : i32
    %71 = vector.broadcast %c0_i32_60 : i32 to vector<128x1xi32>
    %72 = arith.cmpi eq, %70, %71 : vector<128x1xi32>
    %c15_i32 = arith.constant 15 : i32
    %73 = vector.broadcast %c15_i32 : i32 to vector<128x1xi32>
    %74 = arith.cmpi eq, %70, %73 : vector<128x1xi32>
    %c16_61 = arith.constant 16 : index
    %c128_62 = arith.constant 128 : index
    %75 = vector.load %arg8[%c16_61, %c128_62] : memref<192x256xbf16, #tpu.memory_space<vmem>>, vector<128x128xbf16>
    %c0_63 = arith.constant 0 : index
    %c0_64 = arith.constant 0 : index
    %76 = vector.load %arg7[%c0_63, %c0_64] : memref<160x576xbf16, #tpu.memory_space<vmem>>, vector<128x128xbf16>
    tpu.vector_store %arg7[%c0_63, %c0_64], %75 {strides = array<i32>} : memref<160x576xbf16, #tpu.memory_space<vmem>>, vector<128x128xbf16>,
    %c32 = arith.constant 32 : index
    %c0_65 = arith.constant 0 : index
    %77 = vector.load %arg8[%c32, %c0_65] : memref<192x256xbf16, #tpu.memory_space<vmem>>, vector<128x128xbf16>
    %c0_66 = arith.constant 0 : index
    %c128_67 = arith.constant 128 : index
    %78 = vector.load %arg7[%c0_66, %c128_67] : memref<160x576xbf16, #tpu.memory_space<vmem>>, vector<128x128xbf16>
    tpu.vector_store %arg7[%c0_66, %c128_67], %77 {strides = array<i32>} : memref<160x576xbf16, #tpu.memory_space<vmem>>, vector<128x128xbf16>,
    %c32_68 = arith.constant 32 : index
    %c128_69 = arith.constant 128 : index
    %79 = vector.load %arg8[%c32_68, %c128_69] : memref<192x256xbf16, #tpu.memory_space<vmem>>, vector<128x128xbf16>
    %c0_70 = arith.constant 0 : index
    %c256_71 = arith.constant 256 : index
    %80 = vector.load %arg7[%c0_70, %c256_71] : memref<160x576xbf16, #tpu.memory_space<vmem>>, vector<128x128xbf16>
    tpu.vector_store %arg7[%c0_70, %c256_71], %79 {strides = array<i32>} : memref<160x576xbf16, #tpu.memory_space<vmem>>, vector<128x128xbf16>,
    %c15_72 = arith.constant 15 : index
    %c192_73 = arith.constant 192 : index
    %81 = vector.load %arg8[%c15_72, %c192_73] : memref<192x256xbf16, #tpu.memory_space<vmem>>, vector<128x64xbf16>
    %cst_74 = arith.constant 0.000000e+00 : bf16
    %82 = vector.shape_cast %72 : vector<128x1xi1> to vector<128x1xi1>
    %83 = vector.broadcast %82 : vector<128x1xi1> to vector<128x64xi1>
    %84 = vector.broadcast %cst_74 : bf16 to vector<128x64xbf16>
    %85 = arith.select %83, %84, %81 : vector<128x64xi1>, vector<128x64xbf16>
    %c0_75 = arith.constant 0 : index
    %c384_76 = arith.constant 384 : index
    %86 = vector.load %arg7[%c0_75, %c384_76] : memref<160x576xbf16, #tpu.memory_space<vmem>>, vector<128x64xbf16>
    tpu.vector_store %arg7[%c0_75, %c384_76], %85 {strides = array<i32>} : memref<160x576xbf16, #tpu.memory_space<vmem>>, vector<128x64xbf16>,
    %c31 = arith.constant 31 : index
    %c64_77 = arith.constant 64 : index
    %87 = vector.load %arg8[%c31, %c64_77] : memref<192x256xbf16, #tpu.memory_space<vmem>>, vector<128x64xbf16>
    %cst_78 = arith.constant 0.000000e+00 : bf16
    %88 = vector.shape_cast %72 : vector<128x1xi1> to vector<128x1xi1>
    %89 = vector.broadcast %88 : vector<128x1xi1> to vector<128x64xi1>
    %90 = vector.broadcast %cst_78 : bf16 to vector<128x64xbf16>
    %91 = arith.select %89, %90, %87 : vector<128x64xi1>, vector<128x64xbf16>
    %c0_79 = arith.constant 0 : index
    %c448_80 = arith.constant 448 : index
    %92 = vector.load %arg7[%c0_79, %c448_80] : memref<160x576xbf16, #tpu.memory_space<vmem>>, vector<128x64xbf16>
    tpu.vector_store %arg7[%c0_79, %c448_80], %91 {strides = array<i32>} : memref<160x576xbf16, #tpu.memory_space<vmem>>, vector<128x64xbf16>,
    %c31_81 = arith.constant 31 : index
    %c192_82 = arith.constant 192 : index
    %93 = vector.load %arg8[%c31_81, %c192_82] : memref<192x256xbf16, #tpu.memory_space<vmem>>, vector<128x64xbf16>
    %cst_83 = arith.constant 0.000000e+00 : bf16
    %94 = vector.shape_cast %72 : vector<128x1xi1> to vector<128x1xi1>
    %95 = vector.broadcast %94 : vector<128x1xi1> to vector<128x64xi1>
    %96 = vector.broadcast %cst_83 : bf16 to vector<128x64xbf16>
    %97 = arith.select %95, %96, %93 : vector<128x64xi1>, vector<128x64xbf16>
    %c0_84 = arith.constant 0 : index
    %c512_85 = arith.constant 512 : index
    %98 = vector.load %arg7[%c0_84, %c512_85] : memref<160x576xbf16, #tpu.memory_space<vmem>>, vector<128x64xbf16>
    tpu.vector_store %arg7[%c0_84, %c512_85], %97 {strides = array<i32>} : memref<160x576xbf16, #tpu.memory_space<vmem>>, vector<128x64xbf16>,
    %c0_86 = arith.constant 0 : index
    %c0_87 = arith.constant 0 : index
    %99 = vector.load %arg7[%c0_86, %c0_87] : memref<160x576xbf16, #tpu.memory_space<vmem>>, vector<128x576xbf16>
    %c0_88 = arith.constant 0 : index
    %c0_89 = arith.constant 0 : index
    %100 = vector.load %arg4[%c0_88, %c0_89] : memref<576x256xbf16, #tpu.memory_space<vmem>>, vector<576x256xbf16>
    %cst_90 = arith.constant dense<0.000000e+00> : vector<128x256xf32>
    %101 = tpu.matmul %99, %100, %cst_90 {dimension_numbers = #tpu.dot_dimension_numbers<[1], [0], [0], [1], [0, 0, 1, 1], [], []>} : vector<128x576xbf16>, vector<576x256xbf16>, vector<128x256xf32> -> vector<128x256xf32>
    %cst_91 = arith.constant 2.000000e-01 : f32
    %102 = vector.broadcast %cst_91 : f32 to vector<128x256xf32>
    %103 = arith.mulf %102, %101 : vector<128x256xf32>
    %104 = arith.maximumf %101, %103 : vector<128x256xf32>
    %105 = arith.truncf %104 : vector<128x256xf32> to vector<128x256xbf16>
    %c0_92 = arith.constant 0 : index
    %c0_93 = arith.constant 0 : index
    %c0_94 = arith.constant 0 : index
    %c0_95 = arith.constant 0 : index
    %106 = vector.load %arg6[%c0_92, %c0_93, %c0_94, %c0_95] : memref<1x4x128x256xbf16, #tpu.memory_space<vmem>>, vector<1x1x128x256xbf16>
    %107 = vector.shape_cast %106 : vector<1x1x128x256xbf16> to vector<128x256xbf16>
    %108 = vector.shape_cast %105 : vector<128x256xbf16> to vector<1x1x128x256xbf16>
    tpu.vector_store %arg6[%c0_92, %c0_93, %c0_94, %c0_95], %108 {strides = array<i32>} : memref<1x4x128x256xbf16, #tpu.memory_space<vmem>>, vector<1x1x128x256xbf16>,
    %c17 = arith.constant 17 : index
    %c128_96 = arith.constant 128 : index
    %109 = vector.load %arg8[%c17, %c128_96] : memref<192x256xbf16, #tpu.memory_space<vmem>>, vector<128x64xbf16>
    %cst_97 = arith.constant 0.000000e+00 : bf16
    %110 = vector.shape_cast %74 : vector<128x1xi1> to vector<128x1xi1>
    %111 = vector.broadcast %110 : vector<128x1xi1> to vector<128x64xi1>
    %112 = vector.broadcast %cst_97 : bf16 to vector<128x64xbf16>
    %113 = arith.select %111, %112, %109 : vector<128x64xi1>, vector<128x64xbf16>
    %c0_98 = arith.constant 0 : index
    %c384_99 = arith.constant 384 : index
    %114 = vector.load %arg7[%c0_98, %c384_99] : memref<160x576xbf16, #tpu.memory_space<vmem>>, vector<128x64xbf16>
    tpu.vector_store %arg7[%c0_98, %c384_99], %113 {strides = array<i32>} : memref<160x576xbf16, #tpu.memory_space<vmem>>, vector<128x64xbf16>,
    %c33 = arith.constant 33 : index
    %c0_100 = arith.constant 0 : index
    %115 = vector.load %arg8[%c33, %c0_100] : memref<192x256xbf16, #tpu.memory_space<vmem>>, vector<128x64xbf16>
    %cst_101 = arith.constant 0.000000e+00 : bf16
    %116 = vector.shape_cast %74 : vector<128x1xi1> to vector<128x1xi1>
    %117 = vector.broadcast %116 : vector<128x1xi1> to vector<128x64xi1>
    %118 = vector.broadcast %cst_101 : bf16 to vector<128x64xbf16>
    %119 = arith.select %117, %118, %115 : vector<128x64xi1>, vector<128x64xbf16>
    %c0_102 = arith.constant 0 : index
    %c448_103 = arith.constant 448 : index
    %120 = vector.load %arg7[%c0_102, %c448_103] : memref<160x576xbf16, #tpu.memory_space<vmem>>, vector<128x64xbf16>
    tpu.vector_store %arg7[%c0_102, %c448_103], %119 {strides = array<i32>} : memref<160x576xbf16, #tpu.memory_space<vmem>>, vector<128x64xbf16>,
    %c33_104 = arith.constant 33 : index
    %c128_105 = arith.constant 128 : index
    %121 = vector.load %arg8[%c33_104, %c128_105] : memref<192x256xbf16, #tpu.memory_space<vmem>>, vector<128x64xbf16>
    %cst_106 = arith.constant 0.000000e+00 : bf16
    %122 = vector.shape_cast %74 : vector<128x1xi1> to vector<128x1xi1>
    %123 = vector.broadcast %122 : vector<128x1xi1> to vector<128x64xi1>
    %124 = vector.broadcast %cst_106 : bf16 to vector<128x64xbf16>
    %125 = arith.select %123, %124, %121 : vector<128x64xi1>, vector<128x64xbf16>
    %c0_107 = arith.constant 0 : index
    %c512_108 = arith.constant 512 : index
    %126 = vector.load %arg7[%c0_107, %c512_108] : memref<160x576xbf16, #tpu.memory_space<vmem>>, vector<128x64xbf16>
    tpu.vector_store %arg7[%c0_107, %c512_108], %125 {strides = array<i32>} : memref<160x576xbf16, #tpu.memory_space<vmem>>, vector<128x64xbf16>,
    %c0_109 = arith.constant 0 : index
    %c0_110 = arith.constant 0 : index
    %127 = vector.load %arg7[%c0_109, %c0_110] : memref<160x576xbf16, #tpu.memory_space<vmem>>, vector<128x576xbf16>
    %c0_111 = arith.constant 0 : index
    %c0_112 = arith.constant 0 : index
    %128 = vector.load %arg5[%c0_111, %c0_112] : memref<576x256xbf16, #tpu.memory_space<vmem>>, vector<576x256xbf16>
    %cst_113 = arith.constant dense<0.000000e+00> : vector<128x256xf32>
    %129 = tpu.matmul %127, %128, %cst_113 {dimension_numbers = #tpu.dot_dimension_numbers<[1], [0], [0], [1], [0, 0, 1, 1], [], []>} : vector<128x576xbf16>, vector<576x256xbf16>, vector<128x256xf32> -> vector<128x256xf32>
    %cst_114 = arith.constant 2.000000e-01 : f32
    %130 = vector.broadcast %cst_114 : f32 to vector<128x256xf32>
    %131 = arith.mulf %130, %129 : vector<128x256xf32>
    %132 = arith.maximumf %129, %131 : vector<128x256xf32>
    %133 = arith.truncf %132 : vector<128x256xf32> to vector<128x256xbf16>
    %c0_115 = arith.constant 0 : index
    %c1_116 = arith.constant 1 : index
    %c0_117 = arith.constant 0 : index
    %c0_118 = arith.constant 0 : index
    %134 = vector.load %arg6[%c0_115, %c1_116, %c0_117, %c0_118] : memref<1x4x128x256xbf16, #tpu.memory_space<vmem>>, vector<1x1x128x256xbf16>
    %135 = vector.shape_cast %134 : vector<1x1x128x256xbf16> to vector<128x256xbf16>
    %136 = vector.shape_cast %133 : vector<128x256xbf16> to vector<1x1x128x256xbf16>
    tpu.vector_store %arg6[%c0_115, %c1_116, %c0_117, %c0_118], %136 {strides = array<i32>} : memref<1x4x128x256xbf16, #tpu.memory_space<vmem>>, vector<1x1x128x256xbf16>,
    %c32_119 = arith.constant 32 : index
    %c0_120 = arith.constant 0 : index
    %137 = vector.load %arg8[%c32_119, %c0_120] : memref<192x256xbf16, #tpu.memory_space<vmem>>, vector<128x128xbf16>
    %c0_121 = arith.constant 0 : index
    %c0_122 = arith.constant 0 : index
    %138 = vector.load %arg7[%c0_121, %c0_122] : memref<160x576xbf16, #tpu.memory_space<vmem>>, vector<128x128xbf16>
    tpu.vector_store %arg7[%c0_121, %c0_122], %137 {strides = array<i32>} : memref<160x576xbf16, #tpu.memory_space<vmem>>, vector<128x128xbf16>,
    %c32_123 = arith.constant 32 : index
    %c128_124 = arith.constant 128 : index
    %139 = vector.load %arg8[%c32_123, %c128_124] : memref<192x256xbf16, #tpu.memory_space<vmem>>, vector<128x128xbf16>
    %c0_125 = arith.constant 0 : index
    %c128_126 = arith.constant 128 : index
    %140 = vector.load %arg7[%c0_125, %c128_126] : memref<160x576xbf16, #tpu.memory_space<vmem>>, vector<128x128xbf16>
    tpu.vector_store %arg7[%c0_125, %c128_126], %139 {strides = array<i32>} : memref<160x576xbf16, #tpu.memory_space<vmem>>, vector<128x128xbf16>,
    %c48 = arith.constant 48 : index
    %c0_127 = arith.constant 0 : index
    %141 = vector.load %arg8[%c48, %c0_127] : memref<192x256xbf16, #tpu.memory_space<vmem>>, vector<128x128xbf16>
    %c0_128 = arith.constant 0 : index
    %c256_129 = arith.constant 256 : index
    %142 = vector.load %arg7[%c0_128, %c256_129] : memref<160x576xbf16, #tpu.memory_space<vmem>>, vector<128x128xbf16>
    tpu.vector_store %arg7[%c0_128, %c256_129], %141 {strides = array<i32>} : memref<160x576xbf16, #tpu.memory_space<vmem>>, vector<128x128xbf16>,
    %c31_130 = arith.constant 31 : index
    %c64_131 = arith.constant 64 : index
    %143 = vector.load %arg8[%c31_130, %c64_131] : memref<192x256xbf16, #tpu.memory_space<vmem>>, vector<128x64xbf16>
    %cst_132 = arith.constant 0.000000e+00 : bf16
    %144 = vector.shape_cast %72 : vector<128x1xi1> to vector<128x1xi1>
    %145 = vector.broadcast %144 : vector<128x1xi1> to vector<128x64xi1>
    %146 = vector.broadcast %cst_132 : bf16 to vector<128x64xbf16>
    %147 = arith.select %145, %146, %143 : vector<128x64xi1>, vector<128x64xbf16>
    %c0_133 = arith.constant 0 : index
    %c384_134 = arith.constant 384 : index
    %148 = vector.load %arg7[%c0_133, %c384_134] : memref<160x576xbf16, #tpu.memory_space<vmem>>, vector<128x64xbf16>
    tpu.vector_store %arg7[%c0_133, %c384_134], %147 {strides = array<i32>} : memref<160x576xbf16, #tpu.memory_space<vmem>>, vector<128x64xbf16>,
    %c31_135 = arith.constant 31 : index
    %c192_136 = arith.constant 192 : index
    %149 = vector.load %arg8[%c31_135, %c192_136] : memref<192x256xbf16, #tpu.memory_space<vmem>>, vector<128x64xbf16>
    %cst_137 = arith.constant 0.000000e+00 : bf16
    %150 = vector.shape_cast %72 : vector<128x1xi1> to vector<128x1xi1>
    %151 = vector.broadcast %150 : vector<128x1xi1> to vector<128x64xi1>
    %152 = vector.broadcast %cst_137 : bf16 to vector<128x64xbf16>
    %153 = arith.select %151, %152, %149 : vector<128x64xi1>, vector<128x64xbf16>
    %c0_138 = arith.constant 0 : index
    %c448_139 = arith.constant 448 : index
    %154 = vector.load %arg7[%c0_138, %c448_139] : memref<160x576xbf16, #tpu.memory_space<vmem>>, vector<128x64xbf16>
    tpu.vector_store %arg7[%c0_138, %c448_139], %153 {strides = array<i32>} : memref<160x576xbf16, #tpu.memory_space<vmem>>, vector<128x64xbf16>,
    %c47 = arith.constant 47 : index
    %c64_140 = arith.constant 64 : index
    %155 = vector.load %arg8[%c47, %c64_140] : memref<192x256xbf16, #tpu.memory_space<vmem>>, vector<128x64xbf16>
    %cst_141 = arith.constant 0.000000e+00 : bf16
    %156 = vector.shape_cast %72 : vector<128x1xi1> to vector<128x1xi1>
    %157 = vector.broadcast %156 : vector<128x1xi1> to vector<128x64xi1>
    %158 = vector.broadcast %cst_141 : bf16 to vector<128x64xbf16>
    %159 = arith.select %157, %158, %155 : vector<128x64xi1>, vector<128x64xbf16>
    %c0_142 = arith.constant 0 : index
    %c512_143 = arith.constant 512 : index
    %160 = vector.load %arg7[%c0_142, %c512_143] : memref<160x576xbf16, #tpu.memory_space<vmem>>, vector<128x64xbf16>
    tpu.vector_store %arg7[%c0_142, %c512_143], %159 {strides = array<i32>} : memref<160x576xbf16, #tpu.memory_space<vmem>>, vector<128x64xbf16>,
    %c0_144 = arith.constant 0 : index
    %c0_145 = arith.constant 0 : index
    %161 = vector.load %arg7[%c0_144, %c0_145] : memref<160x576xbf16, #tpu.memory_space<vmem>>, vector<128x576xbf16>
    %c0_146 = arith.constant 0 : index
    %c0_147 = arith.constant 0 : index
    %162 = vector.load %arg4[%c0_146, %c0_147] : memref<576x256xbf16, #tpu.memory_space<vmem>>, vector<576x256xbf16>
    %cst_148 = arith.constant dense<0.000000e+00> : vector<128x256xf32>
    %163 = tpu.matmul %161, %162, %cst_148 {dimension_numbers = #tpu.dot_dimension_numbers<[1], [0], [0], [1], [0, 0, 1, 1], [], []>} : vector<128x576xbf16>, vector<576x256xbf16>, vector<128x256xf32> -> vector<128x256xf32>
    %cst_149 = arith.constant 2.000000e-01 : f32
    %164 = vector.broadcast %cst_149 : f32 to vector<128x256xf32>
    %165 = arith.mulf %164, %163 : vector<128x256xf32>
    %166 = arith.maximumf %163, %165 : vector<128x256xf32>
    %167 = arith.truncf %166 : vector<128x256xf32> to vector<128x256xbf16>
    %c0_150 = arith.constant 0 : index
    %c2_151 = arith.constant 2 : index
    %c0_152 = arith.constant 0 : index
    %c0_153 = arith.constant 0 : index
    %168 = vector.load %arg6[%c0_150, %c2_151, %c0_152, %c0_153] : memref<1x4x128x256xbf16, #tpu.memory_space<vmem>>, vector<1x1x128x256xbf16>
    %169 = vector.shape_cast %168 : vector<1x1x128x256xbf16> to vector<128x256xbf16>
    %170 = vector.shape_cast %167 : vector<128x256xbf16> to vector<1x1x128x256xbf16>
    tpu.vector_store %arg6[%c0_150, %c2_151, %c0_152, %c0_153], %170 {strides = array<i32>} : memref<1x4x128x256xbf16, #tpu.memory_space<vmem>>, vector<1x1x128x256xbf16>,
    %c33_154 = arith.constant 33 : index
    %c0_155 = arith.constant 0 : index
    %171 = vector.load %arg8[%c33_154, %c0_155] : memref<192x256xbf16, #tpu.memory_space<vmem>>, vector<128x64xbf16>
    %cst_156 = arith.constant 0.000000e+00 : bf16
    %172 = vector.shape_cast %74 : vector<128x1xi1> to vector<128x1xi1>
    %173 = vector.broadcast %172 : vector<128x1xi1> to vector<128x64xi1>
    %174 = vector.broadcast %cst_156 : bf16 to vector<128x64xbf16>
    %175 = arith.select %173, %174, %171 : vector<128x64xi1>, vector<128x64xbf16>
    %c0_157 = arith.constant 0 : index
    %c384_158 = arith.constant 384 : index
    %176 = vector.load %arg7[%c0_157, %c384_158] : memref<160x576xbf16, #tpu.memory_space<vmem>>, vector<128x64xbf16>
    tpu.vector_store %arg7[%c0_157, %c384_158], %175 {strides = array<i32>} : memref<160x576xbf16, #tpu.memory_space<vmem>>, vector<128x64xbf16>,
    %c33_159 = arith.constant 33 : index
    %c128_160 = arith.constant 128 : index
    %177 = vector.load %arg8[%c33_159, %c128_160] : memref<192x256xbf16, #tpu.memory_space<vmem>>, vector<128x64xbf16>
    %cst_161 = arith.constant 0.000000e+00 : bf16
    %178 = vector.shape_cast %74 : vector<128x1xi1> to vector<128x1xi1>
    %179 = vector.broadcast %178 : vector<128x1xi1> to vector<128x64xi1>
    %180 = vector.broadcast %cst_161 : bf16 to vector<128x64xbf16>
    %181 = arith.select %179, %180, %177 : vector<128x64xi1>, vector<128x64xbf16>
    %c0_162 = arith.constant 0 : index
    %c448_163 = arith.constant 448 : index
    %182 = vector.load %arg7[%c0_162, %c448_163] : memref<160x576xbf16, #tpu.memory_space<vmem>>, vector<128x64xbf16>
    tpu.vector_store %arg7[%c0_162, %c448_163], %181 {strides = array<i32>} : memref<160x576xbf16, #tpu.memory_space<vmem>>, vector<128x64xbf16>,
    %c49 = arith.constant 49 : index
    %c0_164 = arith.constant 0 : index
    %183 = vector.load %arg8[%c49, %c0_164] : memref<192x256xbf16, #tpu.memory_space<vmem>>, vector<128x64xbf16>
    %cst_165 = arith.constant 0.000000e+00 : bf16
    %184 = vector.shape_cast %74 : vector<128x1xi1> to vector<128x1xi1>
    %185 = vector.broadcast %184 : vector<128x1xi1> to vector<128x64xi1>
    %186 = vector.broadcast %cst_165 : bf16 to vector<128x64xbf16>
    %187 = arith.select %185, %186, %183 : vector<128x64xi1>, vector<128x64xbf16>
    %c0_166 = arith.constant 0 : index
    %c512_167 = arith.constant 512 : index
    %188 = vector.load %arg7[%c0_166, %c512_167] : memref<160x576xbf16, #tpu.memory_space<vmem>>, vector<128x64xbf16>
    tpu.vector_store %arg7[%c0_166, %c512_167], %187 {strides = array<i32>} : memref<160x576xbf16, #tpu.memory_space<vmem>>, vector<128x64xbf16>,
    %c0_168 = arith.constant 0 : index
    %c0_169 = arith.constant 0 : index
    %189 = vector.load %arg7[%c0_168, %c0_169] : memref<160x576xbf16, #tpu.memory_space<vmem>>, vector<128x576xbf16>
    %c0_170 = arith.constant 0 : index
    %c0_171 = arith.constant 0 : index
    %190 = vector.load %arg5[%c0_170, %c0_171] : memref<576x256xbf16, #tpu.memory_space<vmem>>, vector<576x256xbf16>
    %cst_172 = arith.constant dense<0.000000e+00> : vector<128x256xf32>
    %191 = tpu.matmul %189, %190, %cst_172 {dimension_numbers = #tpu.dot_dimension_numbers<[1], [0], [0], [1], [0, 0, 1, 1], [], []>} : vector<128x576xbf16>, vector<576x256xbf16>, vector<128x256xf32> -> vector<128x256xf32>
    %cst_173 = arith.constant 2.000000e-01 : f32
    %192 = vector.broadcast %cst_173 : f32 to vector<128x256xf32>
    %193 = arith.mulf %192, %191 : vector<128x256xf32>
    %194 = arith.maximumf %191, %193 : vector<128x256xf32>
    %195 = arith.truncf %194 : vector<128x256xf32> to vector<128x256xbf16>
    %c0_174 = arith.constant 0 : index
    %c3 = arith.constant 3 : index
    %c0_175 = arith.constant 0 : index
    %c0_176 = arith.constant 0 : index
    %196 = vector.load %arg6[%c0_174, %c3, %c0_175, %c0_176] : memref<1x4x128x256xbf16, #tpu.memory_space<vmem>>, vector<1x1x128x256xbf16>
    %197 = vector.shape_cast %196 : vector<1x1x128x256xbf16> to vector<128x256xbf16>
    %198 = vector.shape_cast %195 : vector<128x256xbf16> to vector<1x1x128x256xbf16>
    tpu.vector_store %arg6[%c0_174, %c3, %c0_175, %c0_176], %198 {strides = array<i32>} : memref<1x4x128x256xbf16, #tpu.memory_space<vmem>>, vector<1x1x128x256xbf16>,
    return
  }
  func.func @transform_0(%arg0: i32, %arg1: i32) -> (i32, i32, i32, i32) {
    %c2_i32 = arith.constant 2 : i32
    %0 = arith.muli %arg0, %c2_i32 : i32
    %1 = arith.addi %0, %arg1 : i32
    %c0_i32 = arith.constant 0 : i32
    %c0_i32_0 = arith.constant 0 : i32
    %c0_i32_1 = arith.constant 0 : i32
    %c0_i32_2 = arith.constant 0 : i32
    return %1, %c0_i32, %c0_i32_0, %c0_i32_1 : i32, i32, i32, i32
  }
  func.func @transform_1(%arg0: i32, %arg1: i32) -> (i32, i32) {
    %c0_i32 = arith.constant 0 : i32
    %c0_i32_0 = arith.constant 0 : i32
    %c0_i32_1 = arith.constant 0 : i32
    return %c0_i32, %c0_i32_0 : i32, i32
  }
  func.func @transform_2(%arg0: i32, %arg1: i32) -> (i32, i32) {
    %c0_i32 = arith.constant 0 : i32
    %c0_i32_0 = arith.constant 0 : i32
    %c0_i32_1 = arith.constant 0 : i32
    return %c0_i32, %c0_i32_0 : i32, i32
  }
  func.func @transform_3(%arg0: i32, %arg1: i32) -> (i32, i32) {
    %c0_i32 = arith.constant 0 : i32
    %c0_i32_0 = arith.constant 0 : i32
    %c0_i32_1 = arith.constant 0 : i32
    return %c0_i32, %c0_i32_0 : i32, i32
  }
  func.func @transform_4(%arg0: i32, %arg1: i32) -> (i32, i32, i32, i32) {
    %c0_i32 = arith.constant 0 : i32
    %c0_i32_0 = arith.constant 0 : i32
    %c0_i32_1 = arith.constant 0 : i32
    return %arg0, %c0_i32, %arg1, %c0_i32_0 : i32, i32, i32, i32
  }
}

</mosaic_0001>

<bundles_post_ra>
// kernel: upscale_network_forward.1
= control target key start
LH: loop header
LB: loop body
LE: loop exit
PB: predicated region body
PF: predicated region fallthrough
CT: control target
= control target key end

     0   :  { %s11487_s15 = smov 0   ;;  %s11489_s16 = smov 0   ;;  %s14929_s0 = inlined_call_operand.vmem [shape: bf16[4,12,18,64], index: 0, kind: input, shape index: {}]   ;;  %s14930_s1 = inlined_call_operand.vmem [shape: bf16[576,256], index: 1, kind: input, shape index: {}]   ;;  %s14931_s2 = inlined_call_operand.vmem [shape: bf16[576,256], index: 2, kind: input, shape index: {}]   ;;  %s14932_s3 = inlined_call_operand.vmem [shape: bf16[576,256], index: 3, kind: input, shape index: {}]   ;;  %s14933_s4 = inlined_call_operand.vmem [shape: bf16[2,4,256,256], index: 4, kind: output, shape index: {}]  }
   0x1   :  { %s11491_s17 = smov 0   ;;  %s11493_s18 = smov 0  }
   0x2   :  { %s11495_s19 = smov 0   ;;  %s11497_s20 = smov 0  }
   0x3   :  { %s11499_s21 = smov 0  }
   0x4 LB: > { %s23_s22 = sadd.s32 1, %s11447_s19  ;;  %s26_s23 = sadd.s32 1, %s11451_s20  ;;  %s11455_s21 = sphi %s11499_s21, %s14_s21   ;;  %s11451_s20 = sphi %s11497_s20, %s15225_s20   ;;  %s11447_s19 = sphi %s11495_s19, %s15224_s19   ;;  %s11443_s18 = sphi %s11493_s18, %s15223_s18   ;;  %s11439_s17 = sphi %s11491_s17, %s15222_s17   ;;  %s11435_s16 = sphi %s11489_s16, %s15221_s16   ;;  %s11431_s15 = sphi %s11487_s15, %s15220_s15  }
   0x5   : > { %p24_p0 = scmp.ge.s32.totalorder %s23_s22, 2  ;;  %s9530_s24 = sadd.s32 4294967295, %s11455_s21  }
   0x6   : > { %p138_p1 = scmp.ne.s32.totalorder %s11435_s16, %s11431_s15  ;;  %p139_p2 = scmp.eq.s32.totalorder %s9530_s24, 3 }
   0x7   : > { %s15227_s22 = smov (%p24_p0, %s23_s22), 0  ;;  %s15229_s23 = smov (!%p24_p0, %s26_s23), %s11451_s20 }
   0x8   : > { %s124_s25 = ssub.s32 %s11447_s19, %s15227_s22  ;;  %p28_p3 = scmp.ge.s32.totalorder %s15229_s23, 2 }
   0x9   : > { %p9536_p4 = scmp.ge.s32.totalorder %s11455_s21, 1  ;;  %p11533_p5 = por %p139_p2, %p138_p1 }
   0xa   : > { %p184_p6 = scmp.lt.s32.totalorder %s11455_s21, 5  ;;  %s15231_s23 = smov (%p28_p3, %s15229_s23), 0 }
   0xb   : > { %s123_s27 = ssub.s32 %s11451_s20, %s15231_s23  ;;  %s128_s29 = sadd.s32 1, %s11435_s16 }
   0xc   : > { %p185_p7 = pnand %p9536_p4, %p184_p6  ;;  %s125_s28 = sor.u32 %s124_s25, %s123_s27 }
   0xd   : > { %p126_p8 = scmp.eq.s32.totalorder %s125_s28, 0 }
   0xe   : > { %188 = sbr.rel (%p185_p7) target bundleno = 1505 (0x5e1), region = 36 }
   0xf   : > { %s11544_s30 = scalar_select %p126_p8, %s11435_s16, %s128_s29  }
  0x15   : > { %s9538_s5 = sshll.u32 %s11443_s18, 1  ;;  %s208_s7 = sand.u32 1, %s11431_s15   ;;  %v10862_v0 = vld [vmem:[%s14930_s1 + $0x4] ss:$8 sps:$4 sm:$0xff]   ;;  %v10864_v1 = vld [vmem:[%s14930_s1] ss:$8 sps:$4 sm:$0xff]  }
  0x16   : > { %s212_s6 = sadd.s32 %s11439_s17, %s9538_s5  ;;  %s11549_s8 = sshll.u32 %s208_s7, 9  ;;  %v10865_v2 = vld [vmem:[%s14930_s1 + $0x14] ss:$8 sps:$4 sm:$0xff]   ;;  %2596 = vmatprep.subr.bf16.mxu0 %v10862_v0  ;;  %v10867_v3 = vld [vmem:[%s14930_s1 + $0x10] ss:$8 sps:$4 sm:$0xff]   ;;  %vm719_vm3 = vcmask 1042432  }
  0x17   : > { %p213_p9 = scmp.lt.s32.totalorder %s212_s6, 3  ;;  %2597 = vmatpush1.bf16.msra.mxu0 %v10864_v1  ;;  %v10869_v4 = vld [vmem:[%s14930_s1 + $0x24] ss:$8 sps:$4 sm:$0xff]   ;;  %vm345_vm0 = vsmask.f32 3328  ;;  %s11457_s12 = smov 64  }
  0x18   : > { %2598 = vmatprep.subr.bf16.mxu0 %v10865_v2  ;;  %v10871_v5 = vld [vmem:[%s14930_s1 + $0x20] ss:$8 sps:$4 sm:$0xff]   ;;  %vm346_vm1 = vsmask.f32 7440  ;;  %v10872_v6 = vld [vmem:[%s14930_s1 + $0x34] ss:$8 sps:$4 sm:$0xff]  }
  0x19   : > { %s15233_s6 = smov (!%p213_p9, %s212_s6), 3  ;;  %v10874_v15 = vld [vmem:[%s14930_s1 + $0x30] ss:$8 sps:$4 sm:$0xff]   ;;  %v10876_v19 = vld [vmem:[%s14930_s1 + $0x44] ss:$8 sps:$4 sm:$0xff]   ;;  %vm11598_vm2 = vmor %vm345_vm0, %vm346_vm1  ;;  %vm720_vm4 = vcmask 1046532  }
  0x1a   : > { %s10792_s25 = smul.u32 144, %s15233_s6  ;;  %v10878_v34 = vld [vmem:[%s14930_s1 + $0x40] ss:$8 sps:$4 sm:$0xff]   ;;  %vm11713_vm5 = vmor %vm719_vm3, %vm720_vm4  ;;  %vm14935_vm6 = vcmask 523264   ;;  %vm14934_vm7 = vcmask 1048064   ;;  %vm3115_vm8 = vcmask 1047559  }
  0x1b   : > { %2599 = vmatpush1.bf16.msra.mxu0 %v10867_v3  ;;  %vm3116_vm9 = vsmask.f32 7966  ;;  %vm3124_vm10 = vcmask 1040384   ;;  %vm3125_vm11 = vsmask.f32 256  ;;  %p9902_p10 = scmp.ne.s32.totalorder %s11439_s17, 0 }
  0x1c   : > { %s11572_s10 = scalar_lea.vmem %s14929_s0, %s10792_s25  ;;  %2600 = vmatprep.subr.bf16.mxu0 %v10869_v4  ;;  %vm3117_vm12 = vmand %vm3115_vm8, %vm3116_vm9 }
  0x1d   : > { %v10854_v7 = vld [vmem:[%s11572_s10 + $0xc] sm:$0xff]   ;;  %v315_v8 = vld [vmem:[%s11572_s10] sm:$0xf]  ;;  %v316_v9 = vld [vmem:[%s11572_s10 + $0x4] sm:$0xf] }
  0x1e   : > { %v317_v10 = vld [vmem:[%s11572_s10 + $0x8] sm:$0x1]  ;;  %913 = vrot.lane.b32.xlu0 %v10854_v7, %s11457_s12  ;;  %v349_v11 = vshrl.u32 %v315_v8, 16  ;;  %v352_v12 = vshll.u32 %v315_v8, 16  ;;  %v358_v13 = vshll.u32 %v316_v9, 16  ;;  %v362_v14 = vshrl.u32 %v316_v9, 16  ;;  %vm3126_vm13 = vmand %vm3124_vm10, %vm3125_vm11 }
  0x1f   : > { %v368_v16 = vshll.u32 %v317_v10, 16  ;;  %v10855_v17 = vld [vmem:[%s11572_s10 + $0x18] sm:$0xff]   ;;  %v318_v18 = vld [vmem:[%s11572_s10 + $0xc] sm:$0xf]  ;;  %v319_v24 = vld [vmem:[%s11572_s10 + $0x10] sm:$0xf]  ;;  %2601 = vmatpush1.bf16.msra.mxu0 %v10871_v5 }
  0x20   : > { %v351_v20 = vrot.slane %v349_v11, 4  ;;  %v354_v21 = vrot.slane %v352_v12, 5  ;;  %v360_v22 = vrot.slane %v358_v13, 5  ;;  %v364_v23 = vrot.slane %v362_v14, 4  ;;  %915 = vrot.lane.b32.xlu1 %v10855_v17, %s11457_s12  ;;  %v320_v26 = vld [vmem:[%s11572_s10 + $0x14] sm:$0x1]  ;;  %2602 = vmatprep.subr.bf16.mxu0 %v10872_v6 }
  0x21   : > { %v370_v25 = vrot.slane %v368_v16, 5  ;;  %v373_v27 = vshrl.u32 %v318_v18, 16  ;;  %v376_v28 = vshll.u32 %v318_v18, 16  ;;  %v382_v29 = vshll.u32 %v319_v24, 16  ;;  %v321_v39 = vld [vmem:[%s11572_s10 + $0x18] sm:$0xf] }
  0x22   : > { %v355_v30 = vor.u32 %v354_v21, %v351_v20  ;;  %v365_v31 = vor.u32 %v364_v23, %v360_v22  ;;  %v386_v32 = vshrl.u32 %v319_v24, 16  ;;  %v392_v33 = vshll.u32 %v320_v26, 16  ;;  %v322_v44 = vld [vmem:[%s11572_s10 + $0x1c] sm:$0xf]  ;;  %v323_v46 = vld [vmem:[%s11572_s10 + $0x20] sm:$0x1] }
  0x23   : > { %v375_v36 = vrot.slane %v373_v27, 4  ;;  %v378_v37 = vrot.slane %v376_v28, 5  ;;  %v384_v38 = vrot.slane %v382_v29, 5  ;;  %2603 = vmatpush1.bf16.msra.mxu0 %v10874_v15  ;;  %v397_v47 = vshrl.u32 %v321_v39, 16  ;;  %v10856_v56 = vld [vmem:[%s11572_s10 + $0x24] sm:$0xff]   ;;  %v10857_v13 = vld [vmem:[%s11572_s10 + $0x30] sm:$0xff]  }
  0x24   : > { %v356_v40 = vrot.slane %v355_v30, 4  ;;  %v366_v41 = vrot.slane %v365_v31, 4  ;;  %v388_v42 = vrot.slane %v386_v32, 4  ;;  %v394_v43 = vrot.slane %v392_v33, 5  ;;  %2604 = vmatprep.subr.bf16.mxu0 %v10876_v19  ;;  %v324_v59 = vld [vmem:[%s11572_s10 + $0x24] sm:$0xf] }
  0x25   : > { %v379_v45 = vor.u32 %v378_v37, %v375_v36  ;;  %v400_v48 = vshll.u32 %v321_v39, 16  ;;  %v406_v49 = vshll.u32 %v322_v44, 16  ;;  %v410_v53 = vshrl.u32 %v322_v44, 16  ;;  %v325_v0 = vld [vmem:[%s11572_s10 + $0x28] sm:$0xf] }
  0x26   : > { %v361_v50 = vsel %vm11598_vm2, %v356_v40, %v360_v22  ;;  %v371_v51 = vsel %vm11598_vm2, %v366_v41, %v370_v25  ;;  %v389_v52 = vor.u32 %v388_v42, %v384_v38  ;;  %v399_v57 = vrot.slane %v397_v47, 4  ;;  %v326_v3 = vld [vmem:[%s11572_s10 + $0x2c] sm:$0x1]  ;;  %v327_v10 = vld [vmem:[%s11572_s10 + $0x30] sm:$0xf] }
  0x27   : > { %v9550_v54 = vcombine.low %v361_v50, %v371_v51  ;;  %v380_v55 = vrot.slane %v379_v45, 4  ;;  %v402_v58 = vrot.slane %v400_v48, 5  ;;  %v408_v61 = vrot.slane %v406_v49, 5  ;;  %2605 = vmatpush1.bf16.msra.mxu0 %v10878_v34  ;;  %v328_v16 = vld [vmem:[%s11572_s10 + $0x34] sm:$0xf] }
  0x28   : > { %v390_v60 = vrot.slane %v389_v52, 4  ;;  %v412_v62 = vrot.slane %v410_v53, 4  ;;  %v416_v63 = vshll.u32 %v323_v46, 16  ;;  %v421_v4 = vshrl.u32 %v324_v59, 16  ;;  %v329_v21 = vld [vmem:[%s11572_s10 + $0x38] sm:$0x1] }
  0x29   : > { %618 = vrot.lane.b32.xlu0 %v9550_v54, %s11457_s12  ;;  %v385_v1 = vsel %vm11598_vm2, %v380_v55, %v384_v38  ;;  %v403_v2 = vor.u32 %v402_v58, %v399_v57  ;;  %v424_v5 = vshll.u32 %v324_v59, 16  ;;  %v430_v9 = vshll.u32 %v325_v0, 16  ;;  %v330_v30 = vld [vmem:[%s11572_s10 + $0x3c] sm:$0xf]  ;;  %v331_v36 = vld [vmem:[%s11572_s10 + $0x40] sm:$0xf] }
  0x2a   : > { %v395_v6 = vsel %vm11598_vm2, %v390_v60, %v394_v43  ;;  %v413_v7 = vor.u32 %v412_v62, %v408_v61  ;;  %v418_v8 = vrot.slane %v416_v63, 5  ;;  %v423_v14 = vrot.slane %v421_v4, 4  ;;  %v10858_v38 = vld [vmem:[%s11572_s10 + $0x3c] sm:$0xff]   ;;  %v332_v42 = vld [vmem:[%s11572_s10 + $0x44] sm:$0x1]  ;;  %v10859_v52 = vld [vmem:[%s11572_s10 + $0x48] sm:$0xff]  }
  0x2b   : > { %v9551_v11 = vcombine.low %v385_v1, %v395_v6  ;;  %v404_v12 = vrot.slane %v403_v2, 4  ;;  %v426_v15 = vrot.slane %v424_v5, 5  ;;  %v432_v18 = vrot.slane %v430_v9, 5  ;;  %v335_v2 = vld [vmem:[%s11572_s10 + $0x50] sm:$0x1] }
  0x2c   : > { %v414_v17 = vrot.slane %v413_v7, 4  ;;  %v434_v19 = vshrl.u32 %v325_v0, 16  ;;  %v440_v20 = vshll.u32 %v326_v3, 16  ;;  %v445_v24 = vshrl.u32 %v327_v10, 16  ;;  %v336_v7 = vld [vmem:[%s11572_s10 + $0x54] sm:$0xf] }
  0x2d   : > { %620 = vrot.lane.b32.xlu1 %v9551_v11, %s11457_s12  ;;  %917 = vrot.lane.b32.xlu0 %v10856_v56, %s11457_s12  ;;  %v409_v22 = vsel %vm11598_vm2, %v404_v12, %v408_v61  ;;  %v427_v23 = vor.u32 %v426_v15, %v423_v14  ;;  %v448_v25 = vshll.u32 %v327_v10, 16  ;;  %v454_v29 = vshll.u32 %v328_v16, 16  ;;  %v333_v56 = vld [vmem:[%s11572_s10 + $0x48] sm:$0xf]  ;;  %v334_v61 = vld [vmem:[%s11572_s10 + $0x4c] sm:$0xf] }
  0x2e   : > { %v419_v26 = vsel %vm11598_vm2, %v414_v17, %v418_v8  ;;  %v436_v27 = vrot.slane %v434_v19, 4  ;;  %v442_v28 = vrot.slane %v440_v20, 5  ;;  %v447_v33 = vrot.slane %v445_v24, 4  ;;  %v10860_v10 = vld [vmem:[%s11572_s10 + $0x54] sm:$0xff]  }
  0x2f   : > { %v9552_v31 = vcombine.low %v409_v22, %v419_v26  ;;  %v428_v32 = vrot.slane %v427_v23, 4  ;;  %v450_v34 = vrot.slane %v448_v25, 5  ;;  %v456_v39 = vrot.slane %v454_v29, 5  ;;  %v338_v22 = vld [vmem:[%s11572_s10 + $0x5c] sm:$0x1]  ;;  %v10861_v29 = vld [vmem:[%s11572_s10 + $0x60] sm:$0xff]  }
  0x30   : > { %v437_v37 = vor.u32 %v436_v27, %v432_v18  ;;  %v458_v40 = vshrl.u32 %v328_v16, 16  ;;  %v464_v41 = vshll.u32 %v329_v21, 16  ;;  %v469_v45 = vshrl.u32 %v330_v30, 16  ;;  %v339_v27 = vld [vmem:[%s11572_s10 + $0x60] sm:$0xf] }
  0x31   : > { %622 = vrot.lane.b32.xlu1 %v9552_v31, %s11457_s12  ;;  %919 = vrot.lane.b32.xlu0 %v10857_v13, %s11457_s12  ;;  %v433_v43 = vsel %vm11598_vm2, %v428_v32, %v432_v18  ;;  %v451_v44 = vor.u32 %v450_v34, %v447_v33  ;;  %v472_v46 = vshll.u32 %v330_v30, 16  ;;  %v478_v50 = vshll.u32 %v331_v36, 16  ;;  %v337_v13 = vld [vmem:[%s11572_s10 + $0x58] sm:$0xf]  ;;  %v340_v33 = vld [vmem:[%s11572_s10 + $0x64] sm:$0xf] }
  0x32   : > { %v438_v47 = vrot.slane %v437_v37, 4  ;;  %v460_v48 = vrot.slane %v458_v40, 4  ;;  %v466_v49 = vrot.slane %v464_v41, 5  ;;  %v471_v53 = vrot.slane %v469_v45, 4 }
  0x33   : > { %v452_v51 = vrot.slane %v451_v44, 4  ;;  %v474_v54 = vrot.slane %v472_v46, 5  ;;  %v482_v55 = vshrl.u32 %v331_v36, 16  ;;  %v480_v59 = vrot.slane %v478_v50, 5 }
  0x34   : > { %v443_v57 = vsel %vm11598_vm2, %v438_v47, %v442_v28  ;;  %v461_v58 = vor.u32 %v460_v48, %v456_v39  ;;  %v488_v60 = vshll.u32 %v332_v42, 16  ;;  %v493_v5 = vshrl.u32 %v333_v56, 16  ;;  %v342_v48 = vld [vmem:[%s11572_s10 + $0x6c] sm:$0xf] }
  0x35   : > { %v9553_v62 = vcombine.low %v433_v43, %v443_v57  ;;  %921 = vrot.lane.b32.xlu0 %v10858_v38, %s11457_s12  ;;  %v457_v63 = vsel %vm11598_vm2, %v452_v51, %v456_v39  ;;  %v475_v0 = vor.u32 %v474_v54, %v471_v53  ;;  %v484_v1 = vrot.slane %v482_v55, 4  ;;  %v341_v43 = vld [vmem:[%s11572_s10 + $0x68] sm:$0x1]  ;;  %v343_v53 = vld [vmem:[%s11572_s10 + $0x70] sm:$0xf] }
  0x36   : > { %v462_v3 = vrot.slane %v461_v58, 4  ;;  %v490_v4 = vrot.slane %v488_v60, 5  ;;  %v496_v6 = vshll.u32 %v333_v56, 16  ;;  %v502_v11 = vshll.u32 %v334_v61, 16  ;;  %v10879_v54 = vld [vmem:[%s14930_s1 + $0x54] ss:$8 sps:$4 sm:$0xff]  }
  0x37   : > { %624 = vrot.lane.b32.xlu1 %v9553_v62, %s11457_s12  ;;  %v476_v8 = vrot.slane %v475_v0, 4  ;;  %v485_v9 = vor.u32 %v484_v1, %v480_v59  ;;  %v506_v12 = vshrl.u32 %v334_v61, 16  ;;  %v495_v15 = vrot.slane %v493_v5, 4  ;;  %2606 = vmatprep.subr.bf16.mxu0 %v10879_v54 }
  0x38   : > { %v467_v14 = vsel %vm11598_vm2, %v462_v3, %v466_v49  ;;  %v498_v16 = vrot.slane %v496_v6, 5  ;;  %v512_v17 = vshll.u32 %v335_v2, 16  ;;  %v504_v21 = vrot.slane %v502_v11, 5 }
  0x39   : > { %v9554_v18 = vcombine.low %v457_v63, %v467_v14  ;;  %923 = vrot.lane.b32.xlu0 %v10859_v52, %s11457_s12  ;;  %v481_v19 = vsel %vm11598_vm2, %v476_v8, %v480_v59  ;;  %v486_v20 = vrot.slane %v485_v9, 4  ;;  %v508_v24 = vrot.slane %v506_v12, 4  ;;  %v10881_v59 = vld [vmem:[%s14930_s1 + $0x50] ss:$8 sps:$4 sm:$0xff]  }
  0x3a   : > { %v499_v23 = vor.u32 %v498_v16, %v495_v15  ;;  %v514_v25 = vrot.slane %v512_v17, 5  ;;  %v517_v26 = vshrl.u32 %v336_v7, 16  ;;  %v520_v30 = vshll.u32 %v336_v7, 16  ;;  %v10868_v63 = vld [vmem:[%s11572_s10 + $0x6c] sm:$0xff]   ;;  %2607 = vmatpush1.bf16.msra.mxu0 %v10881_v59  ;;  %v344_v7 = vld [vmem:[%s11572_s10 + $0x74] sm:$0x1] }
  0x3b   : > { %626 = vrot.lane.b32.xlu1 %v9554_v18, %s11457_s12  ;;  %v491_v28 = vsel %vm11598_vm2, %v486_v20, %v490_v4  ;;  %v526_v31 = vshll.u32 %v337_v13, 16  ;;  %v530_v32 = vshrl.u32 %v337_v13, 16  ;;  %v509_v37 = vor.u32 %v508_v24, %v504_v21  ;;  %v10875_v15 = vld [vmem:[%s11572_s10 + $0x78] sm:$0xff]  }
  0x3c   : > { %v9555_v34 = vcombine.low %v481_v19, %v491_v28  ;;  %v500_v36 = vrot.slane %v499_v23, 4  ;;  %v519_v38 = vrot.slane %v517_v26, 4  ;;  %v522_v39 = vrot.slane %v520_v30, 5  ;;  %v9731_v16 = vld [vmem:[%s11572_s10 + $0x1c] sm:$0xf] }
  0x3d   : > { %925 = vrot.lane.b32.xlu0 %v10860_v10, %s11457_s12  ;;  %v528_v40 = vrot.slane %v526_v31, 5  ;;  %v532_v41 = vrot.slane %v530_v32, 4  ;;  %v536_v42 = vshll.u32 %v338_v22, 16  ;;  %v510_v45 = vrot.slane %v509_v37, 4  ;;  %v9730_v10 = vld [vmem:[%s11572_s10 + $0x18] sm:$0xf] }
  0x3e   : > { %v505_v44 = vsel %vm11598_vm2, %v500_v36, %v504_v21  ;;  %v541_v46 = vshrl.u32 %v339_v27, 16  ;;  %v544_v47 = vshll.u32 %v339_v27, 16  ;;  %v523_v49 = vor.u32 %v522_v39, %v519_v38  ;;  %v9732_v21 = vld [vmem:[%s11572_s10 + $0x20] sm:$0x1]  ;;  %v9650_v22 = vld [vmem:[%s11572_s10 + $0xc] sm:$0xe] }
  0x3f   : > { %628 = vrot.lane.b32.xlu1 %v9555_v34, %s11457_s12  ;;  %v533_v50 = vor.u32 %v532_v41, %v528_v40  ;;  %v538_v51 = vrot.slane %v536_v42, 5  ;;  %v550_v52 = vshll.u32 %v340_v33, 16  ;;  %v515_v55 = vsel %vm11598_vm2, %v510_v45, %v514_v25  ;;  %v10882_v23 = vld [vmem:[%s14930_s1 + $0x64] ss:$8 sps:$4 sm:$0xff]   ;;  %v9651_v28 = vld [vmem:[%s11572_s10 + $0x10] sm:$0xf] }
  0x40   : > { %v543_v56 = vrot.slane %v541_v46, 4  ;;  %v546_v57 = vrot.slane %v544_v47, 5  ;;  %v554_v58 = vshrl.u32 %v340_v33, 16  ;;  %v9556_v60 = vcombine.low %v505_v44, %v515_v55  ;;  %2608 = vmatprep.subr.bf16.mxu0 %v10882_v23  ;;  %v10885_v34 = vld [vmem:[%s14930_s1 + $0x74] ss:$8 sps:$4 sm:$0xff]  }
  0x41   : > { %927 = vrot.lane.b32.xlu0 %v10861_v29, %s11457_s12  ;;  %v524_v61 = vrot.slane %v523_v49, 4  ;;  %v534_v62 = vrot.slane %v533_v50, 4  ;;  %v552_v0 = vrot.slane %v550_v52, 5  ;;  %v560_v3 = vshll.u32 %v341_v43, 16  ;;  %v10884_v29 = vld [vmem:[%s14930_s1 + $0x60] ss:$8 sps:$4 sm:$0xff]  }
  0x42   : > { %v547_v1 = vor.u32 %v546_v57, %v543_v56  ;;  %v556_v2 = vrot.slane %v554_v58, 4  ;;  %v565_v4 = vshrl.u32 %v342_v48, 16  ;;  %v568_v8 = vshll.u32 %v342_v48, 16  ;;  %2609 = vmatpush1.bf16.msra.mxu0 %v10884_v29  ;;  %v9652_v45 = vld [vmem:[%s11572_s10 + $0x14] sm:$0x1] }
  0x43   : > { %630 = vrot.lane.b32.xlu1 %v9556_v60, %s11457_s12  ;;  %v529_v5 = vsel %vm11598_vm2, %v524_v61, %v528_v40  ;;  %v539_v6 = vsel %vm11598_vm2, %v534_v62, %v538_v51  ;;  %v574_v9 = vshll.u32 %v343_v53, 16  ;;  %v562_v14 = vrot.slane %v560_v3, 5  ;;  %v10887_v40 = vld [vmem:[%s14930_s1 + $0x70] ss:$8 sps:$4 sm:$0xff]   ;;  %2610 = vmatprep.subr.bf16.mxu0 %v10885_v34  ;;  %v9733_v46 = vld [vmem:[%s11572_s10 + $0x24] sm:$0xf] }
  0x44   : > { %v9557_v11 = vcombine.low %v529_v5, %v539_v6  ;;  %v548_v12 = vrot.slane %v547_v1, 4  ;;  %v557_v13 = vor.u32 %v556_v2, %v552_v0  ;;  %v567_v17 = vrot.slane %v565_v4, 4  ;;  %v9734_v56 = vld [vmem:[%s11572_s10 + $0x28] sm:$0xf]  ;;  %v9735_v57 = vld [vmem:[%s11572_s10 + $0x2c] sm:$0x1] }
  0x45   : > { %929 = vrot.lane.b32.xlu0 %v10868_v63, %s11457_s12  ;;  %v570_v18 = vrot.slane %v568_v8, 5  ;;  %v576_v19 = vrot.slane %v574_v9, 5  ;;  %v578_v20 = vshrl.u32 %v343_v53, 16  ;;  %v584_v26 = vshll.u32 %v344_v7, 16  ;;  %v9653_v62 = vld [vmem:[%s11572_s10 + $0x18] sm:$0xe] }
  0x46   : > { %v553_v24 = vsel %vm11598_vm2, %v548_v12, %v552_v0  ;;  %v558_v25 = vrot.slane %v557_v13, 4  ;;  %v1595_v27 = vshrl.u32 %v9730_v10, 16  ;;  %v1598_v32 = vshll.u32 %v9730_v10, 16  ;;  %2611 = vmatpush1.bf16.msra.mxu0 %v10887_v40  ;;  %v9654_v3 = vld [vmem:[%s11572_s10 + $0x1c] sm:$0xf] }
  0x47   : > { %632 = vrot.lane.b32.xlu1 %v9557_v11, %s11457_s12  ;;  %v571_v30 = vor.u32 %v570_v18, %v567_v17  ;;  %v580_v31 = vrot.slane %v578_v20, 4  ;;  %v1604_v33 = vshll.u32 %v9731_v16, 16  ;;  %v586_v37 = vrot.slane %v584_v26, 5  ;;  %v10888_v4 = vld [vmem:[%s14930_s1 + $0x84] ss:$8 sps:$4 sm:$0xff]  }
  0x48   : > { %v563_v36 = vsel %vm11598_vm2, %v558_v25, %v562_v14  ;;  %v1597_v38 = vrot.slane %v1595_v27, 4  ;;  %v1608_v39 = vshrl.u32 %v9731_v16, 16  ;;  %v1600_v44 = vrot.slane %v1598_v32, 5  ;;  %v10890_v5 = vld [vmem:[%s14930_s1 + $0x80] ss:$8 sps:$4 sm:$0xff]   ;;  %2612 = vmatprep.subr.bf16.mxu0 %v10888_v4 }
  0x49   : > { %v9558_v41 = vcombine.low %v553_v24, %v563_v36  ;;  %931 = vrot.lane.b32.xlu0 %v10875_v15, %s11457_s12  ;;  %v572_v42 = vrot.slane %v571_v30, 4  ;;  %v581_v43 = vor.u32 %v580_v31, %v576_v19  ;;  %v1606_v47 = vrot.slane %v1604_v33, 5  ;;  %v10891_v10 = vld [vmem:[%s14930_s1 + $0x94] ss:$8 sps:$4 sm:$0xff]   ;;  %v9655_v15 = vld [vmem:[%s11572_s10 + $0x20] sm:$0x1] }
  0x4a   : > { %v1610_v48 = vrot.slane %v1608_v39, 4  ;;  %v1614_v49 = vshll.u32 %v9732_v21, 16  ;;  %v9680_v51 = vrot.slane %v9650_v22, 9  ;;  %v1601_v54 = vor.u32 %v1600_v44, %v1597_v38  ;;  %v10893_v16 = vld [vmem:[%s14930_s1 + $0x90] ss:$8 sps:$4 sm:$0xff]   ;;  %2613 = vmatpush1.bf16.msra.mxu0 %v10890_v5 }
  0x4b   : > { %634 = vrot.lane.b32.xlu1 %v9558_v41, %s11457_s12  ;;  %v577_v52 = vsel %vm11598_vm2, %v572_v42, %v576_v19  ;;  %v582_v53 = vrot.slane %v581_v43, 4  ;;  %v1335_v55 = vrot.slane %v9651_v28, 5  ;;  %v1338_v60 = vrot.slane %v9652_v45, 5  ;;  %v9736_v21 = vld [vmem:[%s11572_s10 + $0x30] sm:$0xf]  ;;  %2614 = vmatprep.subr.bf16.mxu0 %v10891_v10 }
  0x4c   : > { %v1611_v58 = vor.u32 %v1610_v48, %v1606_v47  ;;  %v1616_v59 = vrot.slane %v1614_v49, 5  ;;  %v1619_v61 = vshrl.u32 %v9733_v46, 16  ;;  %v1602_v0 = vrot.slane %v1601_v54, 4  ;;  %v9737_v22 = vld [vmem:[%s11572_s10 + $0x34] sm:$0xf] }
  0x4d   : > { %v587_v63 = vsel %vm11598_vm2, %v582_v53, %v586_v37  ;;  %v1336_v1 = vsel %vm11713_vm5, %v9680_v51, %v1335_v55  ;;  %v1337_v2 = vrot.slane %v1335_v55, 4  ;;  %v1622_v9 = vshll.u32 %v9733_v46, 16  ;;  %v9738_v27 = vld [vmem:[%s11572_s10 + $0x38] sm:$0x1]  ;;  %v9656_v32 = vld [vmem:[%s11572_s10 + $0x24] sm:$0xe] }
  0x4e   : > { %v9559_v6 = vcombine.low %v577_v52, %v587_v63  ;;  %v1612_v7 = vrot.slane %v1611_v58, 4  ;;  %v1621_v8 = vrot.slane %v1619_v61, 4  ;;  %v1607_v11 = vsel %vm11598_vm2, %v1602_v0, %v1606_v47  ;;  %v9657_v38 = vld [vmem:[%s11572_s10 + $0x28] sm:$0xf]  ;;  %2615 = vmatpush1.bf16.msra.mxu0 %v10893_v16  ;;  %v10894_v43 = vld [vmem:[%s14930_s1 + $0xa4] ss:$8 sps:$4 sm:$0xff]  }
  0x4f   : > { %v1339_v12 = vsel %vm11713_vm5, %v1337_v2, %v1338_v60  ;;  %v1628_v13 = vshll.u32 %v9734_v56, 16  ;;  %v1632_v14 = vshrl.u32 %v9734_v56, 16  ;;  %v1624_v19 = vrot.slane %v1622_v9, 5  ;;  %v10896_v48 = vld [vmem:[%s14930_s1 + $0xa0] ss:$8 sps:$4 sm:$0xff]   ;;  %2616 = vmatprep.subr.bf16.mxu0 %v10894_v43 }
  0x50   : > { %636 = vrot.lane.b32.xlu1 %v9559_v6, %s11457_s12  ;;  %v1617_v17 = vsel %vm11598_vm2, %v1612_v7, %v1616_v59  ;;  %v9690_v18 = vcombine.low %v1336_v1, %v1339_v12  ;;  %v1638_v20 = vshll.u32 %v9735_v57, 16  ;;  %v9681_v26 = vrot.slane %v9653_v62, 9  ;;  %v9658_v54 = vld [vmem:[%s11572_s10 + $0x2c] sm:$0x1]  ;;  %v10897_v55 = vld [vmem:[%s14930_s1 + $0xb4] ss:$8 sps:$4 sm:$0xff]  }
  0x51   : > { %v9760_v23 = vcombine.low %v1607_v11, %v1617_v17  ;;  %v1630_v24 = vrot.slane %v1628_v13, 5  ;;  %v1634_v25 = vrot.slane %v1632_v14, 4  ;;  %v1625_v28 = vor.u32 %v1624_v19, %v1621_v8  ;;  %v9739_v60 = vld [vmem:[%s11572_s10 + $0x3c] sm:$0xf]  ;;  %v9740_v61 = vld [vmem:[%s11572_s10 + $0x40] sm:$0xf] }
  0x52   : > { %v1640_v29 = vrot.slane %v1638_v20, 5  ;;  %v1342_v30 = vrot.slane %v9654_v3, 5  ;;  %v1345_v31 = vrot.slane %v9655_v15, 5  ;;  %v1643_v34 = vshrl.u32 %v9736_v21, 16  ;;  %v10907_v62 = vld [vmem:[%s11572_s10] sm:$0xff]   ;;  %2617 = vmatpush1.bf16.msra.mxu0 %v10896_v48 }
  0x53   : > { %1864 = vrot.lane.b32.xlu0 %v9760_v23, %s11457_s12  ;;  %v1635_v33 = vor.u32 %v1634_v25, %v1630_v24  ;;  %v1646_v36 = vshll.u32 %v9736_v21, 16  ;;  %v1652_v37 = vshll.u32 %v9737_v22, 16  ;;  %v1626_v39 = vrot.slane %v1625_v28, 4  ;;  %v10899_v3 = vld [vmem:[%s14930_s1 + $0xb0] ss:$8 sps:$4 sm:$0xff]   ;;  %2618 = vmatprep.subr.bf16.mxu0 %v10897_v55  ;;  %305 = vst.msk [vmem:[#allocation2] sm:$0xff] %vm14935_vm6, %v10907_v62 }
  0x54   : > { %1433 = vrot.lane.b32.xlu1 %v9690_v18, %s11457_s12  ;;  %v1343_v40 = vsel %vm11713_vm5, %v9681_v26, %v1342_v30  ;;  %v1344_v41 = vrot.slane %v1342_v30, 4  ;;  %v1656_v42 = vshrl.u32 %v9737_v22, 16  ;;  %v1645_v45 = vrot.slane %v1643_v34, 4  ;;  %v9741_v4 = vld [vmem:[%s11572_s10 + $0x44] sm:$0x1]  ;;  %v2160_v21 = vld [vmem:[%s14930_s1 + $0xd0] sm:$0xff] }
  0x55   : > { %v1636_v44 = vrot.slane %v1635_v33, 4  ;;  %v1648_v46 = vrot.slane %v1646_v36, 5  ;;  %v1654_v47 = vrot.slane %v1652_v37, 5  ;;  %v1631_v49 = vsel %vm11598_vm2, %v1626_v39, %v1630_v24  ;;  %v9659_v9 = vld [vmem:[%s11572_s10 + $0x30] sm:$0xe]  ;;  %v2161_v22 = vld [vmem:[%s14930_s1 + $0xd8] sm:$0xff] }
  0x56   : > { %v1346_v51 = vsel %vm11713_vm5, %v1344_v41, %v1345_v31  ;;  %v1658_v52 = vrot.slane %v1656_v42, 4  ;;  %v1662_v53 = vshll.u32 %v9738_v27, 16  ;;  %v9682_v59 = vrot.slane %v9656_v32, 9  ;;  %v9660_v10 = vld [vmem:[%s11572_s10 + $0x34] sm:$0xf]  ;;  %2619 = vmatpush1.bf16.msra.mxu0 %v10899_v3 }
  0x57   : > { %v1641_v56 = vsel %vm11598_vm2, %v1636_v44, %v1640_v29  ;;  %v9691_v57 = vcombine.low %v1343_v40, %v1346_v51  ;;  %v1649_v58 = vor.u32 %v1648_v46, %v1645_v45  ;;  %v1349_v2 = vrot.slane %v9657_v38, 5  ;;  %v9661_v15 = vld [vmem:[%s11572_s10 + $0x38] sm:$0x1]  ;;  %v10900_v20 = vld [vmem:[%s14930_s1 + $0xc4] ss:$8 sps:$4 sm:$0xff]  }
  0x58   : > { %v9761_v63 = vcombine.low %v1631_v49, %v1641_v56  ;;  %v1659_v0 = vor.u32 %v1658_v52, %v1654_v47  ;;  %v1664_v1 = vrot.slane %v1662_v53, 5  ;;  %v1352_v6 = vrot.slane %v9658_v54, 5  ;;  %v10902_v27 = vld [vmem:[%s14930_s1 + $0xc0] ss:$8 sps:$4 sm:$0xff]   ;;  %v10903_v28 = vld [vmem:[%s14930_s1 + $0xd4] ss:$8 sps:$4 sm:$0xff]   ;;  %2620 = vmatprep.subr.bf16.mxu0 %v10900_v20 }
  0x59   : > { %1435 = vrot.lane.b32.xlu1 %v9691_v57, %s11457_s12  ;;  %v1650_v5 = vrot.slane %v1649_v58, 4  ;;  %v1667_v7 = vshrl.u32 %v9739_v60, 16  ;;  %v1670_v8 = vshll.u32 %v9739_v60, 16  ;;  %v1350_v12 = vsel %vm11713_vm5, %v9682_v59, %v1349_v2  ;;  %v659_v33 = vld [vmem:[%s11572_s10] sm:$0xe]  ;;  %v2163_v60 = vld [vmem:[%s14930_s1 + $0xe8] sm:$0xff] }
  0x5a   : > { %1866 = vrot.lane.b32.xlu0 %v9761_v63, %s11457_s12  ;;  %v1660_v11 = vrot.slane %v1659_v0, 4  ;;  %v1351_v13 = vrot.slane %v1349_v2, 4  ;;  %v1676_v14 = vshll.u32 %v9740_v61, 16  ;;  %v1680_v19 = vshrl.u32 %v9740_v61, 16  ;;  %v660_v34 = vld [vmem:[%s11572_s10 + $0x4] sm:$0xf]  ;;  %2621 = vmatpush1.bf16.msra.mxu0 %v10902_v27 }
  0x5b   : > { %v1655_v16 = vsel %vm11598_vm2, %v1650_v5, %v1654_v47  ;;  %v1669_v17 = vrot.slane %v1667_v7, 4  ;;  %v1672_v18 = vrot.slane %v1670_v8, 5  ;;  %v1686_v26 = vshll.u32 %v9741_v4, 16  ;;  %v661_v40 = vld [vmem:[%s11572_s10 + $0x8] sm:$0x1]  ;;  %2622 = vmatprep.subr.bf16.mxu0 %v10903_v28  ;;  %v2162_v59 = vld [vmem:[%s14930_s1 + $0xe0] sm:$0xff] }
  0x5c   : > { %v1665_v23 = vsel %vm11598_vm2, %v1660_v11, %v1664_v1  ;;  %v1353_v24 = vsel %vm11713_vm5, %v1351_v13, %v1352_v6  ;;  %v1678_v25 = vrot.slane %v1676_v14, 5  ;;  %v1682_v32 = vrot.slane %v1680_v19, 4  ;;  %v9742_v45 = vld [vmem:[%s11572_s10 + $0x48] sm:$0xf]  ;;  %v9743_v51 = vld [vmem:[%s11572_s10 + $0x4c] sm:$0xf] }
  0x5d   : > { %v9762_v29 = vcombine.low %v1655_v16, %v1665_v23  ;;  %v9692_v30 = vcombine.low %v1350_v12, %v1353_v24  ;;  %v1673_v31 = vor.u32 %v1672_v18, %v1669_v17  ;;  %v1688_v36 = vrot.slane %v1686_v26, 5  ;;  %v9744_v52 = vld [vmem:[%s11572_s10 + $0x50] sm:$0x1]  ;;  %v9662_v57 = vld [vmem:[%s11572_s10 + $0x3c] sm:$0xe] }
  0x5e   : > { %v9683_v37 = vrot.slane %v9659_v9, 9  ;;  %v1356_v38 = vrot.slane %v9660_v10, 5  ;;  %v1359_v39 = vrot.slane %v9661_v15, 5  ;;  %v1683_v42 = vor.u32 %v1682_v32, %v1678_v25  ;;  %v9663_v58 = vld [vmem:[%s11572_s10 + $0x40] sm:$0xf]  ;;  %v10913_v2 = vld [vmem:[%s11572_s10 + $0xc] sm:$0xff]  }
  0x5f   : > { %1868 = vrot.lane.b32.xlu0 %v9762_v29, %s11457_s12  ;;  %1437 = vrot.lane.b32.xlu1 %v9692_v30, %s11457_s12  ;;  %v1674_v41 = vrot.slane %v1673_v31, 4  ;;  %v9560_v43 = vrot.slane %v659_v33, 9  ;;  %v724_v44 = vrot.slane %v660_v34, 5  ;;  %v727_v48 = vrot.slane %v661_v40, 5  ;;  %v9664_v1 = vld [vmem:[%s11572_s10 + $0x44] sm:$0x1] }
  0x60   : > { %v1357_v46 = vsel %vm11713_vm5, %v9683_v37, %v1356_v38  ;;  %v1358_v47 = vrot.slane %v1356_v38, 4  ;;  %v9846_v49 = vcombine.low %v2160_v21, %v2161_v22  ;;  %v1684_v54 = vrot.slane %v1683_v42, 4  ;;  %v10905_v7 = vld [vmem:[%s14930_s1 + $0xe4] ss:$8 sps:$4 sm:$0xff]   ;;  %v2164_v12 = vld [vmem:[%s14930_s1 + $0xf0] sm:$0xff]  ;;  %v2165_v13 = vld [vmem:[%s14930_s1 + $0xf8] sm:$0xff] }
  0x61   : > { %v1679_v53 = vsel %vm11598_vm2, %v1674_v41, %v1678_v25  ;;  %v725_v55 = vsel %vm11713_vm5, %v9560_v43, %v724_v44  ;;  %v726_v56 = vrot.slane %v724_v44, 4  ;;  %v1691_v62 = vshrl.u32 %v9742_v45, 16  ;;  %v10908_v14 = vld [vmem:[%s14930_s1 + $0xf4] ss:$8 sps:$4 sm:$0xff]   ;;  %306 = vst.msk [vmem:[#allocation2 + $0x28] sm:$0xff] %vm14935_vm6, %v10913_v2 }
  0x62   : > { %v1360_v61 = vsel %vm11713_vm5, %v1358_v47, %v1359_v39  ;;  %v1694_v63 = vshll.u32 %v9742_v45, 16  ;;  %v1700_v0 = vshll.u32 %v9743_v51, 16  ;;  %v1689_v3 = vsel %vm11598_vm2, %v1684_v54, %v1688_v36  ;;  %2623 = vmatpush1.bf16.msra.mxu0 %v9846_v49  ;;  %v662_v19 = vld [vmem:[%s11572_s10 + $0xc] sm:$0xe]  ;;  %v663_v24 = vld [vmem:[%s11572_s10 + $0x10] sm:$0xf] }
  0x63   : > { %v9693_v4 = vcombine.low %v1357_v46, %v1360_v61  ;;  %v728_v5 = vsel %vm11713_vm5, %v726_v56, %v727_v48  ;;  %v1704_v6 = vshrl.u32 %v9743_v51, 16  ;;  %v9763_v8 = vcombine.low %v1679_v53, %v1689_v3  ;;  %2624 = vmatprep.subr.bf16.mxu0 %v10905_v7  ;;  %v664_v25 = vld [vmem:[%s11572_s10 + $0x14] sm:$0x1]  ;;  %v9746_v36 = vld [vmem:[%s11572_s10 + $0x58] sm:$0xf] }
  0x64   : > { %v9570_v9 = vcombine.low %v725_v55, %v728_v5  ;;  %v1693_v10 = vrot.slane %v1691_v62, 4  ;;  %v1696_v11 = vrot.slane %v1694_v63, 5  ;;  %v1702_v15 = vrot.slane %v1700_v0, 5  ;;  %v9745_v30 = vld [vmem:[%s11572_s10 + $0x54] sm:$0xf]  ;;  %v10917_v37 = vld [vmem:[%s11572_s10 + $0x18] sm:$0xff]  }
  0x65   : > { %1439 = vrot.lane.b32.xlu1 %v9693_v4, %s11457_s12  ;;  %v1706_v16 = vrot.slane %v1704_v6, 4  ;;  %v1710_v17 = vshll.u32 %v9744_v52, 16  ;;  %v9684_v18 = vrot.slane %v9662_v57, 9  ;;  %1870 = vrot.lane.b32.xlu0 %v9763_v8, %s11457_s12  ;;  %v1363_v21 = vrot.slane %v9663_v58, 5  ;;  %v9747_v42 = vld [vmem:[%s11572_s10 + $0x5c] sm:$0x1] }
  0x66   : > { %832 = vst.msk [vmem:[#allocation2 + $0x8] sm:$0xff] %vm14935_vm6, %v9570_v9  ;;  %v1697_v20 = vor.u32 %v1696_v11, %v1693_v10  ;;  %v1366_v22 = vrot.slane %v9664_v1, 5  ;;  %v9848_v23 = vcombine.low %v2162_v59, %v2163_v60  ;;  %v9561_v28 = vrot.slane %v662_v19, 9  ;;  %v9665_v47 = vld [vmem:[%s11572_s10 + $0x48] sm:$0xe]  ;;  %307 = vst.msk [vmem:[#allocation2 + $0x50] sm:$0xff] %vm14935_vm6, %v10917_v37 }
  0x67   : > { %v1707_v26 = vor.u32 %v1706_v16, %v1702_v15  ;;  %v1712_v27 = vrot.slane %v1710_v17, 5  ;;  %v731_v29 = vrot.slane %v663_v24, 5  ;;  %v1364_v32 = vsel %vm11713_vm5, %v9684_v18, %v1363_v21  ;;  %v9666_v48 = vld [vmem:[%s11572_s10 + $0x4c] sm:$0xf]  ;;  %v9667_v54 = vld [vmem:[%s11572_s10 + $0x50] sm:$0x1] }
  0x68   : > { %v1698_v31 = vrot.slane %v1697_v20, 4  ;;  %v1365_v33 = vrot.slane %v1363_v21, 4  ;;  %2625 = vmatpush1.bf16.msra.mxu0 %v9848_v23  ;;  %v734_v34 = vrot.slane %v664_v25, 5  ;;  %v9850_v41 = vcombine.low %v2164_v12, %v2165_v13  ;;  %v10912_v55 = vld [vmem:[%s14930_s1 + $0x104] ss:$8 sps:$4 sm:$0xff]  }
  0x69   : > { %v1708_v38 = vrot.slane %v1707_v26, 4  ;;  %2626 = vmatprep.subr.bf16.mxu0 %v10908_v14  ;;  %v732_v39 = vsel %vm11713_vm5, %v9561_v28, %v731_v29  ;;  %v733_v40 = vrot.slane %v731_v29, 4  ;;  %v1715_v45 = vshrl.u32 %v9745_v30, 16  ;;  %v9748_v0 = vld [vmem:[%s11572_s10 + $0x60] sm:$0xf] }
  0x6a   : > { %v1703_v43 = vsel %vm11598_vm2, %v1698_v31, %v1702_v15  ;;  %v1367_v44 = vsel %vm11713_vm5, %v1365_v33, %v1366_v22  ;;  %v1718_v46 = vshll.u32 %v9745_v30, 16  ;;  %v1724_v53 = vshll.u32 %v9746_v36, 16  ;;  %v9749_v4 = vld [vmem:[%s11572_s10 + $0x64] sm:$0xf]  ;;  %v9750_v7 = vld [vmem:[%s11572_s10 + $0x68] sm:$0x1] }
  0x6b   : > { %v1713_v49 = vsel %vm11598_vm2, %v1708_v38, %v1712_v27  ;;  %v9694_v51 = vcombine.low %v1364_v32, %v1367_v44  ;;  %v735_v52 = vsel %vm11713_vm5, %v733_v40, %v734_v34  ;;  %v1717_v58 = vrot.slane %v1715_v45, 4  ;;  %v9668_v18 = vld [vmem:[%s11572_s10 + $0x54] sm:$0xe]  ;;  %v9669_v23 = vld [vmem:[%s11572_s10 + $0x58] sm:$0xf] }
  0x6c   : > { %v9764_v56 = vcombine.low %v1703_v43, %v1713_v49  ;;  %v9571_v57 = vcombine.low %v732_v39, %v735_v52  ;;  %2627 = vmatpush1.bf16.msra.mxu0 %v9850_v41  ;;  %v1720_v59 = vrot.slane %v1718_v46, 5  ;;  %v1726_v60 = vrot.slane %v1724_v53, 5  ;;  %v9670_v24 = vld [vmem:[%s11572_s10 + $0x5c] sm:$0x1]  ;;  %v665_v29 = vld [vmem:[%s11572_s10 + $0x18] sm:$0xe] }
  0x6d   : > { %1441 = vrot.lane.b32.xlu1 %v9694_v51, %s11457_s12  ;;  %v1728_v61 = vshrl.u32 %v9746_v36, 16  ;;  %v1734_v62 = vshll.u32 %v9747_v42, 16  ;;  %v9685_v63 = vrot.slane %v9665_v47, 9  ;;  %2729 = vmatprep.subr.bf16.mxu0 %v10912_v55  ;;  %v1370_v2 = vrot.slane %v9666_v48, 5  ;;  %v666_v30 = vld [vmem:[%s11572_s10 + $0x1c] sm:$0xf] }
  0x6e   : > { %1872 = vrot.lane.b32.xlu0 %v9764_v56, %s11457_s12  ;;  %833 = vst.msk [vmem:[#allocation2 + $0x30] sm:$0xff] %vm14935_vm6, %v9571_v57  ;;  %v1721_v1 = vor.u32 %v1720_v59, %v1717_v58  ;;  %v1373_v3 = vrot.slane %v9667_v54, 5  ;;  %v1739_v8 = vshrl.u32 %v9748_v0, 16  ;;  %v1742_v9 = vshll.u32 %v9748_v0, 16  ;;  %v667_v36 = vld [vmem:[%s11572_s10 + $0x20] sm:$0x1] }
  0x6f   : > { %v1730_v5 = vrot.slane %v1728_v61, 4  ;;  %v1736_v6 = vrot.slane %v1734_v62, 5  ;;  %v1371_v11 = vsel %vm11713_vm5, %v9685_v63, %v1370_v2  ;;  %v1372_v12 = vrot.slane %v1370_v2, 4  ;;  %v9751_v48 = vld [vmem:[%s11572_s10 + $0x6c] sm:$0xf] }
  0x70   : > { %v1722_v10 = vrot.slane %v1721_v1, 4  ;;  %v1748_v13 = vshll.u32 %v9749_v4, 16  ;;  %v1741_v15 = vrot.slane %v1739_v8, 4  ;;  %v1744_v16 = vrot.slane %v1742_v9, 5  ;;  %v9752_v49 = vld [vmem:[%s11572_s10 + $0x70] sm:$0xf] }
  0x71   : > { %v1731_v14 = vor.u32 %v1730_v5, %v1726_v60  ;;  %v1752_v17 = vshrl.u32 %v9749_v4, 16  ;;  %v1374_v20 = vsel %vm11713_vm5, %v1372_v12, %v1373_v3  ;;  %v1758_v22 = vshll.u32 %v9750_v7, 16  ;;  %v9753_v54 = vld [vmem:[%s11572_s10 + $0x74] sm:$0x1]  ;;  %v9671_v56 = vld [vmem:[%s11572_s10 + $0x60] sm:$0xe] }
  0x72   : > { %v1727_v19 = vsel %vm11598_vm2, %v1722_v10, %v1726_v60  ;;  %v1750_v21 = vrot.slane %v1748_v13, 5  ;;  %v9695_v26 = vcombine.low %v1371_v11, %v1374_v20  ;;  %v1745_v27 = vor.u32 %v1744_v16, %v1741_v15  ;;  %v9672_v61 = vld [vmem:[%s11572_s10 + $0x64] sm:$0xf]  ;;  %v9673_v62 = vld [vmem:[%s11572_s10 + $0x68] sm:$0x1] }
  0x73   : > { %v1732_v25 = vrot.slane %v1731_v14, 4  ;;  %v1754_v28 = vrot.slane %v1752_v17, 4  ;;  %v1760_v31 = vrot.slane %v1758_v22, 5  ;;  %v9686_v32 = vrot.slane %v9668_v18, 9  ;;  %v668_v3 = vld [vmem:[%s11572_s10 + $0x24] sm:$0xe] }
  0x74   : > { %v1377_v33 = vrot.slane %v9669_v23, 5  ;;  %v1380_v34 = vrot.slane %v9670_v24, 5  ;;  %1443 = vrot.lane.b32.xlu1 %v9695_v26, %s11457_s12  ;;  %v1746_v38 = vrot.slane %v1745_v27, 4  ;;  %v9562_v40 = vrot.slane %v665_v29, 9  ;;  %v669_v4 = vld [vmem:[%s11572_s10 + $0x28] sm:$0xf] }
  0x75   : > { %v1737_v37 = vsel %vm11598_vm2, %v1732_v25, %v1736_v6  ;;  %v1755_v39 = vor.u32 %v1754_v28, %v1750_v21  ;;  %v738_v44 = vrot.slane %v666_v30, 5  ;;  %v741_v47 = vrot.slane %v667_v36, 5  ;;  %v670_v9 = vld [vmem:[%s11572_s10 + $0x2c] sm:$0x1]  ;;  %v10924_v18 = vld [vmem:[%s11572_s10 + $0x24] sm:$0xff]   ;;  %v10928_v29 = vld [vmem:[%s11572_s10 + $0x30] sm:$0xff]  }
  0x76   : > { %v9765_v41 = vcombine.low %v1727_v19, %v1737_v37  ;;  %v1378_v42 = vsel %vm11713_vm5, %v9686_v32, %v1377_v33  ;;  %v1379_v43 = vrot.slane %v1377_v33, 4  ;;  %v1751_v45 = vsel %vm11598_vm2, %v1746_v38, %v1750_v21  ;;  %308 = vst.msk [vmem:[#allocation2 + $0x78] sm:$0xff] %vm14935_vm6, %v10924_v18  ;;  %v9754_v28 = vld [vmem:[%s11572_s10 + $0x78] sm:$0xf]  ;;  %v9755_v33 = vld [vmem:[%s11572_s10 + $0x7c] sm:$0xf] }
  0x77   : > { %v1756_v46 = vrot.slane %v1755_v39, 4  ;;  %v739_v52 = vsel %vm11713_vm5, %v9562_v40, %v738_v44  ;;  %v740_v53 = vrot.slane %v738_v44, 4  ;;  %v1763_v55 = vshrl.u32 %v9751_v48, 16  ;;  %309 = vst.msk [vmem:[#allocation2 + $0xa0] sm:$0xff] %vm14935_vm6, %v10928_v29 }
  0x78   : > { %1874 = vrot.lane.b32.xlu0 %v9765_v41, %s11457_s12  ;;  %v1381_v51 = vsel %vm11713_vm5, %v1379_v43, %v1380_v34  ;;  %v1766_v59 = vshll.u32 %v9751_v48, 16  ;;  %v1772_v60 = vshll.u32 %v9752_v49, 16  ;;  %v1776_v2 = vshrl.u32 %v9752_v49, 16  ;;  %v9756_v34 = vld [vmem:[%s11572_s10 + $0x80] sm:$0x1] }
  0x79   : > { %v1761_v57 = vsel %vm11598_vm2, %v1756_v46, %v1760_v31  ;;  %v9696_v58 = vcombine.low %v1378_v42, %v1381_v51  ;;  %v742_v0 = vsel %vm11713_vm5, %v740_v53, %v741_v47  ;;  %v1765_v1 = vrot.slane %v1763_v55, 4  ;;  %v9674_v41 = vld [vmem:[%s11572_s10 + $0x6c] sm:$0xe]  ;;  %v9675_v42 = vld [vmem:[%s11572_s10 + $0x70] sm:$0xf] }
  0x7a   : > { %v9766_v63 = vcombine.low %v1751_v45, %v1761_v57  ;;  %v9572_v5 = vcombine.low %v739_v52, %v742_v0  ;;  %v1768_v6 = vrot.slane %v1766_v59, 5  ;;  %v1774_v7 = vrot.slane %v1772_v60, 5  ;;  %v9676_v47 = vld [vmem:[%s11572_s10 + $0x74] sm:$0x1]  ;;  %v671_v53 = vld [vmem:[%s11572_s10 + $0x30] sm:$0xe] }
  0x7b   : > { %1445 = vrot.lane.b32.xlu1 %v9696_v58, %s11457_s12  ;;  %v1782_v8 = vshll.u32 %v9753_v54, 16  ;;  %v1778_v10 = vrot.slane %v1776_v2, 4  ;;  %v9687_v11 = vrot.slane %v9671_v56, 9  ;;  %v1384_v12 = vrot.slane %v9672_v61, 5  ;;  %v672_v56 = vld [vmem:[%s11572_s10 + $0x34] sm:$0xf] }
  0x7c   : > { %1876 = vrot.lane.b32.xlu0 %v9766_v63, %s11457_s12  ;;  %v1387_v13 = vrot.slane %v9673_v62, 5  ;;  %834 = vst.msk [vmem:[#allocation2 + $0x58] sm:$0xff] %vm14935_vm6, %v9572_v5  ;;  %v1769_v14 = vor.u32 %v1768_v6, %v1765_v1  ;;  %v9563_v16 = vrot.slane %v668_v3, 9  ;;  %v745_v17 = vrot.slane %v669_v4, 5  ;;  %v673_v61 = vld [vmem:[%s11572_s10 + $0x38] sm:$0x1] }
  0x7d   : > { %v1784_v15 = vrot.slane %v1782_v8, 5  ;;  %v1779_v19 = vor.u32 %v1778_v10, %v1774_v7  ;;  %v1385_v20 = vsel %vm11713_vm5, %v9687_v11, %v1384_v12  ;;  %v1386_v21 = vrot.slane %v1384_v12, 4  ;;  %v9757_v6 = vld [vmem:[%s11572_s10 + $0x84] sm:$0xf]  ;;  %v9759_v10 = vld [vmem:[%s11572_s10 + $0x8c] sm:$0x1] }
  0x7e   : > { %v748_v22 = vrot.slane %v670_v9, 5  ;;  %v1770_v23 = vrot.slane %v1769_v14, 4  ;;  %v746_v24 = vsel %vm11713_vm5, %v9563_v16, %v745_v17  ;;  %v747_v25 = vrot.slane %v745_v17, 4  ;;  %v9758_v9 = vld [vmem:[%s11572_s10 + $0x88] sm:$0xf] }
  0x7f   : > { %v1780_v26 = vrot.slane %v1779_v19, 4  ;;  %v1388_v27 = vsel %vm11713_vm5, %v1386_v21, %v1387_v13  ;;  %v1787_v36 = vshrl.u32 %v9754_v28, 16  ;;  %v1790_v39 = vshll.u32 %v9754_v28, 16  ;;  %v9677_v16 = vld [vmem:[%s11572_s10 + $0x78] sm:$0xe] }
  0x80   : > { %v1775_v30 = vsel %vm11598_vm2, %v1770_v23, %v1774_v7  ;;  %v9697_v31 = vcombine.low %v1385_v20, %v1388_v27  ;;  %v749_v32 = vsel %vm11713_vm5, %v747_v25, %v748_v22  ;;  %v1796_v40 = vshll.u32 %v9755_v33, 16  ;;  %v9678_v17 = vld [vmem:[%s11572_s10 + $0x7c] sm:$0xf]  ;;  %v9679_v22 = vld [vmem:[%s11572_s10 + $0x80] sm:$0x1] }
  0x81   : > { %v1785_v37 = vsel %vm11598_vm2, %v1780_v26, %v1784_v15  ;;  %v9573_v38 = vcombine.low %v746_v24, %v749_v32  ;;  %v1789_v44 = vrot.slane %v1787_v36, 4  ;;  %v1800_v45 = vshrl.u32 %v9755_v33, 16  ;;  %v10935_v23 = vld [vmem:[%s11572_s10 + $0x3c] sm:$0xff]  }
  0x82   : > { %v9767_v43 = vcombine.low %v1775_v30, %v1785_v37  ;;  %1447 = vrot.lane.b32.xlu1 %v9697_v31, %s11457_s12  ;;  %v1806_v46 = vshll.u32 %v9756_v34, 16  ;;  %v1792_v48 = vrot.slane %v1790_v39, 5  ;;  %v1798_v49 = vrot.slane %v1796_v40, 5  ;;  %310 = vst.msk [vmem:[#allocation2 + $0xc8] sm:$0xff] %vm14935_vm6, %v10935_v23  ;;  %v674_v34 = vld [vmem:[%s11572_s10 + $0x3c] sm:$0xe] }
  0x83   : > { %835 = vst.msk [vmem:[#allocation2 + $0x80] sm:$0xff] %vm14935_vm6, %v9573_v38  ;;  %v9688_v51 = vrot.slane %v9674_v41, 9  ;;  %v1391_v52 = vrot.slane %v9675_v42, 5  ;;  %v1802_v54 = vrot.slane %v1800_v45, 4  ;;  %v1394_v55 = vrot.slane %v9676_v47, 5 }
  0x84   : > { %1878 = vrot.lane.b32.xlu0 %v9767_v43, %s11457_s12  ;;  %v9564_v57 = vrot.slane %v671_v53, 9  ;;  %v1793_v58 = vor.u32 %v1792_v48, %v1789_v44  ;;  %v752_v62 = vrot.slane %v672_v56, 5  ;;  %v1808_v0 = vrot.slane %v1806_v46, 5  ;;  %v675_v36 = vld [vmem:[%s11572_s10 + $0x40] sm:$0xf]  ;;  %v10939_v46 = vld [vmem:[%s11572_s10 + $0x48] sm:$0xff]  }
  0x85   : > { %v1392_v59 = vsel %vm11713_vm5, %v9688_v51, %v1391_v52  ;;  %v1393_v60 = vrot.slane %v1391_v52, 4  ;;  %v1803_v63 = vor.u32 %v1802_v54, %v1798_v49  ;;  %v755_v1 = vrot.slane %v673_v61, 5  ;;  %v676_v40 = vld [vmem:[%s11572_s10 + $0x44] sm:$0x1]  ;;  %v677_v54 = vld [vmem:[%s11572_s10 + $0x48] sm:$0xe] }
  0x86   : > { %v1794_v2 = vrot.slane %v1793_v58, 4  ;;  %v753_v4 = vsel %vm11713_vm5, %v9564_v57, %v752_v62  ;;  %v754_v5 = vrot.slane %v752_v62, 4  ;;  %v1811_v11 = vshrl.u32 %v9757_v6, 16  ;;  %311 = vst.msk [vmem:[#allocation2 + $0xf0] sm:$0xff] %vm14935_vm6, %v10939_v46  ;;  %v679_v58 = vld [vmem:[%s11572_s10 + $0x50] sm:$0x1] }
  0x87   : > { %v1395_v3 = vsel %vm11713_vm5, %v1393_v60, %v1394_v55  ;;  %v1804_v7 = vrot.slane %v1803_v63, 4  ;;  %v1814_v14 = vshll.u32 %v9757_v6, 16  ;;  %v1820_v15 = vshll.u32 %v9758_v9, 16  ;;  %v678_v55 = vld [vmem:[%s11572_s10 + $0x4c] sm:$0xf] }
  0x88   : > { %v9698_v8 = vcombine.low %v1392_v59, %v1395_v3  ;;  %v1799_v12 = vsel %vm11598_vm2, %v1794_v2, %v1798_v49  ;;  %v756_v13 = vsel %vm11713_vm5, %v754_v5, %v755_v1  ;;  %v1813_v20 = vrot.slane %v1811_v11, 4  ;;  %v680_v3 = vld [vmem:[%s11572_s10 + $0x54] sm:$0xe]  ;;  %v682_v6 = vld [vmem:[%s11572_s10 + $0x5c] sm:$0x1] }
  0x89   : > { %v1809_v18 = vsel %vm11598_vm2, %v1804_v7, %v1808_v0  ;;  %v9574_v19 = vcombine.low %v753_v4, %v756_v13  ;;  %v1824_v21 = vshrl.u32 %v9758_v9, 16  ;;  %v1816_v25 = vrot.slane %v1814_v14, 5  ;;  %v681_v4 = vld [vmem:[%s11572_s10 + $0x58] sm:$0xf] }
  0x8a   : > { %1449 = vrot.lane.b32.xlu1 %v9698_v8, %s11457_s12  ;;  %v9768_v24 = vcombine.low %v1799_v12, %v1809_v18  ;;  %v1822_v26 = vrot.slane %v1820_v15, 5  ;;  %v1830_v27 = vshll.u32 %v9759_v10, 16  ;;  %v9689_v29 = vrot.slane %v9677_v16, 9  ;;  %v10946_v12 = vld [vmem:[%s11572_s10 + $0x54] sm:$0xff]   ;;  %v683_v15 = vld [vmem:[%s11572_s10 + $0x60] sm:$0xe] }
  0x8b   : > { %836 = vst.msk [vmem:[#allocation2 + $0xa8] sm:$0xff] %vm14935_vm6, %v9574_v19  ;;  %v1826_v28 = vrot.slane %v1824_v21, 4  ;;  %v1398_v30 = vrot.slane %v9678_v17, 5  ;;  %v1401_v31 = vrot.slane %v9679_v22, 5  ;;  %v1817_v32 = vor.u32 %v1816_v25, %v1813_v20  ;;  %312 = vst.msk [vmem:[#allocation2 + $0x118] sm:$0xff] %vm14935_vm6, %v10946_v12 }
  0x8c   : > { %1880 = vrot.lane.b32.xlu0 %v9768_v24, %s11457_s12  ;;  %v1832_v33 = vrot.slane %v1830_v27, 5  ;;  %v9565_v41 = vrot.slane %v674_v34, 9  ;;  %v759_v44 = vrot.slane %v675_v36, 5  ;;  %v762_v45 = vrot.slane %v676_v40, 5  ;;  %v684_v16 = vld [vmem:[%s11572_s10 + $0x64] sm:$0xf] }
  0x8d   : > { %v1827_v37 = vor.u32 %v1826_v28, %v1822_v26  ;;  %v1399_v38 = vsel %vm11713_vm5, %v9689_v29, %v1398_v30  ;;  %v1400_v39 = vrot.slane %v1398_v30, 4  ;;  %v1818_v43 = vrot.slane %v1817_v32, 4  ;;  %v685_v19 = vld [vmem:[%s11572_s10 + $0x68] sm:$0x1]  ;;  %v687_v32 = vld [vmem:[%s11572_s10 + $0x70] sm:$0xf] }
  0x8e   : > { %v760_v52 = vsel %vm11713_vm5, %v9565_v41, %v759_v44  ;;  %v761_v53 = vrot.slane %v759_v44, 4  ;;  %v9566_v59 = vrot.slane %v677_v54, 9  ;;  %v766_v60 = vrot.slane %v678_v55, 5  ;;  %v10910_v27 = vld [vmem:[%s14930_s1 + $0x100] ss:$8 sps:$4 sm:$0xff]  }
  0x8f   : > { %v1828_v47 = vrot.slane %v1827_v37, 4  ;;  %v1402_v48 = vsel %vm11713_vm5, %v1400_v39, %v1401_v31  ;;  %v1823_v49 = vsel %vm11598_vm2, %v1818_v43, %v1822_v26  ;;  %v769_v63 = vrot.slane %v679_v58, 5  ;;  %v10953_v26 = vld [vmem:[%s11572_s10 + $0x60] sm:$0xff]   ;;  %v686_v31 = vld [vmem:[%s11572_s10 + $0x6c] sm:$0xe] }
  0x90   : > { %v914_v42 = vpop.permute.xlu0 %913  ;;  %v9699_v51 = vcombine.low %v1399_v38, %v1402_v48  ;;  %v763_v62 = vsel %vm11713_vm5, %v761_v53, %v762_v45  ;;  %v767_v1 = vsel %vm11713_vm5, %v9566_v59, %v766_v60  ;;  %v768_v2 = vrot.slane %v766_v60, 4  ;;  %313 = vst.msk [vmem:[#allocation2 + $0x140] sm:$0xff] %vm14935_vm6, %v10953_v26  ;;  %v688_v34 = vld [vmem:[%s11572_s10 + $0x74] sm:$0x1]  ;;  %v10957_v39 = vld [vmem:[%s11572_s10 + $0x6c] sm:$0xff]  }
  0x91   : > { %943 = vst.msk [vmem:[#allocation2 + $0x8] sm:$0xff] %vm14934_vm7, %v914_v42  ;;  %v1833_v57 = vsel %vm11598_vm2, %v1828_v47, %v1832_v33  ;;  %v9575_v0 = vcombine.low %v760_v52, %v763_v62  ;;  %v9567_v7 = vrot.slane %v680_v3, 9  ;;  %v773_v8 = vrot.slane %v681_v4, 5  ;;  %v10916_v41 = vld [vmem:[%s14930_s1 + $0x114] ss:$8 sps:$4 sm:$0xff]  }
  0x92   : > { %v916_v56 = vpop.permute.xlu1 %915  ;;  %v9769_v61 = vcombine.low %v1823_v49, %v1833_v57  ;;  %1451 = vrot.lane.b32.xlu1 %v9699_v51, %s11457_s12  ;;  %v770_v5 = vsel %vm11713_vm5, %v768_v2, %v769_v63  ;;  %v776_v11 = vrot.slane %v682_v6, 5  ;;  %v9568_v20 = vrot.slane %v683_v15, 9  ;;  %314 = vst.msk [vmem:[#allocation2 + $0x168] sm:$0xff] %vm14935_vm6, %v10957_v39  ;;  %v10914_v47 = vld [vmem:[%s14930_s1 + $0x110] ss:$8 sps:$4 sm:$0xff]   ;;  %v10968_v2 = vld [vmem:[%s11572_s10 + $0x24] sm:$0xff]  }
  0x93   : > { %944 = vst.msk [vmem:[#allocation2 + $0x30] sm:$0xff] %vm14934_vm7, %v916_v56  ;;  %v9576_v10 = vcombine.low %v767_v1, %v770_v5  ;;  %v774_v13 = vsel %vm11713_vm5, %v9567_v7, %v773_v8  ;;  %v775_v14 = vrot.slane %v773_v8, 4  ;;  %v780_v21 = vrot.slane %v684_v16, 5  ;;  %v10920_v48 = vld [vmem:[%s14930_s1 + $0x124] ss:$8 sps:$4 sm:$0xff]   ;;  %v10964_v52 = vld [vmem:[%s11572_s10 + $0x18] sm:$0xff]  }
  0x94   : > { %1882 = vrot.lane.b32.xlu0 %v9769_v61, %s11457_s12  ;;  %837 = vst.msk [vmem:[#allocation2 + $0xd0] sm:$0xff] %vm14935_vm6, %v9575_v0  ;;  %v783_v23 = vrot.slane %v685_v19, 5  ;;  %v9569_v36 = vrot.slane %v686_v31, 9  ;;  %v787_v37 = vrot.slane %v687_v32, 5  ;;  %v790_v38 = vrot.slane %v688_v34, 5  ;;  %1554 = vst.msk [vmem:[#allocation2 + $0x18] sm:$0xff] %vm14935_vm6, %v10964_v52 }
  0x95   : > { %838 = vst.msk [vmem:[#allocation2 + $0xf8] sm:$0xff] %vm14935_vm6, %v9576_v10  ;;  %v777_v18 = vsel %vm11713_vm5, %v775_v14, %v776_v11  ;;  %v781_v24 = vsel %vm11713_vm5, %v9568_v20, %v780_v21  ;;  %v782_v25 = vrot.slane %v780_v21, 4  ;;  %v9610_v53 = vld [vmem:[%s11572_s10 + $0xc] sm:$0xf]  ;;  %v9611_v54 = vld [vmem:[%s11572_s10 + $0x10] sm:$0xf] }
  0x96   : > { %v9577_v22 = vcombine.low %v774_v13, %v777_v18  ;;  %v788_v42 = vsel %vm11713_vm5, %v9569_v36, %v787_v37  ;;  %v789_v43 = vrot.slane %v787_v37, 4  ;;  %v9612_v55 = vld [vmem:[%s11572_s10 + $0x14] sm:$0x1]  ;;  %v984_v56 = vshrl.u32 %v9610_v53, 16  ;;  %v10918_v58 = vld [vmem:[%s14930_s1 + $0x120] ss:$8 sps:$4 sm:$0xff]  }
  0x97   : > { %v784_v30 = vsel %vm11713_vm5, %v782_v25, %v783_v23  ;;  %v987_v57 = vshll.u32 %v9610_v53, 16  ;;  %v993_v60 = vshll.u32 %v9611_v54, 16  ;;  %v997_v61 = vshrl.u32 %v9611_v54, 16  ;;  %v10923_v63 = vld [vmem:[%s14930_s1 + $0x134] ss:$8 sps:$4 sm:$0xff]   ;;  %1555 = vst.msk [vmem:[#allocation2 + $0x40] sm:$0xff] %vm14935_vm6, %v10968_v2 }
  0x98   : > { %v2085_v9 = vld [vmem:[#allocation2 + $0x8] sm:$0xff]  ;;  %839 = vst.msk [vmem:[#allocation2 + $0x120] sm:$0xff] %vm14935_vm6, %v9577_v22  ;;  %v9578_v33 = vcombine.low %v781_v24, %v784_v30  ;;  %v791_v49 = vsel %vm11713_vm5, %v789_v43, %v790_v38  ;;  %v1003_v62 = vshll.u32 %v9612_v55, 16  ;;  %v986_v0 = vrot.slane %v984_v56, 4  ;;  %v9614_v13 = vld [vmem:[%s11572_s10 + $0x1c] sm:$0xf] }
  0x99   : > { %2628 = vmatprep.mubr.bf16.mxu0 %v2085_v9  ;;  %v9579_v51 = vcombine.low %v788_v42, %v791_v49  ;;  %v989_v1 = vrot.slane %v987_v57, 5  ;;  %v995_v6 = vrot.slane %v993_v60, 5  ;;  %v999_v7 = vrot.slane %v997_v61, 4  ;;  %v9613_v9 = vld [vmem:[%s11572_s10 + $0x18] sm:$0xf]  ;;  %v10972_v37 = vld [vmem:[%s11572_s10 + $0x30] sm:$0xff]  }
  0x9a   : > { %v2090_v40 = vld [vmem:[#allocation2 + $0x30] sm:$0xff]  ;;  %840 = vst.msk [vmem:[#allocation2 + $0x148] sm:$0xff] %vm14935_vm6, %v9578_v33  ;;  %v1005_v12 = vrot.slane %v1003_v62, 5  ;;  %v1008_v14 = vshrl.u32 %v9613_v9, 16  ;;  %v1011_v15 = vshll.u32 %v9613_v9, 16  ;;  %v1017_v18 = vshll.u32 %v9614_v13, 16 }
  0x9b   : > { %v619_v17 = vpop.permute.xlu0 %618  ;;  %841 = vst.msk [vmem:[#allocation2 + $0x170] sm:$0xff] %vm14935_vm6, %v9579_v51  ;;  %v990_v8 = vor.u32 %v989_v1, %v986_v0  ;;  %v1000_v11 = vor.u32 %v999_v7, %v995_v6  ;;  %v1021_v19 = vshrl.u32 %v9614_v13, 16  ;;  %v10921_v20 = vld [vmem:[%s14930_s1 + $0x130] ss:$8 sps:$4 sm:$0xff]   ;;  %v10927_v26 = vld [vmem:[%s14930_s1 + $0x144] ss:$8 sps:$4 sm:$0xff]  }
  0x9c   : > { %649 = vst.msk [vmem:[#allocation2] sm:$0xff] %vm14934_vm7, %v619_v17  ;;  %v9615_v17 = vld [vmem:[%s11572_s10 + $0x20] sm:$0x1]  ;;  %v1010_v23 = vrot.slane %v1008_v14, 4  ;;  %v1013_v24 = vrot.slane %v1011_v15, 5  ;;  %v10977_v13 = vld [vmem:[%s11572_s10 + $0x48] sm:$0xff]  }
  0x9d   : > { %v991_v16 = vrot.slane %v990_v8, 4  ;;  %v1001_v22 = vrot.slane %v1000_v11, 4  ;;  %v1027_v25 = vshll.u32 %v9615_v17, 16  ;;  %v10925_v31 = vld [vmem:[%s14930_s1 + $0x140] ss:$8 sps:$4 sm:$0xff]   ;;  %1556 = vst.msk [vmem:[#allocation2 + $0x68] sm:$0xff] %vm14935_vm6, %v10972_v37 }
  0x9e   : > { %v1014_v34 = vor.u32 %v1013_v24, %v1010_v23  ;;  %v10931_v38 = vld [vmem:[%s14930_s1 + $0x154] ss:$8 sps:$4 sm:$0xff]   ;;  %v9617_v42 = vld [vmem:[%s11572_s10 + $0x28] sm:$0xf]  ;;  %v9618_v43 = vld [vmem:[%s11572_s10 + $0x2c] sm:$0x1] }
  0x9f   : > { %v621_v28 = vpop.permute.xlu1 %620  ;;  %v918_v29 = vpop.permute.xlu0 %917  ;;  %v1006_v33 = vsel %vm11598_vm2, %v1001_v22, %v1005_v12  ;;  %v1029_v36 = vrot.slane %v1027_v25, 5  ;;  %v1041_v49 = vshll.u32 %v9617_v42, 16  ;;  %v10973_v51 = vld [vmem:[%s11572_s10 + $0x3c] sm:$0xff]   ;;  %v1045_v53 = vshrl.u32 %v9617_v42, 16  ;;  %v10929_v55 = vld [vmem:[%s14930_s1 + $0x150] ss:$8 sps:$4 sm:$0xff]  }
  0xa0   : > { %650 = vst.msk [vmem:[#allocation2 + $0x28] sm:$0xff] %vm14934_vm7, %v621_v28  ;;  %945 = vst.msk [vmem:[#allocation2 + $0x58] sm:$0xff] %vm14934_vm7, %v918_v29  ;;  %v1019_v28 = vrot.slane %v1017_v18, 5  ;;  %v1023_v29 = vrot.slane %v1021_v19, 4  ;;  %v1051_v54 = vshll.u32 %v9618_v43, 16 }
  0xa1   : > { %v1043_v60 = vrot.slane %v1041_v49, 5  ;;  %1557 = vst.msk [vmem:[#allocation2 + $0x90] sm:$0xff] %vm14935_vm6, %v10973_v51  ;;  %v1047_v62 = vrot.slane %v1045_v53, 4  ;;  %v9619_v0 = vld [vmem:[%s11572_s10 + $0x30] sm:$0xf]  ;;  %1558 = vst.msk [vmem:[#allocation2 + $0xb8] sm:$0xff] %vm14935_vm6, %v10977_v13 }
  0xa2   : > { %v9620_v1 = vld [vmem:[%s11572_s10 + $0x34] sm:$0xf]  ;;  %v1059_v7 = vshll.u32 %v9619_v0, 16  ;;  %v10934_v8 = vld [vmem:[%s14930_s1 + $0x164] ss:$8 sps:$4 sm:$0xff]  }
  0xa3   : > { %v2084_v44 = vld [vmem:[#allocation2] sm:$0xff]  ;;  %v623_v45 = vpop.permute.xlu1 %622  ;;  %v920_v46 = vpop.permute.xlu0 %919  ;;  %v1048_v9 = vor.u32 %v1047_v62, %v1043_v60  ;;  %v1069_v11 = vshrl.u32 %v9620_v1, 16  ;;  %v10936_v37 = vld [vmem:[%s14930_s1 + $0x170] ss:$8 sps:$4 sm:$0xff]   ;;  %v9628_v13 = vld [vmem:[%s11572_s10 + $0x54] sm:$0xf] }
  0xa4   : > { %2629 = vmatmul.mubr.bf16.vlgmr.msra.gmra.mrb[0].mxu0 %v2084_v44  ;;  %651 = vst.msk [vmem:[#allocation2 + $0x50] sm:$0xff] %vm14934_vm7, %v623_v45  ;;  %946 = vst.msk [vmem:[#allocation2 + $0x80] sm:$0xff] %vm14934_vm7, %v920_v46  ;;  %v1015_v46 = vrot.slane %v1014_v34, 4  ;;  %v10932_v14 = vld [vmem:[%s14930_s1 + $0x160] ss:$8 sps:$4 sm:$0xff]   ;;  %v1061_v18 = vrot.slane %v1059_v7, 5 }
  0xa5   : > { %2730 = vmatpush1.bf16.msra.mxu0 %v10910_v27  ;;  %2638 = vmatprep.mubr.bf16.mxu0 %v2090_v40  ;;  %v996_v27 = vsel %vm11598_vm2, %v991_v16, %v995_v6  ;;  %v1024_v40 = vor.u32 %v1023_v29, %v1019_v28  ;;  %v1056_v6 = vshrl.u32 %v9619_v0, 16  ;;  %v1071_v23 = vrot.slane %v1069_v11, 4  ;;  %v9622_v29 = vld [vmem:[%s11572_s10 + $0x3c] sm:$0xf]  ;;  %v10942_v43 = vld [vmem:[%s14930_s1 + $0x184] ss:$8 sps:$4 sm:$0xff]  }
  0xa6   : > { %2731 = vmatprep.subr.bf16.mxu0 %v10916_v41  ;;  %v9640_v39 = vcombine.low %v996_v27, %v1006_v33  ;;  %v9616_v41 = vld [vmem:[%s11572_s10 + $0x24] sm:$0xf]  ;;  %v1020_v57 = vsel %vm11598_vm2, %v1015_v46, %v1019_v28  ;;  %v1080_v34 = vshrl.u32 %v9622_v29, 16  ;;  %v10978_v53 = vld [vmem:[%s11572_s10 + $0x54] sm:$0xff]  }
  0xa7   : > { %v922_v59 = vpop.permute.xlu0 %921  ;;  %v2089_v3 = vld [vmem:[#allocation2 + $0x28] sm:$0xff]  ;;  %v2095_v5 = vld [vmem:[#allocation2 + $0x58] sm:$0xff]  ;;  %v1025_v52 = vrot.slane %v1024_v40, 4  ;;  %v1058_v17 = vrot.slane %v1056_v6, 4  ;;  %v9624_v33 = vld [vmem:[%s11572_s10 + $0x44] sm:$0x1] }
  0xa8   : > { %947 = vst.msk [vmem:[#allocation2 + $0xa8] sm:$0xff] %vm14934_vm7, %v922_v59 }
  0xa9   : > { %2732 = vmatpush1.bf16.msra.mxu0 %v10914_v47  ;;  %v625_v4 = vpop.permute.xlu1 %624  ;;  %v1032_v47 = vshrl.u32 %v9616_v41, 16  ;;  %1263 = vst.msk [vmem:[#allocation2 + $0x10] sm:$0xff] %vm14935_vm6, %v9640_v39  ;;  %v1030_v61 = vsel %vm11598_vm2, %v1025_v52, %v1029_v36  ;;  %v1062_v27 = vor.u32 %v1061_v18, %v1058_v17  ;;  %v1083_v36 = vshll.u32 %v9622_v29, 16  ;;  %1559 = vst.msk [vmem:[#allocation2 + $0xe0] sm:$0xff] %vm14935_vm6, %v10978_v53  ;;  %v9629_v18 = vld [vmem:[%s11572_s10 + $0x58] sm:$0xf] }
  0xaa   : > { %2733 = vmatprep.subr.bf16.mxu0 %v10920_v48  ;;  %652 = vst.msk [vmem:[#allocation2 + $0x78] sm:$0xff] %vm14934_vm7, %v625_v4  ;;  %v1035_v48 = vshll.u32 %v9616_v41, 16  ;;  %v1141_v29 = vshrl.u32 %v9629_v18, 16  ;;  %v9633_v53 = vld [vmem:[%s11572_s10 + $0x68] sm:$0x1] }
  0xab   : > { %v924_v10 = vpop.permute.xlu0 %923  ;;  %v2094_v30 = vld [vmem:[#allocation2 + $0x50] sm:$0xff]  ;;  %v2100_v44 = vld [vmem:[#allocation2 + $0x80] sm:$0xff]  ;;  %v1063_v40 = vrot.slane %v1062_v27, 4  ;;  %v1085_v46 = vrot.slane %v1083_v36, 5 }
  0xac   : > { %2639 = vmatmul.mubr.bf16.gmra.mrb[4].mxu0 %v2089_v3  ;;  %948 = vst.msk [vmem:[#allocation2 + $0xd0] sm:$0xff] %vm14934_vm7, %v924_v10  ;;  %v1037_v59 = vrot.slane %v1035_v48, 5  ;;  %v9641_v3 = vcombine.low %v1020_v57, %v1030_v61  ;;  %v1065_v10 = vshll.u32 %v9620_v1, 16  ;;  %v10940_v61 = vld [vmem:[%s14930_s1 + $0x180] ss:$8 sps:$4 sm:$0xff]   ;;  %v10983_v36 = vld [vmem:[%s11572_s10 + $0x6c] sm:$0xff]  }
  0xad   : > { %2734 = vmatpush1.bf16.msra.mxu0 %v10918_v58  ;;  %2648 = vmatprep.mubr.bf16.mxu0 %v2095_v5  ;;  %v627_v21 = vpop.permute.xlu1 %626  ;;  %v1034_v58 = vrot.slane %v1032_v47, 4  ;;  %v9621_v5 = vld [vmem:[%s11572_s10 + $0x38] sm:$0x1]  ;;  %v1099_v47 = vshll.u32 %v9624_v33, 16  ;;  %1561 = vst.msk [vmem:[#allocation2 + $0x130] sm:$0xff] %vm14935_vm6, %v10983_v36 }
  0xae   : > { %2735 = vmatprep.subr.bf16.mxu0 %v10923_v63  ;;  %653 = vst.msk [vmem:[#allocation2 + $0xa0] sm:$0xff] %vm14934_vm7, %v627_v21  ;;  %v1053_v63 = vrot.slane %v1051_v54, 5  ;;  %v1075_v12 = vshll.u32 %v9621_v5, 16  ;;  %v1049_v21 = vrot.slane %v1048_v9, 4  ;;  %v1067_v22 = vrot.slane %v1065_v10, 5 }
  0xaf   : > { %v926_v32 = vpop.permute.xlu0 %925  ;;  %v1038_v4 = vor.u32 %v1037_v59, %v1034_v58  ;;  %1264 = vst.msk [vmem:[#allocation2 + $0x38] sm:$0xff] %vm14935_vm6, %v9641_v3  ;;  %v2105_v19 = vld [vmem:[#allocation2 + $0xa8] sm:$0xff]  ;;  %v1101_v57 = vrot.slane %v1099_v47, 5  ;;  %v9627_v59 = vld [vmem:[%s11572_s10 + $0x50] sm:$0x1] }
  0xb0   : > { %949 = vst.msk [vmem:[#allocation2 + $0xf8] sm:$0xff] %vm14934_vm7, %v926_v32  ;;  %v1077_v28 = vrot.slane %v1075_v12, 5  ;;  %v9623_v32 = vld [vmem:[%s11572_s10 + $0x40] sm:$0xf]  ;;  %v1068_v49 = vsel %vm11598_vm2, %v1063_v40, %v1067_v22  ;;  %v9625_v54 = vld [vmem:[%s11572_s10 + $0x48] sm:$0xf] }
  0xb1   : > { %2736 = vmatpush1.bf16.msra.mxu0 %v10921_v20  ;;  %v629_v45 = vpop.permute.xlu1 %628  ;;  %v1039_v16 = vrot.slane %v1038_v4, 4  ;;  %v10938_v20 = vld [vmem:[%s14930_s1 + $0x174] ss:$8 sps:$4 sm:$0xff]   ;;  %v1089_v41 = vshll.u32 %v9623_v32, 16  ;;  %v1093_v42 = vshrl.u32 %v9623_v32, 16  ;;  %v1107_v0 = vshll.u32 %v9625_v54, 16 }
  0xb2   : > { %2737 = vmatprep.subr.bf16.mxu0 %v10927_v26  ;;  %654 = vst.msk [vmem:[#allocation2 + $0xc8] sm:$0xff] %vm14934_vm7, %v629_v45  ;;  %v2099_v24 = vld [vmem:[#allocation2 + $0x78] sm:$0xff]  ;;  %v1082_v45 = vrot.slane %v1080_v34, 4  ;;  %v9626_v58 = vld [vmem:[%s11572_s10 + $0x4c] sm:$0xf]  ;;  %v1143_v40 = vrot.slane %v1141_v29, 4 }
  0xb3   : > { %v928_v56 = vpop.permute.xlu0 %927  ;;  %v1044_v26 = vsel %vm11598_vm2, %v1039_v16, %v1043_v60  ;;  %v1091_v51 = vrot.slane %v1089_v41, 5  ;;  %v1095_v52 = vrot.slane %v1093_v42, 4  ;;  %v1104_v60 = vshrl.u32 %v9625_v54, 16  ;;  %v2110_v3 = vld [vmem:[#allocation2 + $0xd0] sm:$0xff]  ;;  %v10984_v41 = vld [vmem:[%s11572_s10 + $0x78] sm:$0xff]  }
  0xb4   : > { %2649 = vmatmul.mubr.bf16.gmra.mrb[8].mxu0 %v2094_v30  ;;  %950 = vst.msk [vmem:[#allocation2 + $0x120] sm:$0xff] %vm14934_vm7, %v928_v56  ;;  %v1054_v30 = vsel %vm11598_vm2, %v1049_v21, %v1053_v63  ;;  %v1086_v56 = vor.u32 %v1085_v46, %v1082_v45  ;;  %v1113_v1 = vshll.u32 %v9626_v58, 16  ;;  %v10945_v4 = vld [vmem:[%s14930_s1 + $0x194] ss:$8 sps:$4 sm:$0xff]   ;;  %v1117_v7 = vshrl.u32 %v9626_v58, 16 }
  0xb5   : > { %2738 = vmatpush1.bf16.msra.mxu0 %v10925_v31  ;;  %2658 = vmatprep.mubr.bf16.mxu0 %v2100_v44  ;;  %v631_v2 = vpop.permute.xlu1 %630  ;;  %v1072_v31 = vor.u32 %v1071_v23, %v1067_v22  ;;  %v9642_v39 = vcombine.low %v1044_v26, %v1054_v30  ;;  %v1096_v63 = vor.u32 %v1095_v52, %v1091_v51  ;;  %v1106_v6 = vrot.slane %v1104_v60, 4  ;;  %v2104_v9 = vld [vmem:[#allocation2 + $0xa0] sm:$0xff]  ;;  %v10960_v29 = vld [vmem:[%s14930_s1 + $0x1d4] ss:$8 sps:$4 sm:$0xff]  }
  0xb6   : > { %2739 = vmatprep.subr.bf16.mxu0 %v10931_v38  ;;  %655 = vst.msk [vmem:[#allocation2 + $0xf0] sm:$0xff] %vm14934_vm7, %v631_v2  ;;  %v10979_v2 = vld [vmem:[%s11572_s10 + $0x60] sm:$0xff]   ;;  %v1087_v5 = vrot.slane %v1086_v56, 4  ;;  %v1109_v11 = vrot.slane %v1107_v0, 5  ;;  %v1115_v12 = vrot.slane %v1113_v1, 5  ;;  %v1119_v16 = vrot.slane %v1117_v7, 4 }
  0xb7   : > { %v930_v15 = vpop.permute.xlu0 %929  ;;  %v1073_v44 = vrot.slane %v1072_v31, 4  ;;  %1265 = vst.msk [vmem:[#allocation2 + $0x60] sm:$0xff] %vm14935_vm6, %v9642_v39  ;;  %v1097_v10 = vrot.slane %v1096_v63, 4  ;;  %1560 = vst.msk [vmem:[#allocation2 + $0x108] sm:$0xff] %vm14935_vm6, %v10979_v2  ;;  %v1128_v22 = vshrl.u32 %v9628_v13, 16  ;;  %v1131_v23 = vshll.u32 %v9628_v13, 16 }
  0xb8   : > { %951 = vst.msk [vmem:[#allocation2 + $0x148] sm:$0xff] %vm14934_vm7, %v930_v15  ;;  %v1092_v15 = vsel %vm11598_vm2, %v1087_v5, %v1091_v51  ;;  %v1110_v21 = vor.u32 %v1109_v11, %v1106_v6  ;;  %v1120_v27 = vor.u32 %v1119_v16, %v1115_v12  ;;  %v9631_v47 = vld [vmem:[%s11572_s10 + $0x60] sm:$0xf]  ;;  %v9632_v52 = vld [vmem:[%s11572_s10 + $0x64] sm:$0xf]  ;;  %v2115_v60 = vld [vmem:[#allocation2 + $0xf8] sm:$0xff] }
  0xb9   : > { %2740 = vmatpush1.bf16.msra.mxu0 %v10929_v55  ;;  %v633_v25 = vpop.permute.xlu1 %632  ;;  %v1078_v55 = vsel %vm11598_vm2, %v1073_v44, %v1077_v28  ;;  %v1137_v28 = vshll.u32 %v9629_v18, 16  ;;  %v1130_v32 = vrot.slane %v1128_v22, 4  ;;  %v1133_v33 = vrot.slane %v1131_v23, 5  ;;  %v2109_v42 = vld [vmem:[#allocation2 + $0xc8] sm:$0xff]  ;;  %1562 = vst.msk [vmem:[#allocation2 + $0x158] sm:$0xff] %vm14935_vm6, %v10984_v41 }
  0xba   : > { %2741 = vmatprep.subr.bf16.mxu0 %v10934_v8  ;;  %656 = vst.msk [vmem:[#allocation2 + $0x118] sm:$0xff] %vm14934_vm7, %v633_v25  ;;  %v9643_v62 = vcombine.low %v1068_v49, %v1078_v55  ;;  %v1123_v8 = vshll.u32 %v9627_v59, 16  ;;  %v10949_v25 = vld [vmem:[%s14930_s1 + $0x1a4] ss:$8 sps:$4 sm:$0xff]   ;;  %v1111_v31 = vrot.slane %v1110_v21, 4  ;;  %v1152_v54 = vshrl.u32 %v9631_v47, 16 }
  0xbb   : > { %v932_v38 = vpop.permute.xlu0 %931  ;;  %v1139_v39 = vrot.slane %v1137_v28, 5  ;;  %v1134_v45 = vor.u32 %v1133_v33, %v1130_v32  ;;  %v1155_v55 = vshll.u32 %v9631_v47, 16  ;;  %v1161_v58 = vshll.u32 %v9632_v52, 16  ;;  %v10988_v1 = vld [vmem:[%s11572_s10 + $0x84] sm:$0xff]   ;;  %v9634_v6 = vld [vmem:[%s11572_s10 + $0x6c] sm:$0xf] }
  0xbc   : > { %2659 = vmatmul.mubr.bf16.gmra.mrb[12].mxu0 %v2099_v24  ;;  %952 = vst.msk [vmem:[#allocation2 + $0x170] sm:$0xff] %vm14934_vm7, %v932_v38  ;;  %v1125_v17 = vrot.slane %v1123_v8, 5  ;;  %v10943_v24 = vld [vmem:[%s14930_s1 + $0x190] ss:$8 sps:$4 sm:$0xff]   ;;  %v1121_v38 = vrot.slane %v1120_v27, 4  ;;  %v1116_v44 = vsel %vm11598_vm2, %v1111_v31, %v1115_v12  ;;  %v1165_v59 = vshrl.u32 %v9632_v52, 16 }
  0xbd   : > { %2742 = vmatpush1.bf16.msra.mxu0 %v10932_v14  ;;  %2668 = vmatprep.mubr.bf16.mxu0 %v2105_v19  ;;  %v635_v48 = vpop.permute.xlu1 %634  ;;  %1266 = vst.msk [vmem:[#allocation2 + $0x88] sm:$0xff] %vm14935_vm6, %v9643_v62  ;;  %v9630_v19 = vld [vmem:[%s11572_s10 + $0x5c] sm:$0x1]  ;;  %v1144_v51 = vor.u32 %v1143_v40, %v1139_v39  ;;  %v1154_v62 = vrot.slane %v1152_v54, 4  ;;  %v1157_v63 = vrot.slane %v1155_v55, 5  ;;  %v1171_v0 = vshll.u32 %v9633_v53, 16 }
  0xbe   : > { %2743 = vmatprep.subr.bf16.mxu0 %v10938_v20  ;;  %657 = vst.msk [vmem:[#allocation2 + $0x140] sm:$0xff] %vm14934_vm7, %v635_v48  ;;  %v1102_v20 = vsel %vm11598_vm2, %v1097_v10, %v1101_v57  ;;  %v1147_v34 = vshll.u32 %v9630_v19, 16  ;;  %v10952_v48 = vld [vmem:[%s14930_s1 + $0x1b4] ss:$8 sps:$4 sm:$0xff]   ;;  %v1126_v49 = vsel %vm11598_vm2, %v1121_v38, %v1125_v17  ;;  %v1135_v57 = vrot.slane %v1134_v45, 4  ;;  %v2120_v41 = vld [vmem:[#allocation2 + $0x120] sm:$0xff] }
  0xbf   : > { %v9644_v26 = vcombine.low %v1092_v15, %v1102_v20  ;;  %v9645_v56 = vcombine.low %v1116_v44, %v1126_v49  ;;  %v1167_v5 = vrot.slane %v1165_v59, 4  ;;  %v1173_v10 = vrot.slane %v1171_v0, 5  ;;  %v9635_v11 = vld [vmem:[%s11572_s10 + $0x70] sm:$0xf]  ;;  %v9636_v12 = vld [vmem:[%s11572_s10 + $0x74] sm:$0x1] }
  0xc0   : > { %v1149_v46 = vrot.slane %v1147_v34, 5  ;;  %v1176_v13 = vshrl.u32 %v9634_v6, 16  ;;  %1563 = vst.msk [vmem:[#allocation2 + $0x180] sm:$0xff] %vm14935_vm6, %v10988_v1  ;;  %v1179_v17 = vshll.u32 %v9634_v6, 16  ;;  %v1185_v18 = vshll.u32 %v9635_v11, 16 }
  0xc1   : > { %2744 = vmatpush1.bf16.msra.mxu0 %v10936_v37  ;;  %1267 = vst.msk [vmem:[#allocation2 + $0xb0] sm:$0xff] %vm14935_vm6, %v9644_v26  ;;  %1268 = vst.msk [vmem:[#allocation2 + $0xd8] sm:$0xff] %vm14935_vm6, %v9645_v56  ;;  %v10956_v19 = vld [vmem:[%s14930_s1 + $0x1c4] ss:$8 sps:$4 sm:$0xff]   ;;  %v1189_v22 = vshrl.u32 %v9635_v11, 16  ;;  %v1195_v23 = vshll.u32 %v9636_v12, 16 }
  0xc2   : > { %2745 = vmatprep.subr.bf16.mxu0 %v10942_v43  ;;  %v637_v14 = vpop.permute.xlu1 %636  ;;  %v10947_v43 = vld [vmem:[%s14930_s1 + $0x1a0] ss:$8 sps:$4 sm:$0xff]   ;;  %v1178_v21 = vrot.slane %v1176_v13, 4  ;;  %v1181_v27 = vrot.slane %v1179_v17, 5  ;;  %v1187_v28 = vrot.slane %v1185_v18, 5 }
  0xc3   : > { %658 = vst.msk [vmem:[#allocation2 + $0x168] sm:$0xff] %vm14934_vm7, %v637_v14  ;;  %v10950_v14 = vld [vmem:[%s14930_s1 + $0x1b0] ss:$8 sps:$4 sm:$0xff]   ;;  %v1191_v31 = vrot.slane %v1189_v22, 4  ;;  %v1197_v32 = vrot.slane %v1195_v23, 5 }
  0xc4   : > { %2669 = vmatmul.mubr.bf16.gmra.mrb[16].mxu0 %v2104_v9  ;;  %v1158_v9 = vor.u32 %v1157_v63, %v1154_v62  ;;  %v9637_v38 = vld [vmem:[%s11572_s10 + $0x78] sm:$0xf]  ;;  %v9639_v40 = vld [vmem:[%s11572_s10 + $0x80] sm:$0x1]  ;;  %v9771_v53 = vld [vmem:[%s11572_s10 + $0x1c] sm:$0xf] }
  0xc5   : > { %2678 = vmatprep.mubr.bf16.mxu0 %v2110_v3  ;;  %2746 = vmatpush1.bf16.msra.mxu0 %v10940_v61  ;;  %v1865_v30 = vpop.permute.xlu0 %1864  ;;  %v1145_v61 = vrot.slane %v1144_v51, 4  ;;  %v1140_v3 = vsel %vm11598_vm2, %v1135_v57, %v1139_v39  ;;  %v9638_v39 = vld [vmem:[%s11572_s10 + $0x7c] sm:$0xf]  ;;  %v1200_v44 = vshrl.u32 %v9637_v38, 16  ;;  %v1203_v45 = vshll.u32 %v9637_v38, 16 }
  0xc6   : > { %2747 = vmatprep.subr.bf16.mxu0 %v10945_v4  ;;  %1894 = vst.msk [vmem:[#allocation2 + $0x18] sm:$0xff] %vm14934_vm7, %v1865_v30  ;;  %v1434_v37 = vpop.permute.xlu1 %1433  ;;  %v1163_v4 = vrot.slane %v1161_v58, 5  ;;  %v1159_v20 = vrot.slane %v1158_v9, 4  ;;  %v10958_v47 = vld [vmem:[%s14930_s1 + $0x1d0] ss:$8 sps:$4 sm:$0xff]   ;;  %v1209_v49 = vshll.u32 %v9638_v39, 16 }
  0xc7   : > { %1463 = vst.msk [vmem:[#allocation2 + $0x10] sm:$0xff] %vm14934_vm7, %v1434_v37  ;;  %v1150_v8 = vsel %vm11598_vm2, %v1145_v61, %v1149_v46  ;;  %v1182_v37 = vor.u32 %v1181_v27, %v1178_v21  ;;  %v9770_v46 = vld [vmem:[%s11572_s10 + $0x18] sm:$0xe]  ;;  %v1213_v51 = vshrl.u32 %v9638_v39, 16  ;;  %v1219_v52 = vshll.u32 %v9639_v40, 16 }
  0xc8   : > { %v9646_v15 = vcombine.low %v1140_v3, %v1150_v8  ;;  %v1168_v16 = vor.u32 %v1167_v5, %v1163_v4  ;;  %v1164_v30 = vsel %vm11598_vm2, %v1159_v20, %v1163_v4  ;;  %v10963_v54 = vld [vmem:[%s14930_s1 + $0x1e4] ss:$8 sps:$4 sm:$0xff]   ;;  %v1202_v56 = vrot.slane %v1200_v44, 4  ;;  %v9772_v58 = vld [vmem:[%s11572_s10 + $0x20] sm:$0x1] }
  0xc9   : > { %2748 = vmatpush1.bf16.msra.mxu0 %v10943_v24  ;;  %v2114_v24 = vld [vmem:[#allocation2 + $0xf0] sm:$0xff]  ;;  %v1205_v57 = vrot.slane %v1203_v45, 5  ;;  %v1215_v61 = vrot.slane %v1213_v51, 4  ;;  %v1221_v62 = vrot.slane %v1219_v52, 5  ;;  %v9773_v63 = vld [vmem:[%s11572_s10 + $0x24] sm:$0xe] }
  0xca   : > { %2749 = vmatprep.subr.bf16.mxu0 %v10949_v25  ;;  %v10954_v25 = vld [vmem:[%s14930_s1 + $0x1c0] ss:$8 sps:$4 sm:$0xff]   ;;  %1269 = vst.msk [vmem:[#allocation2 + $0x100] sm:$0xff] %vm14935_vm6, %v9646_v15  ;;  %v1169_v26 = vrot.slane %v1168_v16, 4  ;;  %v1966_v3 = vrot.slane %v9771_v53, 5  ;;  %v9801_v11 = vrot.slane %v9773_v63, 9 }
  0xcb   : > { %v1436_v2 = vpop.permute.xlu1 %1435  ;;  %v1206_v1 = vor.u32 %v1205_v57, %v1202_v56  ;;  %v9774_v4 = vld [vmem:[%s11572_s10 + $0x28] sm:$0xf]  ;;  %v9775_v5 = vld [vmem:[%s11572_s10 + $0x2c] sm:$0x1]  ;;  %v9776_v12 = vld [vmem:[%s11572_s10 + $0x30] sm:$0xe] }
  0xcc   : > { %2679 = vmatmul.mubr.bf16.gmra.mrb[20].mxu0 %v2109_v42  ;;  %v1867_v7 = vpop.permute.xlu0 %1866  ;;  %1464 = vst.msk [vmem:[#allocation2 + $0x38] sm:$0xff] %vm14934_vm7, %v1436_v2  ;;  %v1174_v36 = vsel %vm11598_vm2, %v1169_v26, %v1173_v10  ;;  %v9800_v2 = vrot.slane %v9770_v46, 9  ;;  %v10961_v6 = vld [vmem:[%s14930_s1 + $0x1e0] ss:$8 sps:$4 sm:$0xff]   ;;  %v1969_v10 = vrot.slane %v9772_v58, 5  ;;  %v1973_v20 = vrot.slane %v9774_v4, 5 }
  0xcd   : > { %2688 = vmatprep.mubr.bf16.mxu0 %v2115_v60  ;;  %2750 = vmatpush1.bf16.msra.mxu0 %v10947_v43  ;;  %1895 = vst.msk [vmem:[#allocation2 + $0x40] sm:$0xff] %vm14934_vm7, %v1867_v7  ;;  %v9647_v42 = vcombine.low %v1164_v30, %v1174_v36  ;;  %v1192_v43 = vor.u32 %v1191_v31, %v1187_v28  ;;  %v1211_v60 = vrot.slane %v1209_v49, 5  ;;  %v9777_v13 = vld [vmem:[%s11572_s10 + $0x34] sm:$0xf]  ;;  %v1207_v17 = vrot.slane %v1206_v1, 4  ;;  %v2125_v26 = vld [vmem:[#allocation2 + $0x148] sm:$0xff] }
  0xce   : > { %2751 = vmatprep.subr.bf16.mxu0 %v10952_v48  ;;  %v1183_v48 = vrot.slane %v1182_v37, 4  ;;  %v10967_v15 = vld [vmem:[%s14930_s1 + $0x1f4] ss:$8 sps:$4 sm:$0xff]   ;;  %v1967_v18 = vsel %vm11713_vm5, %v9800_v2, %v1966_v3  ;;  %v1976_v22 = vrot.slane %v9775_v5, 5  ;;  %v9778_v23 = vld [vmem:[%s11572_s10 + $0x38] sm:$0x1] }
  0xcf   : > { %1270 = vst.msk [vmem:[#allocation2 + $0x128] sm:$0xff] %vm14935_vm6, %v9647_v42  ;;  %v1193_v55 = vrot.slane %v1192_v43, 4  ;;  %v1216_v9 = vor.u32 %v1215_v61, %v1211_v60  ;;  %v1212_v27 = vsel %vm11598_vm2, %v1207_v17, %v1211_v60  ;;  %v1975_v30 = vrot.slane %v1973_v20, 4  ;;  %v9779_v31 = vld [vmem:[%s11572_s10 + $0x3c] sm:$0xe]  ;;  %v2124_v4 = vld [vmem:[#allocation2 + $0x140] sm:$0xff] }
  0xd0   : > { %v1188_v59 = vsel %vm11598_vm2, %v1183_v48, %v1187_v28  ;;  %v9781_v39 = vld [vmem:[%s11572_s10 + $0x44] sm:$0x1]  ;;  %v9782_v40 = vld [vmem:[%s11572_s10 + $0x48] sm:$0xe]  ;;  %v1983_v44 = vrot.slane %v9778_v23, 5  ;;  %v9803_v35 = vrot.slane %v9779_v31, 9 }
  0xd1   : > { %2752 = vmatpush1.bf16.msra.mxu0 %v10950_v14  ;;  %v1869_v33 = vpop.permute.xlu0 %1868  ;;  %v1438_v34 = vpop.permute.xlu1 %1437  ;;  %v1198_v0 = vsel %vm11598_vm2, %v1193_v55, %v1197_v32  ;;  %v2119_v14 = vld [vmem:[#allocation2 + $0x118] sm:$0xff]  ;;  %v1217_v21 = vrot.slane %v1216_v9, 4  ;;  %v9780_v32 = vld [vmem:[%s11572_s10 + $0x40] sm:$0xf]  ;;  %v1977_v43 = vsel %vm11713_vm5, %v1975_v30, %v1976_v22  ;;  %v9783_v45 = vld [vmem:[%s11572_s10 + $0x4c] sm:$0xf] }
  0xd2   : > { %2753 = vmatprep.subr.bf16.mxu0 %v10956_v19  ;;  %1896 = vst.msk [vmem:[#allocation2 + $0x68] sm:$0xff] %vm14934_vm7, %v1869_v33  ;;  %1465 = vst.msk [vmem:[#allocation2 + $0x60] sm:$0xff] %vm14934_vm7, %v1438_v34  ;;  %v9648_v8 = vcombine.low %v1188_v59, %v1198_v0  ;;  %v1968_v19 = vrot.slane %v1966_v3, 4  ;;  %v10965_v33 = vld [vmem:[%s14930_s1 + $0x1f0] ss:$8 sps:$4 sm:$0xff]   ;;  %v1987_v48 = vrot.slane %v9780_v32, 5 }
  0xd3   : > { %v1222_v34 = vsel %vm11598_vm2, %v1217_v21, %v1221_v62  ;;  %v9784_v46 = vld [vmem:[%s11572_s10 + $0x50] sm:$0x1]  ;;  %v1990_v49 = vrot.slane %v9781_v39, 5  ;;  %v9804_v51 = vrot.slane %v9782_v40, 9  ;;  %v9786_v52 = vld [vmem:[%s11572_s10 + $0x58] sm:$0xf] }
  0xd4   : > { %2689 = vmatmul.mubr.bf16.gmra.mrb[24].mxu0 %v2114_v24  ;;  %1271 = vst.msk [vmem:[#allocation2 + $0x150] sm:$0xff] %vm14935_vm6, %v9648_v8  ;;  %v9802_v24 = vrot.slane %v9776_v12, 9  ;;  %v1970_v28 = vsel %vm11713_vm5, %v1968_v19, %v1969_v10  ;;  %v9649_v42 = vcombine.low %v1212_v27, %v1222_v34  ;;  %v1997_v55 = vrot.slane %v9784_v46, 5  ;;  %v9785_v56 = vld [vmem:[%s11572_s10 + $0x54] sm:$0xe]  ;;  %v2129_v22 = vld [vmem:[#allocation2 + $0x168] sm:$0xff] }
  0xd5   : > { %2698 = vmatprep.mubr.bf16.mxu0 %v2120_v41  ;;  %2754 = vmatpush1.bf16.msra.mxu0 %v10954_v25  ;;  %v1980_v25 = vrot.slane %v9777_v13, 5  ;;  %v9810_v36 = vcombine.low %v1967_v18, %v1970_v28  ;;  %v10971_v41 = vld [vmem:[%s14930_s1 + $0x204] ss:$8 sps:$4 sm:$0xff]   ;;  %v9787_v57 = vld [vmem:[%s11572_s10 + $0x5c] sm:$0x1]  ;;  %v1988_v60 = vsel %vm11713_vm5, %v9803_v35, %v1987_v48  ;;  %v1989_v61 = vrot.slane %v1987_v48, 4 }
  0xd6   : > { %2755 = vmatprep.subr.bf16.mxu0 %v10960_v29  ;;  %v1974_v29 = vsel %vm11713_vm5, %v9801_v11, %v1973_v20  ;;  %1272 = vst.msk [vmem:[#allocation2 + $0x178] sm:$0xff] %vm14935_vm6, %v9649_v42  ;;  %v9805_v62 = vrot.slane %v9785_v56, 9  ;;  %v2001_v2 = vrot.slane %v9786_v52, 5  ;;  %v2004_v3 = vrot.slane %v9787_v57, 5  ;;  %v9789_v13 = vld [vmem:[%s11572_s10 + $0x64] sm:$0xf] }
  0xd7   : > { %v1440_v7 = vpop.permute.xlu1 %1439  ;;  %v1871_v16 = vpop.permute.xlu0 %1870  ;;  %v1981_v37 = vsel %vm11713_vm5, %v9802_v24, %v1980_v25  ;;  %v1982_v38 = vrot.slane %v1980_v25, 4  ;;  %2074 = vst.msk [vmem:[#allocation2 + $0x20] sm:$0xff] %vm14935_vm6, %v9810_v36  ;;  %v1991_v5 = vsel %vm11713_vm5, %v1989_v61, %v1990_v49  ;;  %v9790_v17 = vld [vmem:[%s11572_s10 + $0x68] sm:$0x1]  ;;  %v2087_v25 = vld [vmem:[#allocation2 + $0x18] sm:$0xff]  ;;  %v2086_v39 = vld [vmem:[#allocation2 + $0x10] sm:$0xff] }
  0xd8   : > { %1466 = vst.msk [vmem:[#allocation2 + $0x88] sm:$0xff] %vm14934_vm7, %v1440_v7  ;;  %1897 = vst.msk [vmem:[#allocation2 + $0x90] sm:$0xff] %vm14934_vm7, %v1871_v16  ;;  %v9813_v7 = vcombine.low %v1988_v60, %v1991_v5  ;;  %v2002_v9 = vsel %vm11713_vm5, %v9805_v62, %v2001_v2  ;;  %v2003_v10 = vrot.slane %v2001_v2, 4  ;;  %v9788_v16 = vld [vmem:[%s11572_s10 + $0x60] sm:$0xe]  ;;  %v2011_v21 = vrot.slane %v9790_v17, 5 }
  0xd9   : > { %2756 = vmatpush1.bf16.msra.mxu0 %v10958_v47  ;;  %v9811_v47 = vcombine.low %v1974_v29, %v1977_v43  ;;  %v1984_v53 = vsel %vm11713_vm5, %v1982_v38, %v1983_v44  ;;  %v9806_v19 = vrot.slane %v9788_v16, 9  ;;  %v9792_v28 = vld [vmem:[%s11572_s10 + $0x70] sm:$0xf]  ;;  %v9791_v32 = vld [vmem:[%s11572_s10 + $0x6c] sm:$0xe]  ;;  %v2092_v42 = vld [vmem:[#allocation2 + $0x40] sm:$0xff] }
  0xda   : > { %2757 = vmatprep.subr.bf16.mxu0 %v10963_v54  ;;  %v1994_v54 = vrot.slane %v9783_v45, 5  ;;  %v9812_v59 = vcombine.low %v1981_v37, %v1984_v53  ;;  %2077 = vst.msk [vmem:[#allocation2 + $0x98] sm:$0xff] %vm14935_vm6, %v9813_v7  ;;  %v2005_v12 = vsel %vm11713_vm5, %v2003_v10, %v2004_v3  ;;  %v2015_v30 = vrot.slane %v9792_v28, 5  ;;  %v10969_v38 = vld [vmem:[%s14930_s1 + $0x200] ss:$8 sps:$4 sm:$0xff]   ;;  %v2091_v56 = vld [vmem:[#allocation2 + $0x38] sm:$0xff] }
  0xdb   : > { %2075 = vst.msk [vmem:[#allocation2 + $0x48] sm:$0xff] %vm14935_vm6, %v9811_v47  ;;  %v9807_v34 = vrot.slane %v9791_v32, 9  ;;  %v10976_v43 = vld [vmem:[%s14930_s1 + $0x214] ss:$8 sps:$4 sm:$0xff]   ;;  %v10974_v45 = vld [vmem:[%s14930_s1 + $0x210] ss:$8 sps:$4 sm:$0xff]  }
  0xdc   : > { %2699 = vmatmul.mubr.bf16.gmra.mrb[28].mxu0 %v2119_v14  ;;  %v1995_v0 = vsel %vm11713_vm5, %v9804_v51, %v1994_v54  ;;  %v1996_v1 = vrot.slane %v1994_v54, 4  ;;  %2076 = vst.msk [vmem:[#allocation2 + $0x70] sm:$0xff] %vm14935_vm6, %v9812_v59  ;;  %v9815_v14 = vcombine.low %v2002_v9, %v2005_v12  ;;  %v2017_v36 = vrot.slane %v2015_v30, 4  ;;  %v9795_v35 = vld [vmem:[%s11572_s10 + $0x7c] sm:$0xf]  ;;  %v2097_v60 = vld [vmem:[#allocation2 + $0x68] sm:$0xff] }
  0xdd   : > { %2708 = vmatprep.mubr.bf16.mxu0 %v2125_v26  ;;  %2758 = vmatpush1.bf16.msra.mxu0 %v10961_v6  ;;  %v2130_v6 = vld [vmem:[#allocation2 + $0x170] sm:$0xff]  ;;  %v2016_v40 = vsel %vm11713_vm5, %v9807_v34, %v2015_v30  ;;  %v2022_v47 = vrot.slane %v9795_v35, 5  ;;  %v10982_v48 = vld [vmem:[%s14930_s1 + $0x224] ss:$8 sps:$4 sm:$0xff]   ;;  %v9794_v49 = vld [vmem:[%s11572_s10 + $0x78] sm:$0xe] }
  0xde   : > { %2759 = vmatprep.subr.bf16.mxu0 %v10967_v15  ;;  %v1998_v8 = vsel %vm11713_vm5, %v1996_v1, %v1997_v55  ;;  %v2008_v15 = vrot.slane %v9789_v13, 5  ;;  %2079 = vst.msk [vmem:[#allocation2 + $0xe8] sm:$0xff] %vm14935_vm6, %v9815_v14  ;;  %v9796_v51 = vld [vmem:[%s11572_s10 + $0x80] sm:$0x1]  ;;  %v9808_v53 = vrot.slane %v9794_v49, 9  ;;  %v14936_v28 = vmov 0  }
  0xdf   : > { %v1442_v58 = vpop.permute.xlu1 %1441  ;;  %v9814_v11 = vcombine.low %v1995_v0, %v1998_v8  ;;  %v2024_v54 = vrot.slane %v2022_v47, 4  ;;  %v2025_v55 = vrot.slane %v9796_v51, 5  ;;  %v10980_v57 = vld [vmem:[%s14930_s1 + $0x220] ss:$8 sps:$4 sm:$0xff]   ;;  %v10987_v61 = vld [vmem:[%s14930_s1 + $0x234] ss:$8 sps:$4 sm:$0xff]  }
  0xe0   : > { %v1873_v63 = vpop.permute.xlu0 %1872  ;;  %1467 = vst.msk [vmem:[#allocation2 + $0xb0] sm:$0xff] %vm14934_vm7, %v1442_v58  ;;  %v2010_v20 = vrot.slane %v2008_v15, 4  ;;  %v2009_v23 = vsel %vm11713_vm5, %v9806_v19, %v2008_v15  ;;  %v2023_v58 = vsel %vm11713_vm5, %v9808_v53, %v2022_v47  ;;  %v10985_v1 = vld [vmem:[%s14930_s1 + $0x230] ss:$8 sps:$4 sm:$0xff]   ;;  %v9797_v3 = vld [vmem:[%s11572_s10 + $0x84] sm:$0xe] }
  0xe1   : > { %2760 = vmatpush1.bf16.msra.mxu0 %v10965_v33  ;;  %1898 = vst.msk [vmem:[#allocation2 + $0xb8] sm:$0xff] %vm14934_vm7, %v1873_v63  ;;  %v9793_v33 = vld [vmem:[%s11572_s10 + $0x74] sm:$0x1]  ;;  %v2026_v59 = vsel %vm11713_vm5, %v2024_v54, %v2025_v55  ;;  %v9798_v63 = vld [vmem:[%s11572_s10 + $0x88] sm:$0xf]  ;;  %v9809_v5 = vrot.slane %v9797_v3, 9 }
  0xe2   : > { %2862 = vmatprep.subr.bf16.mxu0 %v10971_v41  ;;  %2078 = vst.msk [vmem:[#allocation2 + $0xc0] sm:$0xff] %vm14935_vm6, %v9814_v11  ;;  %v2012_v24 = vsel %vm11713_vm5, %v2010_v20, %v2011_v21  ;;  %v2018_v37 = vrot.slane %v9793_v33, 5  ;;  %v9818_v62 = vcombine.low %v2023_v58, %v2026_v59  ;;  %v2029_v2 = vrot.slane %v9798_v63, 5  ;;  %v2096_v9 = vld [vmem:[#allocation2 + $0x60] sm:$0xff]  ;;  %v2102_v12 = vld [vmem:[#allocation2 + $0x90] sm:$0xff]  ;;  %v2101_v16 = vld [vmem:[#allocation2 + $0x88] sm:$0xff] }
  0xe3   : > { %v9816_v27 = vcombine.low %v2009_v23, %v2012_v24  ;;  %v2093_v30 = vld [vmem:[#allocation2 + $0x48] sm:$0xff]  ;;  %v2103_v32 = vld [vmem:[#allocation2 + $0x98] sm:$0xff] }
  0xe4   : > { %2709 = vmatmul.mubr.bf16.gmra.mrb[32].mxu0 %v2124_v4  ;;  %v2019_v41 = vsel %vm11713_vm5, %v2017_v36, %v2018_v37  ;;  %2082 = vst.msk [vmem:[#allocation2 + $0x160] sm:$0xff] %vm14935_vm6, %v9818_v62  ;;  %v9799_v4 = vld [vmem:[%s11572_s10 + $0x8c] sm:$0x1]  ;;  %v2030_v10 = vsel %vm11713_vm5, %v9809_v5, %v2029_v2  ;;  %v3130_v35 = vld [vmem:[#allocation3 + $0xb8] sm:$0x1]  ;;  %s12395_s10 = scalar_lea.vmem [#allocation4], %s11549_s8 }
  0xe5   : > { %2718 = vmatprep.mubr.bf16.mxu0 %v2130_v6  ;;  %2080 = vst.msk [vmem:[#allocation2 + $0x110] sm:$0xff] %vm14935_vm6, %v9816_v27  ;;  %v9817_v44 = vcombine.low %v2016_v40, %v2019_v41  ;;  %v2031_v6 = vrot.slane %v2029_v2, 4  ;;  %v2032_v7 = vrot.slane %v9799_v4, 5  ;;  %v2113_v34 = vld [vmem:[#allocation2 + $0xe8] sm:$0xff]  ;;  %v3118_v40 = vld [vmem:[#allocation3] sm:$0x80] }
  0xe6   : > { %v1444_v18 = vpop.permute.xlu1 %1443  ;;  %v3121_v41 = vld [vmem:[#allocation3 + $0x8] sm:$0x80] }
  0xe7   : > { %1468 = vst.msk [vmem:[#allocation2 + $0xd8] sm:$0xff] %vm14934_vm7, %v1444_v18  ;;  %v2033_v11 = vsel %vm11713_vm5, %v2031_v6, %v2032_v7  ;;  %v2106_v18 = vld [vmem:[#allocation2 + $0xb0] sm:$0xff] }
  0xe8   : > { %2081 = vst.msk [vmem:[#allocation2 + $0x138] sm:$0xff] %vm14935_vm6, %v9817_v44  ;;  %v9819_v13 = vcombine.low %v2030_v10, %v2033_v11  ;;  %v2107_v17 = vld [vmem:[#allocation2 + $0xb8] sm:$0xff]  ;;  %v3127_v44 = vld [vmem:[#allocation3 + $0xb0] sm:$0x1] }
  0xe9   : > { %v2108_v33 = vld [vmem:[#allocation2 + $0xc0] sm:$0xff] }
  0xea   : > { %v1875_v26 = vpop.permute.xlu0 %1874  ;;  %2083 = vst.msk [vmem:[#allocation2 + $0x188] sm:$0xff] %vm14935_vm6, %v9819_v13 }
  0xeb   : > { %1899 = vst.msk [vmem:[#allocation2 + $0xe0] sm:$0xff] %vm14934_vm7, %v1875_v26 }
  0xec   : > { %2719 = vmatmul.mubr.bf16.gmra.mrb[36].mxu0 %v2129_v22  ;;  %v2118_v36 = vld [vmem:[#allocation2 + $0x110] sm:$0xff] }
  0xed   : > { %2761 = vmatprep.mubr.bf16.mxu0 %v2087_v25  ;;  %v1446_v29 = vpop.permute.xlu1 %1445 }
  0xee   : > { %v1877_v31 = vpop.permute.xlu0 %1876  ;;  %1469 = vst.msk [vmem:[#allocation2 + $0x100] sm:$0xff] %vm14934_vm7, %v1446_v29  ;;  %v2111_v50 = vld [vmem:[#allocation2 + $0xd8] sm:$0xff]  ;;  %v2088_v29 = vld [vmem:[#allocation2 + $0x20] sm:$0xff] }
  0xef   : > { %1900 = vst.msk [vmem:[#allocation2 + $0x108] sm:$0xff] %vm14934_vm7, %v1877_v31  ;;  %v2098_v31 = vld [vmem:[#allocation2 + $0x70] sm:$0xff]  ;;  %v2123_v37 = vld [vmem:[#allocation2 + $0x138] sm:$0xff] }
  0xf2   : > { %v2112_v19 = vld [vmem:[#allocation2 + $0xe0] sm:$0xff] }
  0xf4   : > { %2762 = vmatmul.mubr.bf16.vlgmr.msra.gmra.mrb[0].mxu0 %v2086_v39  ;;  %v1448_v46 = vpop.permute.xlu1 %1447  ;;  %v2133_v39 = vld [vmem:[#allocation2 + $0x188] sm:$0xff] }
  0xf5   : > { %2863 = vmatpush1.bf16.msra.mxu0 %v10969_v38  ;;  %2771 = vmatprep.mubr.bf16.mxu0 %v2092_v42  ;;  %1470 = vst.msk [vmem:[#allocation2 + $0x128] sm:$0xff] %vm14934_vm7, %v1448_v46  ;;  %v2116_v21 = vld [vmem:[#allocation2 + $0x100] sm:$0xff]  ;;  %v3119_v42 = vsel %vm3117_vm12, 0, %v3118_v40  ;;  %v3131_v46 = vsel %vm3126_vm13, 0, %v3130_v35 }
  0xf6   : > { %2864 = vmatprep.subr.bf16.mxu0 %v10976_v43  ;;  %v1879_v52 = vpop.permute.xlu0 %1878  ;;  %v2117_v20 = vld [vmem:[#allocation2 + $0x108] sm:$0xff]  ;;  %v2128_v38 = vld [vmem:[#allocation2 + $0x160] sm:$0xff]  ;;  %v3122_v43 = vsel %vm3117_vm12, 0, %v3121_v41  ;;  %3120 = vst [vmem:[#allocation3] sm:$0x80] %v3119_v42 }
  0xf7   : > { %1901 = vst.msk [vmem:[#allocation2 + $0x130] sm:$0xff] %vm14934_vm7, %v1879_v52  ;;  %3123 = vst [vmem:[#allocation3 + $0x8] sm:$0x80] %v3122_v43 }
  0xf8   : > { %3132 = vst [vmem:[#allocation3 + $0xb8] sm:$0x1] %v3131_v46 }
  0xf9   : > { %2865 = vmatpush1.bf16.msra.mxu0 %v10974_v45  ;;  %v3128_v45 = vsel %vm3126_vm13, 0, %v3127_v44 }
  0xfa   : > { %2866 = vmatprep.subr.bf16.mxu0 %v10982_v48  ;;  %3129 = vst [vmem:[#allocation3 + $0xb0] sm:$0x1] %v3128_v45 }
  0xfc   : > { %2772 = vmatmul.mubr.bf16.gmra.mrb[4].mxu0 %v2091_v56  ;;  %v1450_v0 = vpop.permute.xlu1 %1449  ;;  %v2121_v23 = vld [vmem:[#allocation2 + $0x128] sm:$0xff] }
  0xfd   : > { %2781 = vmatprep.mubr.bf16.mxu0 %v2097_v60  ;;  %2867 = vmatpush1.bf16.msra.mxu0 %v10980_v57  ;;  %1471 = vst.msk [vmem:[#allocation2 + $0x150] sm:$0xff] %vm14934_vm7, %v1450_v0 }
  0xfe   : > { %2868 = vmatprep.subr.bf16.mxu0 %v10987_v61  ;;  %v1881_v8 = vpop.permute.xlu0 %1880  ;;  %v2122_v22 = vld [vmem:[#allocation2 + $0x130] sm:$0xff] }
  0xff   : > { %1902 = vst.msk [vmem:[#allocation2 + $0x158] sm:$0xff] %vm14934_vm7, %v1881_v8 }
 0x101   : > { %2869 = vmatpush1.bf16.msra.mxu0 %v10985_v1 }
 0x104   : > { %2782 = vmatmul.mubr.bf16.gmra.mrb[8].mxu0 %v2096_v9  ;;  %v1452_v14 = vpop.permute.xlu1 %1451  ;;  %v2126_v25 = vld [vmem:[#allocation2 + $0x150] sm:$0xff] }
 0x105   : > { %2791 = vmatprep.mubr.bf16.mxu0 %v2102_v12  ;;  %1472 = vst.msk [vmem:[#allocation2 + $0x178] sm:$0xff] %vm14934_vm7, %v1452_v14 }
 0x106   : > { %v1883_v15 = vpop.permute.xlu0 %1882  ;;  %v2127_v24 = vld [vmem:[#allocation2 + $0x158] sm:$0xff] }
 0x107   : > { %1903 = vst.msk [vmem:[#allocation2 + $0x180] sm:$0xff] %vm14934_vm7, %v1883_v15 }
 0x10c   : > { %2792 = vmatmul.mubr.bf16.gmra.mrb[12].mxu0 %v2101_v16  ;;  %v2131_v27 = vld [vmem:[#allocation2 + $0x178] sm:$0xff] }
 0x10d   : > { %2801 = vmatprep.mubr.bf16.mxu0 %v2107_v17 }
 0x10e   : > { %v2132_v26 = vld [vmem:[#allocation2 + $0x180] sm:$0xff] }
 0x114   : > { %2802 = vmatmul.mubr.bf16.gmra.mrb[16].mxu0 %v2106_v18 }
 0x115   : > { %2811 = vmatprep.mubr.bf16.mxu0 %v2112_v19 }
 0x11c   : > { %2812 = vmatmul.mubr.bf16.gmra.mrb[20].mxu0 %v2111_v50 }
 0x11d   : > { %2821 = vmatprep.mubr.bf16.mxu0 %v2117_v20 }
 0x124   : > { %2822 = vmatmul.mubr.bf16.gmra.mrb[24].mxu0 %v2116_v21 }
 0x125   : > { %2831 = vmatprep.mubr.bf16.mxu0 %v2122_v22 }
 0x12c   : > { %2832 = vmatmul.mubr.bf16.gmra.mrb[28].mxu0 %v2121_v23 }
 0x12d   : > { %2841 = vmatprep.mubr.bf16.mxu0 %v2127_v24 }
 0x134   : > { %2842 = vmatmul.mubr.bf16.gmra.mrb[32].mxu0 %v2126_v25 }
 0x135   : > { %2851 = vmatprep.mubr.bf16.mxu0 %v2132_v26 }
 0x13c   : > { %2852 = vmatmul.mubr.bf16.gmra.mrb[36].mxu0 %v2131_v27 }
 0x13d   : > { %2894 = vmatprep.mubr.bf16.mxu0 %v14936_v28 }
 0x144   : > { %9892 = vmatmul.mubr.msk.bf16.vlgmr.msra.gmra.mrb[0].mxu0 %vm14935_vm6, %v2088_v29 }
 0x145   : > { %2904 = vmatprep.mubr.bf16.mxu0 %v14936_v28 }
 0x14c   : > { %9893 = vmatmul.mubr.msk.bf16.gmra.mrb[4].mxu0 %vm14935_vm6, %v2093_v30 }
 0x14d   : > { %2914 = vmatprep.mubr.bf16.mxu0 %v14936_v28 }
 0x154   : > { %9894 = vmatmul.mubr.msk.bf16.gmra.mrb[8].mxu0 %vm14935_vm6, %v2098_v31 }
 0x155   : > { %2924 = vmatprep.mubr.bf16.mxu0 %v14936_v28 }
 0x15c   : > { %9895 = vmatmul.mubr.msk.bf16.gmra.mrb[12].mxu0 %vm14935_vm6, %v2103_v32 }
 0x15d   : > { %2934 = vmatprep.mubr.bf16.mxu0 %v14936_v28 }
 0x164   : > { %9896 = vmatmul.mubr.msk.bf16.gmra.mrb[16].mxu0 %vm14935_vm6, %v2108_v33 }
 0x165   : > { %2944 = vmatprep.mubr.bf16.mxu0 %v14936_v28 }
 0x16c   : > { %9897 = vmatmul.mubr.msk.bf16.gmra.mrb[20].mxu0 %vm14935_vm6, %v2113_v34 }
 0x16d   : > { %2954 = vmatprep.mubr.bf16.mxu0 %v14936_v28 }
 0x174   : > { %9898 = vmatmul.mubr.msk.bf16.gmra.mrb[24].mxu0 %vm14935_vm6, %v2118_v36 }
 0x175   : > { %2964 = vmatprep.mubr.bf16.mxu0 %v14936_v28 }
 0x17c   : > { %9899 = vmatmul.mubr.msk.bf16.gmra.mrb[28].mxu0 %vm14935_vm6, %v2123_v37 }
 0x17d   : > { %2974 = vmatprep.mubr.bf16.mxu0 %v14936_v28 }
 0x184   : > { %9900 = vmatmul.mubr.msk.bf16.gmra.mrb[32].mxu0 %vm14935_vm6, %v2128_v38 }
 0x185   : > { %2984 = vmatprep.mubr.bf16.mxu0 %v14936_v28 }
 0x18c   : > { %9901 = vmatmul.mubr.msk.bf16.gmra.mrb[36].mxu0 %vm14935_vm6, %v2133_v39 }
 0x217   : > { %v2896_v47 = vpop.f32.mrb[0].mxu0 }
 0x218   : > { %v2995_v48 = vmul.f32 0.2, %v2896_v47  ;;  %v2898_v49 = vpop.f32.mrb[1].mxu0 }
 0x219   : > { %v2996_v51 = vmul.f32 0.2, %v2898_v49  ;;  %v2900_v52 = vpop.f32.mrb[2].mxu0 }
 0x21a   : > { %v2997_v53 = vmul.f32 0.2, %v2900_v52  ;;  %v2902_v54 = vpop.f32.mrb[3].mxu0  ;;  %v3035_v56 = vmax.f32 %v2896_v47, %v2995_v48 }
 0x21b   : > { %v2998_v55 = vmul.f32 0.2, %v2902_v54  ;;  %v3036_v58 = vmax.f32 %v2898_v49, %v2996_v51 }
 0x21c   : > { %v3037_v57 = vmax.f32 %v2900_v52, %v2997_v53 }
 0x21d   : > { %v3038_v59 = vmax.f32 %v2902_v54, %v2998_v55 }
 0x21e   : > { %v3075_v60 = vpack.c.bf16 %v3037_v57, %v3035_v56 }
 0x21f   : > { %v3076_v61 = vpack.c.bf16 %v3038_v59, %v3036_v58  ;;  %v2906_v62 = vpop.f32.mrb[4].mxu0 }
 0x220   : > { %3095 = vst [vmem:[#allocation3 + $0x10] sm:$0xff] %v3075_v60  ;;  %v2999_v63 = vmul.f32 0.2, %v2906_v62  ;;  %v2908_v0 = vpop.f32.mrb[5].mxu0 }
 0x221   : > { %3096 = vst [vmem:[#allocation3 + $0x18] sm:$0xff] %v3076_v61  ;;  %v3000_v1 = vmul.f32 0.2, %v2908_v0  ;;  %v2910_v2 = vpop.f32.mrb[6].mxu0 }
 0x222   : > { %v3001_v3 = vmul.f32 0.2, %v2910_v2  ;;  %v2912_v4 = vpop.f32.mrb[7].mxu0  ;;  %v3039_v6 = vmax.f32 %v2906_v62, %v2999_v63 }
 0x223   : > { %v3002_v5 = vmul.f32 0.2, %v2912_v4  ;;  %v3040_v8 = vmax.f32 %v2908_v0, %v3000_v1 }
 0x224   : > { %v3041_v7 = vmax.f32 %v2910_v2, %v3001_v3 }
 0x225   : > { %v3042_v9 = vmax.f32 %v2912_v4, %v3002_v5 }
 0x226   : > { %v3077_v10 = vpack.c.bf16 %v3041_v7, %v3039_v6 }
 0x227   : > { %v3078_v11 = vpack.c.bf16 %v3042_v9, %v3040_v8  ;;  %v2916_v12 = vpop.f32.mrb[8].mxu0 }
 0x228   : > { %3097 = vst [vmem:[#allocation3 + $0x20] sm:$0xff] %v3077_v10  ;;  %v3003_v13 = vmul.f32 0.2, %v2916_v12  ;;  %v2918_v14 = vpop.f32.mrb[9].mxu0 }
 0x229   : > { %3098 = vst [vmem:[#allocation3 + $0x28] sm:$0xff] %v3078_v11  ;;  %v3004_v15 = vmul.f32 0.2, %v2918_v14  ;;  %v2920_v16 = vpop.f32.mrb[10].mxu0 }
 0x22a   : > { %v3005_v17 = vmul.f32 0.2, %v2920_v16  ;;  %v2922_v18 = vpop.f32.mrb[11].mxu0  ;;  %v3043_v50 = vmax.f32 %v2916_v12, %v3003_v13 }
 0x22b   : > { %v3006_v19 = vmul.f32 0.2, %v2922_v18  ;;  %v3044_v21 = vmax.f32 %v2918_v14, %v3004_v15 }
 0x22c   : > { %v3045_v20 = vmax.f32 %v2920_v16, %v3005_v17 }
 0x22d   : > { %v3046_v22 = vmax.f32 %v2922_v18, %v3006_v19 }
 0x22e   : > { %v3079_v23 = vpack.c.bf16 %v3045_v20, %v3043_v50 }
 0x22f   : > { %v3080_v24 = vpack.c.bf16 %v3046_v22, %v3044_v21  ;;  %v2926_v25 = vpop.f32.mrb[12].mxu0 }
 0x230   : > { %3099 = vst [vmem:[#allocation3 + $0x30] sm:$0xff] %v3079_v23  ;;  %v3007_v26 = vmul.f32 0.2, %v2926_v25  ;;  %v2928_v27 = vpop.f32.mrb[13].mxu0 }
 0x231   : > { %3100 = vst [vmem:[#allocation3 + $0x38] sm:$0xff] %v3080_v24  ;;  %v3008_v29 = vmul.f32 0.2, %v2928_v27  ;;  %v2930_v30 = vpop.f32.mrb[14].mxu0 }
 0x232   : > { %v3009_v31 = vmul.f32 0.2, %v2930_v30  ;;  %v2932_v32 = vpop.f32.mrb[15].mxu0  ;;  %v3047_v34 = vmax.f32 %v2926_v25, %v3007_v26 }
 0x233   : > { %v3010_v33 = vmul.f32 0.2, %v2932_v32  ;;  %v3048_v37 = vmax.f32 %v2928_v27, %v3008_v29 }
 0x234   : > { %v3049_v36 = vmax.f32 %v2930_v30, %v3009_v31 }
 0x235   : > { %v3050_v38 = vmax.f32 %v2932_v32, %v3010_v33 }
 0x236   : > { %v3081_v39 = vpack.c.bf16 %v3049_v36, %v3047_v34 }
 0x237   : > { %v3082_v40 = vpack.c.bf16 %v3050_v38, %v3048_v37  ;;  %v2936_v41 = vpop.f32.mrb[16].mxu0 }
 0x238   : > { %3101 = vst [vmem:[#allocation3 + $0x40] sm:$0xff] %v3081_v39  ;;  %v3011_v42 = vmul.f32 0.2, %v2936_v41  ;;  %v2938_v43 = vpop.f32.mrb[17].mxu0 }
 0x239   : > { %3102 = vst [vmem:[#allocation3 + $0x48] sm:$0xff] %v3082_v40  ;;  %v3012_v44 = vmul.f32 0.2, %v2938_v43  ;;  %v2940_v35 = vpop.f32.mrb[18].mxu0 }
 0x23a   : > { %v3013_v45 = vmul.f32 0.2, %v2940_v35  ;;  %v2942_v46 = vpop.f32.mrb[19].mxu0  ;;  %v3051_v48 = vmax.f32 %v2936_v41, %v3011_v42 }
 0x23b   : > { %v3014_v47 = vmul.f32 0.2, %v2942_v46  ;;  %v3052_v51 = vmax.f32 %v2938_v43, %v3012_v44 }
 0x23c   : > { %v3053_v49 = vmax.f32 %v2940_v35, %v3013_v45 }
 0x23d   : > { %v3054_v52 = vmax.f32 %v2942_v46, %v3014_v47 }
 0x23e   : > { %v3083_v53 = vpack.c.bf16 %v3053_v49, %v3051_v48 }
 0x23f   : > { %v3084_v54 = vpack.c.bf16 %v3054_v52, %v3052_v51  ;;  %v2946_v55 = vpop.f32.mrb[20].mxu0 }
 0x240   : > { %3103 = vst [vmem:[#allocation3 + $0x50] sm:$0xff] %v3083_v53  ;;  %v3015_v56 = vmul.f32 0.2, %v2946_v55  ;;  %v2948_v57 = vpop.f32.mrb[21].mxu0 }
 0x241   : > { %3104 = vst [vmem:[#allocation3 + $0x58] sm:$0xff] %v3084_v54  ;;  %v3016_v58 = vmul.f32 0.2, %v2948_v57  ;;  %v2950_v59 = vpop.f32.mrb[22].mxu0 }
 0x242   : > { %v3017_v60 = vmul.f32 0.2, %v2950_v59  ;;  %v2952_v61 = vpop.f32.mrb[23].mxu0  ;;  %v3055_v63 = vmax.f32 %v2946_v55, %v3015_v56 }
 0x243   : > { %v3018_v62 = vmul.f32 0.2, %v2952_v61  ;;  %v3056_v1 = vmax.f32 %v2948_v57, %v3016_v58 }
 0x244   : > { %v3057_v0 = vmax.f32 %v2950_v59, %v3017_v60 }
 0x245   : > { %v3058_v2 = vmax.f32 %v2952_v61, %v3018_v62  ;;  %v11459_v62 = vmov (!%p9902_p10), 0  }
 0x246   : > { %v3085_v3 = vpack.c.bf16 %v3057_v0, %v3055_v63  ;;  %3137 = vst [vmem:[#allocation3 + $0x18] sm:$0xff] (!%p9902_p10), %v11459_v62 }
 0x247   : > { %v3086_v4 = vpack.c.bf16 %v3058_v2, %v3056_v1  ;;  %v2956_v5 = vpop.f32.mrb[24].mxu0 }
 0x248   : > { %3105 = vst [vmem:[#allocation3 + $0x60] sm:$0xff] %v3085_v3  ;;  %v3019_v6 = vmul.f32 0.2, %v2956_v5  ;;  %v2958_v7 = vpop.f32.mrb[25].mxu0 }
 0x249   : > { %3106 = vst [vmem:[#allocation3 + $0x68] sm:$0xff] %v3086_v4  ;;  %v3020_v8 = vmul.f32 0.2, %v2958_v7  ;;  %v2960_v9 = vpop.f32.mrb[26].mxu0 }
 0x24a   : > { %v3021_v10 = vmul.f32 0.2, %v2960_v9  ;;  %v2962_v11 = vpop.f32.mrb[27].mxu0  ;;  %v3059_v13 = vmax.f32 %v2956_v5, %v3019_v6 }
 0x24b   : > { %v3022_v12 = vmul.f32 0.2, %v2962_v11  ;;  %v3060_v15 = vmax.f32 %v2958_v7, %v3020_v8 }
 0x24c   : > { %v3061_v14 = vmax.f32 %v2960_v9, %v3021_v10 }
 0x24d   : > { %v3062_v16 = vmax.f32 %v2962_v11, %v3022_v12 }
 0x24e   : > { %v3087_v17 = vpack.c.bf16 %v3061_v14, %v3059_v13 }
 0x24f   : > { %v3088_v18 = vpack.c.bf16 %v3062_v16, %v3060_v15  ;;  %v2966_v19 = vpop.f32.mrb[28].mxu0 }
 0x250   : > { %3107 = vst [vmem:[#allocation3 + $0x70] sm:$0xff] %v3087_v17  ;;  %v3023_v50 = vmul.f32 0.2, %v2966_v19  ;;  %v2968_v20 = vpop.f32.mrb[29].mxu0 }
 0x251   : > { %3108 = vst [vmem:[#allocation3 + $0x78] sm:$0xff] %v3088_v18  ;;  %v3024_v21 = vmul.f32 0.2, %v2968_v20  ;;  %v2970_v22 = vpop.f32.mrb[30].mxu0 }
 0x252   : > { %v3025_v23 = vmul.f32 0.2, %v2970_v22  ;;  %v2972_v24 = vpop.f32.mrb[31].mxu0  ;;  %v3063_v26 = vmax.f32 %v2966_v19, %v3023_v50 }
 0x253   : > { %v3026_v25 = vmul.f32 0.2, %v2972_v24  ;;  %v3064_v29 = vmax.f32 %v2968_v20, %v3024_v21 }
 0x254   : > { %v3065_v27 = vmax.f32 %v2970_v22, %v3025_v23 }
 0x255   : > { %v3066_v30 = vmax.f32 %v2972_v24, %v3026_v25 }
 0x256   : > { %v3089_v31 = vpack.c.bf16 %v3065_v27, %v3063_v26 }
 0x257   : > { %v3090_v32 = vpack.c.bf16 %v3066_v30, %v3064_v29  ;;  %v2976_v33 = vpop.f32.mrb[32].mxu0 }
 0x258   : > { %3109 = vst [vmem:[#allocation3 + $0x80] sm:$0xff] %v3089_v31  ;;  %v3027_v34 = vmul.f32 0.2, %v2976_v33  ;;  %v2978_v36 = vpop.f32.mrb[33].mxu0 }
 0x259   : > { %3110 = vst [vmem:[#allocation3 + $0x88] sm:$0xff] %v3090_v32  ;;  %v3028_v37 = vmul.f32 0.2, %v2978_v36  ;;  %v2980_v38 = vpop.f32.mrb[34].mxu0 }
 0x25a   : > { %v3029_v39 = vmul.f32 0.2, %v2980_v38  ;;  %v2982_v40 = vpop.f32.mrb[35].mxu0  ;;  %v3067_v42 = vmax.f32 %v2976_v33, %v3027_v34 }
 0x25b   : > { %v3030_v41 = vmul.f32 0.2, %v2982_v40  ;;  %v3068_v44 = vmax.f32 %v2978_v36, %v3028_v37 }
 0x25c   : > { %v3069_v43 = vmax.f32 %v2980_v38, %v3029_v39 }
 0x25d   : > { %v3070_v35 = vmax.f32 %v2982_v40, %v3030_v41 }
 0x25e   : > { %v3091_v45 = vpack.c.bf16 %v3069_v43, %v3067_v42 }
 0x25f   : > { %v3092_v46 = vpack.c.bf16 %v3070_v35, %v3068_v44  ;;  %v2986_v47 = vpop.f32.mrb[36].mxu0 }
 0x260   : > { %3111 = vst [vmem:[#allocation3 + $0x90] sm:$0xff] %v3091_v45  ;;  %v3031_v48 = vmul.f32 0.2, %v2986_v47  ;;  %v2988_v49 = vpop.f32.mrb[37].mxu0 }
 0x261   : > { %3112 = vst [vmem:[#allocation3 + $0x98] sm:$0xff] %v3092_v46  ;;  %v3032_v51 = vmul.f32 0.2, %v2988_v49  ;;  %v2990_v52 = vpop.f32.mrb[38].mxu0 }
 0x262   : > { %v3033_v53 = vmul.f32 0.2, %v2990_v52  ;;  %v2992_v54 = vpop.f32.mrb[39].mxu0  ;;  %v3071_v56 = vmax.f32 %v2986_v47, %v3031_v48 }
 0x263   : > { %v3034_v55 = vmul.f32 0.2, %v2992_v54  ;;  %v3072_v58 = vmax.f32 %v2988_v49, %v3032_v51  ;;  %3136 = sbr.rel (%p9902_p10) target bundleno = 618 (0x26a), region = 40 }
 0x264   : > { %v3073_v57 = vmax.f32 %v2990_v52, %v3033_v53 }
 0x265   : > { %v3074_v59 = vmax.f32 %v2992_v54, %v3034_v55 }
 0x266   : > { %v3093_v60 = vpack.c.bf16 %v3073_v57, %v3071_v56 }
 0x267   : > { %v3094_v61 = vpack.c.bf16 %v3074_v59, %v3072_v58 }
 0x268   : > { %3113 = vst [vmem:[#allocation3 + $0xa0] sm:$0xff] %v3093_v60 }
 0x269   : > { %3114 = vst [vmem:[#allocation3 + $0xa8] sm:$0xff] %v3094_v61 }
 0x26a PF: > { %p9903_p11 = scmp.ne.s32.totalorder %s11439_s17, 1 }
 0x26b   : > { %v11460_v63 = vmov (!%p9903_p11), 0  }
 0x26c   : > { %3141 = sbr.rel (%p9903_p11) target bundleno = 627 (0x273), region = 44  ;;  %3142 = vst [vmem:[#allocation3 + $0xa0] sm:$0xff] (!%p9903_p11), %v11460_v63 }
 0x273 PF: > { %v3143_v0 = vlaneseq  ;;  %vm11461_vm14 = vmmov 0   ;;  %v12399_v1 = vld [vmem:[#allocation3 + $0x38] sm:$0xff]  ;;  %v12403_v3 = vld [vmem:[#allocation3 + $0x48] sm:$0xff]  ;;  %vm3529_vm9 = vsmask.f32 7424  ;;  %s10423_s7 = sshll.u32 (%p11533_p5), %s11439_s17, 5 }
 0x274   : > { %vm3474_vm15 = vmpackc.low %vm11461_vm14, %vm11461_vm14  ;;  %v12405_v4 = vld [vmem:[#allocation3 + $0x58] sm:$0xff]  ;;  %v12407_v5 = vld [vmem:[#allocation3 + $0x68] sm:$0xff]  ;;  %3425 = vst [vmem:[#allocation2 + $0x38] sm:$0xff] %v12399_v1  ;;  %s10355_s9 = sshll.u32 (%p11533_p5), %s11443_s18, 8 }
 0x275   : > { %v12401_v2 = vshrl.u32 %v3143_v0, 7  ;;  %v12411_v6 = vsel %vm3474_vm15, 65537, %v14936_v28  ;;  %v12413_v7 = vld [vmem:[#allocation3 + $0x78] sm:$0xff]  ;;  %v12415_v8 = vld [vmem:[#allocation3 + $0x88] sm:$0xff]  ;;  %3426 = vst [vmem:[#allocation2 + $0x60] sm:$0xff] %v12403_v3  ;;  %3427 = vst [vmem:[#allocation2 + $0x88] sm:$0xff] %v12405_v4  ;;  %s9178_s26 = sadd.s32 (%p11533_p5), %s10423_s7, %s10355_s9 }
 0x276   : > { %3428 = vst [vmem:[#allocation2 + $0xb0] sm:$0xff] %v12407_v5  ;;  %3429 = vst [vmem:[#allocation2 + $0xd8] sm:$0xff] %v12413_v7  ;;  %v10989_v17 = vld [vmem:[%s14931_s2 + $0x104] ss:$8 sps:$4 sm:$0xff]   ;;  %v10991_v20 = vld [vmem:[%s14931_s2 + $0x100] ss:$8 sps:$4 sm:$0xff]  }
 0x277   : > { %v3146_v9 = vadd.s32 16, %v12401_v2  ;;  %v3164_v10 = vand.u32 15, %v12401_v2  ;;  %v3148_v11 = vadd.s32 32, %v12401_v2  ;;  %v3150_v12 = vadd.s32 48, %v12401_v2  ;;  %3430 = vst [vmem:[#allocation2 + $0x100] sm:$0xff] %v12415_v8  ;;  %4540 = vmatprep.subr.bf16.mxu1 %v10989_v17  ;;  %v3433_v56 = vld [vmem:[#allocation3 + $0x18] sm:$0xff] }
 0x278   : > { %v3152_v13 = vadd.s32 64, %v12401_v2  ;;  %v3154_v14 = vadd.s32 80, %v12401_v2  ;;  %v3156_v15 = vadd.s32 96, %v12401_v2  ;;  %v3158_v16 = vadd.s32 112, %v12401_v2  ;;  %4541 = vmatpush1.bf16.msra.mxu1 %v10991_v20  ;;  %v10992_v27 = vld [vmem:[%s14931_s2 + $0x114] ss:$8 sps:$4 sm:$0xff]  }
 0x279   : > { %v3178_v18 = vand.u32 15, %v3146_v9  ;;  %vm3352_vm0 = vcmp.eq.s32.totalorder %v3164_v10, 0  ;;  %v3192_v19 = vand.u32 15, %v3148_v11  ;;  %v3206_v50 = vand.u32 15, %v3150_v12  ;;  %v10994_v32 = vld [vmem:[%s14931_s2 + $0x110] ss:$8 sps:$4 sm:$0xff]   ;;  %4542 = vmatprep.subr.bf16.mxu1 %v10992_v27 }
 0x27a   : > { %vm3473_vm1 = vmpackc.low %vm3352_vm0, %vm3352_vm0  ;;  %v3220_v21 = vand.u32 15, %v3152_v13  ;;  %v3234_v22 = vand.u32 15, %v3154_v14  ;;  %v3248_v23 = vand.u32 15, %v3156_v15  ;;  %v3262_v31 = vand.u32 15, %v3158_v16  ;;  %v10995_v36 = vld [vmem:[%s14931_s2 + $0x124] ss:$8 sps:$4 sm:$0xff]  }
 0x27b   : > { %vm3354_vm2 = vcmp.eq.s32.totalorder %v3178_v18, 0  ;;  %v3489_v24 = vsel %vm3473_vm1, 65537, %v14936_v28  ;;  %vm12437_vm3 = vcmp.eq.s32.totalorder %v3192_v19, 0  ;;  %vm12441_vm4 = vcmp.eq.s32.totalorder %v3206_v50, 0  ;;  %v3432_v37 = vld [vmem:[#allocation3 + $0x8] sm:$0x80] }
 0x27c   : > { %vm3475_vm5 = vmpackc.low %vm3354_vm2, %vm3354_vm2  ;;  %v9904_v29 = vcombine.low %v3489_v24, %v12411_v6  ;;  %vm12449_vm8 = vcmp.eq.s32.totalorder %v3220_v21, 0  ;;  %vm12460_vm12 = vcmp.eq.s32.totalorder %v3234_v22, 0  ;;  %vm12477_vm15 = vcmp.eq.s32.totalorder %v3248_v23, 0  ;;  %4543 = vmatpush1.bf16.msra.mxu1 %v10994_v32  ;;  %v10997_v35 = vld [vmem:[%s14931_s2 + $0x120] ss:$8 sps:$4 sm:$0xff]   ;;  %v12514_v14 = vld [vmem:[#allocation3 + $0x28] sm:$0xff] }
 0x27d   : > { %v3491_v33 = vsel %vm3475_vm5, 65537, %v14936_v28  ;;  %vm3477_vm10 = vmpackc.low %vm12437_vm3, %vm12437_vm3  ;;  %vm12490_vm1 = vcmp.eq.s32.totalorder %v3262_v31, 0  ;;  %4544 = vmatprep.subr.bf16.mxu1 %v10995_v36  ;;  %v10998_v51 = vld [vmem:[%s14931_s2 + $0x134] ss:$8 sps:$4 sm:$0xff]   ;;  %v11000_v0 = vld [vmem:[%s14931_s2 + $0x130] ss:$8 sps:$4 sm:$0xff]  }
 0x27e   : > { %v9905_v38 = vcombine.low %v3491_v33, %v12411_v6  ;;  %v3531_v39 = vshll.u32 %v9904_v29, 16  ;;  %v3534_v40 = vshrl.u32 %v9904_v29, 16  ;;  %v3493_v41 = vsel %vm3477_vm10, 65537, %v14936_v28  ;;  %vm3479_vm13 = vmpackc.low %vm12441_vm4, %vm12441_vm4  ;;  %v11001_v13 = vld [vmem:[%s14931_s2 + $0x144] ss:$8 sps:$4 sm:$0xff]   ;;  %s10356_s6 = sshll.u32 (%p11533_p5), %s9178_s26, 2 }
 0x27f   : > { %v9906_v42 = vcombine.low %v3493_v41, %v12411_v6  ;;  %v3495_v43 = vsel %vm3479_vm13, 65537, %v14936_v28  ;;  %vm3481_vm14 = vmpackc.low %vm12449_vm8, %vm12449_vm8  ;;  %v11003_v24 = vld [vmem:[%s14931_s2 + $0x140] ss:$8 sps:$4 sm:$0xff]   ;;  %v11004_v29 = vld [vmem:[%s14931_s2 + $0x154] ss:$8 sps:$4 sm:$0xff]   ;;  %s14787_s13 = scalar_lea.vmem (%p11533_p5), %s14933_s4, %s10356_s6 }
 0x280   : > { %v12484_v45 = vrot.slane %v3531_v39, 1  ;;  %v3538_v46 = vshll.u32 %v9905_v38, 16  ;;  %v3542_v47 = vshrl.u32 %v9905_v38, 16  ;;  %v9907_v48 = vcombine.low %v3495_v43, %v12411_v6  ;;  %vm3483_vm0 = vmpackc.low %vm12460_vm12, %vm12460_vm12  ;;  %4545 = vmatpush1.bf16.msra.mxu1 %v10997_v35  ;;  %v3813_v39 = vld [vmem:[#allocation3 + $0x18] sm:$0x80] }
 0x281   : > { %v3546_v52 = vshll.u32 %v9906_v42, 16  ;;  %v3550_v53 = vshrl.u32 %v9906_v42, 16  ;;  %v3497_v54 = vsel %vm3481_vm14, 65537, %v14936_v28  ;;  %v3499_v55 = vsel %vm3483_vm0, 65537, %v14936_v28  ;;  %4546 = vmatprep.subr.bf16.mxu1 %v10998_v51  ;;  %vm3485_vm8 = vmpackc.low %vm12477_vm15, %vm12477_vm15  ;;  %v11006_v43 = vld [vmem:[%s14931_s2 + $0x150] ss:$8 sps:$4 sm:$0xff]  }
 0x282   : > { %v3536_v57 = vor.u32 %v3534_v40, %v12484_v45  ;;  %v3540_v58 = vrot.slane %v3538_v46, 1  ;;  %vm3593_vm2 = vcmp.ne.s16.totalorder %v12484_v45, 0  ;;  %v3554_v59 = vshll.u32 %v9907_v48, 16  ;;  %vm3487_vm12 = vmpackc.low %vm12490_vm1, %vm12490_vm1  ;;  %v11234_v45 = vld [vmem:[%s14931_s2 + $0x1e4] ss:$8 sps:$4 sm:$0xff]  }
 0x283   : > { %v3602_v60 = vsel %vm3593_vm2, 0, %v3432_v37  ;;  %v3548_v61 = vrot.slane %v3546_v52, 1  ;;  %v9908_v62 = vcombine.low %v3497_v54, %v12411_v6  ;;  %v3558_v63 = vshrl.u32 %v9907_v48, 16  ;;  %v11007_v48 = vld [vmem:[%s14931_s2 + $0x164] ss:$8 sps:$4 sm:$0xff]  }
 0x284   : > { %v12508_v9 = vsel %vm3529_vm9, %v3536_v57, %v3540_v58  ;;  %v3612_v10 = vshrl.u32 %v3602_v60, 16  ;;  %v3544_v11 = vor.u32 %v3542_v47, %v3540_v58  ;;  %v3556_v12 = vrot.slane %v3554_v59, 1  ;;  %4547 = vmatpush1.bf16.msra.mxu1 %v11000_v0 }
 0x285   : > { %15003 = vst [vmem:[#allocation5_spill] sm:$0xff] %v12508_v9  ;;  %vm3594_vm3 = vcmp.ne.s16.totalorder %v12508_v9, 0  ;;  %v3552_v15 = vor.u32 %v3550_v53, %v3548_v61  ;;  %v3562_v16 = vshll.u32 %v9908_v62, 16  ;;  %v9909_v17 = vcombine.low %v3499_v55, %v12411_v6  ;;  %4548 = vmatprep.subr.bf16.mxu1 %v11001_v13 }
 0x286   : > { %v3603_v18 = vsel %vm3594_vm3, 0, %v3433_v56  ;;  %v3614_v19 = vrot.slane %v3612_v10, 7  ;;  %v12520_v50 = vsel %vm3529_vm9, %v3544_v11, %v3548_v61  ;;  %v3560_v20 = vor.u32 %v3558_v63, %v3556_v12  ;;  %v11009_v63 = vld [vmem:[%s14931_s2 + $0x160] ss:$8 sps:$4 sm:$0xff]  }
 0x287   : > { %15004 = vst [vmem:[#allocation6_spill] sm:$0xff] %v12520_v50  ;;  %v3616_v21 = vshrl.u32 %v3603_v18, 16  ;;  %v3619_v22 = vshll.u32 %v3603_v18, 16  ;;  %vm3595_vm4 = vcmp.ne.s16.totalorder %v12520_v50, 0  ;;  %v12524_v23 = vsel %vm3529_vm9, %v3552_v15, %v3556_v12  ;;  %v11010_v12 = vld [vmem:[%s14931_s2 + $0x174] ss:$8 sps:$4 sm:$0xff]  }
 0x288   : > { %15005 = vst [vmem:[#allocation7_spill] sm:$0xff] %v12524_v23  ;;  %v3604_v25 = vsel %vm3595_vm4, 0, %v12514_v14  ;;  %vm3596_vm5 = vcmp.ne.s16.totalorder %v12524_v23, 0  ;;  %v3564_v26 = vrot.slane %v3562_v16, 1  ;;  %v3566_v27 = vshrl.u32 %v9908_v62, 16  ;;  %4549 = vmatpush1.bf16.msra.mxu1 %v11003_v24  ;;  %v13043_v50 = vld [vmem:[#allocation3 + $0x80] sm:$0xff] }
 0x289   : > { %v3618_v30 = vrot.slane %v3616_v21, 7  ;;  %v3624_v31 = vshrl.u32 %v3604_v25, 16  ;;  %v3627_v32 = vshll.u32 %v3604_v25, 16  ;;  %v3605_v33 = vsel %vm3596_vm5, 0, %v12399_v1  ;;  %4550 = vmatprep.subr.bf16.mxu1 %v11004_v29 }
 0x28a   : > { %v3632_v34 = vshrl.u32 %v3605_v33, 16  ;;  %v3635_v36 = vshll.u32 %v3605_v33, 16  ;;  %v12543_v37 = vsel %vm3529_vm9, %v3560_v20, %v3564_v26  ;;  %v3568_v38 = vor.u32 %v3566_v27, %v3564_v26  ;;  %v11012_v27 = vld [vmem:[%s14931_s2 + $0x170] ss:$8 sps:$4 sm:$0xff]  }
 0x28b   : > { %v3621_v40 = vor.u32 %v3619_v22, %v3618_v30  ;;  %v3626_v41 = vrot.slane %v3624_v31, 7  ;;  %vm3597_vm10 = vcmp.ne.s16.totalorder %v12543_v37, 0  ;;  %v3570_v42 = vshll.u32 %v9909_v17, 16  ;;  %v11111_v37 = vld [vmem:[%s14932_s3 + $0x44] ss:$8 sps:$4 sm:$0xff]  }
 0x28c   : > { %v3634_v44 = vrot.slane %v3632_v34, 7  ;;  %v3606_v35 = vsel %vm3597_vm10, 0, %v12403_v3  ;;  %v3501_v46 = vsel %vm3485_vm8, 65537, %v14936_v28  ;;  %v3574_v47 = vshrl.u32 %v9909_v17, 16  ;;  %4551 = vmatpush1.bf16.msra.mxu1 %v11006_v43  ;;  %v12584_v17 = vld [vmem:[#allocation3 + $0x20] sm:$0xff] }
 0x28d   : > { %v3622_v51 = vsel %vm3125_vm11, %v3614_v19, %v3621_v40  ;;  %v3629_v52 = vor.u32 %v3627_v32, %v3626_v41  ;;  %v3640_v53 = vshrl.u32 %v3606_v35, 16  ;;  %v3643_v54 = vshll.u32 %v3606_v35, 16  ;;  %4552 = vmatprep.subr.bf16.mxu1 %v11007_v48  ;;  %4459 = vmatprep.mubr.bf16.mxu0 %v12584_v17  ;;  %6444 = vst [vmem:[#allocation2] sm:$0xff] %v12584_v17  ;;  %v11013_v32 = vld [vmem:[%s14931_s2 + $0x184] ss:$8 sps:$4 sm:$0xff]  }
 0x28e   : > { %3679 = vrot.lane.b32.xlu0 %v3622_v51, %s11457_s12  ;;  %v3637_v55 = vor.u32 %v3635_v36, %v3634_v44  ;;  %v3572_v56 = vrot.slane %v3570_v42, 1  ;;  %v9910_v57 = vcombine.low %v3501_v46, %v12411_v6  ;;  %v3503_v58 = vsel %vm3487_vm12, 65537, %v14936_v28  ;;  %v12620_v42 = vld [vmem:[#allocation3 + $0x98] sm:$0xff]  ;;  %v11016_v46 = vld [vmem:[%s14931_s2 + $0x194] ss:$8 sps:$4 sm:$0xff]  }
 0x28f   : > { %v3630_v59 = vsel %vm3125_vm11, %v3618_v30, %v3629_v52  ;;  %v3642_v60 = vrot.slane %v3640_v53, 7  ;;  %v9911_v61 = vcombine.low %v3503_v58, %v12411_v6  ;;  %v3822_v62 = vsel %vm3593_vm2, 0, %v3813_v39  ;;  %3431 = vst [vmem:[#allocation2 + $0x128] sm:$0xff] %v12620_v42 }
 0x290   : > { %v3638_v0 = vsel %vm3125_vm11, %v3626_v41, %v3637_v55  ;;  %v12577_v10 = vsel %vm3529_vm9, %v3568_v38, %v3572_v56  ;;  %v3576_v49 = vor.u32 %v3574_v47, %v3572_v56  ;;  %v3578_v11 = vshll.u32 %v9910_v57, 16  ;;  %4553 = vmatpush1.bf16.msra.mxu1 %v11009_v63  ;;  %v11015_v41 = vld [vmem:[%s14931_s2 + $0x180] ss:$8 sps:$4 sm:$0xff]  }
 0x291   : > { %3683 = vrot.lane.b32.xlu1 %v3638_v0, %s11457_s12  ;;  %v3645_v13 = vor.u32 %v3643_v54, %v3642_v60  ;;  %vm3598_vm13 = vcmp.ne.s16.totalorder %v12577_v10, 0  ;;  %v3582_v15 = vshrl.u32 %v9910_v57, 16  ;;  %v3586_v16 = vshll.u32 %v9911_v61, 16  ;;  %4554 = vmatprep.subr.bf16.mxu1 %v11010_v12  ;;  %v12626_v47 = vld [vmem:[#allocation3 + $0x30] sm:$0xff]  ;;  %v11018_v57 = vld [vmem:[%s14931_s2 + $0x190] ss:$8 sps:$4 sm:$0xff]  }
 0x292   : > { %3681 = vrot.lane.b32.xlu0 %v3630_v59, %s11457_s12  ;;  %v3607_v18 = vsel %vm3598_vm13, 0, %v12405_v4  ;;  %v3580_v19 = vrot.slane %v3578_v11, 1  ;;  %v3590_v20 = vshrl.u32 %v9911_v61, 16  ;;  %v3823_v21 = vsel %vm3594_vm3, 0, %v12514_v14  ;;  %6476 = vst [vmem:[#allocation2 + $0x10] sm:$0xff] %v12626_v47 }
 0x293   : > { %v3646_v22 = vsel %vm3125_vm11, %v3634_v44, %v3645_v13  ;;  %v3648_v24 = vshrl.u32 %v3607_v18, 16  ;;  %v3651_v25 = vshll.u32 %v3607_v18, 16  ;;  %v3588_v26 = vrot.slane %v3586_v16, 1  ;;  %v12652_v11 = vld [vmem:[%s14931_s2 + $0x4] ss:$8 sps:$4 sm:$0xff]  }
 0x294   : > { %v12600_v29 = vsel %vm3529_vm9, %v3576_v49, %v3580_v19  ;;  %v3584_v30 = vor.u32 %v3582_v15, %v3580_v19  ;;  %v3832_v31 = vshrl.u32 %v3822_v62, 16  ;;  %v3836_v14 = vshrl.u32 %v3823_v21, 16  ;;  %4555 = vmatpush1.bf16.msra.mxu1 %v11012_v27  ;;  %v12666_v18 = vld [vmem:[%s14931_s2] ss:$8 sps:$4 sm:$0xff]   ;;  %4427 = vmatprep.subr.bf16.mxu0 %v12652_v11  ;;  %v12683_v27 = vld [vmem:[%s14931_s2 + $0x10] ss:$8 sps:$4 sm:$0xff]  }
 0x295   : > { %3685 = vrot.lane.b32.xlu1 %v3646_v22, %s11457_s12  ;;  %v3650_v33 = vrot.slane %v3648_v24, 7  ;;  %vm14965_vm14 = vcmp.ne.s16.totalorder %v12600_v29, 0  ;;  %v12607_v34 = vor.u32 %v3590_v20, %v3588_v26  ;;  %v3839_v40 = vshll.u32 %v3823_v21, 16  ;;  %4556 = vmatprep.subr.bf16.mxu1 %v11013_v32  ;;  %v11117_v10 = vld [vmem:[%s14932_s3 + $0x64] ss:$8 sps:$4 sm:$0xff]  }
 0x296   : > { %v3608_v36 = vsel %vm14965_vm14, 0, %v12407_v5  ;;  %v12613_v38 = vsel %vm3529_vm9, %v3584_v30, %v3588_v26  ;;  %v12615_v39 = vrot.slane %v3836_v14, 7  ;;  %v3834_v51 = vrot.slane %v3832_v31, 7  ;;  %4428 = vmatpush1.bf16.msra.mxu0 %v12666_v18 }
 0x297   : > { %v3653_v43 = vor.u32 %v3651_v25, %v3650_v33  ;;  %v3656_v44 = vshrl.u32 %v3608_v36, 16  ;;  %v3659_v35 = vshll.u32 %v3608_v36, 16  ;;  %vm3600_vm15 = vcmp.ne.s16.totalorder %v12613_v38, 0  ;;  %v11129_v38 = vld [vmem:[%s14932_s3 + $0xa4] ss:$8 sps:$4 sm:$0xff]  }
 0x298   : > { %v3609_v48 = vsel %vm3600_vm15, 0, %v12413_v7  ;;  %vm14943_vm0 = vcmp.ne.s16.totalorder %v12607_v34, 0  ;;  %v3824_v52 = vsel %vm3595_vm4, 0, %v12399_v1  ;;  %v3841_v1 = vor.u32 %v3839_v40, %v12615_v39  ;;  %4557 = vmatpush1.bf16.msra.mxu1 %v11015_v41 }
 0x299   : > { %v3654_v53 = vsel %vm3125_vm11, %v3642_v60, %v3653_v43  ;;  %v3658_v54 = vrot.slane %v3656_v44, 7  ;;  %v3664_v55 = vshrl.u32 %v3609_v48, 16  ;;  %v3667_v56 = vshll.u32 %v3609_v48, 16  ;;  %v11019_v60 = vld [vmem:[%s14931_s2 + $0x1a4] ss:$8 sps:$4 sm:$0xff]   ;;  %4558 = vmatprep.subr.bf16.mxu1 %v11016_v46 }
 0x29a   : > { %3687 = vrot.lane.b32.xlu0 %v3654_v53, %s11457_s12  ;;  %v3610_v58 = vsel %vm14943_vm0, 0, %v12415_v8  ;;  %v3844_v59 = vshrl.u32 %v3824_v52, 16  ;;  %v3847_v61 = vshll.u32 %v3824_v52, 16  ;;  %v3825_v13 = vsel %vm3596_vm5, 0, %v12403_v3  ;;  %v11021_v3 = vld [vmem:[%s14931_s2 + $0x1a0] ss:$8 sps:$4 sm:$0xff]  }
 0x29b   : > { %v3661_v62 = vor.u32 %v3659_v35, %v3658_v54  ;;  %v3666_v63 = vrot.slane %v3664_v55, 7  ;;  %v3672_v0 = vshrl.u32 %v3610_v58, 16  ;;  %v3675_v49 = vshll.u32 %v3610_v58, 16  ;;  %v11022_v43 = vld [vmem:[%s14931_s2 + $0x1b4] ss:$8 sps:$4 sm:$0xff]  }
 0x29c   : > { %v3846_v12 = vrot.slane %v3844_v59, 7  ;;  %v3826_v15 = vsel %vm3597_vm10, 0, %v12405_v4  ;;  %v3827_v16 = vsel %vm3598_vm13, 0, %v12407_v5  ;;  %v3852_v22 = vshrl.u32 %v3825_v13, 16  ;;  %v12676_v4 = vld [vmem:[%s14931_s2 + $0x14] ss:$8 sps:$4 sm:$0xff]   ;;  %4559 = vmatpush1.bf16.msra.mxu1 %v11018_v57 }
 0x29d   : > { %v3662_v19 = vsel %vm3125_vm11, %v3650_v33, %v3661_v62  ;;  %v3669_v20 = vor.u32 %v3667_v56, %v3666_v63  ;;  %v3674_v21 = vrot.slane %v3672_v0, 7  ;;  %v3855_v24 = vshll.u32 %v3825_v13, 16  ;;  %4429 = vmatprep.subr.bf16.mxu0 %v12676_v4  ;;  %v12690_v33 = vld [vmem:[%s14931_s2 + $0x24] ss:$8 sps:$4 sm:$0xff]   ;;  %4560 = vmatprep.subr.bf16.mxu1 %v11019_v60  ;;  %v11024_v52 = vld [vmem:[%s14931_s2 + $0x1b0] ss:$8 sps:$4 sm:$0xff]  }
 0x29e   : > { %3689 = vrot.lane.b32.xlu1 %v3662_v19, %s11457_s12  ;;  %v3849_v5 = vor.u32 %v3847_v61, %v3846_v12  ;;  %v3860_v25 = vshrl.u32 %v3826_v15, 16  ;;  %v3863_v26 = vshll.u32 %v3826_v15, 16  ;;  %v3854_v14 = vrot.slane %v3852_v22, 7  ;;  %4430 = vmatpush1.bf16.msra.mxu0 %v12683_v27  ;;  %v12719_v55 = vld [vmem:[%s14931_s2 + $0x34] ss:$8 sps:$4 sm:$0xff]  }
 0x29f   : > { %v3670_v30 = vsel %vm3125_vm11, %v3658_v54, %v3669_v20  ;;  %v3677_v31 = vor.u32 %v3675_v49, %v3674_v21  ;;  %v3868_v32 = vshrl.u32 %v3827_v16, 16  ;;  %v3842_v36 = vsel %vm3125_vm11, %v3834_v51, %v3841_v1  ;;  %4431 = vmatprep.subr.bf16.mxu0 %v12690_v33  ;;  %v11028_v15 = vld [vmem:[%s14931_s2 + $0x1d4] ss:$8 sps:$4 sm:$0xff]   ;;  %v12757_v22 = vld [vmem:[%s14931_s2 + $0x40] ss:$8 sps:$4 sm:$0xff]  }
 0x2a0   : > { %3691 = vrot.lane.b32.xlu0 %v3670_v30, %s11457_s12  ;;  %v3862_v40 = vrot.slane %v3860_v25, 7  ;;  %v3871_v41 = vshll.u32 %v3827_v16, 16  ;;  %v3828_v44 = vsel %vm14965_vm14, 0, %v12413_v7  ;;  %v3857_v46 = vor.u32 %v3855_v24, %v3854_v14  ;;  %v12714_v7 = vld [vmem:[%s14931_s2 + $0x20] ss:$8 sps:$4 sm:$0xff]   ;;  %4561 = vmatpush1.bf16.msra.mxu1 %v11021_v3 }
 0x2a1   : > { %v3678_v35 = vsel %vm3125_vm11, %v3666_v63, %v3677_v31  ;;  %v3870_v48 = vrot.slane %v3868_v32, 7  ;;  %v3876_v51 = vshrl.u32 %v3828_v44, 16  ;;  %v3850_v53 = vsel %vm3125_vm11, %v12615_v39, %v3849_v5  ;;  %4562 = vmatprep.subr.bf16.mxu1 %v11022_v43  ;;  %v12735_v63 = vld [vmem:[%s14931_s2 + $0x30] ss:$8 sps:$4 sm:$0xff]   ;;  %v12767_v25 = vld [vmem:[%s14931_s2 + $0x54] ss:$8 sps:$4 sm:$0xff]  }
 0x2a2   : > { %3693 = vrot.lane.b32.xlu1 %v3678_v35, %s11457_s12  ;;  %v3829_v54 = vsel %vm3600_vm15, 0, %v12415_v8  ;;  %v3865_v56 = vor.u32 %v3863_v26, %v3862_v40  ;;  %v3879_v39 = vshll.u32 %v3828_v44, 16  ;;  %v11025_v8 = vld [vmem:[%s14931_s2 + $0x1c4] ss:$8 sps:$4 sm:$0xff]   ;;  %v3858_v1 = vsel %vm3125_vm11, %v3846_v12, %v3857_v46  ;;  %4432 = vmatpush1.bf16.msra.mxu0 %v12714_v7  ;;  %v11027_v12 = vld [vmem:[%s14931_s2 + $0x1c0] ss:$8 sps:$4 sm:$0xff]  }
 0x2a3   : > { %v3878_v57 = vrot.slane %v3876_v51, 7  ;;  %v3884_v58 = vshrl.u32 %v3829_v54, 16  ;;  %v3873_v59 = vor.u32 %v3871_v41, %v3870_v48  ;;  %v3887_v60 = vshll.u32 %v3829_v54, 16  ;;  %4433 = vmatprep.subr.bf16.mxu0 %v12719_v55  ;;  %v11030_v5 = vld [vmem:[%s14931_s2 + $0x1d0] ss:$8 sps:$4 sm:$0xff]  }
 0x2a4   : > { %3899 = vrot.lane.b32.xlu0 %v3842_v36, %s11457_s12  ;;  %v3830_v62 = vsel %vm14943_vm0, 0, %v12620_v42  ;;  %v3866_v0 = vsel %vm3125_vm11, %v3854_v14, %v3865_v56  ;;  %4563 = vmatpush1.bf16.msra.mxu1 %v11024_v52  ;;  %v12745_v42 = vld [vmem:[%s14931_s2 + $0x44] ss:$8 sps:$4 sm:$0xff]   ;;  %v12779_v31 = vld [vmem:[%s14931_s2 + $0x50] ss:$8 sps:$4 sm:$0xff]   ;;  %v3147_v43 = vadd.s32 24, %v12401_v2 }
 0x2a5   : > { %v3886_v61 = vrot.slane %v3884_v58, 7  ;;  %v3881_v49 = vor.u32 %v3879_v39, %v3878_v57  ;;  %v3892_v13 = vshrl.u32 %v3830_v62, 16  ;;  %4564 = vmatprep.subr.bf16.mxu1 %v11025_v8  ;;  %v3895_v16 = vshll.u32 %v3830_v62, 16  ;;  %v11031_v26 = vld [vmem:[%s14931_s2 + $0x1e4] ss:$8 sps:$4 sm:$0xff]  }
 0x2a6   : > { %3901 = vrot.lane.b32.xlu1 %v3850_v53, %s11457_s12  ;;  %v3874_v19 = vsel %vm3125_vm11, %v3862_v40, %v3873_v59  ;;  %4434 = vmatpush1.bf16.msra.mxu0 %v12735_v63  ;;  %v11033_v14 = vld [vmem:[%s14931_s2 + $0x1e0] ss:$8 sps:$4 sm:$0xff]   ;;  %v12789_v36 = vld [vmem:[%s14931_s2 + $0x64] ss:$8 sps:$4 sm:$0xff]   ;;  %v3145_v40 = vadd.s32 8, %v12401_v2  ;;  %v3185_v51 = vand.u32 15, %v3147_v43 }
 0x2a7   : > { %v3889_v20 = vor.u32 %v3887_v60, %v3886_v61  ;;  %v3894_v21 = vrot.slane %v3892_v13, 7  ;;  %v3882_v3 = vsel %vm3125_vm11, %v3870_v48, %v3881_v49  ;;  %4435 = vmatprep.subr.bf16.mxu0 %v12745_v42  ;;  %v11034_v41 = vld [vmem:[%s14931_s2 + $0x1f4] ss:$8 sps:$4 sm:$0xff]   ;;  %v12802_v44 = vld [vmem:[%s14931_s2 + $0x60] ss:$8 sps:$4 sm:$0xff]   ;;  %v3149_v53 = vadd.s32 40, %v12401_v2 }
 0x2a8   : > { %3903 = vrot.lane.b32.xlu0 %v3858_v1, %s11457_s12  ;;  %4565 = vmatpush1.bf16.msra.mxu1 %v11027_v12  ;;  %v3171_v35 = vand.u32 15, %v3145_v40  ;;  %v11036_v46 = vld [vmem:[%s14931_s2 + $0x1f0] ss:$8 sps:$4 sm:$0xff]   ;;  %v12811_v48 = vld [vmem:[%s14931_s2 + $0x74] ss:$8 sps:$4 sm:$0xff]   ;;  %vm3371_vm8 = vcmp.eq.s32.totalorder %v3185_v51, 15 }
 0x2a9   : > { %v3897_v24 = vor.u32 %v3895_v16, %v3894_v21  ;;  %4566 = vmatprep.subr.bf16.mxu1 %v11028_v15  ;;  %v3890_v30 = vsel %vm3125_vm11, %v3878_v57, %v3889_v20  ;;  %v11039_v52 = vld [vmem:[%s14931_s2 + $0x204] ss:$8 sps:$4 sm:$0xff]   ;;  %v12821_v54 = vld [vmem:[%s14931_s2 + $0x70] ss:$8 sps:$4 sm:$0xff]   ;;  %v3151_v57 = vadd.s32 56, %v12401_v2  ;;  %vm4986_vm7 = vmpackc.low %vm3371_vm8, %vm3371_vm8  ;;  %v3199_v58 = vand.u32 15, %v3149_v53 }
 0x2aa   : > { %3905 = vrot.lane.b32.xlu1 %v3866_v0, %s11457_s12  ;;  %4436 = vmatpush1.bf16.msra.mxu0 %v12757_v22  ;;  %v12826_v56 = vld [vmem:[%s14931_s2 + $0x84] ss:$8 sps:$4 sm:$0xff]   ;;  %vm3369_vm1 = vcmp.eq.s32.totalorder %v3171_v35, 15  ;;  %v3153_v8 = vadd.s32 72, %v12401_v2  ;;  %v5002_v1 = vsel %vm4986_vm7, 65537, %v14936_v28 }
 0x2ab   : > { %v3898_v32 = vsel %vm3125_vm11, %v3886_v61, %v3897_v24  ;;  %4437 = vmatprep.subr.bf16.mxu0 %v12767_v25  ;;  %vm4984_vm12 = vmpackc.low %vm3369_vm1, %vm3369_vm1  ;;  %v3155_v61 = vadd.s32 88, %v12401_v2  ;;  %v12839_v60 = vld [vmem:[%s14931_s2 + $0x80] ss:$8 sps:$4 sm:$0xff]   ;;  %v10009_v62 = vcombine.low %v12411_v6, %v5002_v1  ;;  %v3213_v0 = vand.u32 15, %v3151_v57  ;;  %v12846_v49 = vld [vmem:[%s14931_s2 + $0x94] ss:$8 sps:$4 sm:$0xff]  }
 0x2ac   : > { %3907 = vrot.lane.b32.xlu0 %v3874_v19, %s11457_s12  ;;  %4567 = vmatpush1.bf16.msra.mxu1 %v11030_v5  ;;  %v5000_v39 = vsel %vm4984_vm12, 65537, %v14936_v28  ;;  %vm3373_vm1 = vcmp.eq.s32.totalorder %v3199_v58, 15  ;;  %v3227_v15 = vand.u32 15, %v3153_v8  ;;  %v12852_v21 = vld [vmem:[%s14931_s2 + $0x90] ss:$8 sps:$4 sm:$0xff]  }
 0x2ad   : > { %4568 = vmatprep.subr.bf16.mxu1 %v11031_v26  ;;  %v10008_v59 = vcombine.low %v12411_v6, %v5000_v39  ;;  %vm4988_vm7 = vmpackc.low %vm3373_vm1, %vm3373_vm1  ;;  %v5047_v16 = vshrl.u32 %v10009_v62, 16  ;;  %v5050_v19 = vshll.u32 %v10009_v62, 16  ;;  %vm3375_vm8 = vcmp.eq.s32.totalorder %v3213_v0, 15  ;;  %v12859_v26 = vld [vmem:[%s14931_s2 + $0xa4] ss:$8 sps:$4 sm:$0xff]  }
 0x2ae   : > { %3909 = vrot.lane.b32.xlu1 %v3882_v3, %s11457_s12  ;;  %4438 = vmatpush1.bf16.msra.mxu0 %v12779_v31  ;;  %v5004_v20 = vsel %vm4988_vm7, 65537, %v14936_v28  ;;  %vm4990_vm12 = vmpackc.low %vm3375_vm8, %vm3375_vm8  ;;  %v3241_v24 = vand.u32 15, %v3155_v61  ;;  %vm12866_vm1 = vcmp.eq.s32.totalorder %v3227_v15, 15  ;;  %v12879_v53 = vld [vmem:[%s14931_s2 + $0xa0] ss:$8 sps:$4 sm:$0xff]  }
 0x2af   : > { %4439 = vmatprep.subr.bf16.mxu0 %v12789_v36  ;;  %v5040_v12 = vshrl.u32 %v10008_v59, 16  ;;  %v5043_v13 = vshll.u32 %v10008_v59, 16  ;;  %v10010_v5 = vcombine.low %v12411_v6, %v5004_v20  ;;  %v12894_v8 = vld [vmem:[%s14931_s2 + $0xb4] ss:$8 sps:$4 sm:$0xff]   ;;  %v12911_v20 = vld [vmem:[%s14931_s2 + $0xb0] ss:$8 sps:$4 sm:$0xff]  }
 0x2b0   : > { %3911 = vrot.lane.b32.xlu0 %v3890_v30, %s11457_s12  ;;  %4569 = vmatpush1.bf16.msra.mxu1 %v11033_v14  ;;  %v5049_v30 = vrot.slane %v5047_v16, 7  ;;  %v5006_v14 = vsel %vm4990_vm12, 65537, %v14936_v28  ;;  %vm12871_vm8 = vcmp.eq.s32.totalorder %v3241_v24, 15  ;;  %vm4992_vm12 = vmpackc.low %vm12866_vm1, %vm12866_vm1  ;;  %15011 = vst [vmem:[#allocation9_spill] sm:$0xff] %v12894_v8 }
 0x2b1   : > { %4570 = vmatprep.subr.bf16.mxu1 %v11034_v41  ;;  %v5042_v3 = vrot.slane %v5040_v12, 7  ;;  %v10011_v40 = vcombine.low %v12411_v6, %v5006_v14  ;;  %v5055_v41 = vshrl.u32 %v10010_v5, 16  ;;  %vm4994_vm1 = vmpackc.low %vm12871_vm8, %vm12871_vm8  ;;  %v12903_v12 = vld [vmem:[#allocation3 + $0x40] sm:$0xff]  ;;  %v5008_v16 = vsel %vm4992_vm12, 65537, %v14936_v28  ;;  %15012 = vst [vmem:[#allocation10_spill] sm:$0xff] %v12911_v20 }
 0x2b2   : > { %3913 = vrot.lane.b32.xlu1 %v3898_v32, %s11457_s12  ;;  %4440 = vmatpush1.bf16.msra.mxu0 %v12802_v44  ;;  %v5052_v35 = vor.u32 %v5050_v19, %v5049_v30  ;;  %v3157_v19 = vadd.s32 104, %v12401_v2  ;;  %v3159_v14 = vadd.s32 120, %v12401_v2  ;;  %v12933_v2 = vld [vmem:[%s14931_s2 + $0xc0] ss:$8 sps:$4 sm:$0xff]  }
 0x2b3   : > { %4441 = vmatprep.subr.bf16.mxu0 %v12811_v48  ;;  %v12863_v32 = vor.u32 %v5043_v13, %v5042_v3  ;;  %v5063_v58 = vshrl.u32 %v10011_v40, 16  ;;  %v5066_v0 = vshll.u32 %v10011_v40, 16  ;;  %v12921_v40 = vld [vmem:[%s14931_s2 + $0xc4] ss:$8 sps:$4 sm:$0xff]   ;;  %15014 = vst [vmem:[#allocation12_spill] sm:$0xff] %v12933_v2 }
 0x2b4   : > { %4571 = vmatpush1.bf16.msra.mxu1 %v11036_v46  ;;  %v5058_v46 = vshll.u32 %v10010_v5, 16  ;;  %v12882_v57 = vsel %vm3125_vm11, %v5042_v3, %v5052_v35  ;;  %15013 = vst [vmem:[#allocation11_spill] sm:$0xff] %v12921_v40 }
 0x2b5   : > { %4653 = vmatprep.subr.bf16.mxu1 %v11039_v52  ;;  %15006 = vst [vmem:[#allocation8_spill] sm:$0xff] %v12863_v32  ;;  %vm14940_vm7 = vcmp.ne.s16.totalorder %v12863_v32, 0  ;;  %v5057_v52 = vrot.slane %v5055_v41, 7  ;;  %vm14967_vm6 = vcmp.ne.s16.totalorder %v12882_v57, 0  ;;  %v5065_v5 = vrot.slane %v5063_v58, 7  ;;  %v12939_v58 = vld [vmem:[#allocation3 + $0x50] sm:$0xff] }
 0x2b6   : > { %4442 = vmatpush1.bf16.msra.mxu0 %v12821_v54  ;;  %v5213_v39 = vsel %vm14940_vm7, 0, %v12584_v17  ;;  %v5214_v61 = vsel %vm14967_vm6, 0, %v12626_v47 }
 0x2b7   : > { %4443 = vmatprep.subr.bf16.mxu0 %v12826_v56  ;;  %v5223_v1 = vshrl.u32 %v5213_v39, 16  ;;  %v5225_v59 = vshll.u32 %v5213_v39, 16  ;;  %v5060_v62 = vor.u32 %v5058_v46, %v5057_v52  ;;  %v5230_v15 = vshll.u32 %v5214_v61, 16 }
 0x2b8   : > { %v5234_v24 = vshrl.u32 %v5214_v61, 16  ;;  %v5068_v35 = vor.u32 %v5066_v0, %v5065_v5  ;;  %v10012_v39 = vcombine.low %v12411_v6, %v5008_v16  ;;  %v12952_v16 = vld [vmem:[%s14931_s2 + $0xd4] ss:$8 sps:$4 sm:$0xff]  }
 0x2b9   : > { %v5227_v13 = vrot.slane %v5225_v59, 1  ;;  %v12914_v3 = vsel %vm3125_vm11, %v5049_v30, %v5060_v62  ;;  %v5232_v43 = vrot.slane %v5230_v15, 1  ;;  %v5010_v30 = vsel %vm4994_vm1, 65537, %v14936_v28  ;;  %15015 = vst [vmem:[#allocation13_spill] sm:$0xff] %v12952_v16 }
 0x2ba   : > { %4444 = vmatpush1.bf16.msra.mxu0 %v12839_v60  ;;  %vm14966_vm12 = vcmp.ne.s16.totalorder %v12914_v3, 0  ;;  %v12945_v62 = vsel %vm3125_vm11, %v5057_v52, %v5068_v35  ;;  %v10013_v0 = vcombine.low %v12411_v6, %v5010_v30  ;;  %v3255_v15 = vand.u32 15, %v3157_v19  ;;  %v12958_v52 = vld [vmem:[%s14931_s2 + $0xd0] ss:$8 sps:$4 sm:$0xff]  }
 0x2bb   : > { %4445 = vmatprep.subr.bf16.mxu0 %v12846_v49  ;;  %v5228_v41 = vor.u32 %v5227_v13, %v5223_v1  ;;  %v5215_v46 = vsel %vm14966_vm12, 0, %v12903_v12  ;;  %v5236_v61 = vor.u32 %v5234_v24, %v5232_v43  ;;  %v5071_v13 = vshrl.u32 %v10012_v39, 16  ;;  %15016 = vst [vmem:[#allocation14_spill] sm:$0xff] %v12958_v52 }
 0x2bc   : > { %v5238_v59 = vshll.u32 %v5215_v46, 16  ;;  %v5242_v51 = vshrl.u32 %v5215_v46, 16  ;;  %vm14941_vm8 = vcmp.ne.s16.totalorder %v12945_v62, 0  ;;  %v5079_v35 = vshrl.u32 %v10013_v0, 16 }
 0x2bd   : > { %v5233_v1 = vsel %vm3529_vm9, %v5228_v41, %v5232_v43  ;;  %v5074_v41 = vshll.u32 %v10012_v39, 16  ;;  %v3269_v43 = vand.u32 15, %v3159_v14  ;;  %v5216_v19 = vsel %vm14941_vm8, 0, %v12939_v58 }
 0x2be   : > { %4446 = vmatpush1.bf16.msra.mxu0 %v12852_v21  ;;  %5290 = vrot.lane.b32.xlu0 %v5233_v1, %s11457_s12  ;;  %v5240_v24 = vrot.slane %v5238_v59, 1  ;;  %v5073_v30 = vrot.slane %v5071_v13, 7  ;;  %v5082_v46 = vshll.u32 %v10013_v0, 16  ;;  %v5246_v28 = vshll.u32 %v5216_v19, 16  ;;  %v12966_v59 = vld [vmem:[%s14931_s2 + $0xe4] ss:$8 sps:$4 sm:$0xff]  }
 0x2bf   : > { %4447 = vmatprep.subr.bf16.mxu0 %v12859_v26  ;;  %15017 = vst [vmem:[#allocation15_spill] sm:$0xff] %v12966_v59  ;;  %v12971_v32 = vrot.slane %v5079_v35, 7  ;;  %vm3381_vm1 = vcmp.eq.s32.totalorder %v3255_v15, 15  ;;  %vm12973_vm7 = vcmp.eq.s32.totalorder %v3269_v43, 15  ;;  %v5250_v0 = vshrl.u32 %v5216_v19, 16 }
 0x2c0   : > { %v5244_v1 = vor.u32 %v5242_v51, %v5240_v24  ;;  %v5241_v14 = vsel %vm3529_vm9, %v5236_v61, %v5240_v24  ;;  %v5076_v39 = vor.u32 %v5074_v41, %v5073_v30  ;;  %v5248_v51 = vrot.slane %v5246_v28, 1  ;;  %vm4996_vm8 = vmpackc.low %vm3381_vm1, %vm3381_vm1  ;;  %v12983_v61 = vld [vmem:[%s14931_s2 + $0xe0] ss:$8 sps:$4 sm:$0xff]  }
 0x2c1   : > { %5292 = vrot.lane.b32.xlu1 %v5241_v14, %s11457_s12  ;;  %15020 = vst [vmem:[#allocation16_spill] sm:$0xff] %v12983_v61  ;;  %v5084_v15 = vor.u32 %v5082_v46, %v12971_v32  ;;  %vm4998_vm0 = vmpackc.low %vm12973_vm7, %vm12973_vm7  ;;  %v15022_v41 = vmov 0   ;;  %v12996_v43 = vsel %vm3594_vm3, 0, %v12584_v17 }
 0x2c2   : > { %4448 = vmatpush1.bf16.msra.mxu0 %v12879_v53  ;;  %v12986_v24 = vsel %vm3125_vm11, %v5065_v5, %v5076_v39  ;;  %v5012_v28 = vsel %vm4996_vm8, 65537, %v15022_v41  ;;  %v5249_v19 = vsel %vm3529_vm9, %v5244_v1, %v5248_v51  ;;  %v13003_v5 = vld [vmem:[%s14931_s2 + $0xf4] ss:$8 sps:$4 sm:$0xff]   ;;  %v5014_v35 = vsel %vm4998_vm0, 65537, %v15022_v41  ;;  %v13016_v39 = vld [vmem:[#allocation3 + $0x70] sm:$0xff] }
 0x2c3   : > { %4449 = vmatprep.subr.bf16.mxu0 %v12894_v8  ;;  %15021 = vst [vmem:[#allocation17_spill] sm:$0xff] %v12986_v24  ;;  %vm5106_vm1 = vcmp.ne.s16.totalorder %v12986_v24, 0  ;;  %15023 = vst [vmem:[#allocation18_spill] sm:$0xff] %v13003_v5  ;;  %5294 = vrot.lane.b32.xlu0 %v5249_v19, %s11457_s12  ;;  %v13009_v46 = vsel %vm3125_vm11, %v5073_v30, %v5084_v15  ;;  %v10014_v1 = vcombine.low %v12411_v6, %v5012_v28  ;;  %v13026_v15 = vld [vmem:[%s14931_s2 + $0xf0] ss:$8 sps:$4 sm:$0xff]   ;;  %v13045_v24 = vld [vmem:[#allocation3 + $0x90] sm:$0xff] }
 0x2c4   : > { %15024 = vst [vmem:[#allocation19_spill] sm:$0xff] %v13009_v46  ;;  %v10015_v14 = vcombine.low %v12411_v6, %v5014_v35  ;;  %vm5107_vm0 = vcmp.ne.s16.totalorder %v13009_v46, 0  ;;  %v5252_v19 = vor.u32 %v5250_v0, %v5248_v51  ;;  %15025 = vst [vmem:[#allocation20_spill] sm:$0xff] %v13026_v15  ;;  %v13035_v46 = vsel %vm3595_vm4, 0, %v12626_v47 }
 0x2c5   : > { %v5218_v30 = vsel %vm5107_vm0, 0, %v13016_v39  ;;  %v5087_v28 = vshrl.u32 %v10014_v1, 16  ;;  %v5090_v6 = vshll.u32 %v10014_v1, 16 }
 0x2c6   : > { %4450 = vmatpush1.bf16.msra.mxu0 %v12911_v20  ;;  %v5095_v35 = vshrl.u32 %v10015_v14, 16  ;;  %v5212_v20 = vld [vmem:[#allocation3 + $0xa0] sm:$0x1] }
 0x2c7   : > { %4451 = vmatprep.subr.bf16.mxu0 %v12921_v40  ;;  %v12978_v40 = vld [vmem:[#allocation3 + $0x60] sm:$0xff]  ;;  %v5089_v51 = vrot.slane %v5087_v28, 7  ;;  %v5266_v28 = vshrl.u32 %v5218_v30, 16 }
 0x2c8   : > { %v5217_v17 = vsel %vm5106_vm1, 0, %v12978_v40  ;;  %v13030_v0 = vrot.slane %v5095_v35, 7  ;;  %v3737_v35 = vshll.u32 %v12996_v43, 16 }
 0x2c9   : > { %v5254_v13 = vshll.u32 %v5217_v17, 16  ;;  %v5258_v41 = vshrl.u32 %v5217_v17, 16  ;;  %v3734_v17 = vshrl.u32 %v12996_v43, 16 }
 0x2ca   : > { %4452 = vmatpush1.bf16.msra.mxu0 %v12933_v2  ;;  %v5098_v2 = vshll.u32 %v10015_v14, 16  ;;  %v5092_v14 = vor.u32 %v5090_v6, %v5089_v51  ;;  %vm14960_vm7 = vcmp.ne.s16.totalorder %v13030_v0, 0 }
 0x2cb   : > { %4453 = vmatprep.subr.bf16.mxu0 %v12952_v16  ;;  %v5256_v16 = vrot.slane %v5254_v13, 1 }
 0x2cc   : > { %v5100_v8 = vor.u32 %v5098_v2, %v13030_v0  ;;  %v3742_v2 = vshrl.u32 %v13035_v46, 16  ;;  %v13057_v43 = vsel %vm3125_vm11, %v12971_v32, %v5092_v14 }
 0x2cd   : > { %v5260_v9 = vor.u32 %v5258_v41, %v5256_v16  ;;  %v5257_v13 = vsel %vm3529_vm9, %v5252_v19, %v5256_v16  ;;  %v5221_v41 = vsel %vm14960_vm7, 0, %v5212_v20  ;;  %vm5108_vm8 = vcmp.ne.s16.totalorder %v13057_v43, 0  ;;  %v11231_v43 = vld [vmem:[%s14932_s3 + $0x1e4] ss:$8 sps:$4 sm:$0xff]  }
 0x2ce   : > { %4454 = vmatpush1.bf16.msra.mxu0 %v12958_v52  ;;  %v6484_v52 = vld [vmem:[#allocation3 + $0x10] sm:$0x80]  ;;  %5296 = vrot.lane.b32.xlu1 %v5257_v13, %s11457_s12  ;;  %v13060_v19 = vsel %vm3125_vm11, %v5089_v51, %v5100_v8  ;;  %v5219_v20 = vsel %vm5108_vm8, 0, %v13043_v50 }
 0x2cf   : > { %4455 = vmatprep.subr.bf16.mxu0 %v12966_v59  ;;  %v5262_v59 = vshll.u32 %v5218_v30, 16  ;;  %v6493_v16 = vsel %vm3593_vm2, 0, %v6484_v52  ;;  %v3723_v52 = vsel %vm3596_vm5, 0, %v12903_v12  ;;  %vm5109_vm7 = vcmp.ne.s16.totalorder %v13060_v19, 0  ;;  %v11243_v19 = vld [vmem:[%s14932_s3 + $0x204] ss:$8 sps:$4 sm:$0xff]  }
 0x2d0   : > { %v5220_v32 = vsel %vm5109_vm7, 0, %v13045_v24  ;;  %v6503_v30 = vshrl.u32 %v6493_v16, 16  ;;  %v5270_v6 = vshll.u32 %v5219_v20, 16  ;;  %v5274_v51 = vshrl.u32 %v5219_v20, 16  ;;  %v13087_v20 = vld [vmem:[#allocation3 + $0x48] sm:$0xff] }
 0x2d1   : > { %v5264_v1 = vrot.slane %v5262_v59, 1  ;;  %v5278_v13 = vshll.u32 %v5220_v32, 16  ;;  %v5282_v14 = vshrl.u32 %v5220_v32, 16  ;;  %6462 = vst [vmem:[#allocation2 + $0x58] sm:$0xff] %v13087_v20 }
 0x2d2   : > { %4456 = vmatpush1.bf16.msra.mxu0 %v12983_v61  ;;  %v3384_v61 = vld [vmem:[#allocation3 + $0x18] sm:$0xff]  ;;  %v5272_v23 = vrot.slane %v5270_v6, 1 }
 0x2d3   : > { %4457 = vmatprep.subr.bf16.mxu0 %v13003_v5  ;;  %v5265_v59 = vsel %vm3529_vm9, %v5260_v9, %v5264_v1  ;;  %v5286_v9 = vshll.u32 %v5221_v41, 16  ;;  %v5268_v8 = vor.u32 %v5266_v28, %v5264_v1  ;;  %v3750_v41 = vshrl.u32 %v3723_v52, 16  ;;  %v13084_v28 = vld [vmem:[#allocation3 + $0x28] sm:$0xff] }
 0x2d4   : > { %5298 = vrot.lane.b32.xlu0 %v5265_v59, %s11457_s12  ;;  %v3736_v59 = vrot.slane %v3734_v17, 7  ;;  %v5280_v5 = vrot.slane %v5278_v13, 1  ;;  %v3745_v17 = vshll.u32 %v13035_v46, 16  ;;  %v3753_v46 = vshll.u32 %v3723_v52, 16  ;;  %v5323_v13 = vld [vmem:[#allocation3 + $0x38] sm:$0xff] }
 0x2d5   : > { %v5273_v16 = vsel %vm3529_vm9, %v5268_v8, %v5272_v23 }
 0x2d6   : > { %4458 = vmatpush1.bf16.msra.mxu0 %v13026_v15  ;;  %v13076_v15 = vld [vmem:[#allocation3 + $0x50] sm:$0xff]  ;;  %5300 = vrot.lane.b32.xlu1 %v5273_v16, %s11457_s12 }
 0x2d7   : > { %7318 = vmatprep.subr.bf16.mxu0 %v12652_v11  ;;  %v5288_v11 = vrot.slane %v5286_v9, 1  ;;  %v6497_v1 = vsel %vm3597_vm10, 0, %v13076_v15  ;;  %6447 = vst [vmem:[#allocation2 + $0x78] sm:$0xff] %v13076_v15  ;;  %v5284_v9 = vor.u32 %v5282_v14, %v5280_v5 }
 0x2d8   : > { %v6531_v32 = vshrl.u32 %v6497_v1, 16  ;;  %v6534_v8 = vshll.u32 %v6497_v1, 16 }
 0x2d9   : > { %4460 = vmatmul.mubr.bf16.vlgmr.msra.gmra.mrb[40].mxu0 %v3384_v61  ;;  %v3744_v61 = vrot.slane %v3742_v2, 7  ;;  %v13094_v2 = vrot.slane %v3750_v41, 7  ;;  %v5289_v6 = vsel %vm3529_vm9, %v5284_v9, %v5288_v11  ;;  %v13118_v41 = vld [vmem:[#allocation3 + $0x58] sm:$0xff] }
 0x2da   : > { %7319 = vmatpush1.bf16.msra.mxu0 %v12666_v18  ;;  %4469 = vmatprep.mubr.bf16.mxu0 %v12626_v47  ;;  %v6505_v18 = vrot.slane %v6503_v30, 7  ;;  %v5276_v47 = vor.u32 %v5274_v51, %v5272_v23  ;;  %v13103_v51 = vld [vmem:[#allocation3 + $0x60] sm:$0xff]  ;;  %6463 = vst [vmem:[#allocation2 + $0x80] sm:$0xff] %v13118_v41 }
 0x2db   : > { %7320 = vmatprep.subr.bf16.mxu0 %v12676_v4  ;;  %v13089_v4 = vor.u32 %v3737_v35, %v3736_v59  ;;  %v3747_v23 = vor.u32 %v3745_v17, %v3744_v61  ;;  %5304 = vrot.lane.b32.xlu1 %v5289_v6, %s11457_s12  ;;  %6448 = vst [vmem:[#allocation2 + $0xa0] sm:$0xff] %v13103_v51  ;;  %v13132_v17 = vld [vmem:[#allocation3 + $0x70] sm:$0xff]  ;;  %v3724_v6 = vsel %vm3597_vm10, 0, %v12939_v58 }
 0x2dc   : > { %v5281_v30 = vsel %vm3529_vm9, %v5276_v47, %v5280_v5  ;;  %v3755_v5 = vor.u32 %v3753_v46, %v13094_v2  ;;  %6449 = vst [vmem:[#allocation2 + $0xc8] sm:$0xff] %v13132_v17  ;;  %v13143_v47 = vld [vmem:[#allocation3 + $0x68] sm:$0xff]  ;;  %v13153_v46 = vld [vmem:[#allocation3 + $0x80] sm:$0xff] }
 0x2dd   : > { %5302 = vrot.lane.b32.xlu0 %v5281_v30, %s11457_s12  ;;  %v6513_v35 = vsel %vm3125_vm11, %v6505_v18, %v13089_v4  ;;  %v13116_v14 = vsel %vm3125_vm11, %v3736_v59, %v3747_v23  ;;  %6464 = vst [vmem:[#allocation2 + $0xa8] sm:$0xff] %v13143_v47  ;;  %v5332_v30 = vsel %vm14967_vm6, 0, %v5323_v13  ;;  %6450 = vst [vmem:[#allocation2 + $0xf0] sm:$0xff] %v13153_v46  ;;  %vm15029_vm6 = vcmp.ne.s16.totalorder %v12607_v34, 0 }
 0x2de   : > { %7321 = vmatpush1.bf16.msra.mxu0 %v12683_v27  ;;  %v6533_v27 = vrot.slane %v6531_v32, 7 }
 0x2df   : > { %7322 = vmatprep.subr.bf16.mxu0 %v12690_v33  ;;  %v6498_v33 = vsel %vm3598_vm13, 0, %v13103_v51  ;;  %6572 = vrot.lane.b32.xlu1 %v13116_v14, %s11457_s12 }
 0x2e0   : > { %v6539_v52 = vshrl.u32 %v6498_v33, 16  ;;  %v6542_v1 = vshll.u32 %v6498_v33, 16 }
 0x2e1   : > { %4470 = vmatmul.mubr.bf16.gmra.mrb[44].mxu0 %v13084_v28  ;;  %6570 = vrot.lane.b32.xlu0 %v6513_v35, %s11457_s12  ;;  %v5348_v35 = vshll.u32 %v5332_v30, 16 }
 0x2e2   : > { %7323 = vmatpush1.bf16.msra.mxu0 %v12714_v7  ;;  %4479 = vmatprep.mubr.bf16.mxu0 %v12903_v12  ;;  %v6536_v7 = vor.u32 %v6534_v8, %v6533_v27  ;;  %v6541_v11 = vrot.slane %v6539_v52, 7  ;;  %v3761_v52 = vshll.u32 %v3724_v6, 16 }
 0x2e3   : > { %7324 = vmatprep.subr.bf16.mxu0 %v12719_v55  ;;  %v13125_v55 = vsel %vm3125_vm11, %v3744_v61, %v3755_v5  ;;  %v3711_v61 = vld [vmem:[#allocation3 + $0x10] sm:$0x80]  ;;  %v3758_v5 = vshrl.u32 %v3724_v6, 16 }
 0x2e4   : > { %v6537_v12 = vsel %vm3125_vm11, %v13094_v2, %v6536_v7  ;;  %v6544_v59 = vor.u32 %v6542_v1, %v6541_v11  ;;  %v13181_v7 = vrot.slane %v5348_v35, 1  ;;  %v13185_v1 = vld [vmem:[#allocation3 + $0x90] sm:$0xff] }
 0x2e5   : > { %6574 = vrot.lane.b32.xlu0 %v13125_v55, %s11457_s12 }
 0x2e6   : > { %7325 = vmatpush1.bf16.msra.mxu0 %v12735_v63  ;;  %v6499_v63 = vsel %vm14965_vm14, 0, %v13132_v17  ;;  %v6545_v18 = vsel %vm3125_vm11, %v6533_v27, %v6544_v59  ;;  %v13171_v27 = vld [vmem:[#allocation3 + $0x78] sm:$0xff] }
 0x2e7   : > { %7326 = vmatprep.subr.bf16.mxu0 %v12745_v42  ;;  %v6547_v42 = vshrl.u32 %v6499_v63, 16  ;;  %6465 = vst [vmem:[#allocation2 + $0xd0] sm:$0xff] %v13171_v27 }
 0x2e9   : > { %4480 = vmatmul.mubr.bf16.gmra.mrb[48].mxu0 %v5323_v13  ;;  %6576 = vrot.lane.b32.xlu0 %v6537_v12, %s11457_s12  ;;  %v6549_v16 = vrot.slane %v6547_v42, 7  ;;  %v13187_v12 = vrot.slane %v3758_v5, 7 }
 0x2ea   : > { %7327 = vmatpush1.bf16.msra.mxu0 %v12757_v22  ;;  %4489 = vmatprep.mubr.bf16.mxu0 %v12939_v58  ;;  %v6550_v22 = vshll.u32 %v6499_v63, 16 }
 0x2eb   : > { %7328 = vmatprep.subr.bf16.mxu0 %v12767_v25  ;;  %v3720_v25 = vsel %vm3593_vm2, 0, %v3711_v61 }
 0x2ec   : > { %v6552_v9 = vor.u32 %v6550_v22, %v6549_v16  ;;  %v13207_v22 = vsel %vm3600_vm15, 0, %v13043_v50 }
 0x2ed   : > { %6578 = vrot.lane.b32.xlu0 %v6545_v18, %s11457_s12  ;;  %v3782_v5 = vshrl.u32 %v13207_v22, 16 }
 0x2ee   : > { %7329 = vmatpush1.bf16.msra.mxu0 %v12779_v31  ;;  %v6553_v32 = vsel %vm3125_vm11, %v6541_v11, %v6552_v9  ;;  %v6500_v31 = vsel %vm3600_vm15, 0, %v13153_v46  ;;  %v5352_v11 = vshrl.u32 %v5332_v30, 16  ;;  %v3763_v30 = vor.u32 %v3761_v52, %v13187_v12 }
 0x2ef   : > { %7330 = vmatprep.subr.bf16.mxu0 %v12789_v36  ;;  %v3730_v36 = vshrl.u32 %v3720_v25, 16  ;;  %v6555_v23 = vshrl.u32 %v6500_v31, 16  ;;  %v6558_v33 = vshll.u32 %v6500_v31, 16  ;;  %v13220_v31 = vsel %vm15029_vm6, 0, %v13045_v24 }
 0x2f0   : > { %vm15031_vm6 = vcmask 523264  }
 0x2f1   : > { %4490 = vmatmul.mubr.bf16.gmra.mrb[52].mxu0 %v13087_v20  ;;  %6580 = vrot.lane.b32.xlu0 %v6553_v32, %s11457_s12  ;;  %v6557_v8 = vrot.slane %v6555_v23, 7  ;;  %v3732_v58 = vrot.slane %v3730_v36, 7 }
 0x2f2   : > { %7331 = vmatpush1.bf16.msra.mxu0 %v12802_v44  ;;  %4499 = vmatprep.mubr.bf16.mxu0 %v12978_v40  ;;  %v3725_v44 = vsel %vm3598_vm13, 0, %v12978_v40  ;;  %v13179_v40 = vsel %vm14965_vm14, 0, %v13016_v39  ;;  %vm15026_vm14 = vcmp.ne.s16.totalorder %v12607_v34, 0 }
 0x2f3   : > { %7332 = vmatprep.subr.bf16.mxu0 %v12811_v48  ;;  %v6560_v48 = vor.u32 %v6558_v33, %v6557_v8  ;;  %v3766_v13 = vshrl.u32 %v3725_v44, 16  ;;  %v6501_v39 = vsel %vm15026_vm14, 0, %v13185_v1  ;;  %v3740_v59 = vsel %vm3125_vm11, %v3732_v58, %v13089_v4  ;;  %v13210_v4 = vld [vmem:[#allocation3 + $0x88] sm:$0xff] }
 0x2f4   : > { %v6563_v42 = vshrl.u32 %v6501_v39, 16  ;;  %v3769_v18 = vshll.u32 %v3725_v44, 16  ;;  %vm15027_vm14 = vcmask 523264   ;;  %v6566_v32 = vshll.u32 %v6501_v39, 16  ;;  %6466 = vst [vmem:[#allocation2 + $0xf8] sm:$0xff] %v13210_v4 }
 0x2f5   : > { %v13201_v61 = vrot.slane %v3766_v13, 7  ;;  %v3777_v24 = vshll.u32 %v13179_v40, 16  ;;  %v11037_v13 = vld [vmem:[%s14931_s2 + $0x200] ss:$8 sps:$4 sm:$0xff]  }
 0x2f6   : > { %7333 = vmatpush1.bf16.msra.mxu0 %v12821_v54  ;;  %v6561_v54 = vsel %vm3125_vm11, %v6549_v16, %v6560_v48  ;;  %v3774_v16 = vshrl.u32 %v13179_v40, 16  ;;  %v6565_v25 = vrot.slane %v6563_v42, 7  ;;  %v3764_v40 = vsel %vm3125_vm11, %v13094_v2, %v3763_v30  ;;  %v13258_v2 = vld [vmem:[#allocation3 + $0x30] sm:$0xff] }
 0x2f7   : > { %7334 = vmatprep.subr.bf16.mxu0 %v12826_v56  ;;  %v7947_v56 = vsel %vm14966_vm12, 0, %v13087_v20  ;;  %6582 = vrot.lane.b32.xlu0 %v6561_v54, %s11457_s12  ;;  %vm15028_vm12 = vcmask 1048064   ;;  %v13266_v42 = vrot.slane %v3782_v5, 7  ;;  %6445 = vst [vmem:[#allocation2 + $0x28] sm:$0xff] %v13258_v2 }
 0x2f8   : > { %v7970_v63 = vshll.u32 %v7947_v56, 16  ;;  %v6568_v23 = vor.u32 %v6566_v32, %v6565_v25  ;;  %v7974_v44 = vshrl.u32 %v7947_v56, 16  ;;  %v15036_v56 = vld [vmem:[#allocation9_spill] sm:$0xff] }
 0x2f9   : > { %4500 = vmatmul.mubr.bf16.gmra.mrb[56].mxu0 %v13118_v41 }
 0x2fa   : > { %7335 = vmatpush1.bf16.msra.mxu0 %v12839_v60  ;;  %4509 = vmatprep.mubr.bf16.mxu0 %v13132_v17  ;;  %v7972_v9 = vrot.slane %v7970_v63, 1  ;;  %v6569_v58 = vsel %vm3125_vm11, %v6557_v8, %v6568_v23  ;;  %v14112_v8 = vld [vmem:[%s14932_s3 + $0x134] ss:$8 sps:$4 sm:$0xff]   ;;  %v11211_v23 = vld [vmem:[%s14932_s3 + $0x1b0] ss:$8 sps:$4 sm:$0xff]  }
 0x2fb   : > { %7336 = vmatprep.subr.bf16.mxu0 %v12846_v49  ;;  %v13213_v49 = vor.u32 %v5352_v11, %v13181_v7  ;;  %v7949_v11 = vsel %vm5106_vm1, 0, %v13143_v47  ;;  %6584 = vrot.lane.b32.xlu0 %v6569_v58, %s11457_s12 }
 0x2fc   : > { %v7976_v48 = vor.u32 %v7974_v44, %v7972_v9  ;;  %v7950_v44 = vsel %vm5107_vm0, 0, %v13171_v27  ;;  %v7990_v5 = vshrl.u32 %v7949_v11, 16 }
 0x2fd   : > { %v7973_v6 = vsel %vm3529_vm9, %v13213_v49, %v7972_v9  ;;  %v6714_v9 = vsel %vm3594_vm3, 0, %v13258_v2  ;;  %v7994_v58 = vshll.u32 %v7950_v44, 16 }
 0x2fe   : > { %7337 = vmatpush1.bf16.msra.mxu0 %v12852_v21  ;;  %v3771_v21 = vor.u32 %v3769_v18, %v13201_v61  ;;  %8024 = vrot.lane.b32.xlu1 %v7973_v6, %s11457_s12  ;;  %v13270_v18 = vld [vmem:[#allocation3 + $0x28] sm:$0xff] }
 0x2ff   : > { %7338 = vmatprep.subr.bf16.mxu0 %v12859_v26  ;;  %v13238_v26 = vrot.slane %v3774_v16, 7  ;;  %6460 = vst [vmem:[#allocation2 + $0x8] sm:$0xff] %v13270_v18  ;;  %v15039_v6 = vld [vmem:[#allocation10_spill] sm:$0xff] }
 0x300   : > { %v3680_v60 = vpop.permute.xlu0 %3679  ;;  %v3772_v63 = vsel %vm3125_vm11, %v13187_v12, %v3771_v21  ;;  %v3793_v12 = vshll.u32 %v13220_v31, 16  ;;  %v11373_v21 = vld [vmem:[#allocation3 + $0x28] sm:$0xff] }
 0x301   : > { %3703 = vst.msk [vmem:[#allocation2 + $0x18] sm:$0xff] %vm15027_vm14, %v3680_v60  ;;  %vm15030_vm14 = vcmp.ne.s16.totalorder %v12945_v62, 0  ;;  %4510 = vmatmul.mubr.bf16.gmra.mrb[60].mxu0 %v13143_v47  ;;  %v3785_v60 = vshll.u32 %v13207_v22, 16  ;;  %v3779_v32 = vor.u32 %v3777_v24, %v13238_v26 }
 0x302   : > { %3805 = vst.msk [vmem:[#allocation2 + $0x18] sm:$0xff] %vm15028_vm12, %v3740_v59  ;;  %v7948_v50 = vsel %vm15030_vm14, 0, %v13118_v41  ;;  %vm15032_vm12 = vmmov %vm15031_vm6  ;;  %vm15033_vm14 = vcmask 1048064   ;;  %7339 = vmatpush1.bf16.msra.mxu0 %v12879_v53  ;;  %4519 = vmatprep.mubr.bf16.mxu0 %v13153_v46  ;;  %v7986_v59 = vshll.u32 %v7949_v11, 16  ;;  %v11054_v53 = vld [vmem:[%s14931_s2 + $0x214] ss:$8 sps:$4 sm:$0xff]  }
 0x303   : > { %v3684_v36 = vpop.permute.xlu1 %3683  ;;  %v7978_v35 = vshll.u32 %v7948_v50, 16  ;;  %7340 = vmatprep.subr.bf16.mxu0 %v15036_v56  ;;  %v7982_v39 = vshrl.u32 %v7948_v50, 16  ;;  %v6704_v50 = vld [vmem:[#allocation3 + $0x20] sm:$0x80] }
 0x304   : > { %v3682_v33 = vpop.permute.xlu0 %3681  ;;  %3705 = vst.msk [vmem:[#allocation2 + $0x68] sm:$0xff] %vm15031_vm6, %v3684_v36  ;;  %vm15034_vm6 = vmmov %vm15033_vm14  ;;  %v7988_v30 = vrot.slane %v7986_v59, 1  ;;  %v7996_v59 = vrot.slane %v7994_v58, 1 }
 0x305   : > { %3704 = vst.msk [vmem:[#allocation2 + $0x40] sm:$0xff] %vm15032_vm12, %v3682_v33  ;;  %v7980_v52 = vrot.slane %v7978_v35, 1  ;;  %v6713_v35 = vsel %vm3593_vm2, 0, %v6704_v50  ;;  %v6727_v33 = vshrl.u32 %v6714_v9, 16  ;;  %v7951_v50 = vsel %vm5108_vm8, 0, %v13210_v4 }
 0x306   : > { %3807 = vst.msk [vmem:[#allocation2 + $0x68] sm:$0xff] %vm15033_vm14, %v13125_v55  ;;  %v3790_v55 = vshrl.u32 %v13220_v31, 16  ;;  %vm15038_vm14 = vmmov %vm15034_vm6  ;;  %7341 = vmatpush1.bf16.msra.mxu0 %v15039_v6  ;;  %v15041_v31 = vld [vmem:[#allocation11_spill] sm:$0xff]  ;;  %v15045_v6 = vld [vmem:[#allocation13_spill] sm:$0xff] }
 0x307   : > { %3806 = vst.msk [vmem:[#allocation2 + $0x40] sm:$0xff] %vm15034_vm6, %v13116_v14  ;;  %v3686_v54 = vpop.permute.xlu1 %3685  ;;  %v7981_v14 = vsel %vm3529_vm9, %v7976_v48, %v7980_v52  ;;  %v7984_v22 = vor.u32 %v7982_v39, %v7980_v52  ;;  %7342 = vmatprep.subr.bf16.mxu0 %v15041_v31  ;;  %v6723_v48 = vshrl.u32 %v6713_v35, 16  ;;  %v11052_v52 = vld [vmem:[%s14931_s2 + $0x210] ss:$8 sps:$4 sm:$0xff]   ;;  %v7992_v39 = vor.u32 %v7990_v5, %v7988_v30  ;;  %v11084_v5 = vld [vmem:[%s14931_s2 + $0x234] ss:$8 sps:$4 sm:$0xff]  }
 0x308   : > { %3706 = vst.msk [vmem:[#allocation2 + $0x90] sm:$0xff] %vm15032_vm12, %v3686_v54  ;;  %8026 = vrot.lane.b32.xlu1 %v7981_v14, %s11457_s12  ;;  %v3792_v36 = vrot.slane %v3790_v55, 7  ;;  %v3787_v55 = vor.u32 %v3785_v60, %v13266_v42  ;;  %v15042_v54 = vld [vmem:[#allocation8_spill] sm:$0xff]  ;;  %v13298_v14 = vrot.slane %v6727_v33, 7  ;;  %v7998_v35 = vshrl.u32 %v7950_v44, 16  ;;  %v13316_v33 = vld [vmem:[#allocation3 + $0x40] sm:$0xff] }
 0x309   : > { %v3934_v25 = vld [vmem:[#allocation2 + $0x18] sm:$0xff]  ;;  %3808 = vst.msk [vmem:[#allocation2 + $0x90] sm:$0xff] %vm15038_vm14, %v3764_v40  ;;  %v7989_v24 = vsel %vm3529_vm9, %v7984_v22, %v7988_v30  ;;  %vm15043_vm6 = vcmp.ne.s16.totalorder %v15042_v54, 0  ;;  %4520 = vmatmul.mubr.bf16.gmra.mrb[64].mxu0 %v13171_v27  ;;  %v6725_v60 = vrot.slane %v6723_v48, 7  ;;  %v7997_v30 = vsel %vm3529_vm9, %v7992_v39, %v7996_v59  ;;  %6446 = vst [vmem:[#allocation2 + $0x50] sm:$0xff] %v13316_v33 }
 0x30a   : > { %4572 = vmatprep.mubr.bf16.mxu1 %v3934_v25  ;;  %v13295_v56 = vsel %vm15043_vm6, 0, %v13084_v28  ;;  %v6730_v25 = vshll.u32 %v6714_v9, 16  ;;  %v3780_v28 = vsel %vm3125_vm11, %v13201_v61, %v3779_v32  ;;  %v3795_v22 = vor.u32 %v3793_v12, %v3792_v36  ;;  %4529 = vmatprep.mubr.bf16.mxu0 %v13185_v1  ;;  %v11067_v32 = vld [vmem:[%s14931_s2 + $0x220] ss:$8 sps:$4 sm:$0xff]   ;;  %vm15047_vm6 = vmmov %vm15032_vm12  ;;  %v15049_v39 = vld [vmem:[#allocation14_spill] sm:$0xff] }
 0x30b   : > { %4573 = vmatmul.mubr.bf16.vlgmr.msra.gmra.mrb[0].mxu1 %v11373_v21  ;;  %v5343_v12 = vshll.u32 %v13295_v56, 16  ;;  %v13323_v36 = vld [vmem:[#allocation3 + $0x38] sm:$0xff]  ;;  %v6715_v31 = vsel %vm3595_vm4, 0, %v13316_v33  ;;  %v8000_v48 = vor.u32 %v7998_v35, %v7996_v59 }
 0x30c   : > { %4654 = vmatpush1.bf16.msra.mxu1 %v11037_v13  ;;  %v3688_v40 = vpop.permute.xlu0 %3687  ;;  %8028 = vrot.lane.b32.xlu1 %v7989_v24, %s11457_s12  ;;  %v11069_v13 = vld [vmem:[%s14931_s2 + $0x224] ss:$8 sps:$4 sm:$0xff]   ;;  %v6732_v9 = vor.u32 %v6730_v25, %v13298_v14  ;;  %v3788_v24 = vsel %vm3125_vm11, %v13238_v26, %v3787_v55  ;;  %6461 = vst [vmem:[#allocation2 + $0x30] sm:$0xff] %v13323_v36  ;;  %v6735_v55 = vshrl.u32 %v6715_v31, 16  ;;  %v8006_v25 = vshrl.u32 %v7951_v50, 16 }
 0x30d   : > { %4655 = vmatprep.subr.bf16.mxu1 %v11054_v53  ;;  %3707 = vst.msk [vmem:[#allocation2 + $0xb8] sm:$0xff] %vm15032_vm12, %v3688_v40  ;;  %v15044_v53 = vld [vmem:[#allocation12_spill] sm:$0xff]  ;;  %vm15048_vm12 = vmmov %vm15038_vm14  ;;  %v3796_v59 = vsel %vm3125_vm11, %v13266_v42, %v3795_v22  ;;  %v5345_v35 = vrot.slane %v5343_v12, 1 }
 0x30e   : > { %v3939_v11 = vld [vmem:[#allocation2 + $0x40] sm:$0xff]  ;;  %3809 = vst.msk [vmem:[#allocation2 + $0xb8] sm:$0xff] %vm15038_vm14, %v3772_v63  ;;  %7343 = vmatpush1.bf16.msra.mxu0 %v15044_v53  ;;  %v8002_v63 = vshll.u32 %v7951_v50, 16  ;;  %v3944_v44 = vld [vmem:[#allocation2 + $0x68] sm:$0xff]  ;;  %v6733_v58 = vsel %vm3125_vm11, %v6725_v60, %v6732_v9  ;;  %vm15050_vm14 = vmmov %vm15047_vm6  ;;  %v6738_v53 = vshll.u32 %v6715_v31, 16  ;;  %v5341_v9 = vshrl.u32 %v13295_v56, 16 }
 0x30f   : > { %4582 = vmatprep.mubr.bf16.mxu1 %v3939_v11  ;;  %7344 = vmatprep.subr.bf16.mxu0 %v15045_v6  ;;  %v13337_v40 = vld [vmem:[#allocation3 + $0x98] sm:$0xff]  ;;  %v15051_v60 = vld [vmem:[#allocation15_spill] sm:$0xff]  ;;  %v13356_v42 = vrot.slane %v6735_v55, 7  ;;  %v11108_v55 = vld [vmem:[%s14932_s3 + $0x34] ss:$8 sps:$4 sm:$0xff]  }
 0x310   : > { %4656 = vmatpush1.bf16.msra.mxu1 %v11052_v52  ;;  %v3690_v61 = vpop.permute.xlu1 %3689  ;;  %8030 = vrot.lane.b32.xlu1 %v7997_v30, %s11457_s12  ;;  %v8004_v52 = vrot.slane %v8002_v63, 1  ;;  %v7952_v26 = vsel %vm5109_vm7, 0, %v13337_v40  ;;  %6467 = vst [vmem:[#allocation2 + $0x120] sm:$0xff] %v13337_v40  ;;  %v11082_v30 = vld [vmem:[%s14931_s2 + $0x230] ss:$8 sps:$4 sm:$0xff]   ;;  %v15055_v12 = vld [vmem:[#allocation16_spill] sm:$0xff] }
 0x311   : > { %3708 = vst.msk [vmem:[#allocation2 + $0xe0] sm:$0xff] %vm15047_vm6, %v3690_v61  ;;  %4657 = vmatprep.subr.bf16.mxu1 %v11069_v13  ;;  %6790 = vrot.lane.b32.xlu0 %v6733_v58, %s11457_s12  ;;  %v11374_v13 = vld [vmem:[#allocation2 + $0x38] sm:$0xff]  ;;  %vm15052_vm6 = vmmov %vm15048_vm12  ;;  %v11099_v22 = vld [vmem:[%s14932_s3 + $0x4] ss:$8 sps:$4 sm:$0xff]   ;;  %v8014_v58 = vshrl.u32 %v7952_v26, 16 }
 0x312   : > { %3810 = vst.msk [vmem:[#allocation2 + $0xe0] sm:$0xff] %vm15048_vm12, %v3780_v28  ;;  %v3692_v11 = vpop.permute.xlu0 %3691  ;;  %7345 = vmatpush1.bf16.msra.mxu0 %v15049_v39  ;;  %v8010_v28 = vshll.u32 %v7952_v26, 16  ;;  %v8005_v63 = vsel %vm3529_vm9, %v8000_v48, %v8004_v52  ;;  %vm15053_vm12 = vmmov %vm15050_vm14  ;;  %v8008_v50 = vor.u32 %v8006_v25, %v8004_v52  ;;  %v11150_v31 = vld [vmem:[%s14931_s2 + $0x104] ss:$8 sps:$4 sm:$0xff]   ;;  %v5346_v52 = vor.u32 %v5345_v35, %v5341_v9 }
 0x313   : > { %4583 = vmatmul.mubr.bf16.gmra.mrb[4].mxu1 %v11374_v13  ;;  %3709 = vst.msk [vmem:[#allocation2 + $0x108] sm:$0xff] %vm15050_vm14, %v3692_v11  ;;  %7346 = vmatprep.subr.bf16.mxu0 %v15051_v60  ;;  %vm15054_vm14 = vmmov %vm15052_vm6  ;;  %v6716_v13 = vsel %vm3596_vm5, 0, %v13076_v15  ;;  %v11156_v15 = vld [vmem:[%s14931_s2 + $0x114] ss:$8 sps:$4 sm:$0xff]  }
 0x314   : > { %4592 = vmatprep.mubr.bf16.mxu1 %v3944_v44  ;;  %4658 = vmatpush1.bf16.msra.mxu1 %v11067_v32  ;;  %3811 = vst.msk [vmem:[#allocation2 + $0x108] sm:$0xff] %vm15052_vm6, %v3788_v24  ;;  %v3694_v6 = vpop.permute.xlu1 %3693  ;;  %v8012_v61 = vrot.slane %v8010_v28, 1  ;;  %v7944_v32 = vld [vmem:[#allocation3 + $0xa8] sm:$0x1]  ;;  %v6740_v44 = vor.u32 %v6738_v53, %v13356_v42  ;;  %vm15056_vm6 = vcmp.ne.s16.totalorder %v13030_v0, 0  ;;  %v6743_v28 = vshrl.u32 %v6716_v13, 16 }
 0x315   : > { %3710 = vst.msk [vmem:[#allocation2 + $0x130] sm:$0xff] %vm15053_vm12, %v3694_v6  ;;  %4659 = vmatprep.subr.bf16.mxu1 %v11084_v5  ;;  %4530 = vmatmul.mubr.bf16.gmra.mrb[68].mxu0 %v13210_v4  ;;  %v7953_v24 = vsel %vm15056_vm6, 0, %v7944_v32  ;;  %v15057_v5 = vld [vmem:[#allocation18_spill] sm:$0xff]  ;;  %v15060_v6 = vld [vmem:[#allocation20_spill] sm:$0xff]  ;;  %vm15061_vm6 = vmmov %vm15053_vm12  ;;  %v6746_v35 = vshll.u32 %v6716_v13, 16 }
 0x316   : > { %3812 = vst.msk [vmem:[#allocation2 + $0x130] sm:$0xff] %vm15054_vm14, %v3796_v59  ;;  %v3900_v56 = vpop.permute.xlu0 %3899  ;;  %7347 = vmatpush1.bf16.msra.mxu0 %v15055_v12  ;;  %7350 = vmatprep.mubr.bf16.mxu0 %v13270_v18  ;;  %v8018_v48 = vshll.u32 %v7953_v24, 16  ;;  %v6741_v39 = vsel %vm3125_vm11, %v13298_v14, %v6740_v44  ;;  %v3949_v59 = vld [vmem:[#allocation2 + $0x90] sm:$0xff]  ;;  %vm15059_vm14 = vmmov %vm15053_vm12  ;;  %v8013_v60 = vsel %vm3529_vm9, %v8008_v50, %v8012_v61  ;;  %v11148_v14 = vld [vmem:[%s14931_s2 + $0x100] ss:$8 sps:$4 sm:$0xff]   ;;  %v6745_v9 = vrot.slane %v6743_v28, 7 }
 0x317   : > { %3923 = vst.msk [vmem:[#allocation2 + $0x20] sm:$0xff] %vm15053_vm12, %v3900_v56  ;;  %7348 = vmatprep.subr.bf16.mxu0 %v15057_v5  ;;  %8032 = vrot.lane.b32.xlu1 %v8005_v63, %s11457_s12  ;;  %v8016_v26 = vor.u32 %v8014_v58, %v8012_v61  ;;  %v5351_v63 = vsel %vm3529_vm9, %v5346_v52, %v13181_v7  ;;  %vm15062_vm12 = vmmov %vm15061_vm6  ;;  %v13395_v50 = vld [vmem:[#allocation2] sm:$0xff]  ;;  %v11154_v61 = vld [vmem:[%s14931_s2 + $0x110] ss:$8 sps:$4 sm:$0xff]   ;;  %v6717_v5 = vsel %vm3597_vm10, 0, %v13103_v51 }
 0x318   : > { %4660 = vmatpush1.bf16.msra.mxu1 %v11082_v30  ;;  %v3902_v11 = vpop.permute.xlu1 %3901  ;;  %6792 = vrot.lane.b32.xlu0 %v6741_v39, %s11457_s12  ;;  %v8020_v25 = vrot.slane %v8018_v48, 1  ;;  %v11375_v30 = vld [vmem:[#allocation2 + $0x60] sm:$0xff]  ;;  %v6748_v56 = vor.u32 %v6746_v35, %v6745_v9  ;;  %v3954_v58 = vld [vmem:[#allocation2 + $0xb8] sm:$0xff]  ;;  %v6751_v52 = vshrl.u32 %v6717_v5, 16  ;;  %v11377_v13 = vld [vmem:[#allocation2 + $0x88] sm:$0xff] }
 0x319   : > { %3924 = vst.msk [vmem:[#allocation2 + $0x48] sm:$0xff] %vm15059_vm14, %v3902_v11  ;;  %5920 = vmatprep.subr.bf16.mxu1 %v11099_v22  ;;  %v11162_v44 = vld [vmem:[%s14931_s2 + $0x124] ss:$8 sps:$4 sm:$0xff]   ;;  %vm15063_vm14 = vmmov %vm15061_vm6  ;;  %v11160_v39 = vld [vmem:[%s14931_s2 + $0x120] ss:$8 sps:$4 sm:$0xff]  }
 0x31a   : > { %v3904_v53 = vpop.permute.xlu0 %3903  ;;  %7349 = vmatpush1.bf16.msra.mxu0 %v15060_v6  ;;  %v8021_v32 = vsel %vm3529_vm9, %v8016_v26, %v8020_v25  ;;  %v6749_v48 = vsel %vm3125_vm11, %v13356_v42, %v6748_v56  ;;  %v11168_v51 = vld [vmem:[%s14931_s2 + $0x134] ss:$8 sps:$4 sm:$0xff]   ;;  %v11166_v25 = vld [vmem:[%s14931_s2 + $0x130] ss:$8 sps:$4 sm:$0xff]   ;;  %v11174_v28 = vld [vmem:[%s14931_s2 + $0x144] ss:$8 sps:$4 sm:$0xff]  }
 0x31b   : > { %4593 = vmatmul.mubr.bf16.gmra.mrb[8].mxu1 %v11375_v30  ;;  %3925 = vst.msk [vmem:[#allocation2 + $0x70] sm:$0xff] %vm15061_vm6, %v3904_v53  ;;  %7431 = vmatprep.subr.bf16.mxu0 %v11150_v31  ;;  %v3959_v6 = vld [vmem:[#allocation2 + $0xe0] sm:$0xff]  ;;  %v11378_v30 = vld [vmem:[#allocation2 + $0xb0] sm:$0xff] }
 0x31c   : > { %4602 = vmatprep.mubr.bf16.mxu1 %v3949_v59  ;;  %v3906_v22 = vpop.permute.xlu1 %3905  ;;  %8034 = vrot.lane.b32.xlu1 %v8013_v60, %s11457_s12  ;;  %v6753_v59 = vrot.slane %v6751_v52, 7  ;;  %v6754_v60 = vshll.u32 %v6717_v5, 16 }
 0x31d   : > { %3926 = vst.msk [vmem:[#allocation2 + $0x98] sm:$0xff] %vm15062_vm12, %v3906_v22  ;;  %7351 = vmatmul.mubr.bf16.vlgmr.msra.gmra.mrb[72].mxu0 %v13395_v50  ;;  %vm15064_vm12 = vmmov %vm15061_vm6  ;;  %v11186_v22 = vld [vmem:[%s14931_s2 + $0x164] ss:$8 sps:$4 sm:$0xff]  }
 0x31e   : > { %v13402_v12 = vld [vmem:[#allocation2 + $0x20] sm:$0xff]  ;;  %v3908_v31 = vpop.permute.xlu0 %3907  ;;  %7432 = vmatpush1.bf16.msra.mxu0 %v11148_v14  ;;  %7360 = vmatprep.mubr.bf16.mxu0 %v13323_v36  ;;  %v6756_v26 = vor.u32 %v6754_v60, %v6753_v59 }
 0x31f   : > { %5416 = vst.msk [vmem:[#allocation2 + $0x20] sm:$0xff] %vm15063_vm14, %v5351_v63  ;;  %7433 = vmatprep.subr.bf16.mxu0 %v11156_v15  ;;  %vm15065_vm14 = vmmov %vm15061_vm6  ;;  %v11180_v15 = vld [vmem:[%s14931_s2 + $0x154] ss:$8 sps:$4 sm:$0xff]   ;;  %v11178_v63 = vld [vmem:[%s14931_s2 + $0x150] ss:$8 sps:$4 sm:$0xff]  }
 0x320   : > { %3927 = vst.msk [vmem:[#allocation2 + $0xc0] sm:$0xff] %vm15061_vm6, %v3908_v31  ;;  %v3910_v24 = vpop.permute.xlu1 %3909  ;;  %8036 = vrot.lane.b32.xlu1 %v8021_v32, %s11457_s12  ;;  %v6757_v53 = vsel %vm3125_vm11, %v6745_v9, %v6756_v26  ;;  %v4942_v32 = vld [vmem:[#allocation3 + $0x18] sm:$0xff] }
 0x321   : > { %3928 = vst.msk [vmem:[#allocation2 + $0xe8] sm:$0xff] %vm15064_vm12, %v3910_v24  ;;  %6796 = vrot.lane.b32.xlu0 %v6757_v53, %s11457_s12  ;;  %vm15066_vm12 = vcmp.ne.s16.totalorder %v12882_v57, 0 }
 0x322   : > { %v3912_v11 = vpop.permute.xlu0 %3911  ;;  %7434 = vmatpush1.bf16.msra.mxu0 %v11154_v61  ;;  %v5112_v56 = vsel %vm15066_vm12, 0, %v13270_v18  ;;  %vm15069_vm12 = vcmp.ne.s16.totalorder %v12914_v3, 0 }
 0x323   : > { %4603 = vmatmul.mubr.bf16.gmra.mrb[12].mxu1 %v11377_v13  ;;  %3929 = vst.msk [vmem:[#allocation2 + $0x110] sm:$0xff] %vm15065_vm14, %v3912_v11  ;;  %7435 = vmatprep.subr.bf16.mxu0 %v11162_v44  ;;  %vm15067_vm14 = vcmp.ne.s16.totalorder %v15042_v54, 0  ;;  %v3964_v44 = vld [vmem:[#allocation2 + $0x108] sm:$0xff]  ;;  %v5128_v24 = vshll.u32 %v5112_v56, 16  ;;  %v11379_v11 = vld [vmem:[#allocation2 + $0xd8] sm:$0xff] }
 0x324   : > { %4612 = vmatprep.mubr.bf16.mxu1 %v3954_v58  ;;  %v3914_v42 = vpop.permute.xlu1 %3913  ;;  %6794 = vrot.lane.b32.xlu1 %v6749_v48, %s11457_s12  ;;  %v5111_v31 = vsel %vm15067_vm14, 0, %v4942_v32  ;;  %v11184_v48 = vld [vmem:[%s14931_s2 + $0x160] ss:$8 sps:$4 sm:$0xff]   ;;  %vm15070_vm14 = vcmp.ne.s16.totalorder %v12945_v62, 0  ;;  %v3969_v32 = vld [vmem:[#allocation2 + $0x130] sm:$0xff] }
 0x325   : > { %3930 = vst.msk [vmem:[#allocation2 + $0x138] sm:$0xff] %vm15061_vm6, %v3914_v42  ;;  %7361 = vmatmul.mubr.bf16.gmra.mrb[76].mxu0 %v13258_v2  ;;  %v6718_v2 = vsel %vm3598_vm13, 0, %v13132_v17  ;;  %v5123_v5 = vshll.u32 %v5111_v31, 16  ;;  %vm15068_vm6 = vcmp.ne.s16.totalorder %v12600_v29, 0  ;;  %v5130_v13 = vrot.slane %v5128_v24, 1  ;;  %v11380_v42 = vld [vmem:[#allocation2 + $0x78] sm:$0xff] }
 0x326   : > { %7436 = vmatpush1.bf16.msra.mxu0 %v11160_v39  ;;  %7370 = vmatprep.mubr.bf16.mxu0 %v13087_v20  ;;  %v6759_v14 = vshrl.u32 %v6718_v2, 16  ;;  %v11172_v20 = vld [vmem:[%s14931_s2 + $0x140] ss:$8 sps:$4 sm:$0xff]   ;;  %v6762_v35 = vshll.u32 %v6718_v2, 16  ;;  %v6719_v58 = vsel %vm15068_vm6, 0, %v13153_v46  ;;  %v5113_v46 = vsel %vm15069_vm12, 0, %v13323_v36 }
 0x327   : > { %7437 = vmatprep.subr.bf16.mxu0 %v11168_v51  ;;  %v6767_v52 = vshrl.u32 %v6719_v58, 16  ;;  %v11192_v39 = vld [vmem:[%s14931_s2 + $0x174] ss:$8 sps:$4 sm:$0xff]   ;;  %v5125_v51 = vrot.slane %v5123_v5, 1  ;;  %v6770_v60 = vshll.u32 %v6719_v58, 16  ;;  %v5140_v53 = vshrl.u32 %v5113_v46, 16 }
 0x328   : > { %v6761_v9 = vrot.slane %v6759_v14, 7  ;;  %v11190_v2 = vld [vmem:[%s14931_s2 + $0x170] ss:$8 sps:$4 sm:$0xff]   ;;  %vm15071_vm6 = vcmask 523264  }
 0x329   : > { %v13481_v14 = vrot.slane %v6767_v52, 7  ;;  %v11381_v52 = vld [vmem:[#allocation2 + $0x100] sm:$0xff]  ;;  %vm15072_vm12 = vmmov %vm15071_vm6 }
 0x32a   : > { %7438 = vmatpush1.bf16.msra.mxu0 %v11166_v25  ;;  %v6764_v17 = vor.u32 %v6762_v35, %v6761_v9 }
 0x32b   : > { %4613 = vmatmul.mubr.bf16.gmra.mrb[16].mxu1 %v11378_v30  ;;  %7439 = vmatprep.subr.bf16.mxu0 %v11174_v28  ;;  %v5136_v28 = vshll.u32 %v5113_v46, 16 }
 0x32c   : > { %4622 = vmatprep.mubr.bf16.mxu1 %v3959_v6  ;;  %v6765_v61 = vsel %vm3125_vm11, %v6753_v59, %v6764_v17  ;;  %v13469_v59 = vld [vmem:[#allocation3 + $0x48] sm:$0xff]  ;;  %v5132_v17 = vshrl.u32 %v5112_v56, 16  ;;  %v11196_v56 = vld [vmem:[%s14931_s2 + $0x180] ss:$8 sps:$4 sm:$0xff]  }
 0x32d   : > { %7371 = vmatmul.mubr.bf16.gmra.mrb[80].mxu0 %v13316_v33  ;;  %6798 = vrot.lane.b32.xlu1 %v6765_v61, %s11457_s12  ;;  %v5114_v25 = vsel %vm15070_vm14, 0, %v13469_v59  ;;  %v5116_v61 = vsel %vm5107_vm0, 0, %v13143_v47  ;;  %vm15073_vm14 = vcmask 1048064  }
 0x32e   : > { %7440 = vmatpush1.bf16.msra.mxu0 %v11172_v20  ;;  %7380 = vmatprep.mubr.bf16.mxu0 %v13118_v41  ;;  %v5121_v41 = vshrl.u32 %v5111_v31, 16  ;;  %v5144_v6 = vshll.u32 %v5114_v25, 16  ;;  %v11198_v20 = vld [vmem:[%s14931_s2 + $0x184] ss:$8 sps:$4 sm:$0xff]   ;;  %v5160_v24 = vshll.u32 %v5116_v61, 16 }
 0x32f   : > { %7441 = vmatprep.subr.bf16.mxu0 %v11180_v15  ;;  %v5138_v15 = vrot.slane %v5136_v28, 1 }
 0x330   : > { %v5126_v26 = vor.u32 %v5125_v51, %v5121_v41  ;;  %v5146_v35 = vrot.slane %v5144_v6, 1  ;;  %v5134_v41 = vor.u32 %v5132_v17, %v5130_v13  ;;  %v6720_v51 = vsel %vm3600_vm15, 0, %v13185_v1  ;;  %v11210_v17 = vld [vmem:[%s14931_s2 + $0x1a4] ss:$8 sps:$4 sm:$0xff]  }
 0x331   : > { %v5142_v31 = vor.u32 %v5140_v53, %v5138_v15  ;;  %v5118_v1 = vsel %vm5109_vm7, 0, %v13210_v4 }
 0x332   : > { %7442 = vmatpush1.bf16.msra.mxu0 %v11178_v63  ;;  %v5131_v30 = vsel %vm3529_vm9, %v5126_v26, %v5130_v13  ;;  %v6772_v63 = vor.u32 %v6770_v60, %v13481_v14  ;;  %v5291_v13 = vpop.permute.xlu0 %5290  ;;  %v5148_v60 = vshrl.u32 %v5114_v25, 16  ;;  %v11382_v26 = vld [vmem:[#allocation2 + $0xa0] sm:$0xff]  ;;  %v11202_v25 = vld [vmem:[%s14931_s2 + $0x190] ss:$8 sps:$4 sm:$0xff]  }
 0x333   : > { %4623 = vmatmul.mubr.bf16.gmra.mrb[20].mxu1 %v11379_v11  ;;  %7443 = vmatprep.subr.bf16.mxu0 %v11186_v22  ;;  %5196 = vst.msk [vmem:[#allocation2 + $0x18] sm:$0xff] %vm15071_vm6, %v5131_v30  ;;  %v13489_v22 = vld [vmem:[#allocation3 + $0x58] sm:$0xff]  ;;  %v5147_v11 = vsel %vm3529_vm9, %v5142_v31, %v5146_v35  ;;  %v5176_v30 = vshll.u32 %v5118_v1, 16  ;;  %v5293_v31 = vpop.permute.xlu1 %5292 }
 0x334   : > { %4632 = vmatprep.mubr.bf16.mxu1 %v3964_v44  ;;  %v5115_v44 = vsel %vm5106_vm1, 0, %v13489_v22  ;;  %v6773_v5 = vsel %vm3125_vm11, %v6761_v9, %v6772_v63  ;;  %5198 = vst.msk [vmem:[#allocation2 + $0x68] sm:$0xff] %vm15072_vm12, %v5147_v11  ;;  %v5139_v9 = vsel %vm3529_vm9, %v5134_v41, %v5138_v15  ;;  %v6778_v15 = vshll.u32 %v6720_v51, 16  ;;  %vm15074_vm12 = vmmov %vm15073_vm14  ;;  %v11383_v11 = vld [vmem:[#allocation2 + $0x128] sm:$0xff] }
 0x335   : > { %7381 = vmatmul.mubr.bf16.gmra.mrb[84].mxu0 %v11380_v42  ;;  %v5152_v58 = vshll.u32 %v5115_v44, 16  ;;  %6800 = vrot.lane.b32.xlu0 %v6773_v5, %s11457_s12  ;;  %v5117_v42 = vsel %vm5108_vm8, 0, %v13171_v27  ;;  %5314 = vst.msk [vmem:[#allocation2 + $0x18] sm:$0xff] %vm15073_vm14, %v5291_v13  ;;  %v5164_v41 = vshrl.u32 %v5116_v61, 16  ;;  %vm15075_vm14 = vmmov %vm15071_vm6  ;;  %v13537_v5 = vsel %vm3594_vm3, 0, %v13270_v18 }
 0x336   : > { %7444 = vmatpush1.bf16.msra.mxu0 %v11184_v48  ;;  %7390 = vmatprep.mubr.bf16.mxu0 %v13143_v47  ;;  %v5156_v48 = vshrl.u32 %v5115_v44, 16  ;;  %v11204_v47 = vld [vmem:[%s14931_s2 + $0x194] ss:$8 sps:$4 sm:$0xff]   ;;  %5197 = vst.msk [vmem:[#allocation2 + $0x40] sm:$0xff] %vm15071_vm6, %v5139_v9  ;;  %v5168_v28 = vshll.u32 %v5117_v42, 16  ;;  %v5172_v53 = vshrl.u32 %v5117_v42, 16  ;;  %v5295_v9 = vpop.permute.xlu0 %5294  ;;  %vm15077_vm3 = vmmov %vm15071_vm6 }
 0x337   : > { %7445 = vmatprep.subr.bf16.mxu0 %v11192_v39  ;;  %v5162_v39 = vrot.slane %v5160_v24, 1  ;;  %v5154_v46 = vrot.slane %v5152_v58, 1  ;;  %5315 = vst.msk [vmem:[#allocation2 + $0x40] sm:$0xff] %vm15074_vm12, %v5293_v31  ;;  %v13539_v58 = vld [vmem:[#allocation3 + $0xa0] sm:$0xff]  ;;  %v11208_v61 = vld [vmem:[%s14931_s2 + $0x1a0] ss:$8 sps:$4 sm:$0xff]  }
 0x338   : > { %v5170_v63 = vrot.slane %v5168_v28, 1  ;;  %v11216_v18 = vld [vmem:[%s14931_s2 + $0x1b4] ss:$8 sps:$4 sm:$0xff]   ;;  %v15076_v13 = vmov 0   ;;  %v6625_v21 = vshrl.u32 %v13537_v5, 16  ;;  %v13564_v42 = vld [vmem:[#allocation2 + $0xc8] sm:$0xff] }
 0x339   : > { %v5158_v6 = vor.u32 %v5156_v48, %v5154_v46  ;;  %v5166_v48 = vor.u32 %v5164_v41, %v5162_v39  ;;  %5316 = vst.msk [vmem:[#allocation2 + $0x68] sm:$0xff] %vm15074_vm12, %v5295_v9 }
 0x33a   : > { %7446 = vmatpush1.bf16.msra.mxu0 %v11190_v2  ;;  %v6775_v2 = vshrl.u32 %v6720_v51, 16  ;;  %v13585_v31 = vrot.slane %v6625_v21, 7  ;;  %v13616_v21 = vld [vmem:[#allocation2 + $0xf0] sm:$0xff] }
 0x33b   : > { %4633 = vmatmul.mubr.bf16.gmra.mrb[24].mxu1 %v11381_v52  ;;  %7447 = vmatprep.subr.bf16.mxu0 %v11198_v20  ;;  %v5150_v20 = vor.u32 %v5148_v60, %v5146_v35  ;;  %v5163_v44 = vsel %vm3529_vm9, %v5158_v6, %v5162_v39  ;;  %v13544_v52 = vld [vmem:[#allocation3 + $0x90] sm:$0xff]  ;;  %v5180_v60 = vshrl.u32 %v5118_v1, 16  ;;  %v11214_v1 = vld [vmem:[%s14931_s2 + $0x1b0] ss:$8 sps:$4 sm:$0xff]  }
 0x33c   : > { %4642 = vmatprep.mubr.bf16.mxu1 %v3969_v32  ;;  %v13526_v32 = vrot.slane %v6775_v2, 7  ;;  %5200 = vst.msk [vmem:[#allocation2 + $0xb8] sm:$0xff] %vm15075_vm14, %v5163_v44  ;;  %6451 = vst [vmem:[#allocation2 + $0x118] sm:$0xff] %v13544_v52  ;;  %v7936_v6 = vld [vmem:[#allocation3 + $0x28] sm:$0xff] }
 0x33d   : > { %7391 = vmatmul.mubr.bf16.gmra.mrb[88].mxu0 %v11382_v26  ;;  %v5155_v24 = vsel %vm3529_vm9, %v5150_v20, %v5154_v46  ;;  %v4950_v46 = vld [vmem:[#allocation3 + $0x98] sm:$0x1]  ;;  %vm15079_vm14 = vmmov %vm15077_vm3  ;;  %v11222_v20 = vld [vmem:[%s14931_s2 + $0x1c4] ss:$8 sps:$4 sm:$0xff]  }
 0x33e   : > { %7448 = vmatpush1.bf16.msra.mxu0 %v11196_v56  ;;  %7400 = vmatprep.mubr.bf16.mxu0 %v13171_v27  ;;  %v5178_v56 = vrot.slane %v5176_v30, 1  ;;  %5199 = vst.msk [vmem:[#allocation2 + $0x90] sm:$0xff] %vm15071_vm6, %v5155_v24  ;;  %v5174_v27 = vor.u32 %v5172_v53, %v5170_v63  ;;  %v6780_v35 = vor.u32 %v6778_v15, %v13526_v32  ;;  %vm15080_vm6 = vcmp.ne.s16.totalorder %v13030_v0, 0  ;;  %v11102_v24 = vld [vmem:[%s14932_s3 + $0x14] ss:$8 sps:$4 sm:$0xff]  }
 0x33f   : > { %7449 = vmatprep.subr.bf16.mxu0 %v11204_v47  ;;  %v6613_v47 = vsel %vm3595_vm4, 0, %v13323_v36  ;;  %v5171_v36 = vsel %vm3529_vm9, %v5166_v48, %v5170_v63  ;;  %vm15078_vm4 = vcmp.ne.s16.totalorder %v12607_v34, 0  ;;  %v5119_v26 = vsel %vm15080_vm6, 0, %v4950_v46  ;;  %v11097_v63 = vld [vmem:[%s14932_s3] ss:$8 sps:$4 sm:$0xff]   ;;  %vm15084_vm6 = vmmov %vm15074_vm12 }
 0x340   : > { %v5179_v16 = vsel %vm3529_vm9, %v5174_v27, %v5178_v56  ;;  %v6781_v51 = vsel %vm3125_vm11, %v13481_v14, %v6780_v35  ;;  %v6633_v39 = vshrl.u32 %v6613_v47, 16  ;;  %v6721_v14 = vsel %vm15078_vm4, 0, %v13539_v58  ;;  %5201 = vst.msk [vmem:[#allocation2 + $0xe0] sm:$0xff] %vm15079_vm14, %v5171_v36  ;;  %v11220_v27 = vld [vmem:[%s14931_s2 + $0x1c0] ss:$8 sps:$4 sm:$0xff]   ;;  %v5297_v35 = vpop.permute.xlu1 %5296  ;;  %vm15082_vm4 = vmmov %vm15079_vm14 }
 0x341   : > { %5202 = vst.msk [vmem:[#allocation2 + $0x108] sm:$0xff] %vm15077_vm3, %v5179_v16  ;;  %6802 = vrot.lane.b32.xlu1 %v6781_v51, %s11457_s12  ;;  %v5182_v53 = vor.u32 %v5180_v60, %v5178_v56  ;;  %v5184_v2 = vshll.u32 %v5119_v26, 16  ;;  %v6783_v30 = vshrl.u32 %v6721_v14, 16  ;;  %v6786_v15 = vshll.u32 %v6721_v14, 16  ;;  %vm15083_vm14 = vmmov %vm15082_vm4  ;;  %v11105_v36 = vld [vmem:[%s14932_s3 + $0x24] ss:$8 sps:$4 sm:$0xff]  }
 0x342   : > { %7450 = vmatpush1.bf16.msra.mxu0 %v11202_v25  ;;  %v13571_v28 = vrot.slane %v6633_v39, 7  ;;  %v6636_v25 = vshll.u32 %v6613_v47, 16  ;;  %vm15081_vm3 = vcmp.ne.s16.totalorder %v15042_v54, 0  ;;  %5317 = vst.msk [vmem:[#allocation2 + $0x90] sm:$0xff] %vm15074_vm12, %v5297_v35  ;;  %v11100_v39 = vld [vmem:[%s14932_s3 + $0x10] ss:$8 sps:$4 sm:$0xff]  }
 0x343   : > { %4643 = vmatmul.mubr.bf16.gmra.mrb[28].mxu1 %v11383_v11  ;;  %7451 = vmatprep.subr.bf16.mxu0 %v11210_v17  ;;  %v7945_v17 = vsel %vm15081_vm3, 0, %v7936_v6  ;;  %v6785_v56 = vrot.slane %v6783_v30, 7  ;;  %v11226_v26 = vld [vmem:[%s14931_s2 + $0x1d0] ss:$8 sps:$4 sm:$0xff]   ;;  %v11240_v30 = vld [vmem:[%s14931_s2 + $0x1f4] ss:$8 sps:$4 sm:$0xff]  }
 0x344   : > { %4685 = vmatprep.mubr.bf16.mxu1 %v15076_v13  ;;  %v6638_v44 = vor.u32 %v6636_v25, %v13571_v28  ;;  %v7957_v41 = vshll.u32 %v7945_v17, 16  ;;  %v7955_v11 = vshrl.u32 %v7945_v17, 16  ;;  %v6628_v25 = vshll.u32 %v13537_v5, 16  ;;  %v11106_v5 = vld [vmem:[%s14932_s3 + $0x30] ss:$8 sps:$4 sm:$0xff]  }
 0x345   : > { %7401 = vmatmul.mubr.bf16.gmra.mrb[92].mxu0 %v13564_v42  ;;  %v6788_v16 = vor.u32 %v6786_v15, %v6785_v56  ;;  %v13672_v35 = vld [vmem:[#allocation2 + $0x18] sm:$0xff] }
 0x346   : > { %7452 = vmatpush1.bf16.msra.mxu0 %v11208_v61  ;;  %7410 = vmatprep.mubr.bf16.mxu0 %v13210_v4  ;;  %v5186_v4 = vrot.slane %v5184_v2, 1  ;;  %v6602_v61 = vld [vmem:[#allocation3 + $0x18] sm:$0x80]  ;;  %v13597_v47 = vsel %vm3125_vm11, %v13585_v31, %v6638_v44  ;;  %v7959_v51 = vrot.slane %v7957_v41, 1  ;;  %v5299_v9 = vpop.permute.xlu0 %5298  ;;  %v11238_v41 = vld [vmem:[%s14931_s2 + $0x1f0] ss:$8 sps:$4 sm:$0xff]  }
 0x347   : > { %7453 = vmatprep.subr.bf16.mxu0 %v11216_v18  ;;  %v11228_v18 = vld [vmem:[%s14931_s2 + $0x1d4] ss:$8 sps:$4 sm:$0xff]   ;;  %5318 = vst.msk [vmem:[#allocation2 + $0xb8] sm:$0xff] %vm15084_vm6, %v5299_v9  ;;  %v6611_v46 = vsel %vm3593_vm2, 0, %v6602_v61  ;;  %v6789_v60 = vsel %vm3125_vm11, %v13526_v32, %v6788_v16  ;;  %vm15085_vm2 = vmmov %vm15082_vm4 }
 0x348   : > { %v5187_v48 = vsel %vm3529_vm9, %v5182_v53, %v5186_v4  ;;  %v7960_v14 = vor.u32 %v7959_v51, %v7955_v11  ;;  %6804 = vrot.lane.b32.xlu0 %v6789_v60, %s11457_s12  ;;  %v11103_v53 = vld [vmem:[%s14932_s3 + $0x20] ss:$8 sps:$4 sm:$0xff]   ;;  %v6621_v2 = vshrl.u32 %v6611_v46, 16  ;;  %v5301_v15 = vpop.permute.xlu1 %5300  ;;  %vm15090_vm12 = vmmov %vm15085_vm2 }
 0x349   : > { %5203 = vst.msk [vmem:[#allocation2 + $0x130] sm:$0xff] %vm15083_vm14, %v5187_v48  ;;  %v11114_v48 = vld [vmem:[%s14932_s3 + $0x54] ss:$8 sps:$4 sm:$0xff]   ;;  %v13683_v46 = vld [vmem:[#allocation2 + $0x60] sm:$0xff] }
 0x34a   : > { %7454 = vmatpush1.bf16.msra.mxu0 %v11214_v1  ;;  %v6614_v1 = vsel %vm3596_vm5, 0, %v13469_v59  ;;  %v7965_v32 = vsel %vm3529_vm9, %v7960_v14, %v13181_v7  ;;  %v11232_v7 = vld [vmem:[%s14931_s2 + $0x1e0] ss:$8 sps:$4 sm:$0xff]   ;;  %v6623_v17 = vrot.slane %v6621_v2, 7  ;;  %vm15086_vm5 = vmmov %vm15084_vm6 }
 0x34b   : > { %9984 = vmatmul.mubr.msk.bf16.vlgmr.msra.gmra.mrb[0].mxu1 %vm15082_vm4, %v13402_v12  ;;  %7455 = vmatprep.subr.bf16.mxu0 %v11222_v20  ;;  %v13610_v12 = vld [vmem:[#allocation2 + $0x38] sm:$0xff]  ;;  %v6641_v6 = vshrl.u32 %v6614_v1, 16  ;;  %v6615_v20 = vsel %vm3597_vm10, 0, %v13489_v22  ;;  %5319 = vst.msk [vmem:[#allocation2 + $0xe0] sm:$0xff] %vm15086_vm5, %v5301_v15  ;;  %v6644_v44 = vshll.u32 %v6614_v1, 16  ;;  %vm15087_vm10 = vmmov %vm15086_vm5  ;;  %v13685_v60 = vld [vmem:[#allocation3 + $0x50] sm:$0xff] }
 0x34c   : > { %5921 = vmatpush1.bf16.msra.mxu1 %v11097_v63  ;;  %4695 = vmatprep.mubr.bf16.mxu1 %v15076_v13  ;;  %6477 = vst [vmem:[#allocation2 + $0x38] sm:$0xff] %v13316_v33  ;;  %v6630_v63 = vor.u32 %v6628_v25, %v13585_v31  ;;  %v3945_v31 = vld [vmem:[#allocation2 + $0x70] sm:$0xff]  ;;  %vm15088_vm3 = vmmov %vm15086_vm5  ;;  %v6652_v51 = vshll.u32 %v6615_v20, 16 }
 0x34d   : > { %5922 = vmatprep.subr.bf16.mxu1 %v11102_v24  ;;  %7411 = vmatmul.mubr.bf16.gmra.mrb[96].mxu0 %v13616_v21  ;;  %v6643_v4 = vrot.slane %v6641_v6, 7  ;;  %v6649_v24 = vshrl.u32 %v6615_v20, 16  ;;  %v5305_v61 = vpop.permute.xlu1 %5304  ;;  %vm15089_vm4 = vmmov %vm15085_vm2  ;;  %6478 = vst [vmem:[#allocation2 + $0x60] sm:$0xff] %v13685_v60  ;;  %v11112_v1 = vld [vmem:[%s14932_s3 + $0x50] ss:$8 sps:$4 sm:$0xff]  }
 0x34e   : > { %7456 = vmatpush1.bf16.msra.mxu0 %v11220_v27  ;;  %7420 = vmatprep.mubr.bf16.mxu0 %v13337_v40  ;;  %v3940_v40 = vld [vmem:[#allocation2 + $0x48] sm:$0xff]  ;;  %v6631_v11 = vsel %vm3125_vm11, %v6623_v17, %v6630_v63  ;;  %5321 = vst.msk [vmem:[#allocation2 + $0x130] sm:$0xff] %vm15088_vm3, %v5305_v61  ;;  %vm15091_vm14 = vmmov %vm15088_vm3  ;;  %v13713_v20 = vld [vmem:[#allocation2 + $0x90] sm:$0xff] }
 0x34f   : > { %7457 = vmatprep.subr.bf16.mxu0 %v11228_v18  ;;  %8022 = vrot.lane.b32.xlu1 %v7965_v32, %s11457_s12  ;;  %v5303_v56 = vpop.permute.xlu0 %5302  ;;  %v11109_v27 = vld [vmem:[%s14932_s3 + $0x40] ss:$8 sps:$4 sm:$0xff]   ;;  %v6646_v18 = vor.u32 %v6644_v44, %v6643_v4  ;;  %v6651_v16 = vrot.slane %v6649_v24, 7  ;;  %vm15093_vm6 = vmmov %vm15088_vm3  ;;  %v6824_v24 = vld [vmem:[#allocation2 + $0x10] sm:$0xff] }
 0x350   : > { %5923 = vmatpush1.bf16.msra.mxu1 %v11100_v39  ;;  %5320 = vst.msk [vmem:[#allocation2 + $0x108] sm:$0xff] %vm15087_vm10, %v5303_v56  ;;  %v13679_v39 = vld [vmem:[#allocation3 + $0x68] sm:$0xff]  ;;  %v13698_v32 = vld [vmem:[#allocation2 + $0x68] sm:$0xff]  ;;  %vm15094_vm5 = vmmov %vm15088_vm3  ;;  %vm15095_vm10 = vcmp.ne.s16.totalorder %v12600_v29, 0 }
 0x351   : > { %5924 = vmatprep.subr.bf16.mxu1 %v11105_v36  ;;  %v13681_v36 = vld [vmem:[#allocation2 + $0x40] sm:$0xff]  ;;  %v6616_v14 = vsel %vm3598_vm13, 0, %v13679_v39  ;;  %vm15092_vm13 = vmmov %vm15085_vm2  ;;  %v13721_v17 = vld [vmem:[#allocation2 + $0x88] sm:$0xff] }
 0x352   : > { %7458 = vmatpush1.bf16.msra.mxu0 %v11226_v26  ;;  %v6657_v26 = vshrl.u32 %v6616_v14, 16  ;;  %v11115_v6 = vld [vmem:[%s14932_s3 + $0x60] ss:$8 sps:$4 sm:$0xff]   ;;  %vm15096_vm3 = vmmov %vm15085_vm2  ;;  %v13736_v29 = vld [vmem:[#allocation2 + $0xb8] sm:$0xff] }
 0x353   : > { %9985 = vmatmul.mubr.msk.bf16.gmra.mrb[4].mxu1 %vm15085_vm2, %v3940_v40  ;;  %7459 = vmatprep.subr.bf16.mxu0 %v11234_v45  ;;  %v6571_v9 = vpop.permute.xlu0 %6570  ;;  %v6573_v45 = vpop.permute.xlu1 %6572  ;;  %v6654_v40 = vor.u32 %v6652_v51, %v6651_v16  ;;  %v11121_v51 = vld [vmem:[%s14932_s3 + $0x80] ss:$8 sps:$4 sm:$0xff]  }
 0x354   : > { %5925 = vmatpush1.bf16.msra.mxu1 %v11103_v53  ;;  %4705 = vmatprep.mubr.bf16.mxu1 %v15076_v13  ;;  %6594 = vst.msk [vmem:[#allocation2 + $0x18] sm:$0xff] %vm15090_vm12, %v6571_v9  ;;  %v6647_v53 = vsel %vm3125_vm11, %v13571_v28, %v6646_v18  ;;  %v6659_v2 = vrot.slane %v6657_v26, 7  ;;  %v11120_v28 = vld [vmem:[%s14932_s3 + $0x74] ss:$8 sps:$4 sm:$0xff]   ;;  %vm15098_vm12 = vmmov %vm15094_vm5  ;;  %v3955_v9 = vld [vmem:[#allocation2 + $0xc0] sm:$0xff] }
 0x355   : > { %5926 = vmatprep.subr.bf16.mxu1 %v11108_v55  ;;  %7421 = vmatmul.mubr.bf16.gmra.mrb[100].mxu0 %v13544_v52  ;;  %6696 = vst.msk [vmem:[#allocation2 + $0x18] sm:$0xff] %vm15091_vm14, %v6631_v11  ;;  %v6660_v55 = vshll.u32 %v6616_v14, 16  ;;  %vm15099_vm14 = vmmov %vm15085_vm2  ;;  %v13747_v14 = vld [vmem:[#allocation2 + $0xe0] sm:$0xff] }
 0x356   : > { %7460 = vmatpush1.bf16.msra.mxu0 %v11232_v7  ;;  %6595 = vst.msk [vmem:[#allocation2 + $0x40] sm:$0xff] %vm15092_vm13, %v6573_v45  ;;  %v3950_v7 = vld [vmem:[#allocation2 + $0x98] sm:$0xff]  ;;  %vm15100_vm13 = vmmov %vm15094_vm5 }
 0x357   : > { %7461 = vmatprep.subr.bf16.mxu0 %v11240_v30  ;;  %6697 = vst.msk [vmem:[#allocation2 + $0x40] sm:$0xff] %vm15093_vm6, %v13597_v47  ;;  %v6575_v25 = vpop.permute.xlu0 %6574  ;;  %v6655_v47 = vsel %vm3125_vm11, %v6643_v4, %v6654_v40  ;;  %v6662_v30 = vor.u32 %v6660_v55, %v6659_v2  ;;  %vm15101_vm6 = vmmov %vm15085_vm2 }
 0x358   : > { %5927 = vmatpush1.bf16.msra.mxu1 %v11106_v5  ;;  %6596 = vst.msk [vmem:[#allocation2 + $0x68] sm:$0xff] %vm15085_vm2, %v6575_v25  ;;  %v13719_v5 = vld [vmem:[#allocation3 + $0x78] sm:$0xff] }
 0x359   : > { %5928 = vmatprep.subr.bf16.mxu1 %v11111_v37  ;;  %6698 = vst.msk [vmem:[#allocation2 + $0x68] sm:$0xff] %vm15094_vm5, %v6647_v53  ;;  %v13723_v37 = vld [vmem:[#allocation3 + $0x60] sm:$0xff]  ;;  %v6617_v63 = vsel %vm15095_vm10, 0, %v13719_v5  ;;  %v6663_v61 = vsel %vm3125_vm11, %v6651_v16, %v6662_v30  ;;  %v13757_v53 = vld [vmem:[#allocation3 + $0x70] sm:$0xff]  ;;  %vm15103_vm10 = vcmp.ne.s16.totalorder %v12607_v34, 0 }
 0x35a   : > { %7462 = vmatpush1.bf16.msra.mxu0 %v11238_v41  ;;  %6479 = vst [vmem:[#allocation2 + $0x88] sm:$0xff] %v13723_v37  ;;  %v6665_v4 = vshrl.u32 %v6617_v63, 16  ;;  %v6668_v56 = vshll.u32 %v6617_v63, 16  ;;  %v11118_v41 = vld [vmem:[%s14932_s3 + $0x70] ss:$8 sps:$4 sm:$0xff]  }
 0x35b   : > { %9986 = vmatmul.mubr.msk.bf16.gmra.mrb[8].mxu1 %vm15089_vm4, %v3945_v31  ;;  %v6577_v15 = vpop.permute.xlu0 %6576  ;;  %vm15097_vm4 = vmmov %vm15085_vm2  ;;  %v11126_v16 = vld [vmem:[%s14932_s3 + $0x94] ss:$8 sps:$4 sm:$0xff]   ;;  %v11127_v30 = vld [vmem:[%s14932_s3 + $0xa0] ss:$8 sps:$4 sm:$0xff]  }
 0x35c   : > { %5929 = vmatpush1.bf16.msra.mxu1 %v11109_v27  ;;  %4715 = vmatprep.mubr.bf16.mxu1 %v15076_v13  ;;  %v6825_v44 = vld [vmem:[#allocation2 + $0x18] sm:$0xff]  ;;  %6597 = vst.msk [vmem:[#allocation2 + $0x90] sm:$0xff] %vm15097_vm4, %v6577_v15  ;;  %v11123_v27 = vld [vmem:[%s14932_s3 + $0x84] ss:$8 sps:$4 sm:$0xff]   ;;  %vm15105_vm4 = vmmov %vm15094_vm5 }
 0x35d   : > { %5930 = vmatprep.subr.bf16.mxu1 %v11114_v48  ;;  %6699 = vst.msk [vmem:[#allocation2 + $0x90] sm:$0xff] %vm15098_vm12, %v6655_v47  ;;  %7463 = vmatprep.mubr.bf16.mxu0 %v6825_v44  ;;  %v6667_v48 = vrot.slane %v6665_v4, 7  ;;  %v3960_v15 = vld [vmem:[#allocation2 + $0xe8] sm:$0xff]  ;;  %v11132_v63 = vld [vmem:[%s14932_s3 + $0xb4] ss:$8 sps:$4 sm:$0xff]   ;;  %vm15106_vm12 = vcmp.ne.s16.totalorder %v12945_v62, 0 }
 0x35e   : > { %v6830_v31 = vld [vmem:[#allocation2 + $0x40] sm:$0xff]  ;;  %7464 = vmatmul.mubr.bf16.vlgmr.msra.gmra.mrb[72].mxu0 %v6824_v24  ;;  %v13783_v4 = vld [vmem:[#allocation3 + $0x98] sm:$0xff]  ;;  %v11130_v34 = vld [vmem:[%s14932_s3 + $0xb0] ss:$8 sps:$4 sm:$0xff]  }
 0x35f   : > { %v6579_v11 = vpop.permute.xlu0 %6578  ;;  %7473 = vmatprep.mubr.bf16.mxu0 %v6830_v31  ;;  %v6670_v18 = vor.u32 %v6668_v56, %v6667_v48  ;;  %v13788_v56 = vld [vmem:[#allocation3 + $0x80] sm:$0xff] }
 0x360   : > { %5931 = vmatpush1.bf16.msra.mxu1 %v11112_v1  ;;  %6598 = vst.msk [vmem:[#allocation2 + $0xb8] sm:$0xff] %vm15099_vm14, %v6579_v11  ;;  %v13753_v1 = vld [vmem:[#allocation3 + $0x88] sm:$0xff]  ;;  %v13796_v31 = vld [vmem:[#allocation3 + $0x40] sm:$0xff]  ;;  %v13801_v11 = vsel %vm15106_vm12, 0, %v13685_v60  ;;  %vm15107_vm14 = vcmp.ne.s16.totalorder %v12882_v57, 0 }
 0x361   : > { %5932 = vmatprep.subr.bf16.mxu1 %v11117_v10  ;;  %6700 = vst.msk [vmem:[#allocation2 + $0xb8] sm:$0xff] %vm15100_vm13, %v6663_v61  ;;  %v6671_v26 = vsel %vm3125_vm11, %v6659_v2, %v6670_v18  ;;  %v13755_v10 = vld [vmem:[#allocation2 + $0xb0] sm:$0xff]  ;;  %v6618_v40 = vsel %vm3600_vm15, 0, %v13753_v1  ;;  %vm15102_vm15 = vmmov %vm15085_vm2  ;;  %vm15108_vm13 = vcmp.ne.s16.totalorder %v12914_v3, 0 }
 0x362   : > { %6480 = vst [vmem:[#allocation2 + $0xb0] sm:$0xff] %v13757_v53  ;;  %v6673_v55 = vshrl.u32 %v6618_v40, 16  ;;  %v6676_v25 = vshll.u32 %v6618_v40, 16  ;;  %v11124_v2 = vld [vmem:[%s14932_s3 + $0x90] ss:$8 sps:$4 sm:$0xff]   ;;  %vm15117_vm12 = vmmov %vm15107_vm14 }
 0x363   : > { %9987 = vmatmul.mubr.msk.bf16.gmra.mrb[12].mxu1 %vm15096_vm3, %v3950_v7  ;;  %v6581_v45 = vpop.permute.xlu0 %6580  ;;  %vm15104_vm3 = vmmov %vm15085_vm2 }
 0x364   : > { %5933 = vmatpush1.bf16.msra.mxu1 %v11115_v6  ;;  %4725 = vmatprep.mubr.bf16.mxu1 %v15076_v13  ;;  %6599 = vst.msk [vmem:[#allocation2 + $0xe0] sm:$0xff] %vm15085_vm2, %v6581_v45  ;;  %v6835_v6 = vld [vmem:[#allocation2 + $0x68] sm:$0xff]  ;;  %v6675_v7 = vrot.slane %v6673_v55, 7  ;;  %v6840_v18 = vld [vmem:[#allocation2 + $0x90] sm:$0xff] }
 0x365   : > { %5934 = vmatprep.subr.bf16.mxu1 %v11120_v28  ;;  %6701 = vst.msk [vmem:[#allocation2 + $0xe0] sm:$0xff] %vm15094_vm5, %v6671_v26  ;;  %v13774_v28 = vld [vmem:[#allocation2 + $0x108] sm:$0xff]  ;;  %vm15111_vm5 = vmmov %vm15085_vm2 }
 0x366   : > { %7474 = vmatmul.mubr.bf16.gmra.mrb[76].mxu0 %v13316_v33  ;;  %v6678_v47 = vor.u32 %v6676_v25, %v6675_v7  ;;  %v13786_v33 = vld [vmem:[#allocation2 + $0xd8] sm:$0xff]  ;;  %v11135_v26 = vld [vmem:[%s14932_s3 + $0xc4] ss:$8 sps:$4 sm:$0xff]  }
 0x367   : > { %7483 = vmatprep.mubr.bf16.mxu0 %v6835_v6  ;;  %6481 = vst [vmem:[#allocation2 + $0xd8] sm:$0xff] %v13788_v56 }
 0x368   : > { %5935 = vmatpush1.bf16.msra.mxu1 %v11118_v41  ;;  %v6679_v44 = vsel %vm3125_vm11, %v6667_v48, %v6678_v47  ;;  %v6619_v41 = vsel %vm15103_vm10, 0, %v13783_v4  ;;  %vm15113_vm10 = vcmp.ne.s16.totalorder %v15042_v54, 0 }
 0x369   : > { %5936 = vmatprep.subr.bf16.mxu1 %v11123_v27  ;;  %v6583_v24 = vpop.permute.xlu0 %6582  ;;  %v7835_v27 = vld [vmem:[#allocation3 + $0x30] sm:$0xff]  ;;  %v6681_v61 = vshrl.u32 %v6619_v41, 16  ;;  %v6684_v48 = vshll.u32 %v6619_v41, 16  ;;  %v3965_v41 = vld [vmem:[#allocation2 + $0x110] sm:$0xff] }
 0x36a   : > { %6600 = vst.msk [vmem:[#allocation2 + $0x108] sm:$0xff] %vm15102_vm15, %v6583_v24  ;;  %v11133_v24 = vld [vmem:[%s14932_s3 + $0xc0] ss:$8 sps:$4 sm:$0xff]   ;;  %vm15112_vm15 = vmmov %vm15085_vm2 }
 0x36b   : > { %9988 = vmatmul.mubr.msk.bf16.gmra.mrb[16].mxu1 %vm15101_vm6, %v3955_v9  ;;  %6702 = vst.msk [vmem:[#allocation2 + $0x108] sm:$0xff] %vm15105_vm4, %v6679_v44  ;;  %v7845_v9 = vsel %vm15108_vm13, 0, %v13796_v31  ;;  %v6683_v25 = vrot.slane %v6681_v61, 7  ;;  %v11138_v61 = vld [vmem:[%s14932_s3 + $0xd4] ss:$8 sps:$4 sm:$0xff]   ;;  %vm15109_vm6 = vmmov %vm15085_vm2 }
 0x36c   : > { %5937 = vmatpush1.bf16.msra.mxu1 %v11121_v51  ;;  %4735 = vmatprep.mubr.bf16.mxu1 %v15076_v13  ;;  %v7844_v51 = vsel %vm15107_vm14, 0, %v7835_v27  ;;  %v7868_v55 = vshll.u32 %v7845_v9, 16  ;;  %v7872_v6 = vshrl.u32 %v7845_v9, 16  ;;  %vm15118_vm14 = vmmov %vm15108_vm13 }
 0x36d   : > { %5938 = vmatprep.subr.bf16.mxu1 %v11126_v16  ;;  %v7876_v16 = vshll.u32 %v13801_v11, 16  ;;  %v7860_v45 = vshll.u32 %v7844_v51, 16  ;;  %v7864_v40 = vshrl.u32 %v7844_v51, 16  ;;  %v6585_v9 = vpop.permute.xlu0 %6584  ;;  %vm15119_vm13 = vmmov %vm15085_vm2 }
 0x36e   : > { %7484 = vmatmul.mubr.bf16.gmra.mrb[80].mxu0 %v13685_v60 }
 0x36f   : > { %7493 = vmatprep.mubr.bf16.mxu0 %v6840_v18  ;;  %v13819_v47 = vrot.slane %v7860_v45, 1  ;;  %v7878_v44 = vrot.slane %v7876_v16, 1  ;;  %v11136_v45 = vld [vmem:[%s14932_s3 + $0xd0] ss:$8 sps:$4 sm:$0xff]  }
 0x370   : > { %5939 = vmatpush1.bf16.msra.mxu1 %v11124_v2  ;;  %v8025_v2 = vpop.permute.xlu1 %8024 }
 0x371   : > { %5940 = vmatprep.subr.bf16.mxu1 %v11129_v38  ;;  %v13817_v38 = vld [vmem:[#allocation2 + $0x100] sm:$0xff]  ;;  %v7866_v18 = vor.u32 %v7864_v40, %v13819_v47 }
 0x372   : > { %6482 = vst [vmem:[#allocation2 + $0x100] sm:$0xff] %v13544_v52 }
 0x373   : > { %9989 = vmatmul.mubr.msk.bf16.gmra.mrb[20].mxu1 %vm15104_vm3, %v3960_v15  ;;  %v13821_v15 = vld [vmem:[#allocation2 + $0x130] sm:$0xff]  ;;  %vm15115_vm3 = vmmov %vm15105_vm4 }
 0x374   : > { %5941 = vmatpush1.bf16.msra.mxu1 %v11127_v30  ;;  %4745 = vmatprep.mubr.bf16.mxu1 %v15076_v13  ;;  %v7870_v30 = vrot.slane %v7868_v55, 1  ;;  %6601 = vst.msk [vmem:[#allocation2 + $0x130] sm:$0xff] %vm15109_vm6, %v6585_v9  ;;  %v7847_v55 = vsel %vm5106_vm1, 0, %v13723_v37  ;;  %vm15120_vm6 = vmmov %vm15115_vm3 }
 0x375   : > { %5942 = vmatprep.subr.bf16.mxu1 %v11132_v63  ;;  %v6686_v63 = vor.u32 %v6684_v48, %v6683_v25  ;;  %v7880_v25 = vshrl.u32 %v13801_v11, 16  ;;  %v13863_v11 = vsel %vm15113_vm10, 0, %v7835_v27  ;;  %vm15125_vm10 = vmmov %vm15085_vm2 }
 0x376   : > { %v7874_v48 = vor.u32 %v7872_v6, %v7870_v30  ;;  %v11258_v6 = vld [vmem:[%s14931_s2 + $0x214] ss:$8 sps:$4 sm:$0xff]   ;;  %7494 = vmatmul.mubr.bf16.gmra.mrb[84].mxu0 %v13723_v37 }
 0x377   : > { %v6687_v51 = vsel %vm3125_vm11, %v6675_v7, %v6686_v63  ;;  %v7871_v7 = vsel %vm3529_vm9, %v7866_v18, %v7870_v30  ;;  %vm15110_vm11 = vmmov %vm15105_vm4  ;;  %v6845_v63 = vld [vmem:[#allocation2 + $0xb8] sm:$0xff]  ;;  %v7884_v30 = vshll.u32 %v7847_v55, 16  ;;  %v7888_v18 = vshrl.u32 %v7847_v55, 16 }
 0x378   : > { %5943 = vmatpush1.bf16.msra.mxu1 %v11130_v34  ;;  %v11255_v34 = vld [vmem:[%s14931_s2 + $0x204] ss:$8 sps:$4 sm:$0xff]   ;;  %6703 = vst.msk [vmem:[#allocation2 + $0x130] sm:$0xff] %vm15110_vm11, %v6687_v51  ;;  %v7879_v40 = vsel %vm3529_vm9, %v7874_v48, %v7878_v44  ;;  %vm15116_vm4 = vmmov %vm15115_vm3  ;;  %v7882_v9 = vor.u32 %v7880_v25, %v7878_v44  ;;  %v11256_v48 = vld [vmem:[%s14931_s2 + $0x210] ss:$8 sps:$4 sm:$0xff]   ;;  %v8075_v44 = vshll.u32 %v13863_v11, 16  ;;  %7503 = vmatprep.mubr.bf16.mxu0 %v6845_v63 }
 0x379   : > { %5944 = vmatprep.subr.bf16.mxu1 %v11135_v26  ;;  %v11253_v26 = vld [vmem:[%s14931_s2 + $0x200] ss:$8 sps:$4 sm:$0xff]   ;;  %7544 = vmatprep.subr.bf16.mxu0 %v11255_v34  ;;  %7929 = vst.msk [vmem:[#allocation2 + $0x40] sm:$0xff] %vm15111_vm5, %v7871_v7  ;;  %v3970_v55 = vld [vmem:[#allocation2 + $0x138] sm:$0xff]  ;;  %vm15122_vm11 = vmmov %vm15085_vm2 }
 0x37a   : > { %v8027_v16 = vpop.permute.xlu1 %8026  ;;  %7930 = vst.msk [vmem:[#allocation2 + $0x68] sm:$0xff] %vm15112_vm15, %v7879_v40  ;;  %v13865_v51 = vld [vmem:[#allocation2 + $0x128] sm:$0xff]  ;;  %7545 = vmatpush1.bf16.msra.mxu0 %v11253_v26  ;;  %vm15123_vm5 = vmmov %vm15115_vm3 }
 0x37b   : > { %9990 = vmatmul.mubr.msk.bf16.gmra.mrb[24].mxu1 %vm15085_vm2, %v3965_v41  ;;  %v13859_v41 = vsel %vm5107_vm0, 0, %v13757_v53  ;;  %15114 = vst [vmem:[#allocation17_spill] sm:$0xff] %v13865_v51  ;;  %8047 = vst.msk [vmem:[#allocation2 + $0x40] sm:$0xff] %vm15115_vm3, %v8025_v2  ;;  %7546 = vmatprep.subr.bf16.mxu0 %v11258_v6  ;;  %v13881_v2 = vsel %vm15117_vm12, 0, %v13796_v31  ;;  %v11139_v40 = vld [vmem:[%s14932_s3 + $0xe0] ss:$8 sps:$4 sm:$0xff]  }
 0x37c   : > { %5945 = vmatpush1.bf16.msra.mxu1 %v11133_v24  ;;  %4755 = vmatprep.mubr.bf16.mxu1 %v15076_v13  ;;  %v11141_v24 = vld [vmem:[%s14932_s3 + $0xe4] ss:$8 sps:$4 sm:$0xff]   ;;  %8048 = vst.msk [vmem:[#allocation2 + $0x68] sm:$0xff] %vm15116_vm4, %v8027_v16  ;;  %v7892_v27 = vshll.u32 %v13859_v41, 16  ;;  %6483 = vst [vmem:[#allocation2 + $0x128] sm:$0xff] %v13539_v58  ;;  %v5333_v16 = vsel %vm15118_vm14, 0, %v13469_v59 }
 0x37d   : > { %5946 = vmatprep.subr.bf16.mxu1 %v11138_v61  ;;  %v7886_v61 = vrot.slane %v7884_v30, 1  ;;  %v5356_v7 = vshll.u32 %v5333_v16, 16  ;;  %v11144_v31 = vld [vmem:[%s14932_s3 + $0xf4] ss:$8 sps:$4 sm:$0xff]   ;;  %v8080_v59 = vshll.u32 %v13881_v2, 16  ;;  %v13901_v30 = vld [vmem:[#allocation2 + $0x20] sm:$0xff]  ;;  %vm15124_vm15 = vmmov %vm15085_vm2 }
 0x37e   : > { %v8029_v34 = vpop.permute.xlu1 %8028  ;;  %v7894_v26 = vrot.slane %v7892_v27, 1  ;;  %7547 = vmatpush1.bf16.msra.mxu0 %v11256_v48  ;;  %15121 = vst [vmem:[#allocation9_spill] sm:$0xff] %v13901_v30  ;;  %v11142_v48 = vld [vmem:[%s14932_s3 + $0xf0] ss:$8 sps:$4 sm:$0xff]   ;;  %vm15126_vm3 = vcmp.ne.s16.totalorder %v12945_v62, 0  ;;  %vm15127_vm4 = vmmov %vm15085_vm2 }
 0x37f   : > { %v7887_v25 = vsel %vm3529_vm9, %v7882_v9, %v7886_v61  ;;  %v7890_v57 = vor.u32 %v7888_v18, %v7886_v61  ;;  %v5358_v6 = vrot.slane %v5356_v7, 1  ;;  %v8073_v18 = vshrl.u32 %v13863_v11, 16  ;;  %v11259_v9 = vld [vmem:[%s14931_s2 + $0x220] ss:$8 sps:$4 sm:$0xff]   ;;  %v11147_v7 = vld [vmem:[%s14932_s3 + $0x104] ss:$8 sps:$4 sm:$0xff]   ;;  %7504 = vmatmul.mubr.bf16.gmra.mrb[88].mxu0 %v13757_v53  ;;  %vm15128_vm12 = vmmov %vm15123_vm5 }
 0x380   : > { %5947 = vmatpush1.bf16.msra.mxu1 %v11136_v45  ;;  %7931 = vst.msk [vmem:[#allocation2 + $0x90] sm:$0xff] %vm15119_vm13, %v7887_v25  ;;  %v11261_v45 = vld [vmem:[%s14931_s2 + $0x224] ss:$8 sps:$4 sm:$0xff]   ;;  %v7849_v61 = vsel %vm5108_vm8, 0, %v13788_v56  ;;  %v7896_v11 = vshrl.u32 %v13859_v41, 16  ;;  %v7850_v41 = vsel %vm5109_vm7, 0, %v13544_v52  ;;  %vm15129_vm14 = vmmov %vm15085_vm2 }
 0x381   : > { %5948 = vmatprep.subr.bf16.mxu1 %v11141_v24  ;;  %8049 = vst.msk [vmem:[#allocation2 + $0x90] sm:$0xff] %vm15120_vm6, %v8029_v34  ;;  %v7895_v63 = vsel %vm3529_vm9, %v7890_v57, %v7894_v26  ;;  %v8077_v24 = vrot.slane %v8075_v44, 1  ;;  %7548 = vmatprep.subr.bf16.mxu0 %v11261_v45  ;;  %v11264_v34 = vld [vmem:[%s14931_s2 + $0x234] ss:$8 sps:$4 sm:$0xff]   ;;  %v5359_v44 = vsel %vm3529_vm9, %v13213_v49, %v5358_v6  ;;  %v7900_v57 = vshll.u32 %v7849_v61, 16  ;;  %vm15130_vm13 = vmmov %vm15085_vm2 }
 0x382   : > { %v8031_v27 = vpop.permute.xlu1 %8030  ;;  %7932 = vst.msk [vmem:[#allocation2 + $0xb8] sm:$0xff] %vm15122_vm11, %v7895_v63  ;;  %v7904_v45 = vshrl.u32 %v7849_v61, 16  ;;  %v13930_v49 = vrot.slane %v8080_v59, 1  ;;  %7549 = vmatpush1.bf16.msra.mxu0 %v11259_v9  ;;  %v7908_v63 = vshll.u32 %v7850_v41, 16  ;;  %vm15131_vm6 = vmmov %vm15085_vm2  ;;  %vm15132_vm11 = vcmp.ne.s16.totalorder %v13030_v0, 0 }
 0x383   : > { %9991 = vmatmul.mubr.msk.bf16.gmra.mrb[28].mxu1 %vm15085_vm2, %v3970_v55  ;;  %v6850_v55 = vld [vmem:[#allocation2 + $0xe0] sm:$0xff]  ;;  %8050 = vst.msk [vmem:[#allocation2 + $0xb8] sm:$0xff] %vm15123_vm5, %v8031_v27  ;;  %v6791_v25 = vpop.permute.xlu0 %6790  ;;  %v5334_v27 = vsel %vm15126_vm3, 0, %v13489_v22  ;;  %v8078_v61 = vor.u32 %v8077_v24, %v8073_v18  ;;  %7550 = vmatprep.subr.bf16.mxu0 %v11264_v34  ;;  %v11153_v22 = vld [vmem:[%s14932_s3 + $0x114] ss:$8 sps:$4 sm:$0xff]   ;;  %v6855_v24 = vld [vmem:[#allocation2 + $0x108] sm:$0xff] }
 0x384   : > { %5949 = vmatpush1.bf16.msra.mxu1 %v11139_v40  ;;  %5952 = vmatprep.mubr.bf16.mxu1 %v13395_v50  ;;  %5417 = vst.msk [vmem:[#allocation2 + $0x48] sm:$0xff] %vm15124_vm15, %v5359_v44  ;;  %v7898_v50 = vor.u32 %v7896_v11, %v7894_v26  ;;  %v11262_v40 = vld [vmem:[%s14931_s2 + $0x230] ss:$8 sps:$4 sm:$0xff]   ;;  %v7902_v44 = vrot.slane %v7900_v57, 1  ;;  %v5364_v59 = vshll.u32 %v5334_v27, 16  ;;  %vm15133_vm15 = vmmov %vm15085_vm2 }
 0x385   : > { %5950 = vmatprep.subr.bf16.mxu1 %v11144_v31  ;;  %6814 = vst.msk [vmem:[#allocation2 + $0x20] sm:$0xff] %vm15125_vm10, %v6791_v25  ;;  %v5360_v31 = vshrl.u32 %v5333_v16, 16  ;;  %7513 = vmatprep.mubr.bf16.mxu0 %v6850_v55  ;;  %v7910_v25 = vrot.slane %v7908_v63, 1  ;;  %v11145_v26 = vld [vmem:[%s14932_s3 + $0x100] ss:$8 sps:$4 sm:$0xff]   ;;  %v7912_v63 = vshrl.u32 %v7850_v41, 16  ;;  %vm15135_vm3 = vmmov %vm15085_vm2 }
 0x386   : > { %v7903_v9 = vsel %vm3529_vm9, %v7898_v50, %v7902_v44  ;;  %v7906_v11 = vor.u32 %v7904_v45, %v7902_v44  ;;  %v5366_v51 = vrot.slane %v5364_v59, 1  ;;  %7551 = vmatpush1.bf16.msra.mxu0 %v11262_v40  ;;  %v11270_v16 = vld [vmem:[%s14932_s3 + $0x104] ss:$8 sps:$4 sm:$0xff]   ;;  %v11151_v45 = vld [vmem:[%s14932_s3 + $0x110] ss:$8 sps:$4 sm:$0xff]   ;;  %v5368_v41 = vshrl.u32 %v5334_v27, 16 }
 0x387   : > { %v5362_v30 = vor.u32 %v5360_v31, %v5358_v6  ;;  %7933 = vst.msk [vmem:[#allocation2 + $0xe0] sm:$0xff] %vm15127_vm4, %v7903_v9  ;;  %8765 = vmatprep.subr.bf16.mxu0 %v11270_v16  ;;  %v11387_v50 = vld [vmem:[#allocation2 + $0x10] sm:$0xff]  ;;  %v5335_v31 = vsel %vm5106_vm1, 0, %v13679_v39  ;;  %7514 = vmatmul.mubr.bf16.gmra.mrb[92].mxu0 %v13788_v56  ;;  %vm15134_vm10 = vcmp.ne.s16.totalorder %v12914_v3, 0  ;;  %vm15136_vm4 = vmmov %vm15123_vm5  ;;  %v11171_v3 = vld [vmem:[%s14932_s3 + $0x144] ss:$8 sps:$4 sm:$0xff]  }
 0x388   : > { %5951 = vmatpush1.bf16.msra.mxu1 %v11142_v48  ;;  %v8083_v48 = vsel %vm3529_vm9, %v8078_v61, %v13930_v49  ;;  %v7911_v6 = vsel %vm3529_vm9, %v7906_v11, %v7910_v25  ;;  %v11159_v61 = vld [vmem:[%s14932_s3 + $0x124] ss:$8 sps:$4 sm:$0xff]   ;;  %v5372_v11 = vshll.u32 %v5335_v31, 16  ;;  %7523 = vmatprep.mubr.bf16.mxu0 %v6855_v24  ;;  %v5370_v16 = vor.u32 %v5368_v41, %v5366_v51  ;;  %v11165_v39 = vld [vmem:[%s14932_s3 + $0x134] ss:$8 sps:$4 sm:$0xff]  }
 0x389   : > { %6033 = vmatprep.subr.bf16.mxu1 %v11147_v7  ;;  %v8033_v18 = vpop.permute.xlu1 %8032  ;;  %v5367_v34 = vsel %vm3529_vm9, %v5362_v30, %v5366_v51  ;;  %v11386_v7 = vld [vmem:[#allocation3 + $0x18] sm:$0xff]  ;;  %7934 = vst.msk [vmem:[#allocation2 + $0x108] sm:$0xff] %vm15129_vm14, %v7911_v6  ;;  %v7842_v30 = vld [vmem:[#allocation3 + $0xa0] sm:$0x1]  ;;  %v8065_v51 = vsel %vm15134_vm10, 0, %v13685_v60  ;;  %vm15138_vm14 = vmmov %vm15085_vm2 }
 0x38a   : > { %8051 = vst.msk [vmem:[#allocation2 + $0xe0] sm:$0xff] %vm15128_vm12, %v8033_v18  ;;  %v6793_v57 = vpop.permute.xlu0 %6792  ;;  %v7851_v44 = vsel %vm15132_vm11, 0, %v7842_v30  ;;  %v8088_v30 = vshll.u32 %v8065_v51, 16  ;;  %vm15137_vm12 = vmmov %vm15085_vm2 }
 0x38b   : > { %5953 = vmatmul.mubr.bf16.vlgmr.msra.gmra.mrb[32].mxu1 %v11386_v7  ;;  %v13957_v55 = vld [vmem:[#allocation2 + $0x48] sm:$0xff]  ;;  %5418 = vst.msk [vmem:[#allocation2 + $0x70] sm:$0xff] %vm15130_vm13, %v5367_v34  ;;  %v7916_v9 = vshll.u32 %v7851_v44, 16  ;;  %v11388_v34 = vld [vmem:[#allocation3 + $0x28] sm:$0xff]  ;;  %v8084_v7 = vshrl.u32 %v13881_v2, 16  ;;  %v5336_v2 = vsel %vm5107_vm0, 0, %v13719_v5  ;;  %vm15139_vm13 = vmmov %vm15085_vm2 }
 0x38c   : > { %6034 = vmatpush1.bf16.msra.mxu1 %v11145_v26  ;;  %5962 = vmatprep.mubr.bf16.mxu1 %v11387_v50  ;;  %v13963_v40 = vld [vmem:[#allocation2 + $0x20] sm:$0xff]  ;;  %6815 = vst.msk [vmem:[#allocation2 + $0x48] sm:$0xff] %vm15131_vm6, %v6793_v57  ;;  %v7914_v26 = vor.u32 %v7912_v63, %v7910_v25  ;;  %v6860_v25 = vld [vmem:[#allocation2 + $0x130] sm:$0xff]  ;;  %v5376_v44 = vshrl.u32 %v5335_v31, 16  ;;  %vm15140_vm6 = vcmp.ne.s16.totalorder %v12945_v62, 0  ;;  %vm15141_vm11 = vmmov %vm15085_vm2 }
 0x38d   : > { %6035 = vmatprep.subr.bf16.mxu1 %v11153_v22  ;;  %8148 = vst.msk [vmem:[#allocation2 + $0x20] sm:$0xff] %vm15085_vm2, %v8083_v48  ;;  %v11157_v22 = vld [vmem:[%s14932_s3 + $0x120] ss:$8 sps:$4 sm:$0xff]   ;;  %v7918_v18 = vrot.slane %v7916_v9, 1  ;;  %v5374_v48 = vrot.slane %v5372_v11, 1  ;;  %v8086_v60 = vor.u32 %v8084_v7, %v13930_v49  ;;  %vm15144_vm10 = vmmov %vm15085_vm2 }
 0x38e   : > { %v8035_v59 = vpop.permute.xlu1 %8034  ;;  %v11163_v57 = vld [vmem:[%s14932_s3 + $0x130] ss:$8 sps:$4 sm:$0xff]   ;;  %v11181_v7 = vld [vmem:[%s14932_s3 + $0x160] ss:$8 sps:$4 sm:$0xff]  }
 0x38f   : > { %8052 = vst.msk [vmem:[#allocation2 + $0x108] sm:$0xff] %vm15123_vm5, %v8035_v59  ;;  %v7919_v27 = vsel %vm3529_vm9, %v7914_v26, %v7918_v18  ;;  %v5375_v24 = vsel %vm3529_vm9, %v5370_v16, %v5374_v48  ;;  %7524 = vmatmul.mubr.bf16.gmra.mrb[96].mxu0 %v13544_v52  ;;  %v5380_v59 = vshll.u32 %v5336_v2, 16  ;;  %v11169_v26 = vld [vmem:[%s14932_s3 + $0x140] ss:$8 sps:$4 sm:$0xff]   ;;  %v5378_v41 = vor.u32 %v5376_v44, %v5374_v48  ;;  %v11177_v52 = vld [vmem:[%s14932_s3 + $0x154] ss:$8 sps:$4 sm:$0xff]   ;;  %vm15142_vm5 = vmmov %vm15085_vm2 }
 0x390   : > { %6036 = vmatpush1.bf16.msra.mxu1 %v11151_v45  ;;  %7935 = vst.msk [vmem:[#allocation2 + $0x130] sm:$0xff] %vm15133_vm15, %v7919_v27  ;;  %v11389_v45 = vld [vmem:[#allocation3 + $0x40] sm:$0xff]  ;;  %7533 = vmatprep.mubr.bf16.mxu0 %v6860_v25  ;;  %v11390_v18 = vld [vmem:[#allocation3 + $0x38] sm:$0xff]  ;;  %v14023_v16 = vsel %vm15140_vm6, 0, %v13723_v37  ;;  %v8092_v48 = vshrl.u32 %v8065_v51, 16  ;;  %v11391_v25 = vld [vmem:[#allocation3 + $0x50] sm:$0xff] }
 0x391   : > { %6037 = vmatprep.subr.bf16.mxu1 %v11159_v61  ;;  %5419 = vst.msk [vmem:[#allocation2 + $0x98] sm:$0xff] %vm15135_vm3, %v5375_v24  ;;  %v8090_v61 = vrot.slane %v8088_v30, 1  ;;  %v5382_v5 = vrot.slane %v5380_v59, 1  ;;  %v8096_v27 = vshll.u32 %v14023_v16, 16  ;;  %v5337_v37 = vsel %vm5108_vm8, 0, %v13753_v1  ;;  %v11393_v59 = vld [vmem:[#allocation3 + $0x60] sm:$0xff]  ;;  %vm15143_vm15 = vmmov %vm15085_vm2 }
 0x392   : > { %v8037_v6 = vpop.permute.xlu1 %8036  ;;  %v13995_v50 = vld [vmem:[#allocation2 + $0x70] sm:$0xff]  ;;  %v5388_v51 = vshll.u32 %v5337_v37, 16  ;;  %vm15145_vm3 = vmmov %vm15085_vm2 }
 0x393   : > { %5963 = vmatmul.mubr.bf16.gmra.mrb[36].mxu1 %v11388_v34  ;;  %8053 = vst.msk [vmem:[#allocation2 + $0x130] sm:$0xff] %vm15136_vm4, %v8037_v6  ;;  %v14009_v9 = vld [vmem:[#allocation2 + $0x48] sm:$0xff]  ;;  %v8091_v49 = vsel %vm3529_vm9, %v8086_v60, %v8090_v61  ;;  %v6797_v11 = vpop.permute.xlu0 %6796  ;;  %v8094_v62 = vor.u32 %v8092_v48, %v8090_v61  ;;  %v8098_v24 = vrot.slane %v8096_v27, 1  ;;  %v5384_v34 = vshrl.u32 %v5336_v2, 16  ;;  %v11189_v1 = vld [vmem:[%s14932_s3 + $0x174] ss:$8 sps:$4 sm:$0xff]   ;;  %vm15147_vm4 = vmmov %vm15085_vm2 }
 0x394   : > { %6038 = vmatpush1.bf16.msra.mxu1 %v11157_v22  ;;  %5972 = vmatprep.mubr.bf16.mxu1 %v11389_v45  ;;  %8149 = vst.msk [vmem:[#allocation2 + $0x48] sm:$0xff] %vm15138_vm14, %v8091_v49  ;;  %v5383_v22 = vsel %vm3529_vm9, %v5378_v41, %v5382_v5  ;;  %v11183_v6 = vld [vmem:[%s14932_s3 + $0x164] ss:$8 sps:$4 sm:$0xff]   ;;  %v5390_v30 = vrot.slane %v5388_v51, 1  ;;  %v11392_v2 = vld [vmem:[#allocation2 + $0x58] sm:$0xff]  ;;  %v5338_v41 = vsel %vm5109_vm7, 0, %v13783_v4  ;;  %vm15149_vm14 = vmmov %vm15085_vm2 }
 0x395   : > { %6039 = vmatprep.subr.bf16.mxu1 %v11165_v39  ;;  %5420 = vst.msk [vmem:[#allocation2 + $0xc0] sm:$0xff] %vm15085_vm2, %v5383_v22  ;;  %v11175_v39 = vld [vmem:[%s14932_s3 + $0x150] ss:$8 sps:$4 sm:$0xff]   ;;  %v8099_v45 = vsel %vm3529_vm9, %v8094_v62, %v8098_v24  ;;  %v11195_v49 = vld [vmem:[%s14932_s3 + $0x184] ss:$8 sps:$4 sm:$0xff]  }
 0x396   : > { %v6795_v63 = vpop.permute.xlu1 %6794  ;;  %v11187_v44 = vld [vmem:[%s14932_s3 + $0x170] ss:$8 sps:$4 sm:$0xff]   ;;  %v11193_v22 = vld [vmem:[%s14932_s3 + $0x180] ss:$8 sps:$4 sm:$0xff]   ;;  %v14091_v48 = vld [vmem:[%s14932_s3 + $0x124] ss:$8 sps:$4 sm:$0xff]  }
 0x397   : > { %6816 = vst.msk [vmem:[#allocation2 + $0x70] sm:$0xff] %vm15137_vm12, %v6795_v63  ;;  %7534 = vmatmul.mubr.bf16.gmra.mrb[100].mxu0 %v13539_v58  ;;  %v5386_v58 = vor.u32 %v5384_v34, %v5382_v5  ;;  %v14053_v63 = vld [vmem:[%s14932_s3 + $0x100] ss:$8 sps:$4 sm:$0xff]   ;;  %v5392_v5 = vshrl.u32 %v5337_v37, 16  ;;  %v11199_v62 = vld [vmem:[%s14932_s3 + $0x190] ss:$8 sps:$4 sm:$0xff]   ;;  %vm15148_vm12 = vmmov %vm15085_vm2 }
 0x398   : > { %6040 = vmatpush1.bf16.msra.mxu1 %v11163_v57  ;;  %v14016_v31 = vld [vmem:[#allocation2 + $0x98] sm:$0xff]  ;;  %7576 = vmatprep.mubr.bf16.mxu0 %v15076_v13  ;;  %v14105_v37 = vld [vmem:[%s14932_s3 + $0x120] ss:$8 sps:$4 sm:$0xff]  }
 0x399   : > { %6041 = vmatprep.subr.bf16.mxu1 %v11171_v3  ;;  %6817 = vst.msk [vmem:[#allocation2 + $0x98] sm:$0xff] %vm15139_vm13, %v6797_v11  ;;  %v5391_v61 = vsel %vm3529_vm9, %v5386_v58, %v5390_v30  ;;  %v14078_v11 = vld [vmem:[%s14932_s3 + $0x110] ss:$8 sps:$4 sm:$0xff]   ;;  %v5394_v4 = vor.u32 %v5392_v5, %v5390_v30  ;;  %v5400_v58 = vshrl.u32 %v5338_v41, 16  ;;  %vm15150_vm13 = vmmov %vm15085_vm2 }
 0x39a   : > { %5421 = vst.msk [vmem:[#allocation2 + $0xe8] sm:$0xff] %vm15143_vm15, %v5391_v61  ;;  %v5330_v51 = vld [vmem:[#allocation3 + $0xa8] sm:$0x1] }
 0x39b   : > { %5973 = vmatmul.mubr.bf16.gmra.mrb[40].mxu1 %v11390_v18  ;;  %v11201_v18 = vld [vmem:[%s14932_s3 + $0x194] ss:$8 sps:$4 sm:$0xff]   ;;  %v14128_v30 = vld [vmem:[%s14932_s3 + $0x130] ss:$8 sps:$4 sm:$0xff]  }
 0x39c   : > { %6042 = vmatpush1.bf16.msra.mxu1 %v11169_v26  ;;  %5982 = vmatprep.mubr.bf16.mxu1 %v11391_v25  ;;  %v14048_v3 = vld [vmem:[#allocation2 + $0xc0] sm:$0xff]  ;;  %v14063_v26 = vld [vmem:[%s14932_s3 + $0x114] ss:$8 sps:$4 sm:$0xff]   ;;  %v8100_v25 = vshrl.u32 %v14023_v16, 16 }
 0x39d   : > { %6043 = vmatprep.subr.bf16.mxu1 %v11177_v52  ;;  %v5396_v52 = vshll.u32 %v5338_v41, 16  ;;  %v14148_v41 = vld [vmem:[%s14932_s3 + $0x144] ss:$8 sps:$4 sm:$0xff]  }
 0x39e   : > { %v14041_v57 = vld [vmem:[#allocation2 + $0x70] sm:$0xff] }
 0x39f   : > { %8150 = vst.msk [vmem:[#allocation2 + $0x70] sm:$0xff] %vm15141_vm11, %v8099_v45  ;;  %v6799_v60 = vpop.permute.xlu1 %6798  ;;  %10200 = vmatmul.mubr.msk.bf16.vlgmr.msra.gmra.mrb[72].mxu0 %vm15144_vm10, %v13963_v40  ;;  %v5398_v40 = vrot.slane %v5396_v52, 1  ;;  %vm15155_vm11 = vcmp.ne.s16.totalorder %v15042_v54, 0 }
 0x3a0   : > { %6044 = vmatpush1.bf16.msra.mxu1 %v11175_v39  ;;  %6818 = vst.msk [vmem:[#allocation2 + $0xc0] sm:$0xff] %vm15142_vm5, %v6799_v60  ;;  %8766 = vmatpush1.bf16.msra.mxu0 %v14053_v63  ;;  %v8067_v39 = vsel %vm5106_vm1, 0, %v13757_v53  ;;  %v8102_v53 = vor.u32 %v8100_v25, %v8098_v24  ;;  %vm15146_vm1 = vcmp.ne.s16.totalorder %v13030_v0, 0  ;;  %v14131_v60 = vld [vmem:[#allocation2 + $0x98] sm:$0xff]  ;;  %v14162_v25 = vld [vmem:[%s14932_s3 + $0x140] ss:$8 sps:$4 sm:$0xff]  }
 0x3a1   : > { %6045 = vmatprep.subr.bf16.mxu1 %v11183_v6  ;;  %7586 = vmatprep.mubr.bf16.mxu0 %v15076_v13  ;;  %v5399_v27 = vsel %vm3529_vm9, %v5394_v4, %v5398_v40  ;;  %v11394_v6 = vld [vmem:[#allocation2 + $0x80] sm:$0xff]  ;;  %v8104_v34 = vshll.u32 %v8067_v39, 16  ;;  %v14114_v16 = vld [vmem:[#allocation2 + $0xe8] sm:$0xff]  ;;  %v8108_v4 = vshrl.u32 %v8067_v39, 16 }
 0x3a2   : > { %8767 = vmatprep.subr.bf16.mxu0 %v14063_v26  ;;  %5422 = vst.msk [vmem:[#allocation2 + $0x110] sm:$0xff] %vm15145_vm3, %v5399_v27  ;;  %vm15164_vm3 = vcmask 1048064  }
 0x3a3   : > { %5983 = vmatmul.mubr.bf16.gmra.mrb[44].mxu1 %v11392_v2  ;;  %v8106_v45 = vrot.slane %v8104_v34, 1  ;;  %v11219_v34 = vld [vmem:[%s14932_s3 + $0x1c4] ss:$8 sps:$4 sm:$0xff]  }
 0x3a4   : > { %6046 = vmatpush1.bf16.msra.mxu1 %v11181_v7  ;;  %5992 = vmatprep.mubr.bf16.mxu1 %v11393_v59  ;;  %v11207_v7 = vld [vmem:[%s14932_s3 + $0x1a4] ss:$8 sps:$4 sm:$0xff]  }
 0x3a5   : > { %6047 = vmatprep.subr.bf16.mxu1 %v11189_v1  ;;  %8768 = vmatpush1.bf16.msra.mxu0 %v14078_v11  ;;  %v8107_v2 = vsel %vm3529_vm9, %v8102_v53, %v8106_v45  ;;  %v8110_v39 = vor.u32 %v8108_v4, %v8106_v45  ;;  %v11396_v4 = vld [vmem:[#allocation2 + $0xd0] sm:$0xff] }
 0x3a6   : > { %8769 = vmatprep.subr.bf16.mxu0 %v14091_v48  ;;  %8151 = vst.msk [vmem:[#allocation2 + $0x98] sm:$0xff] %vm15149_vm14, %v8107_v2 }
 0x3a7   : > { %10201 = vmatmul.mubr.msk.bf16.gmra.mrb[76].mxu0 %vm15147_vm4, %v14009_v9  ;;  %v6801_v1 = vpop.permute.xlu0 %6800  ;;  %v11205_v9 = vld [vmem:[%s14932_s3 + $0x1a0] ss:$8 sps:$4 sm:$0xff]   ;;  %vm15170_vm4 = vcmp.ne.s16.totalorder %v13030_v0, 0  ;;  %v11249_v0 = vld [vmem:[%s14932_s3 + $0x224] ss:$8 sps:$4 sm:$0xff]  }
 0x3a8   : > { %6048 = vmatpush1.bf16.msra.mxu1 %v11187_v44  ;;  %7596 = vmatprep.mubr.bf16.mxu0 %v15076_v13  ;;  %6819 = vst.msk [vmem:[#allocation2 + $0xe8] sm:$0xff] %vm15148_vm12, %v6801_v1  ;;  %v5402_v44 = vor.u32 %v5400_v58, %v5398_v40  ;;  %v7834_v1 = vld [vmem:[#allocation3 + $0x20] sm:$0xff] }
 0x3a9   : > { %6049 = vmatprep.subr.bf16.mxu1 %v11195_v49  ;;  %8770 = vmatpush1.bf16.msra.mxu0 %v14105_v37  ;;  %v11213_v49 = vld [vmem:[%s14932_s3 + $0x1b4] ss:$8 sps:$4 sm:$0xff]  }
 0x3aa   : > { %8771 = vmatprep.subr.bf16.mxu0 %v14112_v8  ;;  %v11225_v58 = vld [vmem:[%s14932_s3 + $0x1d4] ss:$8 sps:$4 sm:$0xff]  }
 0x3ab   : > { %5993 = vmatmul.mubr.bf16.gmra.mrb[48].mxu1 %v11394_v6 }
 0x3ac   : > { %6050 = vmatpush1.bf16.msra.mxu1 %v11193_v22  ;;  %6002 = vmatprep.mubr.bf16.mxu1 %v13564_v42  ;;  %v5339_v42 = vsel %vm15146_vm1, 0, %v5330_v51  ;;  %v14139_v61 = vpop.f32.mrb[40].mxu0  ;;  %v8068_v22 = vsel %vm5107_vm0, 0, %v13788_v56  ;;  %v14174_v56 = vld [vmem:[%s14932_s3 + $0x154] ss:$8 sps:$4 sm:$0xff]   ;;  %vm15151_vm0 = vmmov %vm15085_vm2 }
 0x3ad   : > { %6051 = vmatprep.subr.bf16.mxu1 %v11201_v18  ;;  %v5404_v24 = vshll.u32 %v5339_v42, 16  ;;  %v14150_v5 = vpop.f32.mrb[41].mxu0  ;;  %v11395_v18 = vld [vmem:[#allocation2 + $0xa8] sm:$0xff]  ;;  %8772 = vmatpush1.bf16.msra.mxu0 %v14128_v30  ;;  %v8112_v6 = vshll.u32 %v8068_v22, 16  ;;  %v14188_v51 = vld [vmem:[%s14932_s3 + $0x150] ss:$8 sps:$4 sm:$0xff]   ;;  %vm15152_vm6 = vmmov %vm15151_vm0 }
 0x3ae   : > { %v14152_v52 = vpop.f32.mrb[42].mxu0  ;;  %8773 = vmatprep.subr.bf16.mxu0 %v14148_v41  ;;  %vm15153_vm2 = vmmov %vm15151_vm0 }
 0x3af   : > { %v5406_v59 = vrot.slane %v5404_v24, 1  ;;  %v14164_v27 = vpop.f32.mrb[43].mxu0  ;;  %v8114_v53 = vrot.slane %v8112_v6, 1  ;;  %10202 = vmatmul.mubr.msk.bf16.gmra.mrb[80].mxu0 %vm15151_vm0, %v14041_v57  ;;  %v11217_v57 = vld [vmem:[%s14932_s3 + $0x1c0] ss:$8 sps:$4 sm:$0xff]   ;;  %vm15160_vm5 = vmmov %vm15151_vm0 }
 0x3b0   : > { %6052 = vmatpush1.bf16.msra.mxu1 %v11199_v62  ;;  %v14176_v62 = vld [vmem:[#allocation2 + $0x110] sm:$0xff]  ;;  %7606 = vmatprep.mubr.bf16.mxu0 %v15076_v13  ;;  %v14208_v24 = vld [vmem:[%s14932_s3 + $0x164] ss:$8 sps:$4 sm:$0xff]   ;;  %vm15161_vm15 = vmmov %vm15151_vm0 }
 0x3b1   : > { %6053 = vmatprep.subr.bf16.mxu1 %v11207_v7  ;;  %v5407_v40 = vsel %vm3529_vm9, %v5402_v44, %v5406_v59  ;;  %8774 = vmatpush1.bf16.msra.mxu0 %v14162_v25  ;;  %v14191_v7 = vld [vmem:[#allocation2 + $0xc0] sm:$0xff]  ;;  %v8115_v45 = vsel %vm3529_vm9, %v8110_v39, %v8114_v53  ;;  %15154 = vst [vmem:[#allocation5_spill] sm:$0xff] %v14208_v24  ;;  %v14232_v39 = vld [vmem:[%s14932_s3 + $0x174] ss:$8 sps:$4 sm:$0xff]   ;;  %vm15162_vm10 = vmmov %vm15151_vm0 }
 0x3b2   : > { %5423 = vst.msk [vmem:[#allocation2 + $0x138] sm:$0xff] %vm15150_vm13, %v5407_v40  ;;  %8775 = vmatprep.subr.bf16.mxu0 %v14174_v56  ;;  %v8060_v59 = vld [vmem:[#allocation3 + $0x90] sm:$0xff]  ;;  %15157 = vst [vmem:[#allocation19_spill] sm:$0xff] %v14232_v39 }
 0x3b3   : > { %6003 = vmatmul.mubr.bf16.gmra.mrb[52].mxu1 %v11395_v18  ;;  %8152 = vst.msk [vmem:[#allocation2 + $0xc0] sm:$0xff] %vm15153_vm2, %v8115_v45  ;;  %v14220_v40 = vld [vmem:[%s14932_s3 + $0x160] ss:$8 sps:$4 sm:$0xff]   ;;  %v8069_v6 = vsel %vm5108_vm8, 0, %v8060_v59  ;;  %vm15158_vm8 = vmmov %vm15151_vm0 }
 0x3b4   : > { %6054 = vmatpush1.bf16.msra.mxu1 %v11205_v9  ;;  %6012 = vmatprep.mubr.bf16.mxu1 %v13616_v21  ;;  %v6803_v21 = vpop.permute.xlu1 %6802  ;;  %v14199_v42 = vpop.f32.mrb[44].mxu0  ;;  %v7843_v9 = vsel %vm15155_vm11, 0, %v7834_v1  ;;  %15156 = vst [vmem:[#allocation10_spill] sm:$0xff] %v14220_v40  ;;  %v11229_v59 = vld [vmem:[%s14932_s3 + $0x1e0] ss:$8 sps:$4 sm:$0xff]   ;;  %vm15168_vm1 = vmmov %vm15151_vm0 }
 0x3b5   : > { %6055 = vmatprep.subr.bf16.mxu1 %v11213_v49  ;;  %6820 = vst.msk [vmem:[#allocation2 + $0x110] sm:$0xff] %vm15152_vm6, %v6803_v21  ;;  %v14210_v2 = vpop.f32.mrb[45].mxu0  ;;  %v8116_v49 = vshrl.u32 %v8068_v22, 16  ;;  %8776 = vmatpush1.bf16.msra.mxu0 %v14188_v51  ;;  %v7855_v54 = vshll.u32 %v7843_v9, 16  ;;  %v11223_v22 = vld [vmem:[%s14932_s3 + $0x1d0] ss:$8 sps:$4 sm:$0xff]   ;;  %vm15172_vm12 = vmmov %vm15151_vm0 }
 0x3b6   : > { %v14214_v44 = vpop.f32.mrb[46].mxu0  ;;  %v8120_v21 = vshll.u32 %v8069_v6, 16  ;;  %v7853_v45 = vshrl.u32 %v7843_v9, 16  ;;  %8777 = vmatprep.subr.bf16.mxu0 %v14208_v24  ;;  %vm15175_vm14 = vmmov %vm15151_vm0 }
 0x3b7   : > { %v14222_v18 = vpop.f32.mrb[47].mxu0  ;;  %10203 = vmatmul.mubr.msk.bf16.gmra.mrb[84].mxu0 %vm15158_vm8, %v14131_v60  ;;  %vm15183_vm13 = vmmov %vm15151_vm0 }
 0x3b8   : > { %6056 = vmatpush1.bf16.msra.mxu1 %v11211_v23  ;;  %v11397_v23 = vld [vmem:[#allocation3 + $0x90] sm:$0xff]  ;;  %v8122_v1 = vrot.slane %v8120_v21, 1  ;;  %7616 = vmatprep.mubr.bf16.mxu0 %v15076_v13  ;;  %vm15187_vm6 = vmmov %vm15151_vm0 }
 0x3b9   : > { %6057 = vmatprep.subr.bf16.mxu1 %v11219_v34  ;;  %v8118_v34 = vor.u32 %v8116_v49, %v8114_v53  ;;  %8778 = vmatpush1.bf16.msra.mxu0 %v14220_v40  ;;  %v14244_v53 = vld [vmem:[%s14932_s3 + $0x170] ss:$8 sps:$4 sm:$0xff]   ;;  %v14255_v49 = vld [vmem:[#allocation2 + $0xe8] sm:$0xff]  ;;  %vm15188_vm2 = vmmov %vm15151_vm0 }
 0x3ba   : > { %8779 = vmatprep.subr.bf16.mxu0 %v14232_v39  ;;  %v6805_v21 = vpop.permute.xlu0 %6804  ;;  %v11398_v40 = vld [vmem:[#allocation2 + $0xf8] sm:$0xff]  ;;  %vm15189_vm11 = vmmov %vm15151_vm0 }
 0x3bb   : > { %6013 = vmatmul.mubr.bf16.gmra.mrb[56].mxu1 %v11396_v4  ;;  %v8123_v4 = vsel %vm3529_vm9, %v8118_v34, %v8122_v1  ;;  %v8061_v34 = vld [vmem:[#allocation3 + $0xa0] sm:$0xff]  ;;  %vm15190_vm8 = vmmov %vm15151_vm0 }
 0x3bc   : > { %6058 = vmatpush1.bf16.msra.mxu1 %v11217_v57  ;;  %6022 = vmatprep.mubr.bf16.mxu1 %v11397_v23  ;;  %v7857_v57 = vrot.slane %v7855_v54, 1  ;;  %v14253_v60 = vpop.f32.mrb[48].mxu0  ;;  %v11237_v54 = vld [vmem:[%s14932_s3 + $0x1f4] ss:$8 sps:$4 sm:$0xff]   ;;  %8153 = vst.msk [vmem:[#allocation2 + $0xe8] sm:$0xff] %vm15160_vm5, %v8123_v4  ;;  %vm15191_vm5 = vmmov %vm15151_vm0 }
 0x3bd   : > { %6059 = vmatprep.subr.bf16.mxu1 %v11225_v58  ;;  %v14247_v58 = vld [vmem:[#allocation2 + $0x138] sm:$0xff]  ;;  %v14266_v23 = vpop.f32.mrb[49].mxu0  ;;  %8780 = vmatpush1.bf16.msra.mxu0 %v14244_v53  ;;  %v14279_v4 = vld [vmem:[%s14932_s3 + $0x180] ss:$8 sps:$4 sm:$0xff]  }
 0x3be   : > { %v7858_v9 = vor.u32 %v7857_v57, %v7853_v45  ;;  %v14271_v57 = vpop.f32.mrb[50].mxu0  ;;  %6821 = vst.msk [vmem:[#allocation2 + $0x138] sm:$0xff] %vm15161_vm15, %v6805_v21  ;;  %15163 = vst [vmem:[#allocation8_spill] sm:$0xff] %v14279_v4 }
 0x3bf   : > { %v14281_v24 = vpop.f32.mrb[51].mxu0  ;;  %vm15192_vm15 = vmmov %vm15151_vm0 }
 0x3c0   : > { %6060 = vmatpush1.bf16.msra.mxu1 %v11223_v22  ;;  %v14264_v22 = vld [vmem:[%s14932_s3 + $0x184] ss:$8 sps:$4 sm:$0xff]   ;;  %v7863_v45 = vsel %vm3529_vm9, %v7858_v9, %v13819_v47  ;;  %v8070_v47 = vsel %vm5109_vm7, 0, %v8061_v34  ;;  %vm15166_vm7 = vmmov %vm15151_vm0 }
 0x3c1   : > { %6061 = vmatprep.subr.bf16.mxu1 %v11231_v43  ;;  %15159 = vst [vmem:[#allocation11_spill] sm:$0xff] %v14264_v22  ;;  %v8124_v43 = vshrl.u32 %v8069_v6, 16  ;;  %v8023_v39 = vpop.permute.xlu1 %8022  ;;  %7928 = vst.msk [vmem:[#allocation2 + $0x18] sm:$0xff] %vm15162_vm10, %v7863_v45  ;;  %v11235_v6 = vld [vmem:[%s14932_s3 + $0x1f0] ss:$8 sps:$4 sm:$0xff]   ;;  %v8128_v21 = vshll.u32 %v8070_v47, 16  ;;  %8781 = vmatprep.subr.bf16.mxu0 %v14264_v22 }
 0x3c2   : > { %8046 = vst.msk [vmem:[#allocation2 + $0x18] sm:$0xff] %vm15164_vm3, %v8023_v39  ;;  %10204 = vmatmul.mubr.msk.bf16.gmra.mrb[88].mxu0 %vm15166_vm7, %v14191_v7  ;;  %v6856_v7 = vld [vmem:[#allocation2 + $0x110] sm:$0xff]  ;;  %v14321_v34 = vld [vmem:[%s14932_s3 + $0x1a4] ss:$8 sps:$4 sm:$0xff]   ;;  %vm15193_vm10 = vmmov %vm15151_vm0 }
 0x3c3   : > { %6023 = vmatmul.mubr.bf16.gmra.mrb[60].mxu1 %v11398_v40  ;;  %v14293_v40 = vld [vmem:[%s14932_s3 + $0x194] ss:$8 sps:$4 sm:$0xff]   ;;  %v8126_v9 = vor.u32 %v8124_v43, %v8122_v1  ;;  %v8130_v39 = vrot.slane %v8128_v21, 1  ;;  %8782 = vmatpush1.bf16.msra.mxu0 %v14279_v4  ;;  %v11241_v1 = vld [vmem:[%s14932_s3 + $0x200] ss:$8 sps:$4 sm:$0xff]   ;;  %vm15212_vm3 = vmmov %vm15151_vm0 }
 0x3c4   : > { %6062 = vmatpush1.bf16.msra.mxu1 %v11229_v59  ;;  %6065 = vmatprep.mubr.bf16.mxu1 %v13672_v35  ;;  %15165 = vst [vmem:[#allocation12_spill] sm:$0xff] %v14293_v40  ;;  %v14305_v35 = vld [vmem:[%s14932_s3 + $0x190] ss:$8 sps:$4 sm:$0xff]   ;;  %v14312_v59 = vpop.f32.mrb[52].mxu0  ;;  %v11246_v45 = vld [vmem:[%s14932_s3 + $0x214] ss:$8 sps:$4 sm:$0xff]   ;;  %vm15213_vm7 = vmmov %vm15151_vm0 }
 0x3c5   : > { %6063 = vmatprep.subr.bf16.mxu1 %v11237_v54  ;;  %15167 = vst [vmem:[#allocation13_spill] sm:$0xff] %v14305_v35  ;;  %7626 = vmatprep.mubr.bf16.mxu0 %v15076_v13  ;;  %v8131_v54 = vsel %vm3529_vm9, %v8126_v9, %v8130_v39  ;;  %v14323_v43 = vpop.f32.mrb[53].mxu0  ;;  %v8062_v21 = vld [vmem:[#allocation3 + $0xb0] sm:$0x1]  ;;  %v11399_v4 = vld [vmem:[#allocation3 + $0x28] sm:$0xff] }
 0x3c6   : > { %8783 = vmatprep.subr.bf16.mxu0 %v14293_v40  ;;  %8154 = vst.msk [vmem:[#allocation2 + $0x110] sm:$0xff] %vm15168_vm1, %v8131_v54  ;;  %v8132_v40 = vshrl.u32 %v8070_v47, 16  ;;  %v14332_v9 = vld [vmem:[%s14932_s3 + $0x1a0] ss:$8 sps:$4 sm:$0xff]   ;;  %v8071_v22 = vsel %vm15170_vm4, 0, %v8062_v21  ;;  %vm15214_vm1 = vmmov %vm15151_vm0 }
 0x3c7   : > { %8784 = vmatpush1.bf16.msra.mxu0 %v14305_v35  ;;  %15169 = vst [vmem:[#allocation6_spill] sm:$0xff] %v14332_v9  ;;  %v11244_v47 = vld [vmem:[%s14932_s3 + $0x210] ss:$8 sps:$4 sm:$0xff]   ;;  %v8136_v35 = vshll.u32 %v8071_v22, 16  ;;  %v11247_v22 = vld [vmem:[%s14932_s3 + $0x220] ss:$8 sps:$4 sm:$0xff]   ;;  %vm15215_vm4 = vmmov %vm15151_vm0 }
 0x3c8   : > { %6064 = vmatpush1.bf16.msra.mxu1 %v11235_v6  ;;  %v14326_v6 = vpop.f32.mrb[54].mxu0  ;;  %v8134_v54 = vor.u32 %v8132_v40, %v8130_v39  ;;  %8785 = vmatprep.subr.bf16.mxu0 %v14321_v34 }
 0x3c9   : > { %6146 = vmatprep.subr.bf16.mxu1 %v11243_v19  ;;  %v14334_v19 = vpop.f32.mrb[55].mxu0 }
 0x3ca   : > { %10205 = vmatmul.mubr.msk.bf16.gmra.mrb[92].mxu0 %vm15172_vm12, %v14255_v49  ;;  %v6861_v49 = vld [vmem:[#allocation2 + $0x138] sm:$0xff]  ;;  %vm15216_vm12 = vmmov %vm15151_vm0 }
 0x3cb   : > { %6066 = vmatmul.mubr.bf16.vlgmr.msra.gmra.mrb[32].mxu1 %v11399_v4  ;;  %v14345_v4 = vld [vmem:[%s14932_s3 + $0x1b4] ss:$8 sps:$4 sm:$0xff]   ;;  %8786 = vmatpush1.bf16.msra.mxu0 %v14332_v9 }
 0x3cc   : > { %6147 = vmatpush1.bf16.msra.mxu1 %v11241_v1  ;;  %6075 = vmatprep.mubr.bf16.mxu1 %v13681_v36  ;;  %15171 = vst [vmem:[#allocation14_spill] sm:$0xff] %v14345_v4  ;;  %v8138_v36 = vrot.slane %v8136_v35, 1  ;;  %v14357_v1 = vld [vmem:[%s14932_s3 + $0x1b0] ss:$8 sps:$4 sm:$0xff]   ;;  %v14364_v40 = vpop.f32.mrb[56].mxu0 }
 0x3cd   : > { %6148 = vmatprep.subr.bf16.mxu1 %v11246_v45  ;;  %15173 = vst [vmem:[#allocation15_spill] sm:$0xff] %v14357_v1  ;;  %7636 = vmatprep.mubr.bf16.mxu0 %v15076_v13  ;;  %v11252_v35 = vld [vmem:[%s14932_s3 + $0x234] ss:$8 sps:$4 sm:$0xff]   ;;  %v14373_v45 = vld [vmem:[%s14932_s3 + $0x1c4] ss:$8 sps:$4 sm:$0xff]   ;;  %v14375_v21 = vpop.f32.mrb[57].mxu0 }
 0x3ce   : > { %8787 = vmatprep.subr.bf16.mxu0 %v14345_v4  ;;  %v8139_v39 = vsel %vm3529_vm9, %v8134_v54, %v8138_v36  ;;  %15174 = vst [vmem:[#allocation16_spill] sm:$0xff] %v14373_v45  ;;  %v14385_v54 = vld [vmem:[%s14932_s3 + $0x1c0] ss:$8 sps:$4 sm:$0xff]   ;;  %v11250_v36 = vld [vmem:[%s14932_s3 + $0x230] ss:$8 sps:$4 sm:$0xff]   ;;  %vm15178_vm9 = vmmov %vm15151_vm0 }
 0x3cf   : > { %8155 = vst.msk [vmem:[#allocation2 + $0x138] sm:$0xff] %vm15175_vm14, %v8139_v39  ;;  %8788 = vmatpush1.bf16.msra.mxu0 %v14357_v1  ;;  %15176 = vst [vmem:[#allocation18_spill] sm:$0xff] %v14385_v54  ;;  %v11267_v39 = vld [vmem:[%s14932_s3 + $0x4] ss:$8 sps:$4 sm:$0xff]  }
 0x3d0   : > { %6149 = vmatpush1.bf16.msra.mxu1 %v11244_v47  ;;  %v14378_v47 = vpop.f32.mrb[58].mxu0  ;;  %8789 = vmatprep.subr.bf16.mxu0 %v14373_v45  ;;  %v8159_v45 = vld [vmem:[#allocation2 + $0x18] sm:$0xff]  ;;  %vm15217_vm14 = vmmov %vm15151_vm0 }
 0x3d1   : > { %6150 = vmatprep.subr.bf16.mxu1 %v11249_v0  ;;  %v14387_v0 = vpop.f32.mrb[59].mxu0 }
 0x3d2   : > { %10206 = vmatmul.mubr.msk.bf16.gmra.mrb[96].mxu0 %vm15178_vm9, %v6856_v7  ;;  %vm15218_vm9 = vmmov %vm15151_vm0 }
 0x3d3   : > { %6076 = vmatmul.mubr.bf16.gmra.mrb[36].mxu1 %v13610_v12  ;;  %v14396_v12 = vld [vmem:[%s14932_s3 + $0x1d4] ss:$8 sps:$4 sm:$0xff]   ;;  %8790 = vmatpush1.bf16.msra.mxu0 %v14385_v54 }
 0x3d4   : > { %6085 = vmatprep.mubr.bf16.mxu1 %v13698_v32  ;;  %6151 = vmatpush1.bf16.msra.mxu1 %v11247_v22  ;;  %15177 = vst [vmem:[#allocation7_spill] sm:$0xff] %v14396_v12  ;;  %v14407_v32 = vld [vmem:[%s14932_s3 + $0x1d0] ss:$8 sps:$4 sm:$0xff]   ;;  %v14414_v22 = vld [vmem:[%s14932_s3 + $0x1e4] ss:$8 sps:$4 sm:$0xff]  }
 0x3d5   : > { %6152 = vmatprep.subr.bf16.mxu1 %v11252_v35  ;;  %15179 = vst [vmem:[#allocation20_spill] sm:$0xff] %v14407_v32  ;;  %7646 = vmatprep.mubr.bf16.mxu0 %v15076_v13  ;;  %15180 = vst [vmem:[#allocation21_spill] sm:$0xff] %v14414_v22  ;;  %v14416_v35 = vpop.f32.mrb[60].mxu0 }
 0x3d6   : > { %8791 = vmatprep.subr.bf16.mxu0 %v14396_v12  ;;  %v14418_v7 = vpop.f32.mrb[61].mxu0 }
 0x3d7   : > { %v14420_v54 = vpop.f32.mrb[62].mxu0  ;;  %8792 = vmatpush1.bf16.msra.mxu0 %v14407_v32 }
 0x3d8   : > { %6153 = vmatpush1.bf16.msra.mxu1 %v11250_v36  ;;  %v14427_v36 = vld [vmem:[%s14932_s3 + $0x1e0] ss:$8 sps:$4 sm:$0xff]   ;;  %v14429_v12 = vpop.f32.mrb[63].mxu0  ;;  %8793 = vmatprep.subr.bf16.mxu0 %v14414_v22 }
 0x3d9   : > { %8652 = vmatprep.subr.bf16.mxu1 %v11267_v39  ;;  %15181 = vst [vmem:[#allocation22_spill] sm:$0xff] %v14427_v36  ;;  %v14436_v39 = vld [vmem:[%s14932_s3 + $0x1f4] ss:$8 sps:$4 sm:$0xff]  }
 0x3da   : > { %15182 = vst [vmem:[#allocation23_spill] sm:$0xff] %v14436_v39  ;;  %10207 = vmatmul.mubr.msk.bf16.gmra.mrb[100].mxu0 %vm15183_vm13, %v6861_v49  ;;  %v8158_v49 = vld [vmem:[#allocation2 + $0x10] sm:$0xff]  ;;  %vm15219_vm13 = vmmov %vm15151_vm0 }
 0x3db   : > { %6086 = vmatmul.mubr.bf16.gmra.mrb[40].mxu1 %v13683_v46  ;;  %8794 = vmatpush1.bf16.msra.mxu0 %v14427_v36  ;;  %v14443_v46 = vld [vmem:[%s14932_s3 + $0x1f0] ss:$8 sps:$4 sm:$0xff]  }
 0x3dc   : > { %6095 = vmatprep.mubr.bf16.mxu1 %v13713_v20  ;;  %15184 = vst [vmem:[#allocation24_spill] sm:$0xff] %v14443_v46  ;;  %8797 = vmatprep.mubr.bf16.mxu0 %v8159_v45  ;;  %v14446_v20 = vpop.f32.mrb[64].mxu0 }
 0x3dd   : > { %8795 = vmatprep.subr.bf16.mxu0 %v14436_v39  ;;  %v14448_v22 = vpop.f32.mrb[65].mxu0 }
 0x3de   : > { %v14450_v32 = vpop.f32.mrb[66].mxu0 }
 0x3df   : > { %8796 = vmatpush1.bf16.msra.mxu0 %v14443_v46  ;;  %v14454_v36 = vpop.f32.mrb[67].mxu0  ;;  %v11309_v46 = vld [vmem:[%s14932_s3 + $0x74] ss:$8 sps:$4 sm:$0xff]  }
 0x3e2   : > { %8798 = vmatmul.mubr.bf16.vlgmr.msra.gmra.mrb[104].mxu0 %v8158_v49  ;;  %v11283_v49 = vld [vmem:[%s14932_s3 + $0x30] ss:$8 sps:$4 sm:$0xff]  }
 0x3e3   : > { %6096 = vmatmul.mubr.bf16.gmra.mrb[44].mxu1 %v13721_v17  ;;  %v15185_v17 = vld [vmem:[#allocation17_spill] sm:$0xff] }
 0x3e4   : > { %6105 = vmatprep.mubr.bf16.mxu1 %v13736_v29  ;;  %v11265_v29 = vld [vmem:[%s14932_s3] ss:$8 sps:$4 sm:$0xff]  }
 0x3e8   : > { %v14457_v1 = vpop.f32.mrb[68].mxu0 }
 0x3e9   : > { %v14459_v45 = vpop.f32.mrb[69].mxu0 }
 0x3ea   : > { %v14461_v39 = vpop.f32.mrb[70].mxu0 }
 0x3eb   : > { %6106 = vmatmul.mubr.bf16.gmra.mrb[48].mxu1 %v13755_v10  ;;  %v14464_v4 = vpop.f32.mrb[71].mxu0  ;;  %v15186_v10 = vld [vmem:[#allocation9_spill] sm:$0xff] }
 0x3ec   : > { %6115 = vmatprep.mubr.bf16.mxu1 %v13747_v14  ;;  %v11273_v14 = vld [vmem:[%s14932_s3 + $0x14] ss:$8 sps:$4 sm:$0xff]  }
 0x3f3   : > { %6116 = vmatmul.mubr.bf16.gmra.mrb[52].mxu1 %v13786_v33  ;;  %v11279_v33 = vld [vmem:[%s14932_s3 + $0x24] ss:$8 sps:$4 sm:$0xff]  }
 0x3f4   : > { %6125 = vmatprep.mubr.bf16.mxu1 %v13774_v28  ;;  %v11271_v28 = vld [vmem:[%s14932_s3 + $0x10] ss:$8 sps:$4 sm:$0xff]  }
 0x3fb   : > { %6126 = vmatmul.mubr.bf16.gmra.mrb[56].mxu1 %v13817_v38  ;;  %v11277_v38 = vld [vmem:[%s14932_s3 + $0x20] ss:$8 sps:$4 sm:$0xff]  }
 0x3fc   : > { %6135 = vmatprep.mubr.bf16.mxu1 %v13821_v15  ;;  %v11285_v15 = vld [vmem:[%s14932_s3 + $0x34] ss:$8 sps:$4 sm:$0xff]  }
 0x403   : > { %6136 = vmatmul.mubr.bf16.gmra.mrb[60].mxu1 %v15185_v17  ;;  %v11291_v17 = vld [vmem:[%s14932_s3 + $0x44] ss:$8 sps:$4 sm:$0xff]  }
 0x404   : > { %6178 = vmatprep.mubr.bf16.mxu1 %v15076_v13 }
 0x40b   : > { %10088 = vmatmul.mubr.msk.bf16.vlgmr.msra.gmra.mrb[32].mxu1 %vm15151_vm0, %v15186_v10  ;;  %v11303_v10 = vld [vmem:[%s14932_s3 + $0x64] ss:$8 sps:$4 sm:$0xff]  }
 0x40c   : > { %8653 = vmatpush1.bf16.msra.mxu1 %v11265_v29  ;;  %6188 = vmatprep.mubr.bf16.mxu1 %v15076_v13  ;;  %v11289_v29 = vld [vmem:[%s14932_s3 + $0x40] ss:$8 sps:$4 sm:$0xff]  }
 0x40d   : > { %8654 = vmatprep.subr.bf16.mxu1 %v11273_v14  ;;  %v11295_v14 = vld [vmem:[%s14932_s3 + $0x50] ss:$8 sps:$4 sm:$0xff]  }
 0x410   : > { %8655 = vmatpush1.bf16.msra.mxu1 %v11271_v28 }
 0x411   : > { %8656 = vmatprep.subr.bf16.mxu1 %v11279_v33 }
 0x413   : > { %10089 = vmatmul.mubr.msk.bf16.gmra.mrb[36].mxu1 %vm15187_vm6, %v13957_v55  ;;  %v11297_v55 = vld [vmem:[%s14932_s3 + $0x54] ss:$8 sps:$4 sm:$0xff]  }
 0x414   : > { %8657 = vmatpush1.bf16.msra.mxu1 %v11277_v38  ;;  %6198 = vmatprep.mubr.bf16.mxu1 %v15076_v13 }
 0x415   : > { %8658 = vmatprep.subr.bf16.mxu1 %v11285_v15 }
 0x418   : > { %8659 = vmatpush1.bf16.msra.mxu1 %v11283_v49  ;;  %v11301_v49 = vld [vmem:[%s14932_s3 + $0x60] ss:$8 sps:$4 sm:$0xff]  }
 0x419   : > { %8660 = vmatprep.subr.bf16.mxu1 %v11291_v17 }
 0x41b   : > { %10090 = vmatmul.mubr.msk.bf16.gmra.mrb[40].mxu1 %vm15188_vm2, %v13995_v50 }
 0x41c   : > { %8661 = vmatpush1.bf16.msra.mxu1 %v11289_v29  ;;  %6208 = vmatprep.mubr.bf16.mxu1 %v15076_v13 }
 0x41d   : > { %8662 = vmatprep.subr.bf16.mxu1 %v11297_v55 }
 0x41e   : > { %v4687_v28 = vpop.f32.mrb[0].mxu1 }
 0x41f   : > { %v10456_v33 = vadd.f32 %v4687_v28, %v14139_v61  ;;  %v4689_v38 = vpop.f32.mrb[1].mxu1 }
 0x420   : > { %v10457_v15 = vadd.f32 %v4689_v38, %v14150_v5  ;;  %8663 = vmatpush1.bf16.msra.mxu1 %v11295_v14  ;;  %v4691_v50 = vpop.f32.mrb[2].mxu1 }
 0x421   : > { %v4766_v17 = vmul.f32 0.2, %v10456_v33  ;;  %v10458_v29 = vadd.f32 %v4691_v50, %v14152_v52  ;;  %v4693_v55 = vpop.f32.mrb[3].mxu1  ;;  %8664 = vmatprep.subr.bf16.mxu1 %v11303_v10  ;;  %v11307_v52 = vld [vmem:[%s14932_s3 + $0x70] ss:$8 sps:$4 sm:$0xff]  }
 0x422   : > { %v4767_v9 = vmul.f32 0.2, %v10457_v15  ;;  %v10459_v61 = vadd.f32 %v4693_v55, %v14164_v27  ;;  %v11315_v27 = vld [vmem:[%s14932_s3 + $0x84] ss:$8 sps:$4 sm:$0xff]  }
 0x423   : > { %v4798_v28 = vmax.f32 %v10456_v33, %v4766_v17  ;;  %v4768_v5 = vmul.f32 0.2, %v10458_v29  ;;  %10091 = vmatmul.mubr.msk.bf16.gmra.mrb[44].mxu1 %vm15189_vm11, %v14016_v31 }
 0x424   : > { %v4799_v14 = vmax.f32 %v10457_v15, %v4767_v9  ;;  %v4769_v38 = vmul.f32 0.2, %v10459_v61  ;;  %8665 = vmatpush1.bf16.msra.mxu1 %v11301_v49  ;;  %6218 = vmatprep.mubr.bf16.mxu1 %v15076_v13 }
 0x425   : > { %v4800_v10 = vmax.f32 %v10458_v29, %v4768_v5  ;;  %8666 = vmatprep.subr.bf16.mxu1 %v11309_v46  ;;  %v11313_v46 = vld [vmem:[%s14932_s3 + $0x80] ss:$8 sps:$4 sm:$0xff]  }
 0x426   : > { %v10359_v33 = vpack.c.bf16 %v4799_v14, %v4798_v28  ;;  %v4801_v50 = vmax.f32 %v10459_v61, %v4769_v38  ;;  %v4697_v17 = vpop.f32.mrb[4].mxu1 }
 0x427   : > { %v10460_v31 = vadd.f32 %v4697_v17, %v14199_v42  ;;  %v4699_v9 = vpop.f32.mrb[5].mxu1  ;;  %v11321_v42 = vld [vmem:[%s14932_s3 + $0x94] ss:$8 sps:$4 sm:$0xff]  }
 0x428   : > { %4926 = vst [vmem:[%s12395_s10] sm:$0xff] %v10359_v33  ;;  %v10360_v15 = vpack.c.bf16 %v4801_v50, %v4800_v10  ;;  %v10461_v49 = vadd.f32 %v4699_v9, %v14210_v2  ;;  %8667 = vmatpush1.bf16.msra.mxu1 %v11307_v52  ;;  %v4701_v55 = vpop.f32.mrb[6].mxu1 }
 0x429   : > { %v4770_v29 = vmul.f32 0.2, %v10460_v31  ;;  %v10462_v5 = vadd.f32 %v4701_v55, %v14214_v44  ;;  %v4703_v28 = vpop.f32.mrb[7].mxu1  ;;  %8668 = vmatprep.subr.bf16.mxu1 %v11315_v27  ;;  %v11319_v44 = vld [vmem:[%s14932_s3 + $0x90] ss:$8 sps:$4 sm:$0xff]  }
 0x42a   : > { %4927 = vst [vmem:[%s12395_s10 + $0x8] sm:$0xff] %v10360_v15  ;;  %v4771_v61 = vmul.f32 0.2, %v10461_v49  ;;  %v10463_v14 = vadd.f32 %v4703_v28, %v14222_v18  ;;  %v11327_v18 = vld [vmem:[%s14932_s3 + $0xa4] ss:$8 sps:$4 sm:$0xff]  }
 0x42b   : > { %v4802_v2 = vmax.f32 %v10460_v31, %v4770_v29  ;;  %v4772_v38 = vmul.f32 0.2, %v10462_v5  ;;  %10092 = vmatmul.mubr.msk.bf16.gmra.mrb[48].mxu1 %vm15190_vm8, %v14048_v3  ;;  %v11325_v55 = vld [vmem:[%s14932_s3 + $0xa0] ss:$8 sps:$4 sm:$0xff]  }
 0x42c   : > { %v4803_v52 = vmax.f32 %v10461_v49, %v4771_v61  ;;  %v4773_v10 = vmul.f32 0.2, %v10463_v14  ;;  %8669 = vmatpush1.bf16.msra.mxu1 %v11313_v46  ;;  %6228 = vmatprep.mubr.bf16.mxu1 %v15076_v13 }
 0x42d   : > { %v4804_v27 = vmax.f32 %v10462_v5, %v4772_v38  ;;  %8670 = vmatprep.subr.bf16.mxu1 %v11321_v42 }
 0x42e   : > { %v10361_v33 = vpack.c.bf16 %v4803_v52, %v4802_v2  ;;  %v4805_v50 = vmax.f32 %v10463_v14, %v4773_v10  ;;  %v4707_v17 = vpop.f32.mrb[8].mxu1 }
 0x42f   : > { %v10464_v3 = vadd.f32 %v4707_v17, %v14253_v60  ;;  %v4709_v31 = vpop.f32.mrb[9].mxu1  ;;  %v11333_v60 = vld [vmem:[%s14932_s3 + $0xb4] ss:$8 sps:$4 sm:$0xff]   ;;  %v11337_v17 = vld [vmem:[%s14932_s3 + $0xc0] ss:$8 sps:$4 sm:$0xff]  }
 0x430   : > { %4928 = vst [vmem:[%s12395_s10 + $0x10] sm:$0xff] %v10361_v33  ;;  %v10362_v9 = vpack.c.bf16 %v4805_v50, %v4804_v27  ;;  %v10465_v15 = vadd.f32 %v4709_v31, %v14266_v23  ;;  %8671 = vmatpush1.bf16.msra.mxu1 %v11319_v44  ;;  %v4711_v49 = vpop.f32.mrb[10].mxu1 }
 0x431   : > { %v4774_v46 = vmul.f32 0.2, %v10464_v3  ;;  %v10466_v29 = vadd.f32 %v4711_v49, %v14271_v57  ;;  %v4713_v5 = vpop.f32.mrb[11].mxu1  ;;  %8672 = vmatprep.subr.bf16.mxu1 %v11327_v18  ;;  %v11331_v57 = vld [vmem:[%s14932_s3 + $0xb0] ss:$8 sps:$4 sm:$0xff]  }
 0x432   : > { %4929 = vst [vmem:[%s12395_s10 + $0x18] sm:$0xff] %v10362_v9  ;;  %v4775_v28 = vmul.f32 0.2, %v10465_v15  ;;  %v10467_v42 = vadd.f32 %v4713_v5, %v14281_v24  ;;  %v11339_v24 = vld [vmem:[%s14932_s3 + $0xc4] ss:$8 sps:$4 sm:$0xff]  }
 0x433   : > { %v4806_v23 = vmax.f32 %v10464_v3, %v4774_v46  ;;  %v4776_v61 = vmul.f32 0.2, %v10466_v29  ;;  %10093 = vmatmul.mubr.msk.bf16.gmra.mrb[52].mxu1 %vm15191_vm5, %v14114_v16 }
 0x434   : > { %v4807_v14 = vmax.f32 %v10465_v15, %v4775_v28  ;;  %v4777_v2 = vmul.f32 0.2, %v10467_v42  ;;  %8673 = vmatpush1.bf16.msra.mxu1 %v11325_v55  ;;  %6238 = vmatprep.mubr.bf16.mxu1 %v15076_v13 }
 0x435   : > { %v4808_v38 = vmax.f32 %v10466_v29, %v4776_v61  ;;  %8674 = vmatprep.subr.bf16.mxu1 %v11333_v60 }
 0x436   : > { %v10363_v52 = vpack.c.bf16 %v4807_v14, %v4806_v23  ;;  %v4809_v10 = vmax.f32 %v10467_v42, %v4777_v2  ;;  %v4717_v44 = vpop.f32.mrb[12].mxu1 }
 0x437   : > { %v10468_v16 = vadd.f32 %v4717_v44, %v14312_v59  ;;  %v4719_v27 = vpop.f32.mrb[13].mxu1  ;;  %v11345_v59 = vld [vmem:[%s14932_s3 + $0xd4] ss:$8 sps:$4 sm:$0xff]  }
 0x438   : > { %4930 = vst [vmem:[%s12395_s10 + $0x20] sm:$0xff] %v10363_v52  ;;  %v10364_v18 = vpack.c.bf16 %v4809_v10, %v4808_v38  ;;  %v10469_v33 = vadd.f32 %v4719_v27, %v14323_v43  ;;  %8675 = vmatpush1.bf16.msra.mxu1 %v11331_v57  ;;  %v4721_v50 = vpop.f32.mrb[14].mxu1  ;;  %v11349_v57 = vld [vmem:[%s14932_s3 + $0xe0] ss:$8 sps:$4 sm:$0xff]  }
 0x439   : > { %v4778_v3 = vmul.f32 0.2, %v10468_v16  ;;  %v10470_v31 = vadd.f32 %v4721_v50, %v14326_v6  ;;  %v4723_v9 = vpop.f32.mrb[15].mxu1  ;;  %8676 = vmatprep.subr.bf16.mxu1 %v11339_v24  ;;  %v11343_v6 = vld [vmem:[%s14932_s3 + $0xd0] ss:$8 sps:$4 sm:$0xff]   ;;  %v8157_v10 = vld [vmem:[#allocation2 + $0x8] sm:$0xff] }
 0x43a   : > { %4931 = vst [vmem:[%s12395_s10 + $0x28] sm:$0xff] %v10364_v18  ;;  %v4779_v15 = vmul.f32 0.2, %v10469_v33  ;;  %v10471_v49 = vadd.f32 %v4723_v9, %v14334_v19  ;;  %v11351_v19 = vld [vmem:[%s14932_s3 + $0xe4] ss:$8 sps:$4 sm:$0xff]  }
 0x43b   : > { %v4810_v43 = vmax.f32 %v10468_v16, %v4778_v3  ;;  %v4780_v55 = vmul.f32 0.2, %v10470_v31  ;;  %10094 = vmatmul.mubr.msk.bf16.gmra.mrb[56].mxu1 %vm15192_vm15, %v14176_v62 }
 0x43c   : > { %v4811_v46 = vmax.f32 %v10469_v33, %v4779_v15  ;;  %v4781_v29 = vmul.f32 0.2, %v10471_v49  ;;  %8677 = vmatpush1.bf16.msra.mxu1 %v11337_v17  ;;  %6248 = vmatprep.mubr.bf16.mxu1 %v15076_v13 }
 0x43d   : > { %v4812_v5 = vmax.f32 %v10470_v31, %v4780_v55  ;;  %8678 = vmatprep.subr.bf16.mxu1 %v11345_v59 }
 0x43e   : > { %v10365_v60 = vpack.c.bf16 %v4811_v46, %v4810_v43  ;;  %v4813_v28 = vmax.f32 %v10471_v49, %v4781_v29  ;;  %v4727_v42 = vpop.f32.mrb[16].mxu1  ;;  %v8156_v49 = vld [vmem:[#allocation2] sm:$0xff] }
 0x43f   : > { %v10472_v62 = vadd.f32 %v4727_v42, %v14364_v40  ;;  %v4729_v23 = vpop.f32.mrb[17].mxu1  ;;  %v11357_v40 = vld [vmem:[%s14932_s3 + $0xf4] ss:$8 sps:$4 sm:$0xff]   ;;  %v11400_v29 = vld [vmem:[%s14932_s3 + $0x104] ss:$8 sps:$4 sm:$0xff]  }
 0x440   : > { %4932 = vst [vmem:[%s12395_s10 + $0x30] sm:$0xff] %v10365_v60  ;;  %v10366_v61 = vpack.c.bf16 %v4813_v28, %v4812_v5  ;;  %v10473_v14 = vadd.f32 %v4729_v23, %v14375_v21  ;;  %8679 = vmatpush1.bf16.msra.mxu1 %v11343_v6  ;;  %v4731_v2 = vpop.f32.mrb[18].mxu1  ;;  %v8162_v6 = vld [vmem:[#allocation2 + $0x30] sm:$0xff] }
 0x441   : > { %v4782_v38 = vmul.f32 0.2, %v10472_v62  ;;  %v10474_v24 = vadd.f32 %v4731_v2, %v14378_v47  ;;  %v4733_v52 = vpop.f32.mrb[19].mxu1  ;;  %8680 = vmatprep.subr.bf16.mxu1 %v11351_v19  ;;  %v11355_v47 = vld [vmem:[%s14932_s3 + $0xf0] ss:$8 sps:$4 sm:$0xff]  }
 0x442   : > { %4933 = vst [vmem:[%s12395_s10 + $0x38] sm:$0xff] %v10366_v61  ;;  %v4783_v44 = vmul.f32 0.2, %v10473_v14  ;;  %v10475_v21 = vadd.f32 %v4733_v52, %v14387_v0 }
 0x443   : > { %v4814_v16 = vmax.f32 %v10472_v62, %v4782_v38  ;;  %v4784_v27 = vmul.f32 0.2, %v10474_v24  ;;  %10095 = vmatmul.mubr.msk.bf16.gmra.mrb[60].mxu1 %vm15193_vm10, %v14247_v58  ;;  %v8161_v38 = vld [vmem:[#allocation2 + $0x28] sm:$0xff] }
 0x444   : > { %v4815_v18 = vmax.f32 %v10473_v14, %v4783_v44  ;;  %v4785_v33 = vmul.f32 0.2, %v10475_v21  ;;  %8681 = vmatpush1.bf16.msra.mxu1 %v11349_v57  ;;  %8684 = vmatprep.mubr.bf16.mxu1 %v8157_v10 }
 0x445   : > { %v4816_v50 = vmax.f32 %v10474_v24, %v4784_v27  ;;  %8682 = vmatprep.subr.bf16.mxu1 %v11357_v40 }
 0x446   : > { %v10367_v17 = vpack.c.bf16 %v4815_v18, %v4814_v16  ;;  %v4817_v3 = vmax.f32 %v10475_v21, %v4785_v33  ;;  %v4737_v0 = vpop.f32.mrb[20].mxu1 }
 0x447   : > { %v10476_v31 = vadd.f32 %v4737_v0, %v14416_v35  ;;  %v4739_v9 = vpop.f32.mrb[21].mxu1 }
 0x448   : > { %4934 = vst [vmem:[%s12395_s10 + $0x40] sm:$0xff] %v10367_v17  ;;  %v10368_v59 = vpack.c.bf16 %v4817_v3, %v4816_v50  ;;  %v10477_v58 = vadd.f32 %v4739_v9, %v14418_v7  ;;  %8683 = vmatpush1.bf16.msra.mxu1 %v11355_v47  ;;  %v4741_v15 = vpop.f32.mrb[22].mxu1  ;;  %v8166_v50 = vld [vmem:[#allocation2 + $0x50] sm:$0xff] }
 0x449   : > { %v4786_v43 = vmul.f32 0.2, %v10476_v31  ;;  %v10478_v55 = vadd.f32 %v4741_v15, %v14420_v54  ;;  %v4743_v46 = vpop.f32.mrb[23].mxu1  ;;  %10424 = vmatprep.subr.bf16.mxu1 %v11400_v29  ;;  %v8171_v15 = vld [vmem:[#allocation2 + $0x78] sm:$0xff]  ;;  %v15198_v29 = vld [vmem:[#allocation8_spill] sm:$0xff] }
 0x44a   : > { %4935 = vst [vmem:[%s12395_s10 + $0x48] sm:$0xff] %v10368_v59  ;;  %v4787_v35 = vmul.f32 0.2, %v10477_v58  ;;  %v10479_v5 = vadd.f32 %v4743_v46, %v14429_v12  ;;  %v8182_v46 = vld [vmem:[#allocation2 + $0xd0] sm:$0xff] }
 0x44b   : > { %v4818_v19 = vmax.f32 %v10476_v31, %v4786_v43  ;;  %v4788_v7 = vmul.f32 0.2, %v10478_v55  ;;  %8685 = vmatmul.mubr.bf16.vlgmr.msra.gmra.mrb[64].mxu1 %v8156_v49  ;;  %v8177_v49 = vld [vmem:[#allocation2 + $0xa8] sm:$0xff]  ;;  %v15195_v43 = vld [vmem:[#allocation10_spill] sm:$0xff] }
 0x44c   : > { %v4819_v60 = vmax.f32 %v10477_v58, %v4787_v35  ;;  %v4789_v28 = vmul.f32 0.2, %v10479_v5  ;;  %10440 = vmatpush1.bf16.msra.mxu1 %v14053_v63  ;;  %8694 = vmatprep.mubr.bf16.mxu1 %v8162_v6  ;;  %v15200_v6 = vld [vmem:[#allocation13_spill] sm:$0xff]  ;;  %v8181_v35 = vld [vmem:[#allocation2 + $0xc8] sm:$0xff] }
 0x44d   : > { %v4820_v54 = vmax.f32 %v10478_v55, %v4788_v7  ;;  %10425 = vmatprep.subr.bf16.mxu1 %v14063_v26  ;;  %v8167_v26 = vld [vmem:[#allocation2 + $0x58] sm:$0xff]  ;;  %v15197_v55 = vld [vmem:[#allocation11_spill] sm:$0xff] }
 0x44e   : > { %v10369_v42 = vpack.c.bf16 %v4819_v60, %v4818_v19  ;;  %v4821_v62 = vmax.f32 %v10479_v5, %v4789_v28  ;;  %v4747_v23 = vpop.f32.mrb[24].mxu1  ;;  %v8187_v5 = vld [vmem:[#allocation2 + $0xf8] sm:$0xff]  ;;  %v15203_v7 = vld [vmem:[#allocation15_spill] sm:$0xff]  ;;  %v8186_v60 = vld [vmem:[#allocation2 + $0xf0] sm:$0xff] }
 0x44f   : > { %v10480_v61 = vadd.f32 %v4747_v23, %v14446_v20  ;;  %v4749_v14 = vpop.f32.mrb[25].mxu1  ;;  %v15201_v19 = vld [vmem:[#allocation6_spill] sm:$0xff]  ;;  %v15204_v28 = vld [vmem:[#allocation16_spill] sm:$0xff] }
 0x450   : > { %4936 = vst [vmem:[%s12395_s10 + $0x50] sm:$0xff] %v10369_v42  ;;  %v10370_v12 = vpack.c.bf16 %v4821_v62, %v4820_v54  ;;  %v10481_v2 = vadd.f32 %v4749_v14, %v14448_v22  ;;  %10441 = vmatpush1.bf16.msra.mxu1 %v14078_v11  ;;  %v4751_v57 = vpop.f32.mrb[26].mxu1  ;;  %v8192_v54 = vld [vmem:[#allocation2 + $0x120] sm:$0xff]  ;;  %v15205_v42 = vld [vmem:[#allocation18_spill] sm:$0xff] }
 0x451   : > { %v4790_v63 = vmul.f32 0.2, %v10480_v61  ;;  %v10482_v24 = vadd.f32 %v4751_v57, %v14450_v32  ;;  %v4753_v52 = vpop.f32.mrb[27].mxu1  ;;  %10426 = vmatprep.subr.bf16.mxu1 %v14091_v48  ;;  %v15206_v62 = vld [vmem:[#allocation7_spill] sm:$0xff]  ;;  %v8191_v14 = vld [vmem:[#allocation2 + $0x118] sm:$0xff] }
 0x452   : > { %4937 = vst [vmem:[%s12395_s10 + $0x58] sm:$0xff] %v10370_v12  ;;  %v4791_v40 = vmul.f32 0.2, %v10481_v2  ;;  %v10483_v20 = vadd.f32 %v4753_v52, %v14454_v36  ;;  %v8164_v57 = vld [vmem:[#allocation2 + $0x40] sm:$0xff] }
 0x453   : > { %v4822_v10 = vmax.f32 %v10480_v61, %v4790_v63  ;;  %v4792_v44 = vmul.f32 0.2, %v10482_v24  ;;  %8695 = vmatmul.mubr.bf16.gmra.mrb[68].mxu1 %v8161_v38  ;;  %v15207_v61 = vld [vmem:[#allocation20_spill] sm:$0xff] }
 0x454   : > { %v4823_v22 = vmax.f32 %v10481_v2, %v4791_v40  ;;  %v4793_v21 = vmul.f32 0.2, %v10483_v20  ;;  %10442 = vmatpush1.bf16.msra.mxu1 %v14105_v37  ;;  %8704 = vmatprep.mubr.bf16.mxu1 %v8167_v26  ;;  %v15208_v2 = vld [vmem:[#allocation21_spill] sm:$0xff]  ;;  %v15209_v26 = vld [vmem:[#allocation22_spill] sm:$0xff] }
 0x455   : > { %v4824_v11 = vmax.f32 %v10482_v24, %v4792_v44  ;;  %10427 = vmatprep.subr.bf16.mxu1 %v14112_v8  ;;  %v8172_v8 = vld [vmem:[#allocation2 + $0x80] sm:$0xff] }
 0x456   : > { %v10371_v32 = vpack.c.bf16 %v4823_v22, %v4822_v10  ;;  %v4825_v48 = vmax.f32 %v10483_v20, %v4793_v21  ;;  %v4757_v16 = vpop.f32.mrb[28].mxu1  ;;  %v15210_v20 = vld [vmem:[#allocation23_spill] sm:$0xff] }
 0x457   : > { %v10484_v27 = vadd.f32 %v4757_v16, %v14457_v1  ;;  %v4759_v18 = vpop.f32.mrb[29].mxu1  ;;  %v11363_v10 = vld [vmem:[%s14932_s3 + $0x204] ss:$8 sps:$4 sm:$0xff]  }
 0x458   : > { %4938 = vst [vmem:[%s12395_s10 + $0x60] sm:$0xff] %v10371_v32  ;;  %v10372_v36 = vpack.c.bf16 %v4825_v48, %v4824_v11  ;;  %v10485_v33 = vadd.f32 %v4759_v18, %v14459_v45  ;;  %10443 = vmatpush1.bf16.msra.mxu1 %v14128_v30  ;;  %v4761_v47 = vpop.f32.mrb[30].mxu1  ;;  %v11361_v32 = vld [vmem:[%s14932_s3 + $0x200] ss:$8 sps:$4 sm:$0xff]   ;;  %v8163_v48 = vld [vmem:[#allocation2 + $0x38] sm:$0xff] }
 0x459   : > { %v4794_v37 = vmul.f32 0.2, %v10484_v27  ;;  %v10486_v17 = vadd.f32 %v4761_v47, %v14461_v39  ;;  %v4763_v3 = vpop.f32.mrb[31].mxu1  ;;  %10428 = vmatprep.subr.bf16.mxu1 %v14148_v41  ;;  %v8169_v16 = vld [vmem:[#allocation2 + $0x68] sm:$0xff]  ;;  %v11366_v18 = vld [vmem:[%s14932_s3 + $0x214] ss:$8 sps:$4 sm:$0xff]  }
 0x45a   : > { %4939 = vst [vmem:[%s12395_s10 + $0x68] sm:$0xff] %v10372_v36  ;;  %v4795_v0 = vmul.f32 0.2, %v10485_v33  ;;  %v10487_v1 = vadd.f32 %v4763_v3, %v14464_v4  ;;  %v15194_v4 = vld [vmem:[#allocation5_spill] sm:$0xff] }
 0x45b   : > { %v4826_v31 = vmax.f32 %v10484_v27, %v4794_v37  ;;  %v4796_v9 = vmul.f32 0.2, %v10486_v17  ;;  %8705 = vmatmul.mubr.bf16.gmra.mrb[72].mxu1 %v8166_v50  ;;  %v15211_v27 = vld [vmem:[#allocation24_spill] sm:$0xff] }
 0x45c   : > { %v4827_v45 = vmax.f32 %v10485_v33, %v4795_v0  ;;  %v4797_v30 = vmul.f32 0.2, %v10487_v1  ;;  %10444 = vmatpush1.bf16.msra.mxu1 %v14162_v25  ;;  %8714 = vmatprep.mubr.bf16.mxu1 %v8172_v8  ;;  %v15196_v25 = vld [vmem:[#allocation19_spill] sm:$0xff] }
 0x45d   : > { %v4828_v59 = vmax.f32 %v10486_v17, %v4796_v9  ;;  %10429 = vmatprep.subr.bf16.mxu1 %v14174_v56  ;;  %v8176_v56 = vld [vmem:[#allocation2 + $0xa0] sm:$0xff] }
 0x45e   : > { %v10373_v39 = vpack.c.bf16 %v4827_v45, %v4826_v31  ;;  %v4829_v41 = vmax.f32 %v10487_v1, %v4797_v30 }
 0x460   : > { %4940 = vst [vmem:[%s12395_s10 + $0x70] sm:$0xff] %v10373_v39  ;;  %v10374_v58 = vpack.c.bf16 %v4829_v41, %v4828_v59  ;;  %10445 = vmatpush1.bf16.msra.mxu1 %v14188_v51  ;;  %v15199_v51 = vld [vmem:[#allocation12_spill] sm:$0xff]  ;;  %v11364_v41 = vld [vmem:[%s14932_s3 + $0x210] ss:$8 sps:$4 sm:$0xff]  }
 0x461   : > { %10430 = vmatprep.subr.bf16.mxu1 %v15194_v4  ;;  %v11369_v4 = vld [vmem:[%s14932_s3 + $0x224] ss:$8 sps:$4 sm:$0xff]  }
 0x462   : > { %4941 = vst [vmem:[%s12395_s10 + $0x78] sm:$0xff] %v10374_v58 }
 0x463   : > { %8715 = vmatmul.mubr.bf16.gmra.mrb[76].mxu1 %v8171_v15 }
 0x464   : > { %10446 = vmatpush1.bf16.msra.mxu1 %v15195_v43  ;;  %8724 = vmatprep.mubr.bf16.mxu1 %v8177_v49 }
 0x465   : > { %10431 = vmatprep.subr.bf16.mxu1 %v15196_v25 }
 0x468   : > { %10447 = vmatpush1.bf16.msra.mxu1 %v14244_v53  ;;  %v15202_v53 = vld [vmem:[#allocation14_spill] sm:$0xff] }
 0x469   : > { %10432 = vmatprep.subr.bf16.mxu1 %v15197_v55 }
 0x46b   : > { %8725 = vmatmul.mubr.bf16.gmra.mrb[80].mxu1 %v8176_v56 }
 0x46c   : > { %10448 = vmatpush1.bf16.msra.mxu1 %v15198_v29  ;;  %8734 = vmatprep.mubr.bf16.mxu1 %v8182_v46  ;;  %v8168_v29 = vld [vmem:[#allocation2 + $0x60] sm:$0xff] }
 0x46d   : > { %10433 = vmatprep.subr.bf16.mxu1 %v15199_v51  ;;  %v11367_v51 = vld [vmem:[%s14932_s3 + $0x220] ss:$8 sps:$4 sm:$0xff]  }
 0x470   : > { %10449 = vmatpush1.bf16.msra.mxu1 %v15200_v6 }
 0x471   : > { %10434 = vmatprep.subr.bf16.mxu1 %v14321_v34 }
 0x472   : > { %v7578_v34 = vpop.f32.mrb[72].mxu0 }
 0x473   : > { %8735 = vmatmul.mubr.bf16.gmra.mrb[84].mxu1 %v8181_v35  ;;  %v7580_v23 = vpop.f32.mrb[73].mxu0  ;;  %v7657_v63 = vmul.f32 0.2, %v7578_v34 }
 0x474   : > { %10450 = vmatpush1.bf16.msra.mxu1 %v15201_v19  ;;  %8744 = vmatprep.mubr.bf16.mxu1 %v8187_v5  ;;  %v7582_v12 = vpop.f32.mrb[74].mxu0  ;;  %v7658_v21 = vmul.f32 0.2, %v7580_v23  ;;  %v8174_v19 = vld [vmem:[#allocation2 + $0x90] sm:$0xff] }
 0x475   : > { %10435 = vmatprep.subr.bf16.mxu1 %v15202_v53  ;;  %v7584_v38 = vpop.f32.mrb[75].mxu0  ;;  %v7689_v22 = vmax.f32 %v7578_v34, %v7657_v63  ;;  %v7659_v11 = vmul.f32 0.2, %v7582_v12  ;;  %v11372_v53 = vld [vmem:[%s14932_s3 + $0x234] ss:$8 sps:$4 sm:$0xff]  }
 0x476   : > { %v7690_v36 = vmax.f32 %v7580_v23, %v7658_v21  ;;  %v7660_v47 = vmul.f32 0.2, %v7584_v38  ;;  %v11370_v23 = vld [vmem:[%s14932_s3 + $0x230] ss:$8 sps:$4 sm:$0xff]  }
 0x477   : > { %v7691_v33 = vmax.f32 %v7582_v12, %v7659_v11 }
 0x478   : > { %10451 = vmatpush1.bf16.msra.mxu1 %v15203_v7  ;;  %v10391_v8 = vpack.c.bf16 %v7690_v36, %v7689_v22  ;;  %v7692_v0 = vmax.f32 %v7584_v38, %v7660_v47 }
 0x479   : > { %10436 = vmatprep.subr.bf16.mxu1 %v15204_v28 }
 0x47a   : > { %v7588_v24 = vpop.f32.mrb[76].mxu0  ;;  %10224 = vst [vmem:[%s12395_s10 + $0x100] sm:$0xff] %v10391_v8  ;;  %v10392_v58 = vpack.c.bf16 %v7692_v0, %v7691_v33 }
 0x47b   : > { %8745 = vmatmul.mubr.bf16.gmra.mrb[88].mxu1 %v8186_v60  ;;  %v7590_v52 = vpop.f32.mrb[77].mxu0  ;;  %v7661_v50 = vmul.f32 0.2, %v7588_v24 }
 0x47c   : > { %10452 = vmatpush1.bf16.msra.mxu1 %v15205_v42  ;;  %8754 = vmatprep.mubr.bf16.mxu1 %v8192_v54  ;;  %v7592_v40 = vpop.f32.mrb[78].mxu0  ;;  %v7662_v37 = vmul.f32 0.2, %v7590_v52  ;;  %10225 = vst [vmem:[%s12395_s10 + $0x108] sm:$0xff] %v10392_v58 }
 0x47d   : > { %10437 = vmatprep.subr.bf16.mxu1 %v15206_v62  ;;  %v7594_v44 = vpop.f32.mrb[79].mxu0  ;;  %v7663_v17 = vmul.f32 0.2, %v7592_v40  ;;  %v7693_v1 = vmax.f32 %v7588_v24, %v7661_v50  ;;  %v8178_v50 = vld [vmem:[#allocation2 + $0xb0] sm:$0xff] }
 0x47e   : > { %v7664_v3 = vmul.f32 0.2, %v7594_v44  ;;  %v7694_v9 = vmax.f32 %v7590_v52, %v7662_v37  ;;  %v8184_v37 = vld [vmem:[#allocation2 + $0xe0] sm:$0xff] }
 0x47f   : > { %v7695_v45 = vmax.f32 %v7592_v40, %v7663_v17  ;;  %v8179_v40 = vld [vmem:[#allocation2 + $0xb8] sm:$0xff] }
 0x480   : > { %10453 = vmatpush1.bf16.msra.mxu1 %v15207_v61  ;;  %v7696_v30 = vmax.f32 %v7594_v44, %v7664_v3  ;;  %v10393_v49 = vpack.c.bf16 %v7694_v9, %v7693_v1 }
 0x481   : > { %10438 = vmatprep.subr.bf16.mxu1 %v15208_v2 }
 0x482   : > { %v7598_v31 = vpop.f32.mrb[80].mxu0  ;;  %v10394_v43 = vpack.c.bf16 %v7696_v30, %v7695_v45  ;;  %10226 = vst [vmem:[%s12395_s10 + $0x110] sm:$0xff] %v10393_v49  ;;  %v8189_v49 = vld [vmem:[#allocation2 + $0x108] sm:$0xff] }
 0x483   : > { %8755 = vmatmul.mubr.bf16.gmra.mrb[92].mxu1 %v8191_v14  ;;  %v7665_v59 = vmul.f32 0.2, %v7598_v31  ;;  %v7600_v39 = vpop.f32.mrb[81].mxu0 }
 0x484   : > { %10454 = vmatpush1.bf16.msra.mxu1 %v15209_v26  ;;  %8807 = vmatprep.mubr.bf16.mxu1 %v8164_v57  ;;  %v7602_v15 = vpop.f32.mrb[82].mxu0  ;;  %v7666_v55 = vmul.f32 0.2, %v7600_v39  ;;  %10227 = vst [vmem:[%s12395_s10 + $0x118] sm:$0xff] %v10394_v43  ;;  %v8173_v26 = vld [vmem:[#allocation2 + $0x88] sm:$0xff] }
 0x485   : > { %10439 = vmatprep.subr.bf16.mxu1 %v15210_v20  ;;  %v7604_v25 = vpop.f32.mrb[83].mxu0  ;;  %v7697_v56 = vmax.f32 %v7598_v31, %v7665_v59  ;;  %v7667_v46 = vmul.f32 0.2, %v7602_v15 }
 0x486   : > { %v7698_v6 = vmax.f32 %v7600_v39, %v7666_v55  ;;  %v7668_v5 = vmul.f32 0.2, %v7604_v25 }
 0x487   : > { %v7699_v35 = vmax.f32 %v7602_v15, %v7667_v46 }
 0x488   : > { %10455 = vmatpush1.bf16.msra.mxu1 %v15211_v27  ;;  %v10395_v60 = vpack.c.bf16 %v7698_v6, %v7697_v56  ;;  %v7700_v28 = vmax.f32 %v7604_v25, %v7668_v5 }
 0x489   : > { %8878 = vmatprep.subr.bf16.mxu1 %v11363_v10 }
 0x48a   : > { %v7608_v7 = vpop.f32.mrb[84].mxu0  ;;  %10228 = vst [vmem:[%s12395_s10 + $0x120] sm:$0xff] %v10395_v60  ;;  %v10396_v61 = vpack.c.bf16 %v7700_v28, %v7699_v35  ;;  %v8188_v28 = vld [vmem:[#allocation2 + $0x100] sm:$0xff] }
 0x48b   : > { %8808 = vmatmul.mubr.bf16.vlgmr.msra.gmra.mrb[68].mxu1 %v8163_v48  ;;  %v7669_v54 = vmul.f32 0.2, %v7608_v7  ;;  %v7610_v42 = vpop.f32.mrb[85].mxu0 }
 0x48c   : > { %8879 = vmatpush1.bf16.msra.mxu1 %v11361_v32  ;;  %8817 = vmatprep.mubr.bf16.mxu1 %v8169_v16  ;;  %v7670_v62 = vmul.f32 0.2, %v7610_v42  ;;  %v7612_v34 = vpop.f32.mrb[86].mxu0  ;;  %10229 = vst [vmem:[%s12395_s10 + $0x128] sm:$0xff] %v10396_v61 }
 0x48d   : > { %8880 = vmatprep.subr.bf16.mxu1 %v11366_v18  ;;  %v7701_v14 = vmax.f32 %v7608_v7, %v7669_v54  ;;  %v7671_v12 = vmul.f32 0.2, %v7612_v34  ;;  %v7614_v2 = vpop.f32.mrb[87].mxu0  ;;  %v8194_v54 = vld [vmem:[#allocation2 + $0x130] sm:$0xff] }
 0x48e   : > { %v7702_v57 = vmax.f32 %v7610_v42, %v7670_v62  ;;  %v7672_v38 = vmul.f32 0.2, %v7614_v2 }
 0x48f   : > { %v7703_v63 = vmax.f32 %v7612_v34, %v7671_v12 }
 0x490   : > { %8881 = vmatpush1.bf16.msra.mxu1 %v11364_v41  ;;  %v10397_v24 = vpack.c.bf16 %v7702_v57, %v7701_v14  ;;  %v7704_v52 = vmax.f32 %v7614_v2, %v7672_v38 }
 0x491   : > { %8882 = vmatprep.subr.bf16.mxu1 %v11369_v4  ;;  %v8183_v4 = vld [vmem:[#allocation2 + $0xd8] sm:$0xff] }
 0x492   : > { %10230 = vst [vmem:[%s12395_s10 + $0x130] sm:$0xff] %v10397_v24  ;;  %v10398_v20 = vpack.c.bf16 %v7704_v52, %v7703_v63 }
 0x493   : > { %8818 = vmatmul.mubr.bf16.gmra.mrb[72].mxu1 %v8168_v29 }
 0x494   : > { %8827 = vmatprep.mubr.bf16.mxu1 %v8174_v19  ;;  %8883 = vmatpush1.bf16.msra.mxu1 %v11367_v51  ;;  %10231 = vst [vmem:[%s12395_s10 + $0x138] sm:$0xff] %v10398_v20 }
 0x495   : > { %8884 = vmatprep.subr.bf16.mxu1 %v11372_v53  ;;  %v7618_v10 = vpop.f32.mrb[88].mxu0 }
 0x496   : > { %v7673_v44 = vmul.f32 0.2, %v7618_v10  ;;  %v7620_v22 = vpop.f32.mrb[89].mxu0 }
 0x497   : > { %v7674_v21 = vmul.f32 0.2, %v7620_v22  ;;  %v7622_v11 = vpop.f32.mrb[90].mxu0 }
 0x498   : > { %8885 = vmatpush1.bf16.msra.mxu1 %v11370_v23  ;;  %v7705_v32 = vmax.f32 %v7618_v10, %v7673_v44  ;;  %v7675_v48 = vmul.f32 0.2, %v7622_v11  ;;  %v7624_v16 = vpop.f32.mrb[91].mxu0 }
 0x499   : > { %v7706_v27 = vmax.f32 %v7620_v22, %v7674_v21  ;;  %v7676_v18 = vmul.f32 0.2, %v7624_v16 }
 0x49a   : > { %v7707_v36 = vmax.f32 %v7622_v11, %v7675_v48  ;;  %v8160_v11 = vld [vmem:[#allocation2 + $0x20] sm:$0xff]  ;;  %v8170_v48 = vld [vmem:[#allocation2 + $0x70] sm:$0xff] }
 0x49b   : > { %8828 = vmatmul.mubr.bf16.gmra.mrb[76].mxu1 %v8173_v26  ;;  %v10399_v33 = vpack.c.bf16 %v7706_v27, %v7705_v32  ;;  %v7708_v47 = vmax.f32 %v7624_v16, %v7676_v18  ;;  %v8165_v32 = vld [vmem:[#allocation2 + $0x48] sm:$0xff]  ;;  %v8175_v16 = vld [vmem:[#allocation2 + $0x98] sm:$0xff] }
 0x49c   : > { %8837 = vmatprep.mubr.bf16.mxu1 %v8179_v40  ;;  %v8193_v40 = vld [vmem:[#allocation2 + $0x128] sm:$0xff] }
 0x49d   : > { %10232 = vst [vmem:[%s12395_s10 + $0x140] sm:$0xff] %v10399_v33  ;;  %v10400_v17 = vpack.c.bf16 %v7708_v47, %v7707_v36  ;;  %v7628_v3 = vpop.f32.mrb[92].mxu0 }
 0x49e   : > { %v7677_v8 = vmul.f32 0.2, %v7628_v3  ;;  %v7630_v0 = vpop.f32.mrb[93].mxu0 }
 0x49f   : > { %10233 = vst [vmem:[%s12395_s10 + $0x148] sm:$0xff] %v10400_v17  ;;  %v7678_v1 = vmul.f32 0.2, %v7630_v0  ;;  %v7632_v31 = vpop.f32.mrb[94].mxu0 }
 0x4a0   : > { %v7709_v9 = vmax.f32 %v7628_v3, %v7677_v8  ;;  %v7679_v45 = vmul.f32 0.2, %v7632_v31  ;;  %v7634_v30 = vpop.f32.mrb[95].mxu0 }
 0x4a1   : > { %v7710_v59 = vmax.f32 %v7630_v0, %v7678_v1  ;;  %v7680_v39 = vmul.f32 0.2, %v7634_v30 }
 0x4a2   : > { %v7711_v41 = vmax.f32 %v7632_v31, %v7679_v45 }
 0x4a3   : > { %8838 = vmatmul.mubr.bf16.gmra.mrb[80].mxu1 %v8178_v50  ;;  %v10401_v58 = vpack.c.bf16 %v7710_v59, %v7709_v9  ;;  %v7712_v15 = vmax.f32 %v7634_v30, %v7680_v39  ;;  %v8180_v50 = vld [vmem:[#allocation2 + $0xc0] sm:$0xff] }
 0x4a4   : > { %8847 = vmatprep.mubr.bf16.mxu1 %v8184_v37 }
 0x4a5   : > { %10234 = vst [vmem:[%s12395_s10 + $0x150] sm:$0xff] %v10401_v58  ;;  %v10402_v43 = vpack.c.bf16 %v7712_v15, %v7711_v41  ;;  %v7638_v25 = vpop.f32.mrb[96].mxu0  ;;  %v8185_v15 = vld [vmem:[#allocation2 + $0xe8] sm:$0xff] }
 0x4a6   : > { %v7681_v56 = vmul.f32 0.2, %v7638_v25  ;;  %v7640_v55 = vpop.f32.mrb[97].mxu0 }
 0x4a7   : > { %10235 = vst [vmem:[%s12395_s10 + $0x158] sm:$0xff] %v10402_v43  ;;  %v7682_v46 = vmul.f32 0.2, %v7640_v55  ;;  %v7642_v29 = vpop.f32.mrb[98].mxu0 }
 0x4a8   : > { %v7713_v51 = vmax.f32 %v7638_v25, %v7681_v56  ;;  %v7683_v6 = vmul.f32 0.2, %v7642_v29  ;;  %v7644_v35 = vpop.f32.mrb[99].mxu0 }
 0x4a9   : > { %v7714_v5 = vmax.f32 %v7640_v55, %v7682_v46  ;;  %v7684_v19 = vmul.f32 0.2, %v7644_v35 }
 0x4aa   : > { %v7715_v53 = vmax.f32 %v7642_v29, %v7683_v6 }
 0x4ab   : > { %8848 = vmatmul.mubr.bf16.gmra.mrb[84].mxu1 %v8183_v4  ;;  %v10403_v7 = vpack.c.bf16 %v7714_v5, %v7713_v51  ;;  %v7716_v60 = vmax.f32 %v7644_v35, %v7684_v19 }
 0x4ac   : > { %8857 = vmatprep.mubr.bf16.mxu1 %v8189_v49 }
 0x4ad   : > { %10236 = vst [vmem:[%s12395_s10 + $0x160] sm:$0xff] %v10403_v7  ;;  %v10404_v42 = vpack.c.bf16 %v7716_v60, %v7715_v53  ;;  %v7648_v62 = vpop.f32.mrb[100].mxu0  ;;  %v8190_v7 = vld [vmem:[#allocation2 + $0x110] sm:$0xff] }
 0x4ae   : > { %v7685_v34 = vmul.f32 0.2, %v7648_v62  ;;  %v7650_v23 = vpop.f32.mrb[101].mxu0 }
 0x4af   : > { %10237 = vst [vmem:[%s12395_s10 + $0x168] sm:$0xff] %v10404_v42  ;;  %v7686_v61 = vmul.f32 0.2, %v7650_v23  ;;  %v7652_v14 = vpop.f32.mrb[102].mxu0 }
 0x4b0   : > { %v7717_v12 = vmax.f32 %v7648_v62, %v7685_v34  ;;  %v7687_v2 = vmul.f32 0.2, %v7652_v14  ;;  %v7654_v57 = vpop.f32.mrb[103].mxu0 }
 0x4b1   : > { %v7718_v38 = vmax.f32 %v7650_v23, %v7686_v61  ;;  %v7688_v63 = vmul.f32 0.2, %v7654_v57 }
 0x4b2   : > { %v7719_v24 = vmax.f32 %v7652_v14, %v7687_v2 }
 0x4b3   : > { %8858 = vmatmul.mubr.bf16.gmra.mrb[88].mxu1 %v8188_v28  ;;  %v10405_v52 = vpack.c.bf16 %v7718_v38, %v7717_v12  ;;  %v7720_v26 = vmax.f32 %v7654_v57, %v7688_v63 }
 0x4b4   : > { %8867 = vmatprep.mubr.bf16.mxu1 %v8194_v54 }
 0x4b5   : > { %10238 = vst [vmem:[%s12395_s10 + $0x170] sm:$0xff] %v10405_v52  ;;  %v10406_v20 = vpack.c.bf16 %v7720_v26, %v7719_v24  ;;  %v14710_v10 = vpop.f32.mrb[104].mxu0  ;;  %v8195_v24 = vld [vmem:[#allocation2 + $0x138] sm:$0xff] }
 0x4b6   : > { %v14712_v44 = vpop.f32.mrb[105].mxu0 }
 0x4b7   : > { %10239 = vst [vmem:[%s12395_s10 + $0x178] sm:$0xff] %v10406_v20  ;;  %v14715_v22 = vpop.f32.mrb[106].mxu0 }
 0x4b8   : > { %v14718_v21 = vpop.f32.mrb[107].mxu0 }
 0x4bb   : > { %8868 = vmatmul.mubr.bf16.gmra.mrb[92].mxu1 %v8193_v40 }
 0x4bc   : > { %8910 = vmatprep.mubr.bf16.mxu1 %v15076_v13 }
 0x4c3   : > { %10312 = vmatmul.mubr.msk.bf16.vlgmr.msra.gmra.mrb[96].mxu1 %vm15212_vm3, %v8160_v11 }
 0x4c4   : > { %8920 = vmatprep.mubr.bf16.mxu1 %v15076_v13 }
 0x4cb   : > { %10313 = vmatmul.mubr.msk.bf16.gmra.mrb[68].mxu1 %vm15213_vm7, %v8165_v32 }
 0x4cc   : > { %8930 = vmatprep.mubr.bf16.mxu1 %v15076_v13 }
 0x4d3   : > { %10314 = vmatmul.mubr.msk.bf16.gmra.mrb[72].mxu1 %vm15214_vm1, %v8170_v48 }
 0x4d4   : > { %8940 = vmatprep.mubr.bf16.mxu1 %v15076_v13 }
 0x4db   : > { %10315 = vmatmul.mubr.msk.bf16.gmra.mrb[76].mxu1 %vm15215_vm4, %v8175_v16 }
 0x4dc   : > { %8950 = vmatprep.mubr.bf16.mxu1 %v15076_v13 }
 0x4de   : > { %v6180_v27 = vpop.f32.mrb[32].mxu1 }
 0x4df   : > { %v6259_v18 = vmul.f32 0.2, %v6180_v27  ;;  %v6182_v36 = vpop.f32.mrb[33].mxu1 }
 0x4e0   : > { %v6260_v33 = vmul.f32 0.2, %v6182_v36  ;;  %v6184_v47 = vpop.f32.mrb[34].mxu1 }
 0x4e1   : > { %v6291_v37 = vmax.f32 %v6180_v27, %v6259_v18  ;;  %v6261_v17 = vmul.f32 0.2, %v6184_v47  ;;  %v6186_v3 = vpop.f32.mrb[35].mxu1 }
 0x4e2   : > { %v6292_v8 = vmax.f32 %v6182_v36, %v6260_v33  ;;  %v6262_v0 = vmul.f32 0.2, %v6186_v3 }
 0x4e3   : > { %v6293_v1 = vmax.f32 %v6184_v47, %v6261_v17  ;;  %10316 = vmatmul.mubr.msk.bf16.gmra.mrb[80].mxu1 %vm15216_vm12, %v8180_v50 }
 0x4e4   : > { %v10375_v31 = vpack.c.bf16 %v6292_v8, %v6291_v37  ;;  %v6294_v9 = vmax.f32 %v6186_v3, %v6262_v0  ;;  %8960 = vmatprep.mubr.bf16.mxu1 %v15076_v13 }
 0x4e6   : > { %10112 = vst [vmem:[%s12395_s10 + $0x80] sm:$0xff] %v10375_v31  ;;  %v10376_v45 = vpack.c.bf16 %v6294_v9, %v6293_v1  ;;  %v6190_v30 = vpop.f32.mrb[36].mxu1 }
 0x4e7   : > { %v6263_v59 = vmul.f32 0.2, %v6190_v30  ;;  %v6192_v39 = vpop.f32.mrb[37].mxu1 }
 0x4e8   : > { %10113 = vst [vmem:[%s12395_s10 + $0x88] sm:$0xff] %v10376_v45  ;;  %v6264_v41 = vmul.f32 0.2, %v6192_v39  ;;  %v6194_v58 = vpop.f32.mrb[38].mxu1 }
 0x4e9   : > { %v6295_v4 = vmax.f32 %v6190_v30, %v6263_v59  ;;  %v6265_v49 = vmul.f32 0.2, %v6194_v58  ;;  %v6196_v43 = vpop.f32.mrb[39].mxu1 }
 0x4ea   : > { %v6296_v25 = vmax.f32 %v6192_v39, %v6264_v41  ;;  %v6266_v56 = vmul.f32 0.2, %v6196_v43 }
 0x4eb   : > { %v6297_v55 = vmax.f32 %v6194_v58, %v6265_v49  ;;  %10317 = vmatmul.mubr.msk.bf16.gmra.mrb[84].mxu1 %vm15217_vm14, %v8185_v15 }
 0x4ec   : > { %v10377_v46 = vpack.c.bf16 %v6296_v25, %v6295_v4  ;;  %v6298_v29 = vmax.f32 %v6196_v43, %v6266_v56  ;;  %8970 = vmatprep.mubr.bf16.mxu1 %v15076_v13 }
 0x4ee   : > { %10114 = vst [vmem:[%s12395_s10 + $0x90] sm:$0xff] %v10377_v46  ;;  %v10378_v51 = vpack.c.bf16 %v6298_v29, %v6297_v55  ;;  %v6200_v6 = vpop.f32.mrb[40].mxu1 }
 0x4ef   : > { %v6267_v35 = vmul.f32 0.2, %v6200_v6  ;;  %v6202_v5 = vpop.f32.mrb[41].mxu1 }
 0x4f0   : > { %10115 = vst [vmem:[%s12395_s10 + $0x98] sm:$0xff] %v10378_v51  ;;  %v6268_v19 = vmul.f32 0.2, %v6202_v5  ;;  %v6204_v53 = vpop.f32.mrb[42].mxu1 }
 0x4f1   : > { %v6299_v60 = vmax.f32 %v6200_v6, %v6267_v35  ;;  %v6269_v28 = vmul.f32 0.2, %v6204_v53  ;;  %v6206_v54 = vpop.f32.mrb[43].mxu1 }
 0x4f2   : > { %v6300_v42 = vmax.f32 %v6202_v5, %v6268_v19  ;;  %v6270_v62 = vmul.f32 0.2, %v6206_v54 }
 0x4f3   : > { %v6301_v34 = vmax.f32 %v6204_v53, %v6269_v28  ;;  %10318 = vmatmul.mubr.msk.bf16.gmra.mrb[88].mxu1 %vm15218_vm9, %v8190_v7 }
 0x4f4   : > { %v10379_v23 = vpack.c.bf16 %v6300_v42, %v6299_v60  ;;  %v6302_v61 = vmax.f32 %v6206_v54, %v6270_v62  ;;  %8980 = vmatprep.mubr.bf16.mxu1 %v15076_v13 }
 0x4f6   : > { %10116 = vst [vmem:[%s12395_s10 + $0xa0] sm:$0xff] %v10379_v23  ;;  %v10380_v14 = vpack.c.bf16 %v6302_v61, %v6301_v34  ;;  %v6210_v12 = vpop.f32.mrb[44].mxu1 }
 0x4f7   : > { %v6271_v2 = vmul.f32 0.2, %v6210_v12  ;;  %v6212_v57 = vpop.f32.mrb[45].mxu1 }
 0x4f8   : > { %10117 = vst [vmem:[%s12395_s10 + $0xa8] sm:$0xff] %v10380_v14  ;;  %v6272_v38 = vmul.f32 0.2, %v6212_v57  ;;  %v6214_v63 = vpop.f32.mrb[46].mxu1 }
 0x4f9   : > { %v6303_v52 = vmax.f32 %v6210_v12, %v6271_v2  ;;  %v6273_v26 = vmul.f32 0.2, %v6214_v63  ;;  %v6216_v40 = vpop.f32.mrb[47].mxu1 }
 0x4fa   : > { %v6304_v20 = vmax.f32 %v6212_v57, %v6272_v38  ;;  %v6274_v11 = vmul.f32 0.2, %v6216_v40 }
 0x4fb   : > { %v6305_v32 = vmax.f32 %v6214_v63, %v6273_v26  ;;  %10319 = vmatmul.mubr.msk.bf16.gmra.mrb[92].mxu1 %vm15219_vm13, %v8195_v24 }
 0x4fc   : > { %v10381_v13 = vpack.c.bf16 %v6304_v20, %v6303_v52  ;;  %v6306_v48 = vmax.f32 %v6216_v40, %v6274_v11 }
 0x4fe   : > { %10118 = vst [vmem:[%s12395_s10 + $0xb0] sm:$0xff] %v10381_v13  ;;  %v10382_v16 = vpack.c.bf16 %v6306_v48, %v6305_v32  ;;  %v6220_v27 = vpop.f32.mrb[48].mxu1 }
 0x4ff   : > { %v6275_v18 = vmul.f32 0.2, %v6220_v27  ;;  %v6222_v36 = vpop.f32.mrb[49].mxu1 }
 0x500   : > { %10119 = vst [vmem:[%s12395_s10 + $0xb8] sm:$0xff] %v10382_v16  ;;  %v6276_v33 = vmul.f32 0.2, %v6222_v36  ;;  %v6224_v47 = vpop.f32.mrb[50].mxu1 }
 0x501   : > { %v6307_v50 = vmax.f32 %v6220_v27, %v6275_v18  ;;  %v6277_v37 = vmul.f32 0.2, %v6224_v47  ;;  %v6226_v17 = vpop.f32.mrb[51].mxu1 }
 0x502   : > { %v6308_v3 = vmax.f32 %v6222_v36, %v6276_v33  ;;  %v6278_v8 = vmul.f32 0.2, %v6226_v17 }
 0x503   : > { %v6309_v0 = vmax.f32 %v6224_v47, %v6277_v37 }
 0x504   : > { %v10383_v1 = vpack.c.bf16 %v6308_v3, %v6307_v50  ;;  %v6310_v31 = vmax.f32 %v6226_v17, %v6278_v8 }
 0x506   : > { %10120 = vst [vmem:[%s12395_s10 + $0xc0] sm:$0xff] %v10383_v1  ;;  %v10384_v9 = vpack.c.bf16 %v6310_v31, %v6309_v0  ;;  %v6230_v45 = vpop.f32.mrb[52].mxu1 }
 0x507   : > { %v6279_v30 = vmul.f32 0.2, %v6230_v45  ;;  %v6232_v59 = vpop.f32.mrb[53].mxu1 }
 0x508   : > { %10121 = vst [vmem:[%s12395_s10 + $0xc8] sm:$0xff] %v10384_v9  ;;  %v6280_v39 = vmul.f32 0.2, %v6232_v59  ;;  %v6234_v41 = vpop.f32.mrb[54].mxu1 }
 0x509   : > { %v6311_v58 = vmax.f32 %v6230_v45, %v6279_v30  ;;  %v6281_v15 = vmul.f32 0.2, %v6234_v41  ;;  %v6236_v4 = vpop.f32.mrb[55].mxu1 }
 0x50a   : > { %v6312_v49 = vmax.f32 %v6232_v59, %v6280_v39  ;;  %v6282_v43 = vmul.f32 0.2, %v6236_v4 }
 0x50b   : > { %v6313_v25 = vmax.f32 %v6234_v41, %v6281_v15 }
 0x50c   : > { %v10385_v56 = vpack.c.bf16 %v6312_v49, %v6311_v58  ;;  %v6314_v55 = vmax.f32 %v6236_v4, %v6282_v43 }
 0x50e   : > { %10122 = vst [vmem:[%s12395_s10 + $0xd0] sm:$0xff] %v10385_v56  ;;  %v10386_v46 = vpack.c.bf16 %v6314_v55, %v6313_v25  ;;  %v6240_v29 = vpop.f32.mrb[56].mxu1 }
 0x50f   : > { %v6283_v51 = vmul.f32 0.2, %v6240_v29  ;;  %v6242_v6 = vpop.f32.mrb[57].mxu1 }
 0x510   : > { %10123 = vst [vmem:[%s12395_s10 + $0xd8] sm:$0xff] %v10386_v46  ;;  %v6284_v35 = vmul.f32 0.2, %v6242_v6  ;;  %v6244_v5 = vpop.f32.mrb[58].mxu1 }
 0x511   : > { %v6315_v19 = vmax.f32 %v6240_v29, %v6283_v51  ;;  %v6285_v53 = vmul.f32 0.2, %v6244_v5  ;;  %v6246_v7 = vpop.f32.mrb[59].mxu1 }
 0x512   : > { %v6316_v60 = vmax.f32 %v6242_v6, %v6284_v35  ;;  %v6286_v28 = vmul.f32 0.2, %v6246_v7 }
 0x513   : > { %v6317_v54 = vmax.f32 %v6244_v5, %v6285_v53 }
 0x514   : > { %v10387_v42 = vpack.c.bf16 %v6316_v60, %v6315_v19  ;;  %v6318_v62 = vmax.f32 %v6246_v7, %v6286_v28 }
 0x516   : > { %10124 = vst [vmem:[%s12395_s10 + $0xe0] sm:$0xff] %v10387_v42  ;;  %v10388_v34 = vpack.c.bf16 %v6318_v62, %v6317_v54  ;;  %v6250_v23 = vpop.f32.mrb[60].mxu1 }
 0x517   : > { %v6287_v61 = vmul.f32 0.2, %v6250_v23  ;;  %v6252_v14 = vpop.f32.mrb[61].mxu1 }
 0x518   : > { %10125 = vst [vmem:[%s12395_s10 + $0xe8] sm:$0xff] %v10388_v34  ;;  %v6288_v12 = vmul.f32 0.2, %v6252_v14  ;;  %v6254_v2 = vpop.f32.mrb[62].mxu1 }
 0x519   : > { %v6319_v57 = vmax.f32 %v6250_v23, %v6287_v61  ;;  %v6289_v38 = vmul.f32 0.2, %v6254_v2  ;;  %v6256_v63 = vpop.f32.mrb[63].mxu1 }
 0x51a   : > { %v6320_v24 = vmax.f32 %v6252_v14, %v6288_v12  ;;  %v6290_v52 = vmul.f32 0.2, %v6256_v63 }
 0x51b   : > { %v6321_v26 = vmax.f32 %v6254_v2, %v6289_v38 }
 0x51c   : > { %v10389_v40 = vpack.c.bf16 %v6320_v24, %v6319_v57  ;;  %v6322_v20 = vmax.f32 %v6256_v63, %v6290_v52 }
 0x51e   : > { %10126 = vst [vmem:[%s12395_s10 + $0xf0] sm:$0xff] %v10389_v40  ;;  %v10390_v11 = vpack.c.bf16 %v6322_v20, %v6321_v26  ;;  %v8686_v32 = vpop.f32.mrb[64].mxu1 }
 0x51f   : > { %v8800_v13 = vadd.f32 %v14710_v10, %v8686_v32  ;;  %v8688_v48 = vpop.f32.mrb[65].mxu1 }
 0x520   : > { %10127 = vst [vmem:[%s12395_s10 + $0xf8] sm:$0xff] %v10390_v11  ;;  %v8802_v16 = vadd.f32 %v14712_v44, %v8688_v48  ;;  %v8690_v27 = vpop.f32.mrb[66].mxu1 }
 0x521   : > { %v8804_v18 = vadd.f32 %v14715_v22, %v8690_v27  ;;  %v8692_v36 = vpop.f32.mrb[67].mxu1 }
 0x522   : > { %v8806_v33 = vadd.f32 %v14718_v21, %v8692_v36 }
 0x596   : > { %v8912_v47 = vpop.f32.mrb[96].mxu1 }
 0x597   : > { %v8913_v50 = vadd.f32 %v8912_v47, %v8800_v13  ;;  %v8914_v37 = vpop.f32.mrb[97].mxu1 }
 0x598   : > { %v8915_v17 = vadd.f32 %v8914_v37, %v8802_v16  ;;  %v8916_v3 = vpop.f32.mrb[98].mxu1 }
 0x599   : > { %v8991_v8 = vmul.f32 0.2, %v8913_v50  ;;  %v8917_v0 = vadd.f32 %v8916_v3, %v8804_v18  ;;  %v8918_v1 = vpop.f32.mrb[99].mxu1 }
 0x59a   : > { %v8992_v10 = vmul.f32 0.2, %v8915_v17  ;;  %v8919_v31 = vadd.f32 %v8918_v1, %v8806_v33 }
 0x59b   : > { %v9023_v9 = vmax.f32 %v8913_v50, %v8991_v8  ;;  %v8993_v45 = vmul.f32 0.2, %v8917_v0 }
 0x59c   : > { %v9024_v44 = vmax.f32 %v8915_v17, %v8992_v10  ;;  %v8994_v30 = vmul.f32 0.2, %v8919_v31 }
 0x59d   : > { %v9025_v22 = vmax.f32 %v8917_v0, %v8993_v45 }
 0x59e   : > { %v10407_v59 = vpack.c.bf16 %v9024_v44, %v9023_v9  ;;  %v9026_v39 = vmax.f32 %v8919_v31, %v8994_v30  ;;  %v8922_v21 = vpop.f32.mrb[68].mxu1 }
 0x59f   : > { %v8995_v41 = vmul.f32 0.2, %v8922_v21  ;;  %v8924_v58 = vpop.f32.mrb[69].mxu1 }
 0x5a0   : > { %10336 = vst [vmem:[%s12395_s10 + $0x180] sm:$0xff] %v10407_v59  ;;  %v10408_v15 = vpack.c.bf16 %v9026_v39, %v9025_v22  ;;  %v8996_v4 = vmul.f32 0.2, %v8924_v58  ;;  %v8926_v49 = vpop.f32.mrb[70].mxu1 }
 0x5a1   : > { %v9027_v43 = vmax.f32 %v8922_v21, %v8995_v41  ;;  %v8997_v25 = vmul.f32 0.2, %v8926_v49  ;;  %v8928_v56 = vpop.f32.mrb[71].mxu1 }
 0x5a2   : > { %10337 = vst [vmem:[%s12395_s10 + $0x188] sm:$0xff] %v10408_v15  ;;  %v9028_v55 = vmax.f32 %v8924_v58, %v8996_v4  ;;  %v8998_v46 = vmul.f32 0.2, %v8928_v56 }
 0x5a3   : > { %v9029_v29 = vmax.f32 %v8926_v49, %v8997_v25 }
 0x5a4   : > { %v10409_v51 = vpack.c.bf16 %v9028_v55, %v9027_v43  ;;  %v9030_v6 = vmax.f32 %v8928_v56, %v8998_v46 }
 0x5a6   : > { %10338 = vst [vmem:[%s12395_s10 + $0x190] sm:$0xff] %v10409_v51  ;;  %v10410_v35 = vpack.c.bf16 %v9030_v6, %v9029_v29  ;;  %v8932_v5 = vpop.f32.mrb[72].mxu1 }
 0x5a7   : > { %v8999_v19 = vmul.f32 0.2, %v8932_v5  ;;  %v8934_v53 = vpop.f32.mrb[73].mxu1 }
 0x5a8   : > { %10339 = vst [vmem:[%s12395_s10 + $0x198] sm:$0xff] %v10410_v35  ;;  %v9000_v7 = vmul.f32 0.2, %v8934_v53  ;;  %v8936_v60 = vpop.f32.mrb[74].mxu1 }
 0x5a9   : > { %v9031_v28 = vmax.f32 %v8932_v5, %v8999_v19  ;;  %v9001_v54 = vmul.f32 0.2, %v8936_v60  ;;  %v8938_v42 = vpop.f32.mrb[75].mxu1 }
 0x5aa   : > { %v9032_v62 = vmax.f32 %v8934_v53, %v9000_v7  ;;  %v9002_v34 = vmul.f32 0.2, %v8938_v42 }
 0x5ab   : > { %v9033_v23 = vmax.f32 %v8936_v60, %v9001_v54 }
 0x5ac   : > { %v10411_v61 = vpack.c.bf16 %v9032_v62, %v9031_v28  ;;  %v9034_v14 = vmax.f32 %v8938_v42, %v9002_v34 }
 0x5ae   : > { %10340 = vst [vmem:[%s12395_s10 + $0x1a0] sm:$0xff] %v10411_v61  ;;  %v10412_v12 = vpack.c.bf16 %v9034_v14, %v9033_v23  ;;  %v8942_v2 = vpop.f32.mrb[76].mxu1 }
 0x5af   : > { %v9003_v57 = vmul.f32 0.2, %v8942_v2  ;;  %v8944_v38 = vpop.f32.mrb[77].mxu1 }
 0x5b0   : > { %10341 = vst [vmem:[%s12395_s10 + $0x1a8] sm:$0xff] %v10412_v12  ;;  %v9004_v63 = vmul.f32 0.2, %v8944_v38  ;;  %v8946_v24 = vpop.f32.mrb[78].mxu1 }
 0x5b1   : > { %v9035_v52 = vmax.f32 %v8942_v2, %v9003_v57  ;;  %v9005_v26 = vmul.f32 0.2, %v8946_v24  ;;  %v8948_v40 = vpop.f32.mrb[79].mxu1 }
 0x5b2   : > { %v9036_v20 = vmax.f32 %v8944_v38, %v9004_v63  ;;  %v9006_v11 = vmul.f32 0.2, %v8948_v40 }
 0x5b3   : > { %v9037_v32 = vmax.f32 %v8946_v24, %v9005_v26  ;;  %v9334_v26 = vld [vmem:[%s12395_s10] sm:$0xff] (%p11533_p5) }
 0x5b4   : > { %v10413_v13 = vpack.c.bf16 %v9036_v20, %v9035_v52  ;;  %v9038_v48 = vmax.f32 %v8948_v40, %v9006_v11  ;;  %v9336_v40 = vld [vmem:[%s12395_s10 + $0x8] sm:$0xff] (%p11533_p5)  ;;  %v9338_v20 = vld [vmem:[%s12395_s10 + $0x10] sm:$0xff] (%p11533_p5)  ;;  %v9340_v11 = vld [vmem:[%s12395_s10 + $0x18] sm:$0xff] (%p11533_p5)  ;;  %9335 = vst [vmem:[%s14787_s13] sm:$0xff] (%p11533_p5), %v9334_v26 }
 0x5b5   : > { %9337 = vst [vmem:[%s14787_s13 + $0x8] sm:$0xff] (%p11533_p5), %v9336_v40  ;;  %9339 = vst [vmem:[%s14787_s13 + $0x10] sm:$0xff] (%p11533_p5), %v9338_v20 }
 0x5b6   : > { %10342 = vst [vmem:[%s12395_s10 + $0x1b0] sm:$0xff] %v10413_v13  ;;  %v10414_v16 = vpack.c.bf16 %v9038_v48, %v9037_v32  ;;  %v8952_v27 = vpop.f32.mrb[80].mxu1  ;;  %v9342_v32 = vld [vmem:[%s12395_s10 + $0x20] sm:$0xff] (%p11533_p5)  ;;  %v9344_v13 = vld [vmem:[%s12395_s10 + $0x28] sm:$0xff] (%p11533_p5)  ;;  %v9346_v48 = vld [vmem:[%s12395_s10 + $0x30] sm:$0xff] (%p11533_p5) }
 0x5b7   : > { %v9007_v18 = vmul.f32 0.2, %v8952_v27  ;;  %v8954_v36 = vpop.f32.mrb[81].mxu1  ;;  %9341 = vst [vmem:[%s14787_s13 + $0x18] sm:$0xff] (%p11533_p5), %v9340_v11  ;;  %9343 = vst [vmem:[%s14787_s13 + $0x20] sm:$0xff] (%p11533_p5), %v9342_v32 }
 0x5b8   : > { %10343 = vst [vmem:[%s12395_s10 + $0x1b8] sm:$0xff] %v10414_v16  ;;  %v9008_v33 = vmul.f32 0.2, %v8954_v36  ;;  %v8956_v47 = vpop.f32.mrb[82].mxu1  ;;  %v9348_v16 = vld [vmem:[%s12395_s10 + $0x38] sm:$0xff] (%p11533_p5)  ;;  %9345 = vst [vmem:[%s14787_s13 + $0x28] sm:$0xff] (%p11533_p5), %v9344_v13 }
 0x5b9   : > { %v9039_v50 = vmax.f32 %v8952_v27, %v9007_v18  ;;  %v9009_v37 = vmul.f32 0.2, %v8956_v47  ;;  %v8958_v17 = vpop.f32.mrb[83].mxu1  ;;  %v9350_v27 = vld [vmem:[%s12395_s10 + $0x40] sm:$0xff] (%p11533_p5)  ;;  %v9352_v18 = vld [vmem:[%s12395_s10 + $0x48] sm:$0xff] (%p11533_p5)  ;;  %9347 = vst [vmem:[%s14787_s13 + $0x30] sm:$0xff] (%p11533_p5), %v9346_v48 }
 0x5ba   : > { %v9040_v3 = vmax.f32 %v8954_v36, %v9008_v33  ;;  %v9010_v8 = vmul.f32 0.2, %v8958_v17  ;;  %v9354_v36 = vld [vmem:[%s12395_s10 + $0x50] sm:$0xff] (%p11533_p5)  ;;  %v9356_v33 = vld [vmem:[%s12395_s10 + $0x58] sm:$0xff] (%p11533_p5)  ;;  %9349 = vst [vmem:[%s14787_s13 + $0x38] sm:$0xff] (%p11533_p5), %v9348_v16  ;;  %9351 = vst [vmem:[%s14787_s13 + $0x40] sm:$0xff] (%p11533_p5), %v9350_v27 }
 0x5bb   : > { %v9041_v0 = vmax.f32 %v8956_v47, %v9009_v37  ;;  %9353 = vst [vmem:[%s14787_s13 + $0x48] sm:$0xff] (%p11533_p5), %v9352_v18  ;;  %9355 = vst [vmem:[%s14787_s13 + $0x50] sm:$0xff] (%p11533_p5), %v9354_v36  ;;  %v9358_v47 = vld [vmem:[%s12395_s10 + $0x60] sm:$0xff] (%p11533_p5)  ;;  %v9362_v37 = vld [vmem:[%s12395_s10 + $0x70] sm:$0xff] (%p11533_p5) }
 0x5bc   : > { %v10415_v1 = vpack.c.bf16 %v9040_v3, %v9039_v50  ;;  %v9042_v10 = vmax.f32 %v8958_v17, %v9010_v8  ;;  %9357 = vst [vmem:[%s14787_s13 + $0x58] sm:$0xff] (%p11533_p5), %v9356_v33  ;;  %v9360_v50 = vld [vmem:[%s12395_s10 + $0x68] sm:$0xff] (%p11533_p5)  ;;  %9359 = vst [vmem:[%s14787_s13 + $0x60] sm:$0xff] (%p11533_p5), %v9358_v47  ;;  %v9364_v17 = vld [vmem:[%s12395_s10 + $0x78] sm:$0xff] (%p11533_p5) }
 0x5bd   : > { %9361 = vst [vmem:[%s14787_s13 + $0x68] sm:$0xff] (%p11533_p5), %v9360_v50  ;;  %9363 = vst [vmem:[%s14787_s13 + $0x70] sm:$0xff] (%p11533_p5), %v9362_v37  ;;  %v9366_v3 = vld [vmem:[%s12395_s10 + $0x80] sm:$0xff] (%p11533_p5)  ;;  %v9368_v8 = vld [vmem:[%s12395_s10 + $0x88] sm:$0xff] (%p11533_p5) }
 0x5be   : > { %10344 = vst [vmem:[%s12395_s10 + $0x1c0] sm:$0xff] %v10415_v1  ;;  %v10416_v31 = vpack.c.bf16 %v9042_v10, %v9041_v0  ;;  %v8962_v9 = vpop.f32.mrb[84].mxu1  ;;  %9365 = vst [vmem:[%s14787_s13 + $0x78] sm:$0xff] (%p11533_p5), %v9364_v17  ;;  %v9370_v0 = vld [vmem:[%s12395_s10 + $0x90] sm:$0xff] (%p11533_p5)  ;;  %v9372_v1 = vld [vmem:[%s12395_s10 + $0x98] sm:$0xff] (%p11533_p5) }
 0x5bf   : > { %v9011_v45 = vmul.f32 0.2, %v8962_v9  ;;  %v8964_v44 = vpop.f32.mrb[85].mxu1  ;;  %9367 = vst [vmem:[%s14787_s13 + $0x100] sm:$0xff] (%p11533_p5), %v9366_v3  ;;  %9369 = vst [vmem:[%s14787_s13 + $0x108] sm:$0xff] (%p11533_p5), %v9368_v8  ;;  %v9374_v10 = vld [vmem:[%s12395_s10 + $0xa0] sm:$0xff] (%p11533_p5) }
 0x5c0   : > { %10345 = vst [vmem:[%s12395_s10 + $0x1c8] sm:$0xff] %v10416_v31  ;;  %v9012_v30 = vmul.f32 0.2, %v8964_v44  ;;  %v8966_v22 = vpop.f32.mrb[86].mxu1  ;;  %9371 = vst [vmem:[%s14787_s13 + $0x110] sm:$0xff] (%p11533_p5), %v9370_v0  ;;  %v9376_v31 = vld [vmem:[%s12395_s10 + $0xa8] sm:$0xff] (%p11533_p5) }
 0x5c1   : > { %v9043_v59 = vmax.f32 %v8962_v9, %v9011_v45  ;;  %v9013_v39 = vmul.f32 0.2, %v8966_v22  ;;  %v8968_v21 = vpop.f32.mrb[87].mxu1  ;;  %9373 = vst [vmem:[%s14787_s13 + $0x118] sm:$0xff] (%p11533_p5), %v9372_v1  ;;  %9375 = vst [vmem:[%s14787_s13 + $0x120] sm:$0xff] (%p11533_p5), %v9374_v10  ;;  %v9378_v9 = vld [vmem:[%s12395_s10 + $0xb0] sm:$0xff] (%p11533_p5) }
 0x5c2   : > { %v9044_v41 = vmax.f32 %v8964_v44, %v9012_v30  ;;  %v9014_v58 = vmul.f32 0.2, %v8968_v21  ;;  %v9380_v45 = vld [vmem:[%s12395_s10 + $0xb8] sm:$0xff] (%p11533_p5)  ;;  %9377 = vst [vmem:[%s14787_s13 + $0x128] sm:$0xff] (%p11533_p5), %v9376_v31  ;;  %9379 = vst [vmem:[%s14787_s13 + $0x130] sm:$0xff] (%p11533_p5), %v9378_v9  ;;  %v9382_v44 = vld [vmem:[%s12395_s10 + $0xc0] sm:$0xff] (%p11533_p5) }
 0x5c3   : > { %v9045_v15 = vmax.f32 %v8966_v22, %v9013_v39  ;;  %9381 = vst [vmem:[%s14787_s13 + $0x138] sm:$0xff] (%p11533_p5), %v9380_v45  ;;  %v9384_v30 = vld [vmem:[%s12395_s10 + $0xc8] sm:$0xff] (%p11533_p5)  ;;  %v9386_v22 = vld [vmem:[%s12395_s10 + $0xd0] sm:$0xff] (%p11533_p5)  ;;  %9383 = vst [vmem:[%s14787_s13 + $0x140] sm:$0xff] (%p11533_p5), %v9382_v44 }
 0x5c4   : > { %v10417_v4 = vpack.c.bf16 %v9044_v41, %v9043_v59  ;;  %v9046_v49 = vmax.f32 %v8968_v21, %v9014_v58  ;;  %9385 = vst [vmem:[%s14787_s13 + $0x148] sm:$0xff] (%p11533_p5), %v9384_v30  ;;  %9387 = vst [vmem:[%s14787_s13 + $0x150] sm:$0xff] (%p11533_p5), %v9386_v22  ;;  %v9388_v59 = vld [vmem:[%s12395_s10 + $0xd8] sm:$0xff] (%p11533_p5)  ;;  %v9390_v39 = vld [vmem:[%s12395_s10 + $0xe0] sm:$0xff] (%p11533_p5) }
 0x5c5   : > { %v9392_v21 = vld [vmem:[%s12395_s10 + $0xe8] sm:$0xff] (%p11533_p5)  ;;  %9389 = vst [vmem:[%s14787_s13 + $0x158] sm:$0xff] (%p11533_p5), %v9388_v59  ;;  %9391 = vst [vmem:[%s14787_s13 + $0x160] sm:$0xff] (%p11533_p5), %v9390_v39  ;;  %v9394_v41 = vld [vmem:[%s12395_s10 + $0xf0] sm:$0xff] (%p11533_p5) }
 0x5c6   : > { %10346 = vst [vmem:[%s12395_s10 + $0x1d0] sm:$0xff] %v10417_v4  ;;  %v10418_v43 = vpack.c.bf16 %v9046_v49, %v9045_v15  ;;  %v8972_v25 = vpop.f32.mrb[88].mxu1  ;;  %9393 = vst [vmem:[%s14787_s13 + $0x168] sm:$0xff] (%p11533_p5), %v9392_v21  ;;  %v9396_v58 = vld [vmem:[%s12395_s10 + $0xf8] sm:$0xff] (%p11533_p5)  ;;  %v9398_v15 = vld [vmem:[%s12395_s10 + $0x100] sm:$0xff] (%p11533_p5) }
 0x5c7   : > { %v9015_v56 = vmul.f32 0.2, %v8972_v25  ;;  %v8974_v55 = vpop.f32.mrb[89].mxu1  ;;  %9395 = vst [vmem:[%s14787_s13 + $0x170] sm:$0xff] (%p11533_p5), %v9394_v41  ;;  %9397 = vst [vmem:[%s14787_s13 + $0x178] sm:$0xff] (%p11533_p5), %v9396_v58  ;;  %v9400_v4 = vld [vmem:[%s12395_s10 + $0x108] sm:$0xff] (%p11533_p5) }
 0x5c8   : > { %10347 = vst [vmem:[%s12395_s10 + $0x1d8] sm:$0xff] %v10418_v43  ;;  %v9016_v46 = vmul.f32 0.2, %v8974_v55  ;;  %v8976_v29 = vpop.f32.mrb[90].mxu1  ;;  %9399 = vst [vmem:[%s14787_s13 + $0x200] sm:$0xff] (%p11533_p5), %v9398_v15  ;;  %v9402_v49 = vld [vmem:[%s12395_s10 + $0x110] sm:$0xff] (%p11533_p5) }
 0x5c9   : > { %v9047_v51 = vmax.f32 %v8972_v25, %v9015_v56  ;;  %v9017_v6 = vmul.f32 0.2, %v8976_v29  ;;  %v8978_v35 = vpop.f32.mrb[91].mxu1  ;;  %v9404_v43 = vld [vmem:[%s12395_s10 + $0x118] sm:$0xff] (%p11533_p5)  ;;  %9401 = vst [vmem:[%s14787_s13 + $0x208] sm:$0xff] (%p11533_p5), %v9400_v4  ;;  %9403 = vst [vmem:[%s14787_s13 + $0x210] sm:$0xff] (%p11533_p5), %v9402_v49 }
 0x5ca   : > { %v9048_v5 = vmax.f32 %v8974_v55, %v9016_v46  ;;  %v9018_v19 = vmul.f32 0.2, %v8978_v35  ;;  %9405 = vst [vmem:[%s14787_s13 + $0x218] sm:$0xff] (%p11533_p5), %v9404_v43  ;;  %v9406_v25 = vld [vmem:[%s12395_s10 + $0x120] sm:$0xff] (%p11533_p5)  ;;  %v9408_v56 = vld [vmem:[%s12395_s10 + $0x128] sm:$0xff] (%p11533_p5)  ;;  %v9410_v55 = vld [vmem:[%s12395_s10 + $0x130] sm:$0xff] (%p11533_p5) }
 0x5cb   : > { %v9049_v53 = vmax.f32 %v8976_v29, %v9017_v6  ;;  %9407 = vst [vmem:[%s14787_s13 + $0x220] sm:$0xff] (%p11533_p5), %v9406_v25  ;;  %9409 = vst [vmem:[%s14787_s13 + $0x228] sm:$0xff] (%p11533_p5), %v9408_v56  ;;  %v9412_v46 = vld [vmem:[%s12395_s10 + $0x138] sm:$0xff] (%p11533_p5)  ;;  %v9414_v29 = vld [vmem:[%s12395_s10 + $0x140] sm:$0xff] (%p11533_p5) }
 0x5cc   : > { %v10419_v7 = vpack.c.bf16 %v9048_v5, %v9047_v51  ;;  %v9050_v60 = vmax.f32 %v8978_v35, %v9018_v19  ;;  %9411 = vst [vmem:[%s14787_s13 + $0x230] sm:$0xff] (%p11533_p5), %v9410_v55  ;;  %v9416_v51 = vld [vmem:[%s12395_s10 + $0x148] sm:$0xff] (%p11533_p5)  ;;  %9413 = vst [vmem:[%s14787_s13 + $0x238] sm:$0xff] (%p11533_p5), %v9412_v46  ;;  %v9418_v6 = vld [vmem:[%s12395_s10 + $0x150] sm:$0xff] (%p11533_p5) }
 0x5cd   : > { %9415 = vst [vmem:[%s14787_s13 + $0x240] sm:$0xff] (%p11533_p5), %v9414_v29  ;;  %9417 = vst [vmem:[%s14787_s13 + $0x248] sm:$0xff] (%p11533_p5), %v9416_v51  ;;  %v9420_v35 = vld [vmem:[%s12395_s10 + $0x158] sm:$0xff] (%p11533_p5)  ;;  %v9422_v5 = vld [vmem:[%s12395_s10 + $0x160] sm:$0xff] (%p11533_p5) }
 0x5ce   : > { %10348 = vst [vmem:[%s12395_s10 + $0x1e0] sm:$0xff] %v10419_v7  ;;  %v10420_v28 = vpack.c.bf16 %v9050_v60, %v9049_v53  ;;  %v8982_v54 = vpop.f32.mrb[92].mxu1  ;;  %9419 = vst [vmem:[%s14787_s13 + $0x250] sm:$0xff] (%p11533_p5), %v9418_v6  ;;  %v9424_v19 = vld [vmem:[%s12395_s10 + $0x168] sm:$0xff] (%p11533_p5)  ;;  %v9426_v53 = vld [vmem:[%s12395_s10 + $0x170] sm:$0xff] (%p11533_p5) }
 0x5cf   : > { %v9019_v42 = vmul.f32 0.2, %v8982_v54  ;;  %v8984_v62 = vpop.f32.mrb[93].mxu1  ;;  %9421 = vst [vmem:[%s14787_s13 + $0x258] sm:$0xff] (%p11533_p5), %v9420_v35  ;;  %9423 = vst [vmem:[%s14787_s13 + $0x260] sm:$0xff] (%p11533_p5), %v9422_v5  ;;  %v9428_v7 = vld [vmem:[%s12395_s10 + $0x178] sm:$0xff] (%p11533_p5) }
 0x5d0   : > { %10349 = vst [vmem:[%s12395_s10 + $0x1e8] sm:$0xff] %v10420_v28  ;;  %v9020_v34 = vmul.f32 0.2, %v8984_v62  ;;  %v8986_v23 = vpop.f32.mrb[94].mxu1  ;;  %9425 = vst [vmem:[%s14787_s13 + $0x268] sm:$0xff] (%p11533_p5), %v9424_v19  ;;  %v9430_v60 = vld [vmem:[%s12395_s10 + $0x180] sm:$0xff] (%p11533_p5) }
 0x5d1   : > { %v9051_v61 = vmax.f32 %v8982_v54, %v9019_v42  ;;  %v9021_v14 = vmul.f32 0.2, %v8986_v23  ;;  %v8988_v12 = vpop.f32.mrb[95].mxu1  ;;  %9427 = vst [vmem:[%s14787_s13 + $0x270] sm:$0xff] (%p11533_p5), %v9426_v53  ;;  %9429 = vst [vmem:[%s14787_s13 + $0x278] sm:$0xff] (%p11533_p5), %v9428_v7  ;;  %v9432_v28 = vld [vmem:[%s12395_s10 + $0x188] sm:$0xff] (%p11533_p5) }
 0x5d2   : > { %v9052_v2 = vmax.f32 %v8984_v62, %v9020_v34  ;;  %v9022_v57 = vmul.f32 0.2, %v8988_v12  ;;  %9174 = sbr.rel (!%p11533_p5) target bundleno = 1505 (0x5e1), region = 48  ;;  %v9434_v54 = vld [vmem:[%s12395_s10 + $0x190] sm:$0xff] (%p11533_p5)  ;;  %9431 = vst [vmem:[%s14787_s13 + $0x300] sm:$0xff] (%p11533_p5), %v9430_v60  ;;  %9433 = vst [vmem:[%s14787_s13 + $0x308] sm:$0xff] (%p11533_p5), %v9432_v28 }
 0x5d3   : > { %v9053_v38 = vmax.f32 %v8986_v23, %v9021_v14  ;;  %9435 = vst [vmem:[%s14787_s13 + $0x310] sm:$0xff] (%p11533_p5), %v9434_v54  ;;  %v9436_v42 = vld [vmem:[%s12395_s10 + $0x198] sm:$0xff] (%p11533_p5)  ;;  %v9438_v62 = vld [vmem:[%s12395_s10 + $0x1a0] sm:$0xff] (%p11533_p5)  ;;  %v9440_v34 = vld [vmem:[%s12395_s10 + $0x1a8] sm:$0xff] (%p11533_p5) }
 0x5d4   : > { %v10421_v63 = vpack.c.bf16 %v9052_v2, %v9051_v61  ;;  %v9054_v24 = vmax.f32 %v8988_v12, %v9022_v57  ;;  %9437 = vst [vmem:[%s14787_s13 + $0x318] sm:$0xff] (%p11533_p5), %v9436_v42  ;;  %9439 = vst [vmem:[%s14787_s13 + $0x320] sm:$0xff] (%p11533_p5), %v9438_v62  ;;  %v9442_v23 = vld [vmem:[%s12395_s10 + $0x1b0] sm:$0xff] (%p11533_p5)  ;;  %v9444_v61 = vld [vmem:[%s12395_s10 + $0x1b8] sm:$0xff] (%p11533_p5) }
 0x5d5   : > { %9441 = vst [vmem:[%s14787_s13 + $0x328] sm:$0xff] (%p11533_p5), %v9440_v34  ;;  %v9446_v14 = vld [vmem:[%s12395_s10 + $0x1c0] sm:$0xff] (%p11533_p5)  ;;  %9443 = vst [vmem:[%s14787_s13 + $0x330] sm:$0xff] (%p11533_p5), %v9442_v23  ;;  %v9448_v12 = vld [vmem:[%s12395_s10 + $0x1c8] sm:$0xff] (%p11533_p5) }
 0x5d6   : > { %10350 = vst [vmem:[%s12395_s10 + $0x1f0] sm:$0xff] %v10421_v63  ;;  %v10422_v52 = vpack.c.bf16 %v9054_v24, %v9053_v38  ;;  %9445 = vst [vmem:[%s14787_s13 + $0x338] sm:$0xff] (%p11533_p5), %v9444_v61  ;;  %v9450_v2 = vld [vmem:[%s12395_s10 + $0x1d0] sm:$0xff] (%p11533_p5)  ;;  %v9452_v57 = vld [vmem:[%s12395_s10 + $0x1d8] sm:$0xff] (%p11533_p5) }
 0x5d7   : > { %9447 = vst [vmem:[%s14787_s13 + $0x340] sm:$0xff] (%p11533_p5), %v9446_v14  ;;  %9449 = vst [vmem:[%s14787_s13 + $0x348] sm:$0xff] (%p11533_p5), %v9448_v12  ;;  %v9454_v38 = vld [vmem:[%s12395_s10 + $0x1e0] sm:$0xff] (%p11533_p5)  ;;  %v9456_v63 = vld [vmem:[%s12395_s10 + $0x1e8] sm:$0xff] (%p11533_p5) }
 0x5d8   : > { %10351 = vst [vmem:[%s12395_s10 + $0x1f8] sm:$0xff] %v10422_v52  ;;  %9451 = vst [vmem:[%s14787_s13 + $0x350] sm:$0xff] (%p11533_p5), %v9450_v2 }
 0x5d9   : > { %9453 = vst [vmem:[%s14787_s13 + $0x358] sm:$0xff] %v9452_v57  ;;  %9455 = vst [vmem:[%s14787_s13 + $0x360] sm:$0xff] %v9454_v38 }
 0x5da   : > { %9457 = vst [vmem:[%s14787_s13 + $0x368] sm:$0xff] %v9456_v63 }
 0x5dd   : > { %v9458_v24 = vld [vmem:[%s12395_s10 + $0x1f0] sm:$0xff] }
 0x5de   : > { %9459 = vst [vmem:[%s14787_s13 + $0x370] sm:$0xff] %v9458_v24 }
 0x5df   : > { %v9460_v52 = vld [vmem:[%s12395_s10 + $0x1f8] sm:$0xff] }
 0x5e0   : > { %9461 = vst [vmem:[%s14787_s13 + $0x378] sm:$0xff] %v9460_v52 }
 0x5e1 PF: > { %s14_s21 = sadd.s32 1, %s11455_s21   ;;  %s15220_s15 = smov %s11435_s16 }
 0x5e2   : > { %p11_p12 = scmp.ge.s32.totalorder %s14_s21, 6   ;;  %s15221_s16 = smov %s11544_s30 }
 0x5e3   : > { %s15222_s17 = smov %s11447_s19  ;;  %s15223_s18 = smov %s11451_s20 }
 0x5e4   : > { %s15224_s19 = smov %s15227_s22  ;;  %s15225_s20 = smov %s15231_s23 }
 0x5e5   :  { %13 = sbr.rel (!%p11_p12) target bundleno = 4 (0x4), region = 117 }

</bundles_post_ra>
